<compile_context>
chip_gen: v5e
topology: v5e:2x2
jax: 0.10.0
libtpu: 0.0.40
codegen_flags: <defaults>
</compile_context>

<pallas_src>
import jax
import jax.numpy as jnp
from jax import lax
from jax.experimental import pallas as pl
from jax.experimental.pallas import tpu as pltpu
import numpy as np

KH = KW = 3
CIN = 3
COUT = 3
EPS = 1e-5

# Static offsets into the flat parameter buffer (f32[180] in SMEM).
W1_OFF = 0                       # 81
B1_OFF = W1_OFF + COUT * CIN * KH * KW   # 81
G1_OFF = B1_OFF + COUT                   # 84
BT1_OFF = G1_OFF + COUT                  # 87
W2_OFF = BT1_OFF + COUT                  # 90
B2_OFF = W2_OFF + COUT * COUT * KH * KW  # 171
G2_OFF = B2_OFF + COUT                   # 174
BT2_OFF = G2_OFF + COUT                  # 177
NPARAMS = BT2_OFF + COUT                 # 180


def _simple_model_kernel(x_ref, p_ref, o_ref):
    # x_ref: VMEM (N, CIN, H, W) f32.  p_ref: SMEM flat f32[180] (all weights,
    # biases, gammas, betas); scalar reads go through the scalar unit.
    x = x_ref[...].astype(jnp.float32)
    n, cin, _, _ = x.shape

    # Single channel representation end-to-end: a Python list of per-channel
    # (N, H, W) slabs.  No stack/unstack relayout between stages.
    chans = [x[:, ci] for ci in range(cin)]

    def conv3x3(chans_in, w_off, b_off):
        # Valid 3x3 convolution, stride 1, pure VPU (no MXU at Cin=Cout=3).
        c_in = len(chans_in)
        n_, hi, wi = chans_in[0].shape
        ho, wo = hi - (KH - 1), wi - (KW - 1)
        # Hoisted shifted-slice taps: each (ci, kh, kw) slice computed once
        # and reused for every output channel (slices with lane offsets are
        # relayout work, not free views).
        taps = [[[c[:, kh:kh + ho, kw:kw + wo] for kw in range(KW)]
                 for kh in range(KH)] for c in chans_in]
        outs = []
        for co in range(COUT):
            # Bias broadcast hoisted out of the accumulation chain.
            acc = jnp.full((n_, ho, wo), p_ref[b_off + co], jnp.float32)
            for ci in range(c_in):
                for kh in range(KH):
                    for kw in range(KW):
                        widx = w_off + ((co * c_in + ci) * KH + kh) * KW + kw
                        acc = acc + taps[ci][kh][kw] * p_ref[widx]
            outs.append(acc)
        return outs

    def batchnorm_train(chans_in, g_off, bt_off):
        # Training-mode BatchNorm2d: biased batch variance over (N, H, W),
        # single-pass stats, folded to one scale*x + shift FMA per element.
        n_, hh, ww = chans_in[0].shape
        inv_cnt = 1.0 / float(n_ * hh * ww)
        outs = []
        for ci, xc in enumerate(chans_in):
            s1 = jnp.sum(xc)
            s2 = jnp.sum(xc * xc)
            mean = s1 * inv_cnt
            var = s2 * inv_cnt - mean * mean            # biased variance
            scale = p_ref[g_off + ci] * lax.rsqrt(var + EPS)   # EUP slot
            shift = p_ref[bt_off + ci] - mean * scale
            outs.append(xc * scale + shift)
        return outs

    y = conv3x3(chans, W1_OFF, B1_OFF)          # self.conv
    y = [jnp.maximum(c, 0.0) for c in y]        # self.relu1 (ReLU)
    y = batchnorm_train(y, G1_OFF, BT1_OFF)     # self.bn
    y = [jnp.clip(c, 0.0, 6.0) for c in y]      # self.relu2 (ReLU6)
    y = conv3x3(y, W2_OFF, B2_OFF)              # seq[0] Conv2d
    y = [jnp.clip(c, 0.0, 6.0) for c in y]      # seq[1] ReLU6
    y = batchnorm_train(y, G2_OFF, BT2_OFF)     # seq[2] BatchNorm2d

    # Single assembly + single whole-tensor store (v5e: one vst slot).
    o_ref[...] = jnp.stack(y, axis=1).astype(o_ref.dtype)


def simple_model_forward(x, w1, b1, g1, bt1, w2, b2, g2, bt2):
    N, C, H, W = x.shape
    Ho, Wo = H - 2 * (KH - 1), W - 2 * (KW - 1)   # two valid 3x3 convs
    params = jnp.concatenate([
        w1.reshape(-1).astype(jnp.float32), b1.astype(jnp.float32),
        g1.astype(jnp.float32), bt1.astype(jnp.float32),
        w2.reshape(-1).astype(jnp.float32), b2.astype(jnp.float32),
        g2.astype(jnp.float32), bt2.astype(jnp.float32)])
    assert params.shape == (NPARAMS,)
    vmem = pl.BlockSpec(memory_space=pltpu.MemorySpace.VMEM)
    smem = pl.BlockSpec(memory_space=pltpu.MemorySpace.SMEM)
    # Gridless single block on purpose: the whole problem (~6 KiB in, ~3.4 KiB
    # out) fits in a fraction of one VMEM tile, BN needs global (N,H,W)
    # statistics, and per-grid-step overhead would exceed the compute.
    return pl.pallas_call(
        _simple_model_kernel,
        out_shape=jax.ShapeDtypeStruct((N, COUT, Ho, Wo), jnp.float32),
        in_specs=[vmem, smem],
        out_specs=vmem,
        cost_estimate=pl.CostEstimate(flops=220_000, transcendentals=6,
                                      bytes_accessed=10_000),
    )(x, params)


def reference_forward(x, w1, b1, g1, bt1, w2, b2, g2, bt2):
    dn = ('NCHW', 'OIHW', 'NCHW')

    def conv(inp, w, b):
        y = lax.conv_general_dilated(inp, w, (1, 1), 'VALID',
                                     dimension_numbers=dn,
                                     precision=lax.Precision.HIGHEST)
        return y + b[None, :, None, None]

    def bn(inp, g, bt):
        mean = jnp.mean(inp, axis=(0, 2, 3), keepdims=True)
        var = jnp.mean((inp - mean) ** 2, axis=(0, 2, 3), keepdims=True)
        return (inp - mean) * lax.rsqrt(var + EPS) * g[None, :, None, None] \
            + bt[None, :, None, None]

    y = jnp.maximum(conv(x, w1, b1), 0.0)
    y = jnp.clip(bn(y, g1, bt1), 0.0, 6.0)
    y = jnp.clip(conv(y, w2, b2), 0.0, 6.0)
    return bn(y, g2, bt2)


if __name__ == "__main__":
    key = jax.random.PRNGKey(0)
    kx, kw1, kb1, kw2, kb2 = jax.random.split(key, 5)

    N, C, H, W = 2, 3, 16, 16
    x = jax.random.normal(kx, (N, C, H, W), dtype=jnp.float32)

    # Deterministic param init (PyTorch-like uniform(-1/sqrt(fan_in), 1/sqrt(fan_in)))
    fan_in = C * KH * KW
    bound = 1.0 / np.sqrt(fan_in)
    w1 = jax.random.uniform(kw1, (COUT, CIN, KH, KW), jnp.float32, -bound, bound)
    b1 = jax.random.uniform(kb1, (COUT,), jnp.float32, -bound, bound)
    w2 = jax.random.uniform(kw2, (COUT, COUT, KH, KW), jnp.float32, -bound, bound)
    b2 = jax.random.uniform(kb2, (COUT,), jnp.float32, -bound, bound)
    # BatchNorm2d default affine init: gamma=1, beta=0
    g1 = jnp.ones((COUT,), jnp.float32)
    bt1 = jnp.zeros((COUT,), jnp.float32)
    g2 = jnp.ones((COUT,), jnp.float32)
    bt2 = jnp.zeros((COUT,), jnp.float32)

    out = simple_model_forward(x, w1, b1, g1, bt1, w2, b2, g2, bt2)
    out = jax.block_until_ready(out)

    ref = reference_forward(x, w1, b1, g1, bt1, w2, b2, g2, bt2)
    ref = jax.block_until_ready(ref)

    assert out.shape == (N, COUT, H - 4, W - 4), out.shape
    np.testing.assert_allclose(np.asarray(out), np.asarray(ref),
                               rtol=2e-4, atol=2e-4)
    print("KERNEL_OK")
</pallas_src>

<mosaic_0001>
module attributes {stable_mosaic.version = 11 : i64} {
  func.func @_simple_model_kernel(%arg0: memref<2x3x16x16xf32, #tpu.memory_space<vmem>>, %arg1: memref<180xf32, #tpu.memory_space<smem>>, %arg2: memref<2x3x12x12xf32, #tpu.memory_space<vmem>>) attributes {dimension_semantics = [], scalar_prefetch = 0 : i64, scratch_operands = 0 : i64, tpu.core_type = #tpu.core_type<tc>} {
    %c0 = arith.constant 0 : index
    %c0_0 = arith.constant 0 : index
    %c0_1 = arith.constant 0 : index
    %c0_2 = arith.constant 0 : index
    %0 = vector.load %arg0[%c0, %c0_0, %c0_1, %c0_2] : memref<2x3x16x16xf32, #tpu.memory_space<vmem>>, vector<2x3x16x16xf32>
    %1 = vector.extract_strided_slice %0 {offsets = [0, 0, 0, 0], sizes = [2, 1, 16, 16], strides = [1, 1, 1, 1]} : vector<2x3x16x16xf32> to vector<2x1x16x16xf32>
    %2 = vector.shape_cast %1 : vector<2x1x16x16xf32> to vector<2x16x16xf32>
    %3 = vector.extract_strided_slice %0 {offsets = [0, 1, 0, 0], sizes = [2, 1, 16, 16], strides = [1, 1, 1, 1]} : vector<2x3x16x16xf32> to vector<2x1x16x16xf32>
    %4 = vector.shape_cast %3 : vector<2x1x16x16xf32> to vector<2x16x16xf32>
    %5 = vector.extract_strided_slice %0 {offsets = [0, 2, 0, 0], sizes = [2, 1, 16, 16], strides = [1, 1, 1, 1]} : vector<2x3x16x16xf32> to vector<2x1x16x16xf32>
    %6 = vector.shape_cast %5 : vector<2x1x16x16xf32> to vector<2x16x16xf32>
    %7 = vector.extract_strided_slice %2 {offsets = [0, 0, 0], sizes = [2, 14, 14], strides = [1, 1, 1]} : vector<2x16x16xf32> to vector<2x14x14xf32>
    %8 = vector.extract_strided_slice %2 {offsets = [0, 0, 1], sizes = [2, 14, 14], strides = [1, 1, 1]} : vector<2x16x16xf32> to vector<2x14x14xf32>
    %9 = vector.extract_strided_slice %2 {offsets = [0, 0, 2], sizes = [2, 14, 14], strides = [1, 1, 1]} : vector<2x16x16xf32> to vector<2x14x14xf32>
    %10 = vector.extract_strided_slice %2 {offsets = [0, 1, 0], sizes = [2, 14, 14], strides = [1, 1, 1]} : vector<2x16x16xf32> to vector<2x14x14xf32>
    %11 = vector.extract_strided_slice %2 {offsets = [0, 1, 1], sizes = [2, 14, 14], strides = [1, 1, 1]} : vector<2x16x16xf32> to vector<2x14x14xf32>
    %12 = vector.extract_strided_slice %2 {offsets = [0, 1, 2], sizes = [2, 14, 14], strides = [1, 1, 1]} : vector<2x16x16xf32> to vector<2x14x14xf32>
    %13 = vector.extract_strided_slice %2 {offsets = [0, 2, 0], sizes = [2, 14, 14], strides = [1, 1, 1]} : vector<2x16x16xf32> to vector<2x14x14xf32>
    %14 = vector.extract_strided_slice %2 {offsets = [0, 2, 1], sizes = [2, 14, 14], strides = [1, 1, 1]} : vector<2x16x16xf32> to vector<2x14x14xf32>
    %15 = vector.extract_strided_slice %2 {offsets = [0, 2, 2], sizes = [2, 14, 14], strides = [1, 1, 1]} : vector<2x16x16xf32> to vector<2x14x14xf32>
    %16 = vector.extract_strided_slice %4 {offsets = [0, 0, 0], sizes = [2, 14, 14], strides = [1, 1, 1]} : vector<2x16x16xf32> to vector<2x14x14xf32>
    %17 = vector.extract_strided_slice %4 {offsets = [0, 0, 1], sizes = [2, 14, 14], strides = [1, 1, 1]} : vector<2x16x16xf32> to vector<2x14x14xf32>
    %18 = vector.extract_strided_slice %4 {offsets = [0, 0, 2], sizes = [2, 14, 14], strides = [1, 1, 1]} : vector<2x16x16xf32> to vector<2x14x14xf32>
    %19 = vector.extract_strided_slice %4 {offsets = [0, 1, 0], sizes = [2, 14, 14], strides = [1, 1, 1]} : vector<2x16x16xf32> to vector<2x14x14xf32>
    %20 = vector.extract_strided_slice %4 {offsets = [0, 1, 1], sizes = [2, 14, 14], strides = [1, 1, 1]} : vector<2x16x16xf32> to vector<2x14x14xf32>
    %21 = vector.extract_strided_slice %4 {offsets = [0, 1, 2], sizes = [2, 14, 14], strides = [1, 1, 1]} : vector<2x16x16xf32> to vector<2x14x14xf32>
    %22 = vector.extract_strided_slice %4 {offsets = [0, 2, 0], sizes = [2, 14, 14], strides = [1, 1, 1]} : vector<2x16x16xf32> to vector<2x14x14xf32>
    %23 = vector.extract_strided_slice %4 {offsets = [0, 2, 1], sizes = [2, 14, 14], strides = [1, 1, 1]} : vector<2x16x16xf32> to vector<2x14x14xf32>
    %24 = vector.extract_strided_slice %4 {offsets = [0, 2, 2], sizes = [2, 14, 14], strides = [1, 1, 1]} : vector<2x16x16xf32> to vector<2x14x14xf32>
    %25 = vector.extract_strided_slice %6 {offsets = [0, 0, 0], sizes = [2, 14, 14], strides = [1, 1, 1]} : vector<2x16x16xf32> to vector<2x14x14xf32>
    %26 = vector.extract_strided_slice %6 {offsets = [0, 0, 1], sizes = [2, 14, 14], strides = [1, 1, 1]} : vector<2x16x16xf32> to vector<2x14x14xf32>
    %27 = vector.extract_strided_slice %6 {offsets = [0, 0, 2], sizes = [2, 14, 14], strides = [1, 1, 1]} : vector<2x16x16xf32> to vector<2x14x14xf32>
    %28 = vector.extract_strided_slice %6 {offsets = [0, 1, 0], sizes = [2, 14, 14], strides = [1, 1, 1]} : vector<2x16x16xf32> to vector<2x14x14xf32>
    %29 = vector.extract_strided_slice %6 {offsets = [0, 1, 1], sizes = [2, 14, 14], strides = [1, 1, 1]} : vector<2x16x16xf32> to vector<2x14x14xf32>
    %30 = vector.extract_strided_slice %6 {offsets = [0, 1, 2], sizes = [2, 14, 14], strides = [1, 1, 1]} : vector<2x16x16xf32> to vector<2x14x14xf32>
    %31 = vector.extract_strided_slice %6 {offsets = [0, 2, 0], sizes = [2, 14, 14], strides = [1, 1, 1]} : vector<2x16x16xf32> to vector<2x14x14xf32>
    %32 = vector.extract_strided_slice %6 {offsets = [0, 2, 1], sizes = [2, 14, 14], strides = [1, 1, 1]} : vector<2x16x16xf32> to vector<2x14x14xf32>
    %33 = vector.extract_strided_slice %6 {offsets = [0, 2, 2], sizes = [2, 14, 14], strides = [1, 1, 1]} : vector<2x16x16xf32> to vector<2x14x14xf32>
    %c81 = arith.constant 81 : index
    %34 = memref.load %arg1[%c81] : memref<180xf32, #tpu.memory_space<smem>>
    %35 = vector.broadcast %34 : f32 to vector<2x14x14xf32>
    %c0_3 = arith.constant 0 : index
    %36 = memref.load %arg1[%c0_3] : memref<180xf32, #tpu.memory_space<smem>>
    %37 = vector.broadcast %36 : f32 to vector<2x14x14xf32>
    %38 = arith.mulf %7, %37 : vector<2x14x14xf32>
    %39 = arith.addf %35, %38 : vector<2x14x14xf32>
    %c1 = arith.constant 1 : index
    %40 = memref.load %arg1[%c1] : memref<180xf32, #tpu.memory_space<smem>>
    %41 = vector.broadcast %40 : f32 to vector<2x14x14xf32>
    %42 = arith.mulf %8, %41 : vector<2x14x14xf32>
    %43 = arith.addf %39, %42 : vector<2x14x14xf32>
    %c2 = arith.constant 2 : index
    %44 = memref.load %arg1[%c2] : memref<180xf32, #tpu.memory_space<smem>>
    %45 = vector.broadcast %44 : f32 to vector<2x14x14xf32>
    %46 = arith.mulf %9, %45 : vector<2x14x14xf32>
    %47 = arith.addf %43, %46 : vector<2x14x14xf32>
    %c3 = arith.constant 3 : index
    %48 = memref.load %arg1[%c3] : memref<180xf32, #tpu.memory_space<smem>>
    %49 = vector.broadcast %48 : f32 to vector<2x14x14xf32>
    %50 = arith.mulf %10, %49 : vector<2x14x14xf32>
    %51 = arith.addf %47, %50 : vector<2x14x14xf32>
    %c4 = arith.constant 4 : index
    %52 = memref.load %arg1[%c4] : memref<180xf32, #tpu.memory_space<smem>>
    %53 = vector.broadcast %52 : f32 to vector<2x14x14xf32>
    %54 = arith.mulf %11, %53 : vector<2x14x14xf32>
    %55 = arith.addf %51, %54 : vector<2x14x14xf32>
    %c5 = arith.constant 5 : index
    %56 = memref.load %arg1[%c5] : memref<180xf32, #tpu.memory_space<smem>>
    %57 = vector.broadcast %56 : f32 to vector<2x14x14xf32>
    %58 = arith.mulf %12, %57 : vector<2x14x14xf32>
    %59 = arith.addf %55, %58 : vector<2x14x14xf32>
    %c6 = arith.constant 6 : index
    %60 = memref.load %arg1[%c6] : memref<180xf32, #tpu.memory_space<smem>>
    %61 = vector.broadcast %60 : f32 to vector<2x14x14xf32>
    %62 = arith.mulf %13, %61 : vector<2x14x14xf32>
    %63 = arith.addf %59, %62 : vector<2x14x14xf32>
    %c7 = arith.constant 7 : index
    %64 = memref.load %arg1[%c7] : memref<180xf32, #tpu.memory_space<smem>>
    %65 = vector.broadcast %64 : f32 to vector<2x14x14xf32>
    %66 = arith.mulf %14, %65 : vector<2x14x14xf32>
    %67 = arith.addf %63, %66 : vector<2x14x14xf32>
    %c8 = arith.constant 8 : index
    %68 = memref.load %arg1[%c8] : memref<180xf32, #tpu.memory_space<smem>>
    %69 = vector.broadcast %68 : f32 to vector<2x14x14xf32>
    %70 = arith.mulf %15, %69 : vector<2x14x14xf32>
    %71 = arith.addf %67, %70 : vector<2x14x14xf32>
    %c9 = arith.constant 9 : index
    %72 = memref.load %arg1[%c9] : memref<180xf32, #tpu.memory_space<smem>>
    %73 = vector.broadcast %72 : f32 to vector<2x14x14xf32>
    %74 = arith.mulf %16, %73 : vector<2x14x14xf32>
    %75 = arith.addf %71, %74 : vector<2x14x14xf32>
    %c10 = arith.constant 10 : index
    %76 = memref.load %arg1[%c10] : memref<180xf32, #tpu.memory_space<smem>>
    %77 = vector.broadcast %76 : f32 to vector<2x14x14xf32>
    %78 = arith.mulf %17, %77 : vector<2x14x14xf32>
    %79 = arith.addf %75, %78 : vector<2x14x14xf32>
    %c11 = arith.constant 11 : index
    %80 = memref.load %arg1[%c11] : memref<180xf32, #tpu.memory_space<smem>>
    %81 = vector.broadcast %80 : f32 to vector<2x14x14xf32>
    %82 = arith.mulf %18, %81 : vector<2x14x14xf32>
    %83 = arith.addf %79, %82 : vector<2x14x14xf32>
    %c12 = arith.constant 12 : index
    %84 = memref.load %arg1[%c12] : memref<180xf32, #tpu.memory_space<smem>>
    %85 = vector.broadcast %84 : f32 to vector<2x14x14xf32>
    %86 = arith.mulf %19, %85 : vector<2x14x14xf32>
    %87 = arith.addf %83, %86 : vector<2x14x14xf32>
    %c13 = arith.constant 13 : index
    %88 = memref.load %arg1[%c13] : memref<180xf32, #tpu.memory_space<smem>>
    %89 = vector.broadcast %88 : f32 to vector<2x14x14xf32>
    %90 = arith.mulf %20, %89 : vector<2x14x14xf32>
    %91 = arith.addf %87, %90 : vector<2x14x14xf32>
    %c14 = arith.constant 14 : index
    %92 = memref.load %arg1[%c14] : memref<180xf32, #tpu.memory_space<smem>>
    %93 = vector.broadcast %92 : f32 to vector<2x14x14xf32>
    %94 = arith.mulf %21, %93 : vector<2x14x14xf32>
    %95 = arith.addf %91, %94 : vector<2x14x14xf32>
    %c15 = arith.constant 15 : index
    %96 = memref.load %arg1[%c15] : memref<180xf32, #tpu.memory_space<smem>>
    %97 = vector.broadcast %96 : f32 to vector<2x14x14xf32>
    %98 = arith.mulf %22, %97 : vector<2x14x14xf32>
    %99 = arith.addf %95, %98 : vector<2x14x14xf32>
    %c16 = arith.constant 16 : index
    %100 = memref.load %arg1[%c16] : memref<180xf32, #tpu.memory_space<smem>>
    %101 = vector.broadcast %100 : f32 to vector<2x14x14xf32>
    %102 = arith.mulf %23, %101 : vector<2x14x14xf32>
    %103 = arith.addf %99, %102 : vector<2x14x14xf32>
    %c17 = arith.constant 17 : index
    %104 = memref.load %arg1[%c17] : memref<180xf32, #tpu.memory_space<smem>>
    %105 = vector.broadcast %104 : f32 to vector<2x14x14xf32>
    %106 = arith.mulf %24, %105 : vector<2x14x14xf32>
    %107 = arith.addf %103, %106 : vector<2x14x14xf32>
    %c18 = arith.constant 18 : index
    %108 = memref.load %arg1[%c18] : memref<180xf32, #tpu.memory_space<smem>>
    %109 = vector.broadcast %108 : f32 to vector<2x14x14xf32>
    %110 = arith.mulf %25, %109 : vector<2x14x14xf32>
    %111 = arith.addf %107, %110 : vector<2x14x14xf32>
    %c19 = arith.constant 19 : index
    %112 = memref.load %arg1[%c19] : memref<180xf32, #tpu.memory_space<smem>>
    %113 = vector.broadcast %112 : f32 to vector<2x14x14xf32>
    %114 = arith.mulf %26, %113 : vector<2x14x14xf32>
    %115 = arith.addf %111, %114 : vector<2x14x14xf32>
    %c20 = arith.constant 20 : index
    %116 = memref.load %arg1[%c20] : memref<180xf32, #tpu.memory_space<smem>>
    %117 = vector.broadcast %116 : f32 to vector<2x14x14xf32>
    %118 = arith.mulf %27, %117 : vector<2x14x14xf32>
    %119 = arith.addf %115, %118 : vector<2x14x14xf32>
    %c21 = arith.constant 21 : index
    %120 = memref.load %arg1[%c21] : memref<180xf32, #tpu.memory_space<smem>>
    %121 = vector.broadcast %120 : f32 to vector<2x14x14xf32>
    %122 = arith.mulf %28, %121 : vector<2x14x14xf32>
    %123 = arith.addf %119, %122 : vector<2x14x14xf32>
    %c22 = arith.constant 22 : index
    %124 = memref.load %arg1[%c22] : memref<180xf32, #tpu.memory_space<smem>>
    %125 = vector.broadcast %124 : f32 to vector<2x14x14xf32>
    %126 = arith.mulf %29, %125 : vector<2x14x14xf32>
    %127 = arith.addf %123, %126 : vector<2x14x14xf32>
    %c23 = arith.constant 23 : index
    %128 = memref.load %arg1[%c23] : memref<180xf32, #tpu.memory_space<smem>>
    %129 = vector.broadcast %128 : f32 to vector<2x14x14xf32>
    %130 = arith.mulf %30, %129 : vector<2x14x14xf32>
    %131 = arith.addf %127, %130 : vector<2x14x14xf32>
    %c24 = arith.constant 24 : index
    %132 = memref.load %arg1[%c24] : memref<180xf32, #tpu.memory_space<smem>>
    %133 = vector.broadcast %132 : f32 to vector<2x14x14xf32>
    %134 = arith.mulf %31, %133 : vector<2x14x14xf32>
    %135 = arith.addf %131, %134 : vector<2x14x14xf32>
    %c25 = arith.constant 25 : index
    %136 = memref.load %arg1[%c25] : memref<180xf32, #tpu.memory_space<smem>>
    %137 = vector.broadcast %136 : f32 to vector<2x14x14xf32>
    %138 = arith.mulf %32, %137 : vector<2x14x14xf32>
    %139 = arith.addf %135, %138 : vector<2x14x14xf32>
    %c26 = arith.constant 26 : index
    %140 = memref.load %arg1[%c26] : memref<180xf32, #tpu.memory_space<smem>>
    %141 = vector.broadcast %140 : f32 to vector<2x14x14xf32>
    %142 = arith.mulf %33, %141 : vector<2x14x14xf32>
    %143 = arith.addf %139, %142 : vector<2x14x14xf32>
    %c82 = arith.constant 82 : index
    %144 = memref.load %arg1[%c82] : memref<180xf32, #tpu.memory_space<smem>>
    %145 = vector.broadcast %144 : f32 to vector<2x14x14xf32>
    %c27 = arith.constant 27 : index
    %146 = memref.load %arg1[%c27] : memref<180xf32, #tpu.memory_space<smem>>
    %147 = vector.broadcast %146 : f32 to vector<2x14x14xf32>
    %148 = arith.mulf %7, %147 : vector<2x14x14xf32>
    %149 = arith.addf %145, %148 : vector<2x14x14xf32>
    %c28 = arith.constant 28 : index
    %150 = memref.load %arg1[%c28] : memref<180xf32, #tpu.memory_space<smem>>
    %151 = vector.broadcast %150 : f32 to vector<2x14x14xf32>
    %152 = arith.mulf %8, %151 : vector<2x14x14xf32>
    %153 = arith.addf %149, %152 : vector<2x14x14xf32>
    %c29 = arith.constant 29 : index
    %154 = memref.load %arg1[%c29] : memref<180xf32, #tpu.memory_space<smem>>
    %155 = vector.broadcast %154 : f32 to vector<2x14x14xf32>
    %156 = arith.mulf %9, %155 : vector<2x14x14xf32>
    %157 = arith.addf %153, %156 : vector<2x14x14xf32>
    %c30 = arith.constant 30 : index
    %158 = memref.load %arg1[%c30] : memref<180xf32, #tpu.memory_space<smem>>
    %159 = vector.broadcast %158 : f32 to vector<2x14x14xf32>
    %160 = arith.mulf %10, %159 : vector<2x14x14xf32>
    %161 = arith.addf %157, %160 : vector<2x14x14xf32>
    %c31 = arith.constant 31 : index
    %162 = memref.load %arg1[%c31] : memref<180xf32, #tpu.memory_space<smem>>
    %163 = vector.broadcast %162 : f32 to vector<2x14x14xf32>
    %164 = arith.mulf %11, %163 : vector<2x14x14xf32>
    %165 = arith.addf %161, %164 : vector<2x14x14xf32>
    %c32 = arith.constant 32 : index
    %166 = memref.load %arg1[%c32] : memref<180xf32, #tpu.memory_space<smem>>
    %167 = vector.broadcast %166 : f32 to vector<2x14x14xf32>
    %168 = arith.mulf %12, %167 : vector<2x14x14xf32>
    %169 = arith.addf %165, %168 : vector<2x14x14xf32>
    %c33 = arith.constant 33 : index
    %170 = memref.load %arg1[%c33] : memref<180xf32, #tpu.memory_space<smem>>
    %171 = vector.broadcast %170 : f32 to vector<2x14x14xf32>
    %172 = arith.mulf %13, %171 : vector<2x14x14xf32>
    %173 = arith.addf %169, %172 : vector<2x14x14xf32>
    %c34 = arith.constant 34 : index
    %174 = memref.load %arg1[%c34] : memref<180xf32, #tpu.memory_space<smem>>
    %175 = vector.broadcast %174 : f32 to vector<2x14x14xf32>
    %176 = arith.mulf %14, %175 : vector<2x14x14xf32>
    %177 = arith.addf %173, %176 : vector<2x14x14xf32>
    %c35 = arith.constant 35 : index
    %178 = memref.load %arg1[%c35] : memref<180xf32, #tpu.memory_space<smem>>
    %179 = vector.broadcast %178 : f32 to vector<2x14x14xf32>
    %180 = arith.mulf %15, %179 : vector<2x14x14xf32>
    %181 = arith.addf %177, %180 : vector<2x14x14xf32>
    %c36 = arith.constant 36 : index
    %182 = memref.load %arg1[%c36] : memref<180xf32, #tpu.memory_space<smem>>
    %183 = vector.broadcast %182 : f32 to vector<2x14x14xf32>
    %184 = arith.mulf %16, %183 : vector<2x14x14xf32>
    %185 = arith.addf %181, %184 : vector<2x14x14xf32>
    %c37 = arith.constant 37 : index
    %186 = memref.load %arg1[%c37] : memref<180xf32, #tpu.memory_space<smem>>
    %187 = vector.broadcast %186 : f32 to vector<2x14x14xf32>
    %188 = arith.mulf %17, %187 : vector<2x14x14xf32>
    %189 = arith.addf %185, %188 : vector<2x14x14xf32>
    %c38 = arith.constant 38 : index
    %190 = memref.load %arg1[%c38] : memref<180xf32, #tpu.memory_space<smem>>
    %191 = vector.broadcast %190 : f32 to vector<2x14x14xf32>
    %192 = arith.mulf %18, %191 : vector<2x14x14xf32>
    %193 = arith.addf %189, %192 : vector<2x14x14xf32>
    %c39 = arith.constant 39 : index
    %194 = memref.load %arg1[%c39] : memref<180xf32, #tpu.memory_space<smem>>
    %195 = vector.broadcast %194 : f32 to vector<2x14x14xf32>
    %196 = arith.mulf %19, %195 : vector<2x14x14xf32>
    %197 = arith.addf %193, %196 : vector<2x14x14xf32>
    %c40 = arith.constant 40 : index
    %198 = memref.load %arg1[%c40] : memref<180xf32, #tpu.memory_space<smem>>
    %199 = vector.broadcast %198 : f32 to vector<2x14x14xf32>
    %200 = arith.mulf %20, %199 : vector<2x14x14xf32>
    %201 = arith.addf %197, %200 : vector<2x14x14xf32>
    %c41 = arith.constant 41 : index
    %202 = memref.load %arg1[%c41] : memref<180xf32, #tpu.memory_space<smem>>
    %203 = vector.broadcast %202 : f32 to vector<2x14x14xf32>
    %204 = arith.mulf %21, %203 : vector<2x14x14xf32>
    %205 = arith.addf %201, %204 : vector<2x14x14xf32>
    %c42 = arith.constant 42 : index
    %206 = memref.load %arg1[%c42] : memref<180xf32, #tpu.memory_space<smem>>
    %207 = vector.broadcast %206 : f32 to vector<2x14x14xf32>
    %208 = arith.mulf %22, %207 : vector<2x14x14xf32>
    %209 = arith.addf %205, %208 : vector<2x14x14xf32>
    %c43 = arith.constant 43 : index
    %210 = memref.load %arg1[%c43] : memref<180xf32, #tpu.memory_space<smem>>
    %211 = vector.broadcast %210 : f32 to vector<2x14x14xf32>
    %212 = arith.mulf %23, %211 : vector<2x14x14xf32>
    %213 = arith.addf %209, %212 : vector<2x14x14xf32>
    %c44 = arith.constant 44 : index
    %214 = memref.load %arg1[%c44] : memref<180xf32, #tpu.memory_space<smem>>
    %215 = vector.broadcast %214 : f32 to vector<2x14x14xf32>
    %216 = arith.mulf %24, %215 : vector<2x14x14xf32>
    %217 = arith.addf %213, %216 : vector<2x14x14xf32>
    %c45 = arith.constant 45 : index
    %218 = memref.load %arg1[%c45] : memref<180xf32, #tpu.memory_space<smem>>
    %219 = vector.broadcast %218 : f32 to vector<2x14x14xf32>
    %220 = arith.mulf %25, %219 : vector<2x14x14xf32>
    %221 = arith.addf %217, %220 : vector<2x14x14xf32>
    %c46 = arith.constant 46 : index
    %222 = memref.load %arg1[%c46] : memref<180xf32, #tpu.memory_space<smem>>
    %223 = vector.broadcast %222 : f32 to vector<2x14x14xf32>
    %224 = arith.mulf %26, %223 : vector<2x14x14xf32>
    %225 = arith.addf %221, %224 : vector<2x14x14xf32>
    %c47 = arith.constant 47 : index
    %226 = memref.load %arg1[%c47] : memref<180xf32, #tpu.memory_space<smem>>
    %227 = vector.broadcast %226 : f32 to vector<2x14x14xf32>
    %228 = arith.mulf %27, %227 : vector<2x14x14xf32>
    %229 = arith.addf %225, %228 : vector<2x14x14xf32>
    %c48 = arith.constant 48 : index
    %230 = memref.load %arg1[%c48] : memref<180xf32, #tpu.memory_space<smem>>
    %231 = vector.broadcast %230 : f32 to vector<2x14x14xf32>
    %232 = arith.mulf %28, %231 : vector<2x14x14xf32>
    %233 = arith.addf %229, %232 : vector<2x14x14xf32>
    %c49 = arith.constant 49 : index
    %234 = memref.load %arg1[%c49] : memref<180xf32, #tpu.memory_space<smem>>
    %235 = vector.broadcast %234 : f32 to vector<2x14x14xf32>
    %236 = arith.mulf %29, %235 : vector<2x14x14xf32>
    %237 = arith.addf %233, %236 : vector<2x14x14xf32>
    %c50 = arith.constant 50 : index
    %238 = memref.load %arg1[%c50] : memref<180xf32, #tpu.memory_space<smem>>
    %239 = vector.broadcast %238 : f32 to vector<2x14x14xf32>
    %240 = arith.mulf %30, %239 : vector<2x14x14xf32>
    %241 = arith.addf %237, %240 : vector<2x14x14xf32>
    %c51 = arith.constant 51 : index
    %242 = memref.load %arg1[%c51] : memref<180xf32, #tpu.memory_space<smem>>
    %243 = vector.broadcast %242 : f32 to vector<2x14x14xf32>
    %244 = arith.mulf %31, %243 : vector<2x14x14xf32>
    %245 = arith.addf %241, %244 : vector<2x14x14xf32>
    %c52 = arith.constant 52 : index
    %246 = memref.load %arg1[%c52] : memref<180xf32, #tpu.memory_space<smem>>
    %247 = vector.broadcast %246 : f32 to vector<2x14x14xf32>
    %248 = arith.mulf %32, %247 : vector<2x14x14xf32>
    %249 = arith.addf %245, %248 : vector<2x14x14xf32>
    %c53 = arith.constant 53 : index
    %250 = memref.load %arg1[%c53] : memref<180xf32, #tpu.memory_space<smem>>
    %251 = vector.broadcast %250 : f32 to vector<2x14x14xf32>
    %252 = arith.mulf %33, %251 : vector<2x14x14xf32>
    %253 = arith.addf %249, %252 : vector<2x14x14xf32>
    %c83 = arith.constant 83 : index
    %254 = memref.load %arg1[%c83] : memref<180xf32, #tpu.memory_space<smem>>
    %255 = vector.broadcast %254 : f32 to vector<2x14x14xf32>
    %c54 = arith.constant 54 : index
    %256 = memref.load %arg1[%c54] : memref<180xf32, #tpu.memory_space<smem>>
    %257 = vector.broadcast %256 : f32 to vector<2x14x14xf32>
    %258 = arith.mulf %7, %257 : vector<2x14x14xf32>
    %259 = arith.addf %255, %258 : vector<2x14x14xf32>
    %c55 = arith.constant 55 : index
    %260 = memref.load %arg1[%c55] : memref<180xf32, #tpu.memory_space<smem>>
    %261 = vector.broadcast %260 : f32 to vector<2x14x14xf32>
    %262 = arith.mulf %8, %261 : vector<2x14x14xf32>
    %263 = arith.addf %259, %262 : vector<2x14x14xf32>
    %c56 = arith.constant 56 : index
    %264 = memref.load %arg1[%c56] : memref<180xf32, #tpu.memory_space<smem>>
    %265 = vector.broadcast %264 : f32 to vector<2x14x14xf32>
    %266 = arith.mulf %9, %265 : vector<2x14x14xf32>
    %267 = arith.addf %263, %266 : vector<2x14x14xf32>
    %c57 = arith.constant 57 : index
    %268 = memref.load %arg1[%c57] : memref<180xf32, #tpu.memory_space<smem>>
    %269 = vector.broadcast %268 : f32 to vector<2x14x14xf32>
    %270 = arith.mulf %10, %269 : vector<2x14x14xf32>
    %271 = arith.addf %267, %270 : vector<2x14x14xf32>
    %c58 = arith.constant 58 : index
    %272 = memref.load %arg1[%c58] : memref<180xf32, #tpu.memory_space<smem>>
    %273 = vector.broadcast %272 : f32 to vector<2x14x14xf32>
    %274 = arith.mulf %11, %273 : vector<2x14x14xf32>
    %275 = arith.addf %271, %274 : vector<2x14x14xf32>
    %c59 = arith.constant 59 : index
    %276 = memref.load %arg1[%c59] : memref<180xf32, #tpu.memory_space<smem>>
    %277 = vector.broadcast %276 : f32 to vector<2x14x14xf32>
    %278 = arith.mulf %12, %277 : vector<2x14x14xf32>
    %279 = arith.addf %275, %278 : vector<2x14x14xf32>
    %c60 = arith.constant 60 : index
    %280 = memref.load %arg1[%c60] : memref<180xf32, #tpu.memory_space<smem>>
    %281 = vector.broadcast %280 : f32 to vector<2x14x14xf32>
    %282 = arith.mulf %13, %281 : vector<2x14x14xf32>
    %283 = arith.addf %279, %282 : vector<2x14x14xf32>
    %c61 = arith.constant 61 : index
    %284 = memref.load %arg1[%c61] : memref<180xf32, #tpu.memory_space<smem>>
    %285 = vector.broadcast %284 : f32 to vector<2x14x14xf32>
    %286 = arith.mulf %14, %285 : vector<2x14x14xf32>
    %287 = arith.addf %283, %286 : vector<2x14x14xf32>
    %c62 = arith.constant 62 : index
    %288 = memref.load %arg1[%c62] : memref<180xf32, #tpu.memory_space<smem>>
    %289 = vector.broadcast %288 : f32 to vector<2x14x14xf32>
    %290 = arith.mulf %15, %289 : vector<2x14x14xf32>
    %291 = arith.addf %287, %290 : vector<2x14x14xf32>
    %c63 = arith.constant 63 : index
    %292 = memref.load %arg1[%c63] : memref<180xf32, #tpu.memory_space<smem>>
    %293 = vector.broadcast %292 : f32 to vector<2x14x14xf32>
    %294 = arith.mulf %16, %293 : vector<2x14x14xf32>
    %295 = arith.addf %291, %294 : vector<2x14x14xf32>
    %c64 = arith.constant 64 : index
    %296 = memref.load %arg1[%c64] : memref<180xf32, #tpu.memory_space<smem>>
    %297 = vector.broadcast %296 : f32 to vector<2x14x14xf32>
    %298 = arith.mulf %17, %297 : vector<2x14x14xf32>
    %299 = arith.addf %295, %298 : vector<2x14x14xf32>
    %c65 = arith.constant 65 : index
    %300 = memref.load %arg1[%c65] : memref<180xf32, #tpu.memory_space<smem>>
    %301 = vector.broadcast %300 : f32 to vector<2x14x14xf32>
    %302 = arith.mulf %18, %301 : vector<2x14x14xf32>
    %303 = arith.addf %299, %302 : vector<2x14x14xf32>
    %c66 = arith.constant 66 : index
    %304 = memref.load %arg1[%c66] : memref<180xf32, #tpu.memory_space<smem>>
    %305 = vector.broadcast %304 : f32 to vector<2x14x14xf32>
    %306 = arith.mulf %19, %305 : vector<2x14x14xf32>
    %307 = arith.addf %303, %306 : vector<2x14x14xf32>
    %c67 = arith.constant 67 : index
    %308 = memref.load %arg1[%c67] : memref<180xf32, #tpu.memory_space<smem>>
    %309 = vector.broadcast %308 : f32 to vector<2x14x14xf32>
    %310 = arith.mulf %20, %309 : vector<2x14x14xf32>
    %311 = arith.addf %307, %310 : vector<2x14x14xf32>
    %c68 = arith.constant 68 : index
    %312 = memref.load %arg1[%c68] : memref<180xf32, #tpu.memory_space<smem>>
    %313 = vector.broadcast %312 : f32 to vector<2x14x14xf32>
    %314 = arith.mulf %21, %313 : vector<2x14x14xf32>
    %315 = arith.addf %311, %314 : vector<2x14x14xf32>
    %c69 = arith.constant 69 : index
    %316 = memref.load %arg1[%c69] : memref<180xf32, #tpu.memory_space<smem>>
    %317 = vector.broadcast %316 : f32 to vector<2x14x14xf32>
    %318 = arith.mulf %22, %317 : vector<2x14x14xf32>
    %319 = arith.addf %315, %318 : vector<2x14x14xf32>
    %c70 = arith.constant 70 : index
    %320 = memref.load %arg1[%c70] : memref<180xf32, #tpu.memory_space<smem>>
    %321 = vector.broadcast %320 : f32 to vector<2x14x14xf32>
    %322 = arith.mulf %23, %321 : vector<2x14x14xf32>
    %323 = arith.addf %319, %322 : vector<2x14x14xf32>
    %c71 = arith.constant 71 : index
    %324 = memref.load %arg1[%c71] : memref<180xf32, #tpu.memory_space<smem>>
    %325 = vector.broadcast %324 : f32 to vector<2x14x14xf32>
    %326 = arith.mulf %24, %325 : vector<2x14x14xf32>
    %327 = arith.addf %323, %326 : vector<2x14x14xf32>
    %c72 = arith.constant 72 : index
    %328 = memref.load %arg1[%c72] : memref<180xf32, #tpu.memory_space<smem>>
    %329 = vector.broadcast %328 : f32 to vector<2x14x14xf32>
    %330 = arith.mulf %25, %329 : vector<2x14x14xf32>
    %331 = arith.addf %327, %330 : vector<2x14x14xf32>
    %c73 = arith.constant 73 : index
    %332 = memref.load %arg1[%c73] : memref<180xf32, #tpu.memory_space<smem>>
    %333 = vector.broadcast %332 : f32 to vector<2x14x14xf32>
    %334 = arith.mulf %26, %333 : vector<2x14x14xf32>
    %335 = arith.addf %331, %334 : vector<2x14x14xf32>
    %c74 = arith.constant 74 : index
    %336 = memref.load %arg1[%c74] : memref<180xf32, #tpu.memory_space<smem>>
    %337 = vector.broadcast %336 : f32 to vector<2x14x14xf32>
    %338 = arith.mulf %27, %337 : vector<2x14x14xf32>
    %339 = arith.addf %335, %338 : vector<2x14x14xf32>
    %c75 = arith.constant 75 : index
    %340 = memref.load %arg1[%c75] : memref<180xf32, #tpu.memory_space<smem>>
    %341 = vector.broadcast %340 : f32 to vector<2x14x14xf32>
    %342 = arith.mulf %28, %341 : vector<2x14x14xf32>
    %343 = arith.addf %339, %342 : vector<2x14x14xf32>
    %c76 = arith.constant 76 : index
    %344 = memref.load %arg1[%c76] : memref<180xf32, #tpu.memory_space<smem>>
    %345 = vector.broadcast %344 : f32 to vector<2x14x14xf32>
    %346 = arith.mulf %29, %345 : vector<2x14x14xf32>
    %347 = arith.addf %343, %346 : vector<2x14x14xf32>
    %c77 = arith.constant 77 : index
    %348 = memref.load %arg1[%c77] : memref<180xf32, #tpu.memory_space<smem>>
    %349 = vector.broadcast %348 : f32 to vector<2x14x14xf32>
    %350 = arith.mulf %30, %349 : vector<2x14x14xf32>
    %351 = arith.addf %347, %350 : vector<2x14x14xf32>
    %c78 = arith.constant 78 : index
    %352 = memref.load %arg1[%c78] : memref<180xf32, #tpu.memory_space<smem>>
    %353 = vector.broadcast %352 : f32 to vector<2x14x14xf32>
    %354 = arith.mulf %31, %353 : vector<2x14x14xf32>
    %355 = arith.addf %351, %354 : vector<2x14x14xf32>
    %c79 = arith.constant 79 : index
    %356 = memref.load %arg1[%c79] : memref<180xf32, #tpu.memory_space<smem>>
    %357 = vector.broadcast %356 : f32 to vector<2x14x14xf32>
    %358 = arith.mulf %32, %357 : vector<2x14x14xf32>
    %359 = arith.addf %355, %358 : vector<2x14x14xf32>
    %c80 = arith.constant 80 : index
    %360 = memref.load %arg1[%c80] : memref<180xf32, #tpu.memory_space<smem>>
    %361 = vector.broadcast %360 : f32 to vector<2x14x14xf32>
    %362 = arith.mulf %33, %361 : vector<2x14x14xf32>
    %363 = arith.addf %359, %362 : vector<2x14x14xf32>
    %cst = arith.constant 0.000000e+00 : f32
    %364 = vector.broadcast %cst : f32 to vector<2x14x14xf32>
    %365 = arith.maximumf %143, %364 : vector<2x14x14xf32>
    %cst_4 = arith.constant 0.000000e+00 : f32
    %366 = vector.broadcast %cst_4 : f32 to vector<2x14x14xf32>
    %367 = arith.maximumf %253, %366 : vector<2x14x14xf32>
    %cst_5 = arith.constant 0.000000e+00 : f32
    %368 = vector.broadcast %cst_5 : f32 to vector<2x14x14xf32>
    %369 = arith.maximumf %363, %368 : vector<2x14x14xf32>
    %370 = vector.shape_cast %365 : vector<2x14x14xf32> to vector<1x2x14x14xf32>
    %cst_6 = arith.constant dense<0.000000e+00> : vector<1xf32>
    %371 = vector.multi_reduction <add>, %370, %cst_6 [1, 2, 3] : vector<1x2x14x14xf32> to vector<1xf32>
    %372 = vector.shape_cast %371 : vector<1xf32> to vector<1x1x1x1xf32>
    %373 = vector.extract %372[0, 0, 0, 0] : f32 from vector<1x1x1x1xf32>
    %374 = arith.mulf %365, %365 : vector<2x14x14xf32>
    %375 = vector.shape_cast %374 : vector<2x14x14xf32> to vector<1x2x14x14xf32>
    %cst_7 = arith.constant dense<0.000000e+00> : vector<1xf32>
    %376 = vector.multi_reduction <add>, %375, %cst_7 [1, 2, 3] : vector<1x2x14x14xf32> to vector<1xf32>
    %377 = vector.shape_cast %376 : vector<1xf32> to vector<1x1x1x1xf32>
    %378 = vector.extract %377[0, 0, 0, 0] : f32 from vector<1x1x1x1xf32>
    %cst_8 = arith.constant 0.00255102036 : f32
    %379 = arith.mulf %373, %cst_8 : f32
    %cst_9 = arith.constant 0.00255102036 : f32
    %380 = arith.mulf %378, %cst_9 : f32
    %381 = arith.mulf %379, %379 : f32
    %382 = arith.subf %380, %381 : f32
    %c84 = arith.constant 84 : index
    %383 = memref.load %arg1[%c84] : memref<180xf32, #tpu.memory_space<smem>>
    %cst_10 = arith.constant 9.99999974E-6 : f32
    %384 = arith.addf %382, %cst_10 : f32
    %385 = math.rsqrt %384 : f32
    %386 = arith.mulf %383, %385 : f32
    %c87 = arith.constant 87 : index
    %387 = memref.load %arg1[%c87] : memref<180xf32, #tpu.memory_space<smem>>
    %388 = arith.mulf %379, %386 : f32
    %389 = arith.subf %387, %388 : f32
    %390 = vector.broadcast %386 : f32 to vector<2x14x14xf32>
    %391 = arith.mulf %365, %390 : vector<2x14x14xf32>
    %392 = vector.broadcast %389 : f32 to vector<2x14x14xf32>
    %393 = arith.addf %391, %392 : vector<2x14x14xf32>
    %394 = vector.shape_cast %367 : vector<2x14x14xf32> to vector<1x2x14x14xf32>
    %cst_11 = arith.constant dense<0.000000e+00> : vector<1xf32>
    %395 = vector.multi_reduction <add>, %394, %cst_11 [1, 2, 3] : vector<1x2x14x14xf32> to vector<1xf32>
    %396 = vector.shape_cast %395 : vector<1xf32> to vector<1x1x1x1xf32>
    %397 = vector.extract %396[0, 0, 0, 0] : f32 from vector<1x1x1x1xf32>
    %398 = arith.mulf %367, %367 : vector<2x14x14xf32>
    %399 = vector.shape_cast %398 : vector<2x14x14xf32> to vector<1x2x14x14xf32>
    %cst_12 = arith.constant dense<0.000000e+00> : vector<1xf32>
    %400 = vector.multi_reduction <add>, %399, %cst_12 [1, 2, 3] : vector<1x2x14x14xf32> to vector<1xf32>
    %401 = vector.shape_cast %400 : vector<1xf32> to vector<1x1x1x1xf32>
    %402 = vector.extract %401[0, 0, 0, 0] : f32 from vector<1x1x1x1xf32>
    %cst_13 = arith.constant 0.00255102036 : f32
    %403 = arith.mulf %397, %cst_13 : f32
    %cst_14 = arith.constant 0.00255102036 : f32
    %404 = arith.mulf %402, %cst_14 : f32
    %405 = arith.mulf %403, %403 : f32
    %406 = arith.subf %404, %405 : f32
    %c85 = arith.constant 85 : index
    %407 = memref.load %arg1[%c85] : memref<180xf32, #tpu.memory_space<smem>>
    %cst_15 = arith.constant 9.99999974E-6 : f32
    %408 = arith.addf %406, %cst_15 : f32
    %409 = math.rsqrt %408 : f32
    %410 = arith.mulf %407, %409 : f32
    %c88 = arith.constant 88 : index
    %411 = memref.load %arg1[%c88] : memref<180xf32, #tpu.memory_space<smem>>
    %412 = arith.mulf %403, %410 : f32
    %413 = arith.subf %411, %412 : f32
    %414 = vector.broadcast %410 : f32 to vector<2x14x14xf32>
    %415 = arith.mulf %367, %414 : vector<2x14x14xf32>
    %416 = vector.broadcast %413 : f32 to vector<2x14x14xf32>
    %417 = arith.addf %415, %416 : vector<2x14x14xf32>
    %418 = vector.shape_cast %369 : vector<2x14x14xf32> to vector<1x2x14x14xf32>
    %cst_16 = arith.constant dense<0.000000e+00> : vector<1xf32>
    %419 = vector.multi_reduction <add>, %418, %cst_16 [1, 2, 3] : vector<1x2x14x14xf32> to vector<1xf32>
    %420 = vector.shape_cast %419 : vector<1xf32> to vector<1x1x1x1xf32>
    %421 = vector.extract %420[0, 0, 0, 0] : f32 from vector<1x1x1x1xf32>
    %422 = arith.mulf %369, %369 : vector<2x14x14xf32>
    %423 = vector.shape_cast %422 : vector<2x14x14xf32> to vector<1x2x14x14xf32>
    %cst_17 = arith.constant dense<0.000000e+00> : vector<1xf32>
    %424 = vector.multi_reduction <add>, %423, %cst_17 [1, 2, 3] : vector<1x2x14x14xf32> to vector<1xf32>
    %425 = vector.shape_cast %424 : vector<1xf32> to vector<1x1x1x1xf32>
    %426 = vector.extract %425[0, 0, 0, 0] : f32 from vector<1x1x1x1xf32>
    %cst_18 = arith.constant 0.00255102036 : f32
    %427 = arith.mulf %421, %cst_18 : f32
    %cst_19 = arith.constant 0.00255102036 : f32
    %428 = arith.mulf %426, %cst_19 : f32
    %429 = arith.mulf %427, %427 : f32
    %430 = arith.subf %428, %429 : f32
    %c86 = arith.constant 86 : index
    %431 = memref.load %arg1[%c86] : memref<180xf32, #tpu.memory_space<smem>>
    %cst_20 = arith.constant 9.99999974E-6 : f32
    %432 = arith.addf %430, %cst_20 : f32
    %433 = math.rsqrt %432 : f32
    %434 = arith.mulf %431, %433 : f32
    %c89 = arith.constant 89 : index
    %435 = memref.load %arg1[%c89] : memref<180xf32, #tpu.memory_space<smem>>
    %436 = arith.mulf %427, %434 : f32
    %437 = arith.subf %435, %436 : f32
    %438 = vector.broadcast %434 : f32 to vector<2x14x14xf32>
    %439 = arith.mulf %369, %438 : vector<2x14x14xf32>
    %440 = vector.broadcast %437 : f32 to vector<2x14x14xf32>
    %441 = arith.addf %439, %440 : vector<2x14x14xf32>
    %cst_21 = arith.constant 0.000000e+00 : f32
    %cst_22 = arith.constant 6.000000e+00 : f32
    %442 = vector.broadcast %cst_21 : f32 to vector<2x14x14xf32>
    %443 = arith.maximumf %442, %393 : vector<2x14x14xf32>
    %444 = vector.broadcast %cst_22 : f32 to vector<2x14x14xf32>
    %445 = arith.minimumf %444, %443 : vector<2x14x14xf32>
    %cst_23 = arith.constant 0.000000e+00 : f32
    %cst_24 = arith.constant 6.000000e+00 : f32
    %446 = vector.broadcast %cst_23 : f32 to vector<2x14x14xf32>
    %447 = arith.maximumf %446, %417 : vector<2x14x14xf32>
    %448 = vector.broadcast %cst_24 : f32 to vector<2x14x14xf32>
    %449 = arith.minimumf %448, %447 : vector<2x14x14xf32>
    %cst_25 = arith.constant 0.000000e+00 : f32
    %cst_26 = arith.constant 6.000000e+00 : f32
    %450 = vector.broadcast %cst_25 : f32 to vector<2x14x14xf32>
    %451 = arith.maximumf %450, %441 : vector<2x14x14xf32>
    %452 = vector.broadcast %cst_26 : f32 to vector<2x14x14xf32>
    %453 = arith.minimumf %452, %451 : vector<2x14x14xf32>
    %454 = vector.extract_strided_slice %445 {offsets = [0, 0, 0], sizes = [2, 12, 12], strides = [1, 1, 1]} : vector<2x14x14xf32> to vector<2x12x12xf32>
    %455 = vector.extract_strided_slice %445 {offsets = [0, 0, 1], sizes = [2, 12, 12], strides = [1, 1, 1]} : vector<2x14x14xf32> to vector<2x12x12xf32>
    %456 = vector.extract_strided_slice %445 {offsets = [0, 0, 2], sizes = [2, 12, 12], strides = [1, 1, 1]} : vector<2x14x14xf32> to vector<2x12x12xf32>
    %457 = vector.extract_strided_slice %445 {offsets = [0, 1, 0], sizes = [2, 12, 12], strides = [1, 1, 1]} : vector<2x14x14xf32> to vector<2x12x12xf32>
    %458 = vector.extract_strided_slice %445 {offsets = [0, 1, 1], sizes = [2, 12, 12], strides = [1, 1, 1]} : vector<2x14x14xf32> to vector<2x12x12xf32>
    %459 = vector.extract_strided_slice %445 {offsets = [0, 1, 2], sizes = [2, 12, 12], strides = [1, 1, 1]} : vector<2x14x14xf32> to vector<2x12x12xf32>
    %460 = vector.extract_strided_slice %445 {offsets = [0, 2, 0], sizes = [2, 12, 12], strides = [1, 1, 1]} : vector<2x14x14xf32> to vector<2x12x12xf32>
    %461 = vector.extract_strided_slice %445 {offsets = [0, 2, 1], sizes = [2, 12, 12], strides = [1, 1, 1]} : vector<2x14x14xf32> to vector<2x12x12xf32>
    %462 = vector.extract_strided_slice %445 {offsets = [0, 2, 2], sizes = [2, 12, 12], strides = [1, 1, 1]} : vector<2x14x14xf32> to vector<2x12x12xf32>
    %463 = vector.extract_strided_slice %449 {offsets = [0, 0, 0], sizes = [2, 12, 12], strides = [1, 1, 1]} : vector<2x14x14xf32> to vector<2x12x12xf32>
    %464 = vector.extract_strided_slice %449 {offsets = [0, 0, 1], sizes = [2, 12, 12], strides = [1, 1, 1]} : vector<2x14x14xf32> to vector<2x12x12xf32>
    %465 = vector.extract_strided_slice %449 {offsets = [0, 0, 2], sizes = [2, 12, 12], strides = [1, 1, 1]} : vector<2x14x14xf32> to vector<2x12x12xf32>
    %466 = vector.extract_strided_slice %449 {offsets = [0, 1, 0], sizes = [2, 12, 12], strides = [1, 1, 1]} : vector<2x14x14xf32> to vector<2x12x12xf32>
    %467 = vector.extract_strided_slice %449 {offsets = [0, 1, 1], sizes = [2, 12, 12], strides = [1, 1, 1]} : vector<2x14x14xf32> to vector<2x12x12xf32>
    %468 = vector.extract_strided_slice %449 {offsets = [0, 1, 2], sizes = [2, 12, 12], strides = [1, 1, 1]} : vector<2x14x14xf32> to vector<2x12x12xf32>
    %469 = vector.extract_strided_slice %449 {offsets = [0, 2, 0], sizes = [2, 12, 12], strides = [1, 1, 1]} : vector<2x14x14xf32> to vector<2x12x12xf32>
    %470 = vector.extract_strided_slice %449 {offsets = [0, 2, 1], sizes = [2, 12, 12], strides = [1, 1, 1]} : vector<2x14x14xf32> to vector<2x12x12xf32>
    %471 = vector.extract_strided_slice %449 {offsets = [0, 2, 2], sizes = [2, 12, 12], strides = [1, 1, 1]} : vector<2x14x14xf32> to vector<2x12x12xf32>
    %472 = vector.extract_strided_slice %453 {offsets = [0, 0, 0], sizes = [2, 12, 12], strides = [1, 1, 1]} : vector<2x14x14xf32> to vector<2x12x12xf32>
    %473 = vector.extract_strided_slice %453 {offsets = [0, 0, 1], sizes = [2, 12, 12], strides = [1, 1, 1]} : vector<2x14x14xf32> to vector<2x12x12xf32>
    %474 = vector.extract_strided_slice %453 {offsets = [0, 0, 2], sizes = [2, 12, 12], strides = [1, 1, 1]} : vector<2x14x14xf32> to vector<2x12x12xf32>
    %475 = vector.extract_strided_slice %453 {offsets = [0, 1, 0], sizes = [2, 12, 12], strides = [1, 1, 1]} : vector<2x14x14xf32> to vector<2x12x12xf32>
    %476 = vector.extract_strided_slice %453 {offsets = [0, 1, 1], sizes = [2, 12, 12], strides = [1, 1, 1]} : vector<2x14x14xf32> to vector<2x12x12xf32>
    %477 = vector.extract_strided_slice %453 {offsets = [0, 1, 2], sizes = [2, 12, 12], strides = [1, 1, 1]} : vector<2x14x14xf32> to vector<2x12x12xf32>
    %478 = vector.extract_strided_slice %453 {offsets = [0, 2, 0], sizes = [2, 12, 12], strides = [1, 1, 1]} : vector<2x14x14xf32> to vector<2x12x12xf32>
    %479 = vector.extract_strided_slice %453 {offsets = [0, 2, 1], sizes = [2, 12, 12], strides = [1, 1, 1]} : vector<2x14x14xf32> to vector<2x12x12xf32>
    %480 = vector.extract_strided_slice %453 {offsets = [0, 2, 2], sizes = [2, 12, 12], strides = [1, 1, 1]} : vector<2x14x14xf32> to vector<2x12x12xf32>
    %c171 = arith.constant 171 : index
    %481 = memref.load %arg1[%c171] : memref<180xf32, #tpu.memory_space<smem>>
    %482 = vector.broadcast %481 : f32 to vector<2x12x12xf32>
    %c90 = arith.constant 90 : index
    %483 = memref.load %arg1[%c90] : memref<180xf32, #tpu.memory_space<smem>>
    %484 = vector.broadcast %483 : f32 to vector<2x12x12xf32>
    %485 = arith.mulf %454, %484 : vector<2x12x12xf32>
    %486 = arith.addf %482, %485 : vector<2x12x12xf32>
    %c91 = arith.constant 91 : index
    %487 = memref.load %arg1[%c91] : memref<180xf32, #tpu.memory_space<smem>>
    %488 = vector.broadcast %487 : f32 to vector<2x12x12xf32>
    %489 = arith.mulf %455, %488 : vector<2x12x12xf32>
    %490 = arith.addf %486, %489 : vector<2x12x12xf32>
    %c92 = arith.constant 92 : index
    %491 = memref.load %arg1[%c92] : memref<180xf32, #tpu.memory_space<smem>>
    %492 = vector.broadcast %491 : f32 to vector<2x12x12xf32>
    %493 = arith.mulf %456, %492 : vector<2x12x12xf32>
    %494 = arith.addf %490, %493 : vector<2x12x12xf32>
    %c93 = arith.constant 93 : index
    %495 = memref.load %arg1[%c93] : memref<180xf32, #tpu.memory_space<smem>>
    %496 = vector.broadcast %495 : f32 to vector<2x12x12xf32>
    %497 = arith.mulf %457, %496 : vector<2x12x12xf32>
    %498 = arith.addf %494, %497 : vector<2x12x12xf32>
    %c94 = arith.constant 94 : index
    %499 = memref.load %arg1[%c94] : memref<180xf32, #tpu.memory_space<smem>>
    %500 = vector.broadcast %499 : f32 to vector<2x12x12xf32>
    %501 = arith.mulf %458, %500 : vector<2x12x12xf32>
    %502 = arith.addf %498, %501 : vector<2x12x12xf32>
    %c95 = arith.constant 95 : index
    %503 = memref.load %arg1[%c95] : memref<180xf32, #tpu.memory_space<smem>>
    %504 = vector.broadcast %503 : f32 to vector<2x12x12xf32>
    %505 = arith.mulf %459, %504 : vector<2x12x12xf32>
    %506 = arith.addf %502, %505 : vector<2x12x12xf32>
    %c96 = arith.constant 96 : index
    %507 = memref.load %arg1[%c96] : memref<180xf32, #tpu.memory_space<smem>>
    %508 = vector.broadcast %507 : f32 to vector<2x12x12xf32>
    %509 = arith.mulf %460, %508 : vector<2x12x12xf32>
    %510 = arith.addf %506, %509 : vector<2x12x12xf32>
    %c97 = arith.constant 97 : index
    %511 = memref.load %arg1[%c97] : memref<180xf32, #tpu.memory_space<smem>>
    %512 = vector.broadcast %511 : f32 to vector<2x12x12xf32>
    %513 = arith.mulf %461, %512 : vector<2x12x12xf32>
    %514 = arith.addf %510, %513 : vector<2x12x12xf32>
    %c98 = arith.constant 98 : index
    %515 = memref.load %arg1[%c98] : memref<180xf32, #tpu.memory_space<smem>>
    %516 = vector.broadcast %515 : f32 to vector<2x12x12xf32>
    %517 = arith.mulf %462, %516 : vector<2x12x12xf32>
    %518 = arith.addf %514, %517 : vector<2x12x12xf32>
    %c99 = arith.constant 99 : index
    %519 = memref.load %arg1[%c99] : memref<180xf32, #tpu.memory_space<smem>>
    %520 = vector.broadcast %519 : f32 to vector<2x12x12xf32>
    %521 = arith.mulf %463, %520 : vector<2x12x12xf32>
    %522 = arith.addf %518, %521 : vector<2x12x12xf32>
    %c100 = arith.constant 100 : index
    %523 = memref.load %arg1[%c100] : memref<180xf32, #tpu.memory_space<smem>>
    %524 = vector.broadcast %523 : f32 to vector<2x12x12xf32>
    %525 = arith.mulf %464, %524 : vector<2x12x12xf32>
    %526 = arith.addf %522, %525 : vector<2x12x12xf32>
    %c101 = arith.constant 101 : index
    %527 = memref.load %arg1[%c101] : memref<180xf32, #tpu.memory_space<smem>>
    %528 = vector.broadcast %527 : f32 to vector<2x12x12xf32>
    %529 = arith.mulf %465, %528 : vector<2x12x12xf32>
    %530 = arith.addf %526, %529 : vector<2x12x12xf32>
    %c102 = arith.constant 102 : index
    %531 = memref.load %arg1[%c102] : memref<180xf32, #tpu.memory_space<smem>>
    %532 = vector.broadcast %531 : f32 to vector<2x12x12xf32>
    %533 = arith.mulf %466, %532 : vector<2x12x12xf32>
    %534 = arith.addf %530, %533 : vector<2x12x12xf32>
    %c103 = arith.constant 103 : index
    %535 = memref.load %arg1[%c103] : memref<180xf32, #tpu.memory_space<smem>>
    %536 = vector.broadcast %535 : f32 to vector<2x12x12xf32>
    %537 = arith.mulf %467, %536 : vector<2x12x12xf32>
    %538 = arith.addf %534, %537 : vector<2x12x12xf32>
    %c104 = arith.constant 104 : index
    %539 = memref.load %arg1[%c104] : memref<180xf32, #tpu.memory_space<smem>>
    %540 = vector.broadcast %539 : f32 to vector<2x12x12xf32>
    %541 = arith.mulf %468, %540 : vector<2x12x12xf32>
    %542 = arith.addf %538, %541 : vector<2x12x12xf32>
    %c105 = arith.constant 105 : index
    %543 = memref.load %arg1[%c105] : memref<180xf32, #tpu.memory_space<smem>>
    %544 = vector.broadcast %543 : f32 to vector<2x12x12xf32>
    %545 = arith.mulf %469, %544 : vector<2x12x12xf32>
    %546 = arith.addf %542, %545 : vector<2x12x12xf32>
    %c106 = arith.constant 106 : index
    %547 = memref.load %arg1[%c106] : memref<180xf32, #tpu.memory_space<smem>>
    %548 = vector.broadcast %547 : f32 to vector<2x12x12xf32>
    %549 = arith.mulf %470, %548 : vector<2x12x12xf32>
    %550 = arith.addf %546, %549 : vector<2x12x12xf32>
    %c107 = arith.constant 107 : index
    %551 = memref.load %arg1[%c107] : memref<180xf32, #tpu.memory_space<smem>>
    %552 = vector.broadcast %551 : f32 to vector<2x12x12xf32>
    %553 = arith.mulf %471, %552 : vector<2x12x12xf32>
    %554 = arith.addf %550, %553 : vector<2x12x12xf32>
    %c108 = arith.constant 108 : index
    %555 = memref.load %arg1[%c108] : memref<180xf32, #tpu.memory_space<smem>>
    %556 = vector.broadcast %555 : f32 to vector<2x12x12xf32>
    %557 = arith.mulf %472, %556 : vector<2x12x12xf32>
    %558 = arith.addf %554, %557 : vector<2x12x12xf32>
    %c109 = arith.constant 109 : index
    %559 = memref.load %arg1[%c109] : memref<180xf32, #tpu.memory_space<smem>>
    %560 = vector.broadcast %559 : f32 to vector<2x12x12xf32>
    %561 = arith.mulf %473, %560 : vector<2x12x12xf32>
    %562 = arith.addf %558, %561 : vector<2x12x12xf32>
    %c110 = arith.constant 110 : index
    %563 = memref.load %arg1[%c110] : memref<180xf32, #tpu.memory_space<smem>>
    %564 = vector.broadcast %563 : f32 to vector<2x12x12xf32>
    %565 = arith.mulf %474, %564 : vector<2x12x12xf32>
    %566 = arith.addf %562, %565 : vector<2x12x12xf32>
    %c111 = arith.constant 111 : index
    %567 = memref.load %arg1[%c111] : memref<180xf32, #tpu.memory_space<smem>>
    %568 = vector.broadcast %567 : f32 to vector<2x12x12xf32>
    %569 = arith.mulf %475, %568 : vector<2x12x12xf32>
    %570 = arith.addf %566, %569 : vector<2x12x12xf32>
    %c112 = arith.constant 112 : index
    %571 = memref.load %arg1[%c112] : memref<180xf32, #tpu.memory_space<smem>>
    %572 = vector.broadcast %571 : f32 to vector<2x12x12xf32>
    %573 = arith.mulf %476, %572 : vector<2x12x12xf32>
    %574 = arith.addf %570, %573 : vector<2x12x12xf32>
    %c113 = arith.constant 113 : index
    %575 = memref.load %arg1[%c113] : memref<180xf32, #tpu.memory_space<smem>>
    %576 = vector.broadcast %575 : f32 to vector<2x12x12xf32>
    %577 = arith.mulf %477, %576 : vector<2x12x12xf32>
    %578 = arith.addf %574, %577 : vector<2x12x12xf32>
    %c114 = arith.constant 114 : index
    %579 = memref.load %arg1[%c114] : memref<180xf32, #tpu.memory_space<smem>>
    %580 = vector.broadcast %579 : f32 to vector<2x12x12xf32>
    %581 = arith.mulf %478, %580 : vector<2x12x12xf32>
    %582 = arith.addf %578, %581 : vector<2x12x12xf32>
    %c115 = arith.constant 115 : index
    %583 = memref.load %arg1[%c115] : memref<180xf32, #tpu.memory_space<smem>>
    %584 = vector.broadcast %583 : f32 to vector<2x12x12xf32>
    %585 = arith.mulf %479, %584 : vector<2x12x12xf32>
    %586 = arith.addf %582, %585 : vector<2x12x12xf32>
    %c116 = arith.constant 116 : index
    %587 = memref.load %arg1[%c116] : memref<180xf32, #tpu.memory_space<smem>>
    %588 = vector.broadcast %587 : f32 to vector<2x12x12xf32>
    %589 = arith.mulf %480, %588 : vector<2x12x12xf32>
    %590 = arith.addf %586, %589 : vector<2x12x12xf32>
    %c172 = arith.constant 172 : index
    %591 = memref.load %arg1[%c172] : memref<180xf32, #tpu.memory_space<smem>>
    %592 = vector.broadcast %591 : f32 to vector<2x12x12xf32>
    %c117 = arith.constant 117 : index
    %593 = memref.load %arg1[%c117] : memref<180xf32, #tpu.memory_space<smem>>
    %594 = vector.broadcast %593 : f32 to vector<2x12x12xf32>
    %595 = arith.mulf %454, %594 : vector<2x12x12xf32>
    %596 = arith.addf %592, %595 : vector<2x12x12xf32>
    %c118 = arith.constant 118 : index
    %597 = memref.load %arg1[%c118] : memref<180xf32, #tpu.memory_space<smem>>
    %598 = vector.broadcast %597 : f32 to vector<2x12x12xf32>
    %599 = arith.mulf %455, %598 : vector<2x12x12xf32>
    %600 = arith.addf %596, %599 : vector<2x12x12xf32>
    %c119 = arith.constant 119 : index
    %601 = memref.load %arg1[%c119] : memref<180xf32, #tpu.memory_space<smem>>
    %602 = vector.broadcast %601 : f32 to vector<2x12x12xf32>
    %603 = arith.mulf %456, %602 : vector<2x12x12xf32>
    %604 = arith.addf %600, %603 : vector<2x12x12xf32>
    %c120 = arith.constant 120 : index
    %605 = memref.load %arg1[%c120] : memref<180xf32, #tpu.memory_space<smem>>
    %606 = vector.broadcast %605 : f32 to vector<2x12x12xf32>
    %607 = arith.mulf %457, %606 : vector<2x12x12xf32>
    %608 = arith.addf %604, %607 : vector<2x12x12xf32>
    %c121 = arith.constant 121 : index
    %609 = memref.load %arg1[%c121] : memref<180xf32, #tpu.memory_space<smem>>
    %610 = vector.broadcast %609 : f32 to vector<2x12x12xf32>
    %611 = arith.mulf %458, %610 : vector<2x12x12xf32>
    %612 = arith.addf %608, %611 : vector<2x12x12xf32>
    %c122 = arith.constant 122 : index
    %613 = memref.load %arg1[%c122] : memref<180xf32, #tpu.memory_space<smem>>
    %614 = vector.broadcast %613 : f32 to vector<2x12x12xf32>
    %615 = arith.mulf %459, %614 : vector<2x12x12xf32>
    %616 = arith.addf %612, %615 : vector<2x12x12xf32>
    %c123 = arith.constant 123 : index
    %617 = memref.load %arg1[%c123] : memref<180xf32, #tpu.memory_space<smem>>
    %618 = vector.broadcast %617 : f32 to vector<2x12x12xf32>
    %619 = arith.mulf %460, %618 : vector<2x12x12xf32>
    %620 = arith.addf %616, %619 : vector<2x12x12xf32>
    %c124 = arith.constant 124 : index
    %621 = memref.load %arg1[%c124] : memref<180xf32, #tpu.memory_space<smem>>
    %622 = vector.broadcast %621 : f32 to vector<2x12x12xf32>
    %623 = arith.mulf %461, %622 : vector<2x12x12xf32>
    %624 = arith.addf %620, %623 : vector<2x12x12xf32>
    %c125 = arith.constant 125 : index
    %625 = memref.load %arg1[%c125] : memref<180xf32, #tpu.memory_space<smem>>
    %626 = vector.broadcast %625 : f32 to vector<2x12x12xf32>
    %627 = arith.mulf %462, %626 : vector<2x12x12xf32>
    %628 = arith.addf %624, %627 : vector<2x12x12xf32>
    %c126 = arith.constant 126 : index
    %629 = memref.load %arg1[%c126] : memref<180xf32, #tpu.memory_space<smem>>
    %630 = vector.broadcast %629 : f32 to vector<2x12x12xf32>
    %631 = arith.mulf %463, %630 : vector<2x12x12xf32>
    %632 = arith.addf %628, %631 : vector<2x12x12xf32>
    %c127 = arith.constant 127 : index
    %633 = memref.load %arg1[%c127] : memref<180xf32, #tpu.memory_space<smem>>
    %634 = vector.broadcast %633 : f32 to vector<2x12x12xf32>
    %635 = arith.mulf %464, %634 : vector<2x12x12xf32>
    %636 = arith.addf %632, %635 : vector<2x12x12xf32>
    %c128 = arith.constant 128 : index
    %637 = memref.load %arg1[%c128] : memref<180xf32, #tpu.memory_space<smem>>
    %638 = vector.broadcast %637 : f32 to vector<2x12x12xf32>
    %639 = arith.mulf %465, %638 : vector<2x12x12xf32>
    %640 = arith.addf %636, %639 : vector<2x12x12xf32>
    %c129 = arith.constant 129 : index
    %641 = memref.load %arg1[%c129] : memref<180xf32, #tpu.memory_space<smem>>
    %642 = vector.broadcast %641 : f32 to vector<2x12x12xf32>
    %643 = arith.mulf %466, %642 : vector<2x12x12xf32>
    %644 = arith.addf %640, %643 : vector<2x12x12xf32>
    %c130 = arith.constant 130 : index
    %645 = memref.load %arg1[%c130] : memref<180xf32, #tpu.memory_space<smem>>
    %646 = vector.broadcast %645 : f32 to vector<2x12x12xf32>
    %647 = arith.mulf %467, %646 : vector<2x12x12xf32>
    %648 = arith.addf %644, %647 : vector<2x12x12xf32>
    %c131 = arith.constant 131 : index
    %649 = memref.load %arg1[%c131] : memref<180xf32, #tpu.memory_space<smem>>
    %650 = vector.broadcast %649 : f32 to vector<2x12x12xf32>
    %651 = arith.mulf %468, %650 : vector<2x12x12xf32>
    %652 = arith.addf %648, %651 : vector<2x12x12xf32>
    %c132 = arith.constant 132 : index
    %653 = memref.load %arg1[%c132] : memref<180xf32, #tpu.memory_space<smem>>
    %654 = vector.broadcast %653 : f32 to vector<2x12x12xf32>
    %655 = arith.mulf %469, %654 : vector<2x12x12xf32>
    %656 = arith.addf %652, %655 : vector<2x12x12xf32>
    %c133 = arith.constant 133 : index
    %657 = memref.load %arg1[%c133] : memref<180xf32, #tpu.memory_space<smem>>
    %658 = vector.broadcast %657 : f32 to vector<2x12x12xf32>
    %659 = arith.mulf %470, %658 : vector<2x12x12xf32>
    %660 = arith.addf %656, %659 : vector<2x12x12xf32>
    %c134 = arith.constant 134 : index
    %661 = memref.load %arg1[%c134] : memref<180xf32, #tpu.memory_space<smem>>
    %662 = vector.broadcast %661 : f32 to vector<2x12x12xf32>
    %663 = arith.mulf %471, %662 : vector<2x12x12xf32>
    %664 = arith.addf %660, %663 : vector<2x12x12xf32>
    %c135 = arith.constant 135 : index
    %665 = memref.load %arg1[%c135] : memref<180xf32, #tpu.memory_space<smem>>
    %666 = vector.broadcast %665 : f32 to vector<2x12x12xf32>
    %667 = arith.mulf %472, %666 : vector<2x12x12xf32>
    %668 = arith.addf %664, %667 : vector<2x12x12xf32>
    %c136 = arith.constant 136 : index
    %669 = memref.load %arg1[%c136] : memref<180xf32, #tpu.memory_space<smem>>
    %670 = vector.broadcast %669 : f32 to vector<2x12x12xf32>
    %671 = arith.mulf %473, %670 : vector<2x12x12xf32>
    %672 = arith.addf %668, %671 : vector<2x12x12xf32>
    %c137 = arith.constant 137 : index
    %673 = memref.load %arg1[%c137] : memref<180xf32, #tpu.memory_space<smem>>
    %674 = vector.broadcast %673 : f32 to vector<2x12x12xf32>
    %675 = arith.mulf %474, %674 : vector<2x12x12xf32>
    %676 = arith.addf %672, %675 : vector<2x12x12xf32>
    %c138 = arith.constant 138 : index
    %677 = memref.load %arg1[%c138] : memref<180xf32, #tpu.memory_space<smem>>
    %678 = vector.broadcast %677 : f32 to vector<2x12x12xf32>
    %679 = arith.mulf %475, %678 : vector<2x12x12xf32>
    %680 = arith.addf %676, %679 : vector<2x12x12xf32>
    %c139 = arith.constant 139 : index
    %681 = memref.load %arg1[%c139] : memref<180xf32, #tpu.memory_space<smem>>
    %682 = vector.broadcast %681 : f32 to vector<2x12x12xf32>
    %683 = arith.mulf %476, %682 : vector<2x12x12xf32>
    %684 = arith.addf %680, %683 : vector<2x12x12xf32>
    %c140 = arith.constant 140 : index
    %685 = memref.load %arg1[%c140] : memref<180xf32, #tpu.memory_space<smem>>
    %686 = vector.broadcast %685 : f32 to vector<2x12x12xf32>
    %687 = arith.mulf %477, %686 : vector<2x12x12xf32>
    %688 = arith.addf %684, %687 : vector<2x12x12xf32>
    %c141 = arith.constant 141 : index
    %689 = memref.load %arg1[%c141] : memref<180xf32, #tpu.memory_space<smem>>
    %690 = vector.broadcast %689 : f32 to vector<2x12x12xf32>
    %691 = arith.mulf %478, %690 : vector<2x12x12xf32>
    %692 = arith.addf %688, %691 : vector<2x12x12xf32>
    %c142 = arith.constant 142 : index
    %693 = memref.load %arg1[%c142] : memref<180xf32, #tpu.memory_space<smem>>
    %694 = vector.broadcast %693 : f32 to vector<2x12x12xf32>
    %695 = arith.mulf %479, %694 : vector<2x12x12xf32>
    %696 = arith.addf %692, %695 : vector<2x12x12xf32>
    %c143 = arith.constant 143 : index
    %697 = memref.load %arg1[%c143] : memref<180xf32, #tpu.memory_space<smem>>
    %698 = vector.broadcast %697 : f32 to vector<2x12x12xf32>
    %699 = arith.mulf %480, %698 : vector<2x12x12xf32>
    %700 = arith.addf %696, %699 : vector<2x12x12xf32>
    %c173 = arith.constant 173 : index
    %701 = memref.load %arg1[%c173] : memref<180xf32, #tpu.memory_space<smem>>
    %702 = vector.broadcast %701 : f32 to vector<2x12x12xf32>
    %c144 = arith.constant 144 : index
    %703 = memref.load %arg1[%c144] : memref<180xf32, #tpu.memory_space<smem>>
    %704 = vector.broadcast %703 : f32 to vector<2x12x12xf32>
    %705 = arith.mulf %454, %704 : vector<2x12x12xf32>
    %706 = arith.addf %702, %705 : vector<2x12x12xf32>
    %c145 = arith.constant 145 : index
    %707 = memref.load %arg1[%c145] : memref<180xf32, #tpu.memory_space<smem>>
    %708 = vector.broadcast %707 : f32 to vector<2x12x12xf32>
    %709 = arith.mulf %455, %708 : vector<2x12x12xf32>
    %710 = arith.addf %706, %709 : vector<2x12x12xf32>
    %c146 = arith.constant 146 : index
    %711 = memref.load %arg1[%c146] : memref<180xf32, #tpu.memory_space<smem>>
    %712 = vector.broadcast %711 : f32 to vector<2x12x12xf32>
    %713 = arith.mulf %456, %712 : vector<2x12x12xf32>
    %714 = arith.addf %710, %713 : vector<2x12x12xf32>
    %c147 = arith.constant 147 : index
    %715 = memref.load %arg1[%c147] : memref<180xf32, #tpu.memory_space<smem>>
    %716 = vector.broadcast %715 : f32 to vector<2x12x12xf32>
    %717 = arith.mulf %457, %716 : vector<2x12x12xf32>
    %718 = arith.addf %714, %717 : vector<2x12x12xf32>
    %c148 = arith.constant 148 : index
    %719 = memref.load %arg1[%c148] : memref<180xf32, #tpu.memory_space<smem>>
    %720 = vector.broadcast %719 : f32 to vector<2x12x12xf32>
    %721 = arith.mulf %458, %720 : vector<2x12x12xf32>
    %722 = arith.addf %718, %721 : vector<2x12x12xf32>
    %c149 = arith.constant 149 : index
    %723 = memref.load %arg1[%c149] : memref<180xf32, #tpu.memory_space<smem>>
    %724 = vector.broadcast %723 : f32 to vector<2x12x12xf32>
    %725 = arith.mulf %459, %724 : vector<2x12x12xf32>
    %726 = arith.addf %722, %725 : vector<2x12x12xf32>
    %c150 = arith.constant 150 : index
    %727 = memref.load %arg1[%c150] : memref<180xf32, #tpu.memory_space<smem>>
    %728 = vector.broadcast %727 : f32 to vector<2x12x12xf32>
    %729 = arith.mulf %460, %728 : vector<2x12x12xf32>
    %730 = arith.addf %726, %729 : vector<2x12x12xf32>
    %c151 = arith.constant 151 : index
    %731 = memref.load %arg1[%c151] : memref<180xf32, #tpu.memory_space<smem>>
    %732 = vector.broadcast %731 : f32 to vector<2x12x12xf32>
    %733 = arith.mulf %461, %732 : vector<2x12x12xf32>
    %734 = arith.addf %730, %733 : vector<2x12x12xf32>
    %c152 = arith.constant 152 : index
    %735 = memref.load %arg1[%c152] : memref<180xf32, #tpu.memory_space<smem>>
    %736 = vector.broadcast %735 : f32 to vector<2x12x12xf32>
    %737 = arith.mulf %462, %736 : vector<2x12x12xf32>
    %738 = arith.addf %734, %737 : vector<2x12x12xf32>
    %c153 = arith.constant 153 : index
    %739 = memref.load %arg1[%c153] : memref<180xf32, #tpu.memory_space<smem>>
    %740 = vector.broadcast %739 : f32 to vector<2x12x12xf32>
    %741 = arith.mulf %463, %740 : vector<2x12x12xf32>
    %742 = arith.addf %738, %741 : vector<2x12x12xf32>
    %c154 = arith.constant 154 : index
    %743 = memref.load %arg1[%c154] : memref<180xf32, #tpu.memory_space<smem>>
    %744 = vector.broadcast %743 : f32 to vector<2x12x12xf32>
    %745 = arith.mulf %464, %744 : vector<2x12x12xf32>
    %746 = arith.addf %742, %745 : vector<2x12x12xf32>
    %c155 = arith.constant 155 : index
    %747 = memref.load %arg1[%c155] : memref<180xf32, #tpu.memory_space<smem>>
    %748 = vector.broadcast %747 : f32 to vector<2x12x12xf32>
    %749 = arith.mulf %465, %748 : vector<2x12x12xf32>
    %750 = arith.addf %746, %749 : vector<2x12x12xf32>
    %c156 = arith.constant 156 : index
    %751 = memref.load %arg1[%c156] : memref<180xf32, #tpu.memory_space<smem>>
    %752 = vector.broadcast %751 : f32 to vector<2x12x12xf32>
    %753 = arith.mulf %466, %752 : vector<2x12x12xf32>
    %754 = arith.addf %750, %753 : vector<2x12x12xf32>
    %c157 = arith.constant 157 : index
    %755 = memref.load %arg1[%c157] : memref<180xf32, #tpu.memory_space<smem>>
    %756 = vector.broadcast %755 : f32 to vector<2x12x12xf32>
    %757 = arith.mulf %467, %756 : vector<2x12x12xf32>
    %758 = arith.addf %754, %757 : vector<2x12x12xf32>
    %c158 = arith.constant 158 : index
    %759 = memref.load %arg1[%c158] : memref<180xf32, #tpu.memory_space<smem>>
    %760 = vector.broadcast %759 : f32 to vector<2x12x12xf32>
    %761 = arith.mulf %468, %760 : vector<2x12x12xf32>
    %762 = arith.addf %758, %761 : vector<2x12x12xf32>
    %c159 = arith.constant 159 : index
    %763 = memref.load %arg1[%c159] : memref<180xf32, #tpu.memory_space<smem>>
    %764 = vector.broadcast %763 : f32 to vector<2x12x12xf32>
    %765 = arith.mulf %469, %764 : vector<2x12x12xf32>
    %766 = arith.addf %762, %765 : vector<2x12x12xf32>
    %c160 = arith.constant 160 : index
    %767 = memref.load %arg1[%c160] : memref<180xf32, #tpu.memory_space<smem>>
    %768 = vector.broadcast %767 : f32 to vector<2x12x12xf32>
    %769 = arith.mulf %470, %768 : vector<2x12x12xf32>
    %770 = arith.addf %766, %769 : vector<2x12x12xf32>
    %c161 = arith.constant 161 : index
    %771 = memref.load %arg1[%c161] : memref<180xf32, #tpu.memory_space<smem>>
    %772 = vector.broadcast %771 : f32 to vector<2x12x12xf32>
    %773 = arith.mulf %471, %772 : vector<2x12x12xf32>
    %774 = arith.addf %770, %773 : vector<2x12x12xf32>
    %c162 = arith.constant 162 : index
    %775 = memref.load %arg1[%c162] : memref<180xf32, #tpu.memory_space<smem>>
    %776 = vector.broadcast %775 : f32 to vector<2x12x12xf32>
    %777 = arith.mulf %472, %776 : vector<2x12x12xf32>
    %778 = arith.addf %774, %777 : vector<2x12x12xf32>
    %c163 = arith.constant 163 : index
    %779 = memref.load %arg1[%c163] : memref<180xf32, #tpu.memory_space<smem>>
    %780 = vector.broadcast %779 : f32 to vector<2x12x12xf32>
    %781 = arith.mulf %473, %780 : vector<2x12x12xf32>
    %782 = arith.addf %778, %781 : vector<2x12x12xf32>
    %c164 = arith.constant 164 : index
    %783 = memref.load %arg1[%c164] : memref<180xf32, #tpu.memory_space<smem>>
    %784 = vector.broadcast %783 : f32 to vector<2x12x12xf32>
    %785 = arith.mulf %474, %784 : vector<2x12x12xf32>
    %786 = arith.addf %782, %785 : vector<2x12x12xf32>
    %c165 = arith.constant 165 : index
    %787 = memref.load %arg1[%c165] : memref<180xf32, #tpu.memory_space<smem>>
    %788 = vector.broadcast %787 : f32 to vector<2x12x12xf32>
    %789 = arith.mulf %475, %788 : vector<2x12x12xf32>
    %790 = arith.addf %786, %789 : vector<2x12x12xf32>
    %c166 = arith.constant 166 : index
    %791 = memref.load %arg1[%c166] : memref<180xf32, #tpu.memory_space<smem>>
    %792 = vector.broadcast %791 : f32 to vector<2x12x12xf32>
    %793 = arith.mulf %476, %792 : vector<2x12x12xf32>
    %794 = arith.addf %790, %793 : vector<2x12x12xf32>
    %c167 = arith.constant 167 : index
    %795 = memref.load %arg1[%c167] : memref<180xf32, #tpu.memory_space<smem>>
    %796 = vector.broadcast %795 : f32 to vector<2x12x12xf32>
    %797 = arith.mulf %477, %796 : vector<2x12x12xf32>
    %798 = arith.addf %794, %797 : vector<2x12x12xf32>
    %c168 = arith.constant 168 : index
    %799 = memref.load %arg1[%c168] : memref<180xf32, #tpu.memory_space<smem>>
    %800 = vector.broadcast %799 : f32 to vector<2x12x12xf32>
    %801 = arith.mulf %478, %800 : vector<2x12x12xf32>
    %802 = arith.addf %798, %801 : vector<2x12x12xf32>
    %c169 = arith.constant 169 : index
    %803 = memref.load %arg1[%c169] : memref<180xf32, #tpu.memory_space<smem>>
    %804 = vector.broadcast %803 : f32 to vector<2x12x12xf32>
    %805 = arith.mulf %479, %804 : vector<2x12x12xf32>
    %806 = arith.addf %802, %805 : vector<2x12x12xf32>
    %c170 = arith.constant 170 : index
    %807 = memref.load %arg1[%c170] : memref<180xf32, #tpu.memory_space<smem>>
    %808 = vector.broadcast %807 : f32 to vector<2x12x12xf32>
    %809 = arith.mulf %480, %808 : vector<2x12x12xf32>
    %810 = arith.addf %806, %809 : vector<2x12x12xf32>
    %cst_27 = arith.constant 0.000000e+00 : f32
    %cst_28 = arith.constant 6.000000e+00 : f32
    %811 = vector.broadcast %cst_27 : f32 to vector<2x12x12xf32>
    %812 = arith.maximumf %811, %590 : vector<2x12x12xf32>
    %813 = vector.broadcast %cst_28 : f32 to vector<2x12x12xf32>
    %814 = arith.minimumf %813, %812 : vector<2x12x12xf32>
    %cst_29 = arith.constant 0.000000e+00 : f32
    %cst_30 = arith.constant 6.000000e+00 : f32
    %815 = vector.broadcast %cst_29 : f32 to vector<2x12x12xf32>
    %816 = arith.maximumf %815, %700 : vector<2x12x12xf32>
    %817 = vector.broadcast %cst_30 : f32 to vector<2x12x12xf32>
    %818 = arith.minimumf %817, %816 : vector<2x12x12xf32>
    %cst_31 = arith.constant 0.000000e+00 : f32
    %cst_32 = arith.constant 6.000000e+00 : f32
    %819 = vector.broadcast %cst_31 : f32 to vector<2x12x12xf32>
    %820 = arith.maximumf %819, %810 : vector<2x12x12xf32>
    %821 = vector.broadcast %cst_32 : f32 to vector<2x12x12xf32>
    %822 = arith.minimumf %821, %820 : vector<2x12x12xf32>
    %823 = vector.shape_cast %814 : vector<2x12x12xf32> to vector<1x2x12x12xf32>
    %cst_33 = arith.constant dense<0.000000e+00> : vector<1xf32>
    %824 = vector.multi_reduction <add>, %823, %cst_33 [1, 2, 3] : vector<1x2x12x12xf32> to vector<1xf32>
    %825 = vector.shape_cast %824 : vector<1xf32> to vector<1x1x1x1xf32>
    %826 = vector.extract %825[0, 0, 0, 0] : f32 from vector<1x1x1x1xf32>
    %827 = arith.mulf %814, %814 : vector<2x12x12xf32>
    %828 = vector.shape_cast %827 : vector<2x12x12xf32> to vector<1x2x12x12xf32>
    %cst_34 = arith.constant dense<0.000000e+00> : vector<1xf32>
    %829 = vector.multi_reduction <add>, %828, %cst_34 [1, 2, 3] : vector<1x2x12x12xf32> to vector<1xf32>
    %830 = vector.shape_cast %829 : vector<1xf32> to vector<1x1x1x1xf32>
    %831 = vector.extract %830[0, 0, 0, 0] : f32 from vector<1x1x1x1xf32>
    %cst_35 = arith.constant 0.00347222225 : f32
    %832 = arith.mulf %826, %cst_35 : f32
    %cst_36 = arith.constant 0.00347222225 : f32
    %833 = arith.mulf %831, %cst_36 : f32
    %834 = arith.mulf %832, %832 : f32
    %835 = arith.subf %833, %834 : f32
    %c174 = arith.constant 174 : index
    %836 = memref.load %arg1[%c174] : memref<180xf32, #tpu.memory_space<smem>>
    %cst_37 = arith.constant 9.99999974E-6 : f32
    %837 = arith.addf %835, %cst_37 : f32
    %838 = math.rsqrt %837 : f32
    %839 = arith.mulf %836, %838 : f32
    %c177 = arith.constant 177 : index
    %840 = memref.load %arg1[%c177] : memref<180xf32, #tpu.memory_space<smem>>
    %841 = arith.mulf %832, %839 : f32
    %842 = arith.subf %840, %841 : f32
    %843 = vector.broadcast %839 : f32 to vector<2x12x12xf32>
    %844 = arith.mulf %814, %843 : vector<2x12x12xf32>
    %845 = vector.broadcast %842 : f32 to vector<2x12x12xf32>
    %846 = arith.addf %844, %845 : vector<2x12x12xf32>
    %847 = vector.shape_cast %818 : vector<2x12x12xf32> to vector<1x2x12x12xf32>
    %cst_38 = arith.constant dense<0.000000e+00> : vector<1xf32>
    %848 = vector.multi_reduction <add>, %847, %cst_38 [1, 2, 3] : vector<1x2x12x12xf32> to vector<1xf32>
    %849 = vector.shape_cast %848 : vector<1xf32> to vector<1x1x1x1xf32>
    %850 = vector.extract %849[0, 0, 0, 0] : f32 from vector<1x1x1x1xf32>
    %851 = arith.mulf %818, %818 : vector<2x12x12xf32>
    %852 = vector.shape_cast %851 : vector<2x12x12xf32> to vector<1x2x12x12xf32>
    %cst_39 = arith.constant dense<0.000000e+00> : vector<1xf32>
    %853 = vector.multi_reduction <add>, %852, %cst_39 [1, 2, 3] : vector<1x2x12x12xf32> to vector<1xf32>
    %854 = vector.shape_cast %853 : vector<1xf32> to vector<1x1x1x1xf32>
    %855 = vector.extract %854[0, 0, 0, 0] : f32 from vector<1x1x1x1xf32>
    %cst_40 = arith.constant 0.00347222225 : f32
    %856 = arith.mulf %850, %cst_40 : f32
    %cst_41 = arith.constant 0.00347222225 : f32
    %857 = arith.mulf %855, %cst_41 : f32
    %858 = arith.mulf %856, %856 : f32
    %859 = arith.subf %857, %858 : f32
    %c175 = arith.constant 175 : index
    %860 = memref.load %arg1[%c175] : memref<180xf32, #tpu.memory_space<smem>>
    %cst_42 = arith.constant 9.99999974E-6 : f32
    %861 = arith.addf %859, %cst_42 : f32
    %862 = math.rsqrt %861 : f32
    %863 = arith.mulf %860, %862 : f32
    %c178 = arith.constant 178 : index
    %864 = memref.load %arg1[%c178] : memref<180xf32, #tpu.memory_space<smem>>
    %865 = arith.mulf %856, %863 : f32
    %866 = arith.subf %864, %865 : f32
    %867 = vector.broadcast %863 : f32 to vector<2x12x12xf32>
    %868 = arith.mulf %818, %867 : vector<2x12x12xf32>
    %869 = vector.broadcast %866 : f32 to vector<2x12x12xf32>
    %870 = arith.addf %868, %869 : vector<2x12x12xf32>
    %871 = vector.shape_cast %822 : vector<2x12x12xf32> to vector<1x2x12x12xf32>
    %cst_43 = arith.constant dense<0.000000e+00> : vector<1xf32>
    %872 = vector.multi_reduction <add>, %871, %cst_43 [1, 2, 3] : vector<1x2x12x12xf32> to vector<1xf32>
    %873 = vector.shape_cast %872 : vector<1xf32> to vector<1x1x1x1xf32>
    %874 = vector.extract %873[0, 0, 0, 0] : f32 from vector<1x1x1x1xf32>
    %875 = arith.mulf %822, %822 : vector<2x12x12xf32>
    %876 = vector.shape_cast %875 : vector<2x12x12xf32> to vector<1x2x12x12xf32>
    %cst_44 = arith.constant dense<0.000000e+00> : vector<1xf32>
    %877 = vector.multi_reduction <add>, %876, %cst_44 [1, 2, 3] : vector<1x2x12x12xf32> to vector<1xf32>
    %878 = vector.shape_cast %877 : vector<1xf32> to vector<1x1x1x1xf32>
    %879 = vector.extract %878[0, 0, 0, 0] : f32 from vector<1x1x1x1xf32>
    %cst_45 = arith.constant 0.00347222225 : f32
    %880 = arith.mulf %874, %cst_45 : f32
    %cst_46 = arith.constant 0.00347222225 : f32
    %881 = arith.mulf %879, %cst_46 : f32
    %882 = arith.mulf %880, %880 : f32
    %883 = arith.subf %881, %882 : f32
    %c176 = arith.constant 176 : index
    %884 = memref.load %arg1[%c176] : memref<180xf32, #tpu.memory_space<smem>>
    %cst_47 = arith.constant 9.99999974E-6 : f32
    %885 = arith.addf %883, %cst_47 : f32
    %886 = math.rsqrt %885 : f32
    %887 = arith.mulf %884, %886 : f32
    %c179 = arith.constant 179 : index
    %888 = memref.load %arg1[%c179] : memref<180xf32, #tpu.memory_space<smem>>
    %889 = arith.mulf %880, %887 : f32
    %890 = arith.subf %888, %889 : f32
    %891 = vector.broadcast %887 : f32 to vector<2x12x12xf32>
    %892 = arith.mulf %822, %891 : vector<2x12x12xf32>
    %893 = vector.broadcast %890 : f32 to vector<2x12x12xf32>
    %894 = arith.addf %892, %893 : vector<2x12x12xf32>
    %895 = vector.shape_cast %846 : vector<2x12x12xf32> to vector<2x1x12x12xf32>
    %896 = vector.shape_cast %870 : vector<2x12x12xf32> to vector<2x1x12x12xf32>
    %897 = vector.shape_cast %894 : vector<2x12x12xf32> to vector<2x1x12x12xf32>
    %898 = tpu.concatenate %895, %896, %897 in 1 : vector<2x1x12x12xf32>, vector<2x1x12x12xf32>, vector<2x1x12x12xf32> -> vector<2x3x12x12xf32>
    %c0_48 = arith.constant 0 : index
    %c0_49 = arith.constant 0 : index
    %c0_50 = arith.constant 0 : index
    %c0_51 = arith.constant 0 : index
    %899 = vector.load %arg2[%c0_48, %c0_49, %c0_50, %c0_51] : memref<2x3x12x12xf32, #tpu.memory_space<vmem>>, vector<2x3x12x12xf32>
    tpu.vector_store %arg2[%c0_48, %c0_49, %c0_50, %c0_51], %898 {strides = array<i32>} : memref<2x3x12x12xf32, #tpu.memory_space<vmem>>, vector<2x3x12x12xf32>,
    return
  }
}

</mosaic_0001>

<bundles_post_ra>
// kernel: tpu_custom_call.1
= control target key start
LH: loop header
LB: loop body
LE: loop exit
PB: predicated region body
PF: predicated region fallthrough
CT: control target
= control target key end

     0   :  { %7 = vsyncpa [#allocation3], 0  ;;  %s8794_s0 = inlined_call_operand.hbm [shape: f32[2,3,16,16], index: 0, kind: input, shape index: {}]   ;;  %s8795_s1 = inlined_call_operand.hbm [shape: f32[180], index: 1, kind: input, shape index: {}]   ;;  %s8796_s2 = inlined_call_operand.vmem [shape: f32[2,3,12,12], index: 2, kind: output, shape index: {}]  }
   0x1   :  { %s13_s11 = sshll.u32 %s8794_s0, 4  ;;  %s14_s11 = int_to_ptr.hbm [resolvable:$true] %s13_s11 }
   0x2   :  { %8 = vsyncpa [#allocation4], 0  ;;  %s5137_s12 = smov [#allocation2]   ;;  %s27_s16 = sshll.u32 %s8795_s1, 4  ;;  %s28_s16 = int_to_ptr.hbm [resolvable:$true] %s27_s16 }
   0x3   :  { %s15_s13 = sshll.u32 %s5137_s12, 4  ;;  %s5138_s17 = smov 128   ;;  %s16_s13 = int_to_ptr.vmem [resolvable:$true] %s15_s13 }
   0x4   :  { %s5139_s18 = smov 8   ;;  %s5140_s19 = smov [#allocation5]  }
   0x5   :  { %21 = dma.hbm_to_vmem [thread:$0]  %s14_s11, 1536, %s16_s13, [#allocation3], %s5138_s17, %s5138_s17, %s5139_s18  }
   0x6   :  { %30 = dma.hbm_to_smem %s28_s16, 32, %s5140_s19, [#allocation4]  }
   0x7   :  { %5133 = dma.done.wait [#allocation3], 1536  }
   0x8   :  { %5134 = vsyncadd [#allocation3], 4294965760 }
   0x9   :  { %5135 = dma.done.wait [#allocation4], 32  }
   0xa   :  { %5136 = vsyncadd [#allocation4], 4294967264 }
   0xb   :  { %39 = sfence }
   0xc   :  { %s4841_s0 = sld [smem:[#allocation5 + $0x1]]  ;;  %v5164_v0 = vld [vmem:[#allocation2 + $0x30] sm:$0xff]  ;;  %v5166_v1 = vld [vmem:[#allocation2] sm:$0xff]  ;;  %s5141_s1 = smov 127   ;;  %v5174_v7 = vld [vmem:[#allocation2 + $0x38] sm:$0xff]  ;;  %vm126_vm0 = vcmask 1046528  }
   0xd   :  { %s4842_s20 = sld [smem:[#allocation5 + $0x2]]  ;;  %s5142_s22 = smov 126   ;;  %v5176_v8 = vld [vmem:[#allocation2 + $0x8] sm:$0xff]  ;;  %vm215_vm1 = vcmask 1045504   ;;  %v5228_v58 = vld [vmem:[#allocation2 + $0x18] sm:$0xff]  ;;  %v5230_v60 = vld [vmem:[#allocation2 + $0x10] sm:$0xff] }
   0xe   :  { %s4844_s21 = sld [smem:[#allocation5 + $0x4]]  ;;  %v5232_v61 = vld [vmem:[#allocation2 + $0x40] sm:$0xff]  ;;  %vm2214_vm2 = vcmask 113664   ;;  %vm2216_vm3 = vcmask 111616   ;;  %vm4616_vm13 = vcmask 97280   ;;  %vm4618_vm14 = vcmask 93184  }
   0xf   :  { %s4845_s23 = sld [smem:[#allocation5 + $0x5]] }
  0x10   :  { %s4847_s24 = sld [smem:[#allocation5 + $0x7]] }
  0x11   :  { %s4848_s25 = sld [smem:[#allocation5 + $0x8]] }
  0x12   :  { %v65_v2 = vstv %s4841_s0  ;;  %s4850_s26 = sld [smem:[#allocation5 + $0xa]] }
  0x13   :  { %v68_v3 = vmul.f32 %v65_v2, %v5164_v0  ;;  %v91_v4 = vstv %s4842_s20  ;;  %v66_v5 = vmul.f32 %v65_v2, %v5166_v1  ;;  %v69_v10 = vmul.f32 %v65_v2, %v5174_v7  ;;  %s4851_s27 = sld [smem:[#allocation5 + $0xb]] }
  0x14   :  { %v92_v6 = vmul.f32 %v91_v4, %v5166_v1  ;;  %v142_v9 = vstv %s4844_s21  ;;  %v67_v11 = vmul.f32 %v65_v2, %v5176_v8  ;;  %v93_v12 = vmul.f32 %v91_v4, %v5176_v8  ;;  %s4853_s28 = sld [smem:[#allocation5 + $0xd]] }
  0x15   :  { %78 = vrot.lane.b32.xlu1 %v68_v3, %s5141_s1  ;;  %74 = vrot.lane.b32.xlu0 %v66_v5, %s5141_s1  ;;  %v143_v13 = vmul.f32 %v142_v9, %v5166_v1  ;;  %v144_v14 = vmul.f32 %v142_v9, %v5176_v8  ;;  %v95_v17 = vmul.f32 %v91_v4, %v5174_v7  ;;  %v174_v24 = vstv %s4845_s23  ;;  %s4854_s29 = sld [smem:[#allocation5 + $0xe]] }
  0x16   :  { %100 = vrot.lane.b32.xlu2 %v92_v6, %s5142_s22  ;;  %v94_v18 = vmul.f32 %v91_v4, %v5164_v0  ;;  %v145_v19 = vmul.f32 %v142_v9, %v5164_v0  ;;  %v146_v20 = vmul.f32 %v142_v9, %v5174_v7  ;;  %v176_v26 = vmul.f32 %v174_v24, %v5176_v8  ;;  %v5240_v4 = vld [vmem:[#allocation2 + $0x48] sm:$0xff]  ;;  %s4856_s30 = sld [smem:[#allocation5 + $0x10]] }
  0x17   :  { %v151_v15 = vrot.slane %v143_v13, 1  ;;  %v152_v16 = vrot.slane %v144_v14, 1  ;;  %v175_v27 = vmul.f32 %v174_v24, %v5166_v1  ;;  %v177_v28 = vmul.f32 %v174_v24, %v5164_v0  ;;  %s4857_s3 = sld [smem:[#allocation5 + $0x11]] }
  0x18   :  { %v154_v22 = vrot.slane %v145_v19, 1  ;;  %v155_v23 = vrot.slane %v146_v20, 1  ;;  %v178_v29 = vmul.f32 %v174_v24, %v5174_v7  ;;  %v184_v30 = vrot.slane %v176_v26, 1  ;;  %s4859_s4 = sld [smem:[#allocation5 + $0x13]] }
  0x19   :  { %v153_v21 = vsel %vm126_vm0, %v151_v15, %v152_v16  ;;  %v183_v31 = vrot.slane %v175_v27, 1  ;;  %v186_v32 = vrot.slane %v177_v28, 1  ;;  %v231_v34 = vstv %s4847_s24  ;;  %s4860_s5 = sld [smem:[#allocation5 + $0x14]] }
  0x1a   :  { %v156_v25 = vsel %vm126_vm0, %v154_v22, %v155_v23  ;;  %v187_v33 = vrot.slane %v178_v29, 1  ;;  %v232_v36 = vmul.f32 %v231_v34, %v5166_v1  ;;  %v233_v37 = vmul.f32 %v231_v34, %v5176_v8  ;;  %s4862_s6 = sld [smem:[#allocation5 + $0x16]] }
  0x1b   :  { %v185_v35 = vsel %vm126_vm0, %v183_v31, %v184_v30  ;;  %v263_v41 = vstv %s4848_s25  ;;  %v235_v43 = vmul.f32 %v231_v34, %v5174_v7  ;;  %v234_v44 = vmul.f32 %v231_v34, %v5164_v0  ;;  %s4863_s7 = sld [smem:[#allocation5 + $0x17]] }
  0x1c   :  { %v188_v38 = vsel %vm126_vm0, %v186_v32, %v187_v33  ;;  %v240_v39 = vrot.slane %v232_v36, 2  ;;  %v241_v40 = vrot.slane %v233_v37, 2  ;;  %v264_v45 = vmul.f32 %v263_v41, %v5166_v1  ;;  %s4865_s8 = sld [smem:[#allocation5 + $0x19]] }
  0x1d   :  { %80 = vrot.lane.b32.xlu1 %v69_v10, %s5141_s1  ;;  %76 = vrot.lane.b32.xlu0 %v67_v11, %s5141_s1  ;;  %v265_v46 = vmul.f32 %v263_v41, %v5176_v8  ;;  %v244_v47 = vrot.slane %v235_v43, 2  ;;  %v243_v48 = vrot.slane %v234_v44, 2  ;;  %v266_v52 = vmul.f32 %v263_v41, %v5164_v0  ;;  %s4866_s9 = sld [smem:[#allocation5 + $0x1a]] }
  0x1e   :  { %102 = vrot.lane.b32.xlu2 %v93_v12, %s5142_s22  ;;  %v242_v42 = vsel %vm215_vm1, %v240_v39, %v241_v40  ;;  %v272_v49 = vrot.slane %v264_v45, 2  ;;  %v267_v53 = vmul.f32 %v263_v41, %v5174_v7  ;;  %v305_v59 = vstv %s4850_s26  ;;  %s4869_s10 = sld [smem:[#allocation5 + $0x1c]] }
  0x1f   :  { %v273_v50 = vrot.slane %v265_v46, 2  ;;  %v245_v51 = vsel %vm215_vm1, %v243_v48, %v244_v47  ;;  %v275_v55 = vrot.slane %v266_v52, 2  ;;  %v307_v62 = vmul.f32 %v305_v59, %v5228_v58  ;;  %s4870_s11 = sld [smem:[#allocation5 + $0x1d]] }
  0x20   :  { %v276_v56 = vrot.slane %v267_v53, 2  ;;  %v306_v63 = vmul.f32 %v305_v59, %v5230_v60  ;;  %v308_v2 = vmul.f32 %v305_v59, %v5232_v61  ;;  %v331_v3 = vstv %s4851_s27  ;;  %s4872_s12 = sld [smem:[#allocation5 + $0x1f]] }
  0x21   :  { %v274_v54 = vsel %vm215_vm1, %v272_v49, %v273_v50  ;;  %v381_v5 = vstv %s4853_s28  ;;  %v332_v6 = vmul.f32 %v331_v3, %v5230_v60  ;;  %v309_v9 = vmul.f32 %v305_v59, %v5240_v4  ;;  %s4873_s13 = sld [smem:[#allocation5 + $0x20]] }
  0x22   :  { %v277_v57 = vsel %vm215_vm1, %v275_v55, %v276_v56  ;;  %v333_v10 = vmul.f32 %v331_v3, %v5228_v58  ;;  %v382_v11 = vmul.f32 %v381_v5, %v5230_v60  ;;  %v383_v12 = vmul.f32 %v381_v5, %v5228_v58  ;;  %s4875_s14 = sld [smem:[#allocation5 + $0x22]] }
  0x23   :  { %v335_v15 = vmul.f32 %v331_v3, %v5240_v4  ;;  %v413_v22 = vstv %s4854_s29  ;;  %v469_v32 = vstv %s4856_s30  ;;  %v501_v41 = vstv %s4857_s3  ;;  %s4876_s15 = sld [smem:[#allocation5 + $0x23]] }
  0x24   :  { %v390_v13 = vrot.slane %v382_v11, 1  ;;  %v391_v14 = vrot.slane %v383_v12, 1  ;;  %v415_v24 = vmul.f32 %v413_v22, %v5228_v58  ;;  %v416_v26 = vmul.f32 %v413_v22, %v5232_v61  ;;  %v5312_v11 = vld [vmem:[#allocation2 + $0x50] sm:$0xff]  ;;  %s4878_s16 = sld [smem:[#allocation5 + $0x25]] }
  0x25   :  { %106 = vrot.lane.b32.xlu1 %v95_v17, %s5142_s22  ;;  %104 = vrot.lane.b32.xlu0 %v94_v18, %s5142_s22  ;;  %v384_v17 = vmul.f32 %v381_v5, %v5232_v61  ;;  %v385_v18 = vmul.f32 %v381_v5, %v5240_v4  ;;  %v417_v27 = vmul.f32 %v413_v22, %v5240_v4  ;;  %v543_v5 = vstv %s4859_s4  ;;  %s4879_s17 = sld [smem:[#allocation5 + $0x26]] }
  0x26   :  { %157 = vrot.lane.b32.xlu2 %v153_v21, %s5141_s1  ;;  %v392_v19 = vsel %vm126_vm0, %v390_v13, %v391_v14  ;;  %v423_v28 = vrot.slane %v415_v24, 1  ;;  %v471_v36 = vmul.f32 %v469_v32, %v5228_v58  ;;  %v473_v43 = vmul.f32 %v469_v32, %v5240_v4  ;;  %s4881_s18 = sld [smem:[#allocation5 + $0x28]] }
  0x27   :  { %v393_v20 = vrot.slane %v384_v17, 1  ;;  %v394_v21 = vrot.slane %v385_v18, 1  ;;  %v426_v31 = vrot.slane %v417_v27, 1  ;;  %v472_v44 = vmul.f32 %v469_v32, %v5232_v61  ;;  %v5322_v17 = vld [vmem:[#allocation2 + $0x58] sm:$0xff]  ;;  %s4882_s19 = sld [smem:[#allocation5 + $0x29]] }
  0x28   :  { %v479_v39 = vrot.slane %v471_v36, 2  ;;  %v502_v45 = vmul.f32 %v501_v41, %v5230_v60  ;;  %v503_v46 = vmul.f32 %v501_v41, %v5228_v58  ;;  %v504_v53 = vmul.f32 %v501_v41, %v5232_v61  ;;  %s4884_s0 = sld [smem:[#allocation5 + $0x2b]] }
  0x29   :  { %v481_v48 = vrot.slane %v472_v44, 2  ;;  %s4885_s20 = sld [smem:[#allocation5 + $0x2c]] }
  0x2a   :  { %v510_v49 = vrot.slane %v502_v45, 2  ;;  %s4887_s21 = sld [smem:[#allocation5 + $0x2e]] }
  0x2b   :  { %s4888_s23 = sld [smem:[#allocation5 + $0x2f]] }
  0x2c   :  { %s4890_s24 = sld [smem:[#allocation5 + $0x31]] }
  0x2d   :  { %161 = vrot.lane.b32.xlu1 %v156_v25, %s5141_s1  ;;  %159 = vrot.lane.b32.xlu0 %v152_v16, %s5141_s1  ;;  %v334_v16 = vmul.f32 %v331_v3, %v5232_v61  ;;  %v414_v25 = vmul.f32 %v413_v22, %v5230_v60  ;;  %v5304_v3 = vld [vmem:[#allocation2 + $0x28] sm:$0xff]  ;;  %s4891_s25 = sld [smem:[#allocation5 + $0x32]] }
  0x2e   :  { %163 = vrot.lane.b32.xlu2 %v155_v23, %s5141_s1  ;;  %v395_v23 = vsel %vm126_vm0, %v393_v20, %v394_v21  ;;  %v545_v13 = vmul.f32 %v543_v5, %v5304_v3  ;;  %s4893_s26 = sld [smem:[#allocation5 + $0x34]] }
  0x2f   :  { %v422_v29 = vrot.slane %v414_v25, 1  ;;  %s4894_s27 = sld [smem:[#allocation5 + $0x35]] }
  0x30   :  { %s4897_s28 = sld [smem:[#allocation5 + $0x37]] }
  0x31   :  { %v424_v34 = vsel %vm126_vm0, %v422_v29, %v423_v28  ;;  %s4898_s29 = sld [smem:[#allocation5 + $0x38]] }
  0x32   :  { %s4900_s30 = sld [smem:[#allocation5 + $0x3a]] }
  0x33   :  { %s4901_s3 = sld [smem:[#allocation5 + $0x3b]] }
  0x34   :  { %s4903_s4 = sld [smem:[#allocation5 + $0x3d]] }
  0x35   :  { %191 = vrot.lane.b32.xlu1 %v184_v30, %s5142_s22  ;;  %189 = vrot.lane.b32.xlu0 %v185_v35, %s5142_s22  ;;  %v425_v30 = vrot.slane %v416_v26, 1  ;;  %v470_v35 = vmul.f32 %v469_v32, %v5230_v60 }
  0x36   :  { %193 = vrot.lane.b32.xlu2 %v188_v38, %s5142_s22 }
  0x37   :  { %v427_v37 = vsel %vm126_vm0, %v425_v30, %v426_v31  ;;  %v478_v38 = vrot.slane %v470_v35, 2 }
  0x3d   :  { %246 = vrot.lane.b32.xlu1 %v242_v42, %s5141_s1  ;;  %195 = vrot.lane.b32.xlu0 %v187_v33, %s5142_s22  ;;  %v480_v42 = vsel %vm215_vm1, %v478_v38, %v479_v39 }
  0x3e   :  { %248 = vrot.lane.b32.xlu2 %v241_v40, %s5141_s1 }
  0x45   :  { %252 = vrot.lane.b32.xlu1 %v244_v47, %s5141_s1  ;;  %250 = vrot.lane.b32.xlu0 %v245_v51, %s5141_s1  ;;  %v482_v47 = vrot.slane %v473_v43, 2  ;;  %v651_v43 = vstv %s4863_s7  ;;  %s4907_s7 = sld [smem:[#allocation5 + $0x41]] }
  0x46   :  { %278 = vrot.lane.b32.xlu2 %v274_v54, %s5142_s22  ;;  %v505_v54 = vmul.f32 %v501_v41, %v5240_v4 }
  0x47   :  { %v483_v52 = vsel %vm215_vm1, %v481_v48, %v482_v47  ;;  %v654_v48 = vmul.f32 %v651_v43, %v5312_v11 }
  0x4d   :  { %282 = vrot.lane.b32.xlu1 %v277_v57, %s5142_s22  ;;  %280 = vrot.lane.b32.xlu0 %v273_v50, %s5142_s22  ;;  %v511_v50 = vrot.slane %v503_v46, 2  ;;  %v514_v57 = vrot.slane %v505_v54, 2  ;;  %v653_v46 = vmul.f32 %v651_v43, %v5304_v3 }
  0x4e   :  { %284 = vrot.lane.b32.xlu2 %v276_v56, %s5142_s22  ;;  %v513_v56 = vrot.slane %v504_v53, 2 }
  0x4f   :  { %v512_v55 = vsel %vm215_vm1, %v510_v49, %v511_v50  ;;  %v655_v49 = vmul.f32 %v651_v43, %v5322_v17 }
  0x55   :  { %316 = vrot.lane.b32.xlu1 %v307_v62, %s5141_s1  ;;  %314 = vrot.lane.b32.xlu0 %v306_v63, %s5141_s1 }
  0x56   :  { %318 = vrot.lane.b32.xlu2 %v308_v2, %s5141_s1  ;;  %v515_v2 = vsel %vm215_vm1, %v513_v56, %v514_v57  ;;  %v664_v56 = vrot.slane %v655_v49, 1 }
  0x5d   :  { %340 = vrot.lane.b32.xlu1 %v332_v6, %s5142_s22  ;;  %320 = vrot.lane.b32.xlu0 %v309_v9, %s5141_s1  ;;  %v5306_v6 = vld [vmem:[#allocation2 + $0x20] sm:$0xff] }
  0x5e   :  { %342 = vrot.lane.b32.xlu2 %v333_v10, %s5142_s22 }
  0x65   :  { %346 = vrot.lane.b32.xlu1 %v335_v15, %s5142_s22  ;;  %344 = vrot.lane.b32.xlu0 %v334_v16, %s5142_s22  ;;  %v546_v15 = vmul.f32 %v543_v5, %v5312_v11  ;;  %v569_v16 = vstv %s4860_s5  ;;  %s4904_s5 = sld [smem:[#allocation5 + $0x3e]] }
  0x66   :  { %396 = vrot.lane.b32.xlu2 %v392_v19, %s5141_s1  ;;  %v570_v22 = vmul.f32 %v569_v16, %v5306_v6  ;;  %v571_v24 = vmul.f32 %v569_v16, %v5304_v3  ;;  %v573_v32 = vmul.f32 %v569_v16, %v5322_v17 }
  0x6d   :  { %400 = vrot.lane.b32.xlu1 %v395_v23, %s5141_s1  ;;  %398 = vrot.lane.b32.xlu0 %v391_v14, %s5141_s1  ;;  %v544_v14 = vmul.f32 %v543_v5, %v5306_v6  ;;  %v547_v23 = vmul.f32 %v543_v5, %v5322_v17 }
  0x6e   :  { %402 = vrot.lane.b32.xlu2 %v394_v21, %s5141_s1  ;;  %v619_v21 = vstv %s4862_s6  ;;  %s4906_s6 = sld [smem:[#allocation5 + $0x40]] }
  0x6f   :  { %v620_v25 = vmul.f32 %v619_v21, %v5306_v6  ;;  %v621_v26 = vmul.f32 %v619_v21, %v5304_v3  ;;  %v622_v35 = vmul.f32 %v619_v21, %v5312_v11  ;;  %v623_v36 = vmul.f32 %v619_v21, %v5322_v17 }
  0x70   :  { %v5266_v33 = vpop.permute.xlu2 %100 }
  0x71   :  { %v628_v29 = vrot.slane %v620_v25, 1  ;;  %v629_v30 = vrot.slane %v621_v26, 1  ;;  %v631_v38 = vrot.slane %v622_v35, 1  ;;  %v739_v25 = vstv %s4866_s9  ;;  %s54_s9 = sld [smem:[#allocation5]] }
  0x75   :  { %430 = vrot.lane.b32.xlu1 %v423_v28, %s5142_s22  ;;  %428 = vrot.lane.b32.xlu0 %v424_v34, %s5142_s22  ;;  %v572_v34 = vmul.f32 %v569_v16, %v5312_v11 }
  0x76   :  { %432 = vrot.lane.b32.xlu2 %v427_v37, %s5142_s22  ;;  %v630_v37 = vsel %vm126_vm0, %v628_v29, %v629_v30 }
  0x78   :  { %v5275_v40 = vpop.permute.xlu2 %102 }
  0x7d   :  { %484 = vrot.lane.b32.xlu1 %v480_v42, %s5141_s1  ;;  %434 = vrot.lane.b32.xlu0 %v426_v31, %s5142_s22 }
  0x7e   :  { %486 = vrot.lane.b32.xlu2 %v479_v39, %s5141_s1  ;;  %v632_v39 = vrot.slane %v623_v36, 1 }
  0x80   :  { %v5285_v51 = vpop.permute.xlu2 %157  ;;  %v633_v45 = vsel %vm126_vm0, %v631_v38, %v632_v39 }
  0x85   :  { %490 = vrot.lane.b32.xlu1 %v482_v47, %s5141_s1  ;;  %488 = vrot.lane.b32.xlu0 %v483_v52, %s5141_s1  ;;  %v652_v47 = vmul.f32 %v651_v43, %v5306_v6 }
  0x86   :  { %516 = vrot.lane.b32.xlu2 %v512_v55, %s5142_s22  ;;  %v663_v55 = vrot.slane %v654_v48, 1  ;;  %v743_v48 = vmul.f32 %v739_v25, %v5322_v17 }
  0x87   :  { %v5294_v59 = vpop.permute.xlu1 %78  ;;  %v5296_v62 = vpop.permute.xlu0 %74  ;;  %v660_v52 = vrot.slane %v652_v47, 1  ;;  %v742_v47 = vmul.f32 %v739_v25, %v5312_v11 }
  0x88   :  { %v5298_v63 = vpop.permute.xlu2 %163 }
  0x8d   :  { %520 = vrot.lane.b32.xlu1 %v515_v2, %s5142_s22  ;;  %518 = vrot.lane.b32.xlu0 %v511_v50, %s5142_s22  ;;  %v661_v50 = vrot.slane %v653_v46, 1 }
  0x8e   :  { %522 = vrot.lane.b32.xlu2 %v514_v57, %s5142_s22  ;;  %v707_v57 = vstv %s4865_s8  ;;  %s4909_s8 = sld [smem:[#allocation5 + $0x43]] }
  0x8f   :  { %v5308_v9 = vpop.permute.xlu1 %80  ;;  %v5310_v10 = vpop.permute.xlu0 %76  ;;  %v662_v5 = vsel %vm126_vm0, %v660_v52, %v661_v50  ;;  %v711_v29 = vmul.f32 %v707_v57, %v5322_v17  ;;  %v752_v52 = vrot.slane %v743_v48, 2 }
  0x90   :  { %v5314_v12 = vpop.permute.xlu2 %193 }
  0x91   :  { %v720_v35 = vrot.slane %v711_v29, 2  ;;  %v809_v29 = vstv %s4870_s11  ;;  %s4843_s11 = sld [smem:[#allocation5 + $0x3]] }
  0x95   :  { %554 = vrot.lane.b32.xlu1 %v545_v13, %s5141_s1  ;;  %552 = vrot.lane.b32.xlu0 %v544_v14, %s5141_s1  ;;  %v708_v13 = vmul.f32 %v707_v57, %v5306_v6  ;;  %v709_v14 = vmul.f32 %v707_v57, %v5304_v3 }
  0x96   :  { %556 = vrot.lane.b32.xlu2 %v546_v15, %s5141_s1  ;;  %v665_v15 = vsel %vm126_vm0, %v663_v55, %v664_v56 }
  0x97   :  { %v5324_v18 = vpop.permute.xlu1 %106  ;;  %v5326_v19 = vpop.permute.xlu0 %104  ;;  %v716_v16 = vrot.slane %v708_v13, 2  ;;  %v717_v21 = vrot.slane %v709_v14, 2  ;;  %v783_v13 = vstv %s4869_s10  ;;  %s4840_s10 = sld [smem:[#allocation5 + $0x51]] }
  0x98   :  { %v5328_v20 = vpop.permute.xlu2 %248 }
  0x99   :  { %v718_v26 = vsel %vm215_vm1, %v716_v16, %v717_v21 }
  0x9d   :  { %578 = vrot.lane.b32.xlu1 %v570_v22, %s5142_s22  ;;  %558 = vrot.lane.b32.xlu0 %v547_v23, %s5141_s1 }
  0x9e   :  { %580 = vrot.lane.b32.xlu2 %v571_v24, %s5142_s22 }
  0x9f   :  { %v5338_v27 = vpop.permute.xlu1 %161  ;;  %v5340_v28 = vpop.permute.xlu0 %159 }
  0xa0   :  { %v5342_v31 = vpop.permute.xlu2 %278 }
  0xa5   :  { %584 = vrot.lane.b32.xlu1 %v573_v32, %s5142_s22  ;;  %582 = vrot.lane.b32.xlu0 %v572_v34, %s5142_s22  ;;  %v740_v32 = vmul.f32 %v739_v25, %v5306_v6  ;;  %v741_v34 = vmul.f32 %v739_v25, %v5304_v3  ;;  %v784_v25 = vmul.f32 %v783_v13, %v5166_v1 }
  0xa6   :  { %634 = vrot.lane.b32.xlu2 %v630_v37, %s5141_s1 }
  0xa7   :  { %v5352_v41 = vpop.permute.xlu1 %191  ;;  %v5354_v42 = vpop.permute.xlu0 %189  ;;  %v749_v43 = vrot.slane %v741_v34, 2 }
  0xa8   :  { %v5356_v44 = vpop.permute.xlu2 %284 }
  0xad   :  { %638 = vrot.lane.b32.xlu1 %v633_v45, %s5141_s1  ;;  %636 = vrot.lane.b32.xlu0 %v629_v30, %s5141_s1  ;;  %v710_v30 = vmul.f32 %v707_v57, %v5312_v11 }
  0xae   :  { %640 = vrot.lane.b32.xlu2 %v632_v39, %s5141_s1  ;;  %v748_v39 = vrot.slane %v740_v32, 2 }
  0xaf   :  { %v5366_v53 = vpop.permute.xlu1 %246  ;;  %v5368_v54 = vpop.permute.xlu0 %195  ;;  %v719_v36 = vrot.slane %v710_v30, 2 }
  0xb0   :  { %v5370_v2 = vpop.permute.xlu2 %318  ;;  %v750_v49 = vsel %vm215_vm1, %v748_v39, %v749_v43  ;;  %v787_v39 = vmul.f32 %v783_v13, %v5174_v7 }
  0xb1   :  { %v721_v46 = vsel %vm215_vm1, %v719_v36, %v720_v35  ;;  %v810_v36 = vmul.f32 %v809_v29, %v5166_v1 }
  0xb5   :  { %668 = vrot.lane.b32.xlu1 %v661_v50, %s5142_s22  ;;  %666 = vrot.lane.b32.xlu0 %v662_v5, %s5142_s22  ;;  %v751_v50 = vrot.slane %v742_v47, 2 }
  0xb6   :  { %670 = vrot.lane.b32.xlu2 %v665_v15, %s5142_s22 }
  0xb7   :  { %v5379_v22 = vpop.permute.xlu1 %252  ;;  %v5381_v23 = vpop.permute.xlu0 %250  ;;  %v753_v5 = vsel %vm215_vm1, %v751_v50, %v752_v52 }
  0xb8   :  { %v5383_v24 = vpop.permute.xlu2 %342 }
  0xbd   :  { %722 = vrot.lane.b32.xlu1 %v718_v26, %s5141_s1  ;;  %672 = vrot.lane.b32.xlu0 %v664_v56, %s5142_s22  ;;  %v786_v26 = vmul.f32 %v783_v13, %v5164_v0 }
  0xbe   :  { %724 = vrot.lane.b32.xlu2 %v717_v21, %s5141_s1  ;;  %v785_v21 = vmul.f32 %v783_v13, %v5176_v8  ;;  %v813_v13 = vmul.f32 %v809_v29, %v5174_v7 }
  0xbf   :  { %v5393_v37 = vpop.permute.xlu1 %282  ;;  %v5395_v38 = vpop.permute.xlu0 %280 }
  0xc0   :  { %v5397_v45 = vpop.permute.xlu2 %396 }
  0xc5   :  { %728 = vrot.lane.b32.xlu1 %v720_v35, %s5141_s1  ;;  %726 = vrot.lane.b32.xlu0 %v721_v46, %s5141_s1  ;;  %v859_v35 = vstv %s4872_s12  ;;  %s4910_s12 = sld [smem:[#allocation5 + $0x44]] }
  0xc6   :  { %754 = vrot.lane.b32.xlu2 %v750_v49, %s5142_s22  ;;  %v860_v46 = vmul.f32 %v859_v35, %v5166_v1  ;;  %v861_v47 = vmul.f32 %v859_v35, %v5176_v8 }
  0xc7   :  { %v5406_v55 = vpop.permute.xlu1 %316  ;;  %v5408_v56 = vpop.permute.xlu0 %314 }
  0xc8   :  { %v5410_v57 = vpop.permute.xlu2 %402  ;;  %v868_v50 = vrot.slane %v860_v46, 1 }
  0xc9   :  { %8951 = vst [vmem:[#allocation8_spill] sm:$0xff] %v5410_v57  ;;  %v947_v57 = vstv %s4875_s14  ;;  %s5899_s14 = sld [smem:[#allocation5 + $0x46]] }
  0xcd   :  { %758 = vrot.lane.b32.xlu1 %v753_v5, %s5142_s22  ;;  %756 = vrot.lane.b32.xlu0 %v749_v43, %s5142_s22  ;;  %v811_v43 = vmul.f32 %v809_v29, %v5176_v8 }
  0xce   :  { %760 = vrot.lane.b32.xlu2 %v752_v52, %s5142_s22  ;;  %v869_v52 = vrot.slane %v861_v47, 1 }
  0xcf   :  { %v5416_v14 = vpop.permute.xlu1 %340  ;;  %v5418_v15 = vpop.permute.xlu0 %320 }
  0xd0   :  { %v5420_v16 = vpop.permute.xlu2 %432 }
  0xd1   :  { %8952 = vst [vmem:[#allocation9_spill] sm:$0xff] %v5420_v16 }
  0xd5   :  { %794 = vrot.lane.b32.xlu1 %v785_v21, %s5141_s1  ;;  %792 = vrot.lane.b32.xlu0 %v784_v25, %s5141_s1  ;;  %v812_v21 = vmul.f32 %v809_v29, %v5164_v0  ;;  %v862_v25 = vmul.f32 %v859_v35, %v5164_v0 }
  0xd6   :  { %796 = vrot.lane.b32.xlu2 %v786_v26, %s5141_s1  ;;  %v863_v26 = vmul.f32 %v859_v35, %v5174_v7 }
  0xd7   :  { %v5428_v30 = vpop.permute.xlu1 %346  ;;  %v5430_v32 = vpop.permute.xlu0 %344 }
  0xd8   :  { %v5432_v34 = vpop.permute.xlu2 %486 }
  0xd9   :  { %8953 = vst [vmem:[#allocation10_spill] sm:$0xff] %v5432_v34 }
  0xdd   :  { %818 = vrot.lane.b32.xlu1 %v810_v36, %s5142_s22  ;;  %798 = vrot.lane.b32.xlu0 %v787_v39, %s5141_s1  ;;  %v870_v36 = vsel %vm126_vm0, %v868_v50, %v869_v52  ;;  %v871_v39 = vrot.slane %v862_v25, 1 }
  0xde   :  { %820 = vrot.lane.b32.xlu2 %v811_v43, %s5142_s22  ;;  %v872_v43 = vrot.slane %v863_v26, 1 }
  0xdf   :  { %v5442_v48 = vpop.permute.xlu1 %400  ;;  %v5444_v49 = vpop.permute.xlu0 %398 }
  0xe0   :  { %8954 = vst [vmem:[#allocation11_spill] sm:$0xff] %v5442_v48  ;;  %v5446_v5 = vpop.permute.xlu2 %516  ;;  %v873_v35 = vsel %vm126_vm0, %v871_v39, %v872_v43 }
  0xe1   :  { %8955 = vst [vmem:[#allocation12_spill] sm:$0xff] %v5444_v49 }
  0xe2   :  { %8956 = vst [vmem:[#allocation13_spill] sm:$0xff] %v5446_v5  ;;  %v891_v5 = vstv %s4873_s13  ;;  %s4846_s13 = sld [smem:[#allocation5 + $0x6]] }
  0xe3   :  { %v893_v50 = vmul.f32 %v891_v5, %v5176_v8 }
  0xe5   :  { %824 = vrot.lane.b32.xlu1 %v813_v13, %s5142_s22  ;;  %822 = vrot.lane.b32.xlu0 %v812_v21, %s5142_s22  ;;  %v892_v13 = vmul.f32 %v891_v5, %v5166_v1  ;;  %v894_v21 = vmul.f32 %v891_v5, %v5164_v0  ;;  %v901_v25 = vrot.slane %v893_v50, 1 }
  0xe6   :  { %874 = vrot.lane.b32.xlu2 %v870_v36, %s5141_s1  ;;  %v895_v36 = vmul.f32 %v891_v5, %v5174_v7 }
  0xe7   :  { %v5456_v46 = vpop.permute.xlu1 %430  ;;  %v5458_v47 = vpop.permute.xlu0 %428  ;;  %v900_v26 = vrot.slane %v892_v13, 1  ;;  %v903_v39 = vrot.slane %v894_v21, 1 }
  0xe8   :  { %8957 = vst [vmem:[#allocation14_spill] sm:$0xff] %v5456_v46  ;;  %v5460_v29 = vpop.permute.xlu2 %522  ;;  %v904_v16 = vrot.slane %v895_v36, 1 }
  0xe9   :  { %8958 = vst [vmem:[#allocation15_spill] sm:$0xff] %v5458_v47  ;;  %v902_v5 = vsel %vm126_vm0, %v900_v26, %v901_v25  ;;  %v979_v26 = vstv %s4876_s15  ;;  %s5931_s15 = sld [smem:[#allocation5 + $0x47]] }
  0xea   :  { %8959 = vst [vmem:[#allocation16_spill] sm:$0xff] %v5460_v29 }
  0xed   :  { %878 = vrot.lane.b32.xlu1 %v873_v35, %s5141_s1  ;;  %876 = vrot.lane.b32.xlu0 %v869_v52, %s5141_s1  ;;  %v948_v35 = vmul.f32 %v947_v57, %v5166_v1  ;;  %v949_v52 = vmul.f32 %v947_v57, %v5176_v8 }
  0xee   :  { %880 = vrot.lane.b32.xlu2 %v872_v43, %s5141_s1  ;;  %v905_v43 = vsel %vm126_vm0, %v903_v39, %v904_v16  ;;  %v950_v39 = vmul.f32 %v947_v57, %v5164_v0 }
  0xef   :  { %v5470_v34 = vpop.permute.xlu1 %484  ;;  %v5472_v29 = vpop.permute.xlu0 %434  ;;  %v956_v50 = vrot.slane %v948_v35, 2  ;;  %v957_v13 = vrot.slane %v949_v52, 2 }
  0xf0   :  { %8960 = vst [vmem:[#allocation17_spill] sm:$0xff] %v5470_v34  ;;  %v5474_v48 = vpop.permute.xlu2 %556  ;;  %v951_v34 = vmul.f32 %v947_v57, %v5174_v7  ;;  %v959_v52 = vrot.slane %v950_v39, 2  ;;  %v983_v57 = vmul.f32 %v979_v26, %v5174_v7  ;;  %v1021_v7 = vstv %s4878_s16  ;;  %s4849_s16 = sld [smem:[#allocation5 + $0x9]] }
  0xf1   :  { %8961 = vst [vmem:[#allocation18_spill] sm:$0xff] %v5472_v29  ;;  %v958_v29 = vsel %vm215_vm1, %v956_v50, %v957_v13 }
  0xf2   :  { %8962 = vst [vmem:[#allocation19_spill] sm:$0xff] %v5474_v48  ;;  %v960_v35 = vrot.slane %v951_v34, 2 }
  0xf5   :  { %908 = vrot.lane.b32.xlu1 %v901_v25, %s5142_s22  ;;  %906 = vrot.lane.b32.xlu0 %v902_v5, %s5142_s22  ;;  %v980_v25 = vmul.f32 %v979_v26, %v5166_v1  ;;  %v981_v5 = vmul.f32 %v979_v26, %v5176_v8  ;;  %v961_v1 = vsel %vm215_vm1, %v959_v52, %v960_v35 }
  0xf6   :  { %910 = vrot.lane.b32.xlu2 %v905_v43, %s5142_s22  ;;  %v982_v8 = vmul.f32 %v979_v26, %v5164_v0  ;;  %v1023_v52 = vmul.f32 %v1021_v7, %v5228_v58 }
  0xf7   :  { %v5483_v21 = vpop.permute.xlu1 %490  ;;  %v5485_v36 = vpop.permute.xlu0 %488  ;;  %v988_v50 = vrot.slane %v980_v25, 2 }
  0xf8   :  { %8963 = vst [vmem:[#allocation20_spill] sm:$0xff] %v5483_v21  ;;  %v5487_v48 = vpop.permute.xlu2 %580  ;;  %v991_v34 = vrot.slane %v982_v8, 2 }
  0xf9   :  { %8964 = vst [vmem:[#allocation21_spill] sm:$0xff] %v5485_v36  ;;  %v989_v36 = vrot.slane %v981_v5, 2 }
  0xfa   :  { %8965 = vst [vmem:[#allocation22_spill] sm:$0xff] %v5487_v48 }
  0xfd   :  { %962 = vrot.lane.b32.xlu1 %v958_v29, %s5141_s1  ;;  %912 = vrot.lane.b32.xlu0 %v904_v16, %s5142_s22  ;;  %v990_v16 = vsel %vm215_vm1, %v988_v50, %v989_v36  ;;  %v992_v29 = vrot.slane %v983_v57, 2  ;;  %v1022_v50 = vmul.f32 %v1021_v7, %v5230_v60 }
  0xfe   :  { %964 = vrot.lane.b32.xlu2 %v957_v13, %s5141_s1 }
  0xff   :  { %v5497_v43 = vpop.permute.xlu1 %520  ;;  %v5499_v48 = vpop.permute.xlu0 %518  ;;  %v993_v0 = vsel %vm215_vm1, %v991_v34, %v992_v29  ;;  %v1097_v34 = vstv %s4881_s18  ;;  %s5979_s18 = sld [smem:[#allocation5 + $0xf]] }
 0x100   :  { %8966 = vst [vmem:[#allocation23_spill] sm:$0xff] %v5497_v43  ;;  %v5501_v21 = vpop.permute.xlu2 %634 }
 0x101   :  { %8967 = vst [vmem:[#allocation24_spill] sm:$0xff] %v5499_v48 }
 0x102   :  { %8968 = vst [vmem:[#allocation25_spill] sm:$0xff] %v5501_v21 }
 0x105   :  { %968 = vrot.lane.b32.xlu1 %v960_v35, %s5141_s1  ;;  %966 = vrot.lane.b32.xlu0 %v961_v1, %s5141_s1  ;;  %v1024_v1 = vmul.f32 %v1021_v7, %v5232_v61 }
 0x106   :  { %994 = vrot.lane.b32.xlu2 %v990_v16, %s5142_s22 }
 0x107   :  { %v5510_v13 = vpop.permute.xlu1 %554  ;;  %v5512_v39 = vpop.permute.xlu0 %552 }
 0x108   :  { %8969 = vst [vmem:[#allocation26_spill] sm:$0xff] %v5510_v13  ;;  %v5514_v25 = vpop.permute.xlu2 %640 }
 0x109   :  { %8970 = vst [vmem:[#allocation27_spill] sm:$0xff] %v5512_v39 }
 0x10a   :  { %8971 = vst [vmem:[#allocation28_spill] sm:$0xff] %v5514_v25 }
 0x10d   :  { %998 = vrot.lane.b32.xlu1 %v993_v0, %s5142_s22  ;;  %996 = vrot.lane.b32.xlu0 %v989_v36, %s5142_s22  ;;  %v1047_v36 = vstv %s4879_s17  ;;  %v1025_v0 = vmul.f32 %v1021_v7, %v5240_v4  ;;  %s4852_s17 = sld [smem:[#allocation5 + $0xc]] }
 0x10e   :  { %1000 = vrot.lane.b32.xlu2 %v992_v29, %s5142_s22  ;;  %v1048_v29 = vmul.f32 %v1047_v36, %v5230_v60  ;;  %v1051_v21 = vmul.f32 %v1047_v36, %v5240_v4 }
 0x10f   :  { %v5520_v26 = vpop.permute.xlu1 %578  ;;  %v5522_v5 = vpop.permute.xlu0 %558 }
 0x110   :  { %8972 = vst [vmem:[#allocation29_spill] sm:$0xff] %v5520_v26  ;;  %v5524_v35 = vpop.permute.xlu2 %670 }
 0x111   :  { %8973 = vst [vmem:[#allocation30_spill] sm:$0xff] %v5522_v5  ;;  %v1100_v5 = vmul.f32 %v1097_v34, %v5232_v61 }
 0x112   :  { %8974 = vst [vmem:[#allocation31_spill] sm:$0xff] %v5524_v35  ;;  %v1049_v35 = vmul.f32 %v1047_v36, %v5228_v58 }
 0x115   :  { %1032 = vrot.lane.b32.xlu1 %v1023_v52, %s5141_s1  ;;  %1030 = vrot.lane.b32.xlu0 %v1022_v50, %s5141_s1  ;;  %v1098_v52 = vmul.f32 %v1097_v34, %v5230_v60  ;;  %v1099_v50 = vmul.f32 %v1097_v34, %v5228_v58 }
 0x116   :  { %1034 = vrot.lane.b32.xlu2 %v1024_v1, %s5141_s1 }
 0x117   :  { %v5532_v8 = vpop.permute.xlu1 %584  ;;  %v5534_v57 = vpop.permute.xlu0 %582  ;;  %v1106_v25 = vrot.slane %v1098_v52, 1 }
 0x118   :  { %8975 = vst [vmem:[#allocation32_spill] sm:$0xff] %v5532_v8  ;;  %v5536_v16 = vpop.permute.xlu2 %724  ;;  %v1050_v8 = vmul.f32 %v1047_v36, %v5232_v61 }
 0x119   :  { %8976 = vst [vmem:[#allocation33_spill] sm:$0xff] %v5534_v57  ;;  %v1107_v57 = vrot.slane %v1099_v50, 1 }
 0x11a   :  { %8977 = vst [vmem:[#allocation34_spill] sm:$0xff] %v5536_v16 }
 0x11d   :  { %1056 = vrot.lane.b32.xlu1 %v1048_v29, %s5142_s22  ;;  %1036 = vrot.lane.b32.xlu0 %v1025_v0, %s5141_s1  ;;  %v1101_v29 = vmul.f32 %v1097_v34, %v5240_v4  ;;  %v1108_v0 = vsel %vm126_vm0, %v1106_v25, %v1107_v57 }
 0x11e   :  { %1058 = vrot.lane.b32.xlu2 %v1049_v35, %s5142_s22  ;;  %v1109_v35 = vrot.slane %v1100_v5, 1 }
 0x11f   :  { %v5546_v1 = vpop.permute.xlu1 %638  ;;  %v5548_v16 = vpop.permute.xlu0 %636  ;;  %v1110_v52 = vrot.slane %v1101_v29, 1 }
 0x120   :  { %8978 = vst [vmem:[#allocation35_spill] sm:$0xff] %v5546_v1  ;;  %v5550_v7 = vpop.permute.xlu2 %754  ;;  %v1129_v1 = vstv %s4882_s19  ;;  %s4915_s19 = sld [smem:[#allocation5 + $0x49]] }
 0x121   :  { %8979 = vst [vmem:[#allocation36_spill] sm:$0xff] %v5548_v16  ;;  %v1111_v34 = vsel %vm126_vm0, %v1109_v35, %v1110_v52  ;;  %v1131_v25 = vmul.f32 %v1129_v1, %v5228_v58  ;;  %v1185_v16 = vstv %s4884_s0  ;;  %s6023_s0 = sld [smem:[#allocation5 + $0x12]] }
 0x122   :  { %8980 = vst [vmem:[#allocation37_spill] sm:$0xff] %v5550_v7 }
 0x123   :  { %v1139_v5 = vrot.slane %v1131_v25, 1 }
 0x125   :  { %1062 = vrot.lane.b32.xlu1 %v1051_v21, %s5142_s22  ;;  %1060 = vrot.lane.b32.xlu0 %v1050_v8, %s5142_s22  ;;  %v1130_v21 = vmul.f32 %v1129_v1, %v5230_v60  ;;  %v1132_v8 = vmul.f32 %v1129_v1, %v5232_v61 }
 0x126   :  { %1112 = vrot.lane.b32.xlu2 %v1108_v0, %s5141_s1  ;;  %v1133_v0 = vmul.f32 %v1129_v1, %v5240_v4 }
 0x127   :  { %v5560_v50 = vpop.permute.xlu1 %668  ;;  %v5562_v7 = vpop.permute.xlu0 %666  ;;  %v1138_v29 = vrot.slane %v1130_v21, 1  ;;  %v1141_v35 = vrot.slane %v1132_v8, 1 }
 0x128   :  { %8981 = vst [vmem:[#allocation38_spill] sm:$0xff] %v5560_v50  ;;  %v5564_v36 = vpop.permute.xlu2 %760 }
 0x129   :  { %8982 = vst [vmem:[#allocation39_spill] sm:$0xff] %v5562_v7  ;;  %v1142_v7 = vrot.slane %v1133_v0, 1  ;;  %v1140_v1 = vsel %vm126_vm0, %v1138_v29, %v1139_v5  ;;  %v1217_v29 = vstv %s4885_s20  ;;  %s6030_s20 = sld [smem:[#allocation5 + $0x4a]] }
 0x12a   :  { %8983 = vst [vmem:[#allocation40_spill] sm:$0xff] %v5564_v36 }
 0x12d   :  { %1116 = vrot.lane.b32.xlu1 %v1111_v34, %s5141_s1  ;;  %1114 = vrot.lane.b32.xlu0 %v1107_v57, %s5141_s1  ;;  %v1186_v34 = vmul.f32 %v1185_v16, %v5230_v60  ;;  %v1187_v57 = vmul.f32 %v1185_v16, %v5228_v58 }
 0x12e   :  { %1118 = vrot.lane.b32.xlu2 %v1110_v52, %s5141_s1  ;;  %v1143_v52 = vsel %vm126_vm0, %v1141_v35, %v1142_v7  ;;  %v1188_v35 = vmul.f32 %v1185_v16, %v5232_v61 }
 0x12f   :  { %v5574_v50 = vpop.permute.xlu1 %722  ;;  %v5576_v36 = vpop.permute.xlu0 %672  ;;  %v1194_v25 = vrot.slane %v1186_v34, 2  ;;  %v1195_v21 = vrot.slane %v1187_v57, 2 }
 0x130   :  { %8984 = vst [vmem:[#allocation41_spill] sm:$0xff] %v5574_v50  ;;  %v5578_v26 = vpop.permute.xlu2 %796  ;;  %v1189_v50 = vmul.f32 %v1185_v16, %v5240_v4  ;;  %v1197_v57 = vrot.slane %v1188_v35, 2  ;;  %v1221_v16 = vmul.f32 %v1217_v29, %v5240_v4  ;;  %v1259_v4 = vstv %s4887_s21  ;;  %s4918_s21 = sld [smem:[#allocation5 + $0x4c]] }
 0x131   :  { %8985 = vst [vmem:[#allocation42_spill] sm:$0xff] %v5576_v36  ;;  %v1196_v36 = vsel %vm215_vm1, %v1194_v25, %v1195_v21 }
 0x132   :  { %8986 = vst [vmem:[#allocation43_spill] sm:$0xff] %v5578_v26  ;;  %v1198_v34 = vrot.slane %v1189_v50, 2 }
 0x135   :  { %1146 = vrot.lane.b32.xlu1 %v1139_v5, %s5142_s22  ;;  %1144 = vrot.lane.b32.xlu0 %v1140_v1, %s5142_s22  ;;  %v1218_v5 = vmul.f32 %v1217_v29, %v5230_v60  ;;  %v1219_v1 = vmul.f32 %v1217_v29, %v5228_v58  ;;  %v1199_v60 = vsel %vm215_vm1, %v1197_v57, %v1198_v34 }
 0x136   :  { %1148 = vrot.lane.b32.xlu2 %v1143_v52, %s5142_s22  ;;  %v1220_v58 = vmul.f32 %v1217_v29, %v5232_v61  ;;  %v1261_v57 = vmul.f32 %v1259_v4, %v5304_v3 }
 0x137   :  { %v5587_v8 = vpop.permute.xlu1 %728  ;;  %v5589_v0 = vpop.permute.xlu0 %726  ;;  %v1226_v25 = vrot.slane %v1218_v5, 2 }
 0x138   :  { %8987 = vst [vmem:[#allocation44_spill] sm:$0xff] %v5587_v8  ;;  %v5591_v26 = vpop.permute.xlu2 %820  ;;  %v1229_v50 = vrot.slane %v1220_v58, 2 }
 0x139   :  { %8988 = vst [vmem:[#allocation45_spill] sm:$0xff] %v5589_v0  ;;  %v1227_v0 = vrot.slane %v1219_v1, 2 }
 0x13a   :  { %8989 = vst [vmem:[#allocation46_spill] sm:$0xff] %v5591_v26 }
 0x13d   :  { %1200 = vrot.lane.b32.xlu1 %v1196_v36, %s5141_s1  ;;  %1150 = vrot.lane.b32.xlu0 %v1142_v7, %s5142_s22  ;;  %v1228_v7 = vsel %vm215_vm1, %v1226_v25, %v1227_v0  ;;  %v1230_v36 = vrot.slane %v1221_v16, 2  ;;  %v1260_v25 = vmul.f32 %v1259_v4, %v5306_v6 }
 0x13e   :  { %1202 = vrot.lane.b32.xlu2 %v1195_v21, %s5141_s1 }
 0x13f   :  { %v5601_v52 = vpop.permute.xlu1 %758  ;;  %v5603_v26 = vpop.permute.xlu0 %756  ;;  %v1231_v61 = vsel %vm215_vm1, %v1229_v50, %v1230_v36  ;;  %v1335_v50 = vstv %s4890_s24  ;;  %s4864_s24 = sld [smem:[#allocation5 + $0x18]] }
 0x140   :  { %8990 = vst [vmem:[#allocation47_spill] sm:$0xff] %v5601_v52  ;;  %v5605_v8 = vpop.permute.xlu2 %874 }
 0x141   :  { %8991 = vst [vmem:[#allocation48_spill] sm:$0xff] %v5603_v26 }
 0x142   :  { %8992 = vst [vmem:[#allocation49_spill] sm:$0xff] %v5605_v8 }
 0x145   :  { %1206 = vrot.lane.b32.xlu1 %v1198_v34, %s5141_s1  ;;  %1204 = vrot.lane.b32.xlu0 %v1199_v60, %s5141_s1  ;;  %v1262_v60 = vmul.f32 %v1259_v4, %v5312_v11 }
 0x146   :  { %1232 = vrot.lane.b32.xlu2 %v1228_v7, %s5142_s22 }
 0x147   :  { %v5614_v21 = vpop.permute.xlu1 %794  ;;  %v5616_v35 = vpop.permute.xlu0 %792 }
 0x148   :  { %8993 = vst [vmem:[#allocation50_spill] sm:$0xff] %v5614_v21  ;;  %v5618_v5 = vpop.permute.xlu2 %880 }
 0x149   :  { %8994 = vst [vmem:[#allocation51_spill] sm:$0xff] %v5616_v35 }
 0x14a   :  { %8995 = vst [vmem:[#allocation52_spill] sm:$0xff] %v5618_v5 }
 0x14d   :  { %1236 = vrot.lane.b32.xlu1 %v1231_v61, %s5142_s22  ;;  %1234 = vrot.lane.b32.xlu0 %v1227_v0, %s5142_s22  ;;  %v1285_v0 = vstv %s4888_s23  ;;  %v1263_v61 = vmul.f32 %v1259_v4, %v5322_v17  ;;  %s4861_s23 = sld [smem:[#allocation5 + $0x15]] }
 0x14e   :  { %1238 = vrot.lane.b32.xlu2 %v1230_v36, %s5142_s22  ;;  %v1286_v36 = vmul.f32 %v1285_v0, %v5306_v6 }
 0x14f   :  { %v5624_v29 = vpop.permute.xlu1 %818  ;;  %v5626_v1 = vpop.permute.xlu0 %798 }
 0x150   :  { %8996 = vst [vmem:[#allocation53_spill] sm:$0xff] %v5624_v29  ;;  %v5628_v34 = vpop.permute.xlu2 %910 }
 0x151   :  { %8997 = vst [vmem:[#allocation54_spill] sm:$0xff] %v5626_v1  ;;  %v1338_v1 = vmul.f32 %v1335_v50, %v5312_v11 }
 0x152   :  { %8998 = vst [vmem:[#allocation55_spill] sm:$0xff] %v5628_v34  ;;  %v1287_v34 = vmul.f32 %v1285_v0, %v5304_v3 }
 0x155   :  { %1270 = vrot.lane.b32.xlu1 %v1261_v57, %s5141_s1  ;;  %1268 = vrot.lane.b32.xlu0 %v1260_v25, %s5141_s1  ;;  %v1336_v57 = vmul.f32 %v1335_v50, %v5306_v6  ;;  %v1337_v25 = vmul.f32 %v1335_v50, %v5304_v3 }
 0x156   :  { %1272 = vrot.lane.b32.xlu2 %v1262_v60, %s5141_s1 }
 0x157   :  { %v5636_v58 = vpop.permute.xlu1 %824  ;;  %v5638_v16 = vpop.permute.xlu0 %822  ;;  %v1344_v5 = vrot.slane %v1336_v57, 1  ;;  %v1345_v8 = vrot.slane %v1337_v25, 1 }
 0x158   :  { %8999 = vst [vmem:[#allocation56_spill] sm:$0xff] %v5636_v58  ;;  %v5640_v7 = vpop.permute.xlu2 %964  ;;  %v1289_v58 = vmul.f32 %v1285_v0, %v5322_v17 }
 0x159   :  { %9000 = vst [vmem:[#allocation57_spill] sm:$0xff] %v5638_v16  ;;  %v1288_v16 = vmul.f32 %v1285_v0, %v5312_v11 }
 0x15a   :  { %9001 = vst [vmem:[#allocation58_spill] sm:$0xff] %v5640_v7 }
 0x15d   :  { %1294 = vrot.lane.b32.xlu1 %v1286_v36, %s5142_s22  ;;  %1274 = vrot.lane.b32.xlu0 %v1263_v61, %s5141_s1  ;;  %v1339_v36 = vmul.f32 %v1335_v50, %v5322_v17  ;;  %v1346_v61 = vsel %vm126_vm0, %v1344_v5, %v1345_v8 }
 0x15e   :  { %1296 = vrot.lane.b32.xlu2 %v1287_v34, %s5142_s22  ;;  %v1347_v34 = vrot.slane %v1338_v1, 1 }
 0x15f   :  { %v5650_v60 = vpop.permute.xlu1 %878  ;;  %v5652_v7 = vpop.permute.xlu0 %876  ;;  %v1348_v57 = vrot.slane %v1339_v36, 1 }
 0x160   :  { %9002 = vst [vmem:[#allocation59_spill] sm:$0xff] %v5650_v60  ;;  %v5654_v4 = vpop.permute.xlu2 %994  ;;  %v1367_v60 = vstv %s4891_s25  ;;  %s4868_s25 = sld [smem:[#allocation5 + $0x1b]] }
 0x161   :  { %9003 = vst [vmem:[#allocation60_spill] sm:$0xff] %v5652_v7  ;;  %v1349_v50 = vsel %vm126_vm0, %v1347_v34, %v1348_v57  ;;  %v1369_v5 = vmul.f32 %v1367_v60, %v5304_v3  ;;  %v1423_v7 = vstv %s4893_s26  ;;  %s4867_s26 = sld [smem:[#allocation5 + $0x52]] }
 0x162   :  { %9004 = vst [vmem:[#allocation61_spill] sm:$0xff] %v5654_v4 }
 0x163   :  { %v1377_v1 = vrot.slane %v1369_v5, 1 }
 0x165   :  { %1300 = vrot.lane.b32.xlu1 %v1289_v58, %s5142_s22  ;;  %1298 = vrot.lane.b32.xlu0 %v1288_v16, %s5142_s22  ;;  %v1368_v58 = vmul.f32 %v1367_v60, %v5306_v6  ;;  %v1370_v16 = vmul.f32 %v1367_v60, %v5312_v11 }
 0x166   :  { %1350 = vrot.lane.b32.xlu2 %v1346_v61, %s5141_s1  ;;  %v1371_v61 = vmul.f32 %v1367_v60, %v5322_v17 }
 0x167   :  { %v5664_v25 = vpop.permute.xlu1 %908  ;;  %v5666_v4 = vpop.permute.xlu0 %906  ;;  %v1376_v36 = vrot.slane %v1368_v58, 1  ;;  %v1379_v34 = vrot.slane %v1370_v16, 1 }
 0x168   :  { %9005 = vst [vmem:[#allocation62_spill] sm:$0xff] %v5664_v25  ;;  %v5668_v0 = vpop.permute.xlu2 %1000  ;;  %v1380_v25 = vrot.slane %v1371_v61, 1 }
 0x169   :  { %9006 = vst [vmem:[#allocation63_spill] sm:$0xff] %v5666_v4  ;;  %v1378_v60 = vsel %vm126_vm0, %v1376_v36, %v1377_v1  ;;  %v1455_v36 = vstv %s4894_s27  ;;  %s4871_s27 = sld [smem:[#allocation5 + $0x1e]] }
 0x16a   :  { %9007 = vst [vmem:[#allocation64_spill] sm:$0xff] %v5668_v0 }
 0x16d   :  { %1354 = vrot.lane.b32.xlu1 %v1349_v50, %s5141_s1  ;;  %1352 = vrot.lane.b32.xlu0 %v1345_v8, %s5141_s1  ;;  %v1424_v50 = vmul.f32 %v1423_v7, %v5306_v6  ;;  %v1425_v8 = vmul.f32 %v1423_v7, %v5304_v3 }
 0x16e   :  { %1356 = vrot.lane.b32.xlu2 %v1348_v57, %s5141_s1  ;;  %v1381_v57 = vsel %vm126_vm0, %v1379_v34, %v1380_v25  ;;  %v1426_v34 = vmul.f32 %v1423_v7, %v5312_v11 }
 0x16f   :  { %v5678_v4 = vpop.permute.xlu1 %962  ;;  %v5680_v0 = vpop.permute.xlu0 %912  ;;  %v1432_v5 = vrot.slane %v1424_v50, 2  ;;  %v1433_v58 = vrot.slane %v1425_v8, 2 }
 0x170   :  { %9008 = vst [vmem:[#allocation65_spill] sm:$0xff] %v5678_v4  ;;  %v5682_v52 = vpop.permute.xlu2 %1034  ;;  %v1427_v4 = vmul.f32 %v1423_v7, %v5322_v17  ;;  %v1435_v8 = vrot.slane %v1426_v34, 2  ;;  %v1459_v7 = vmul.f32 %v1455_v36, %v5322_v17  ;;  %v1499_v17 = vstv %s4897_s28  ;;  %s6152_s28 = sld [smem:[#allocation5 + $0x4d]] }
 0x171   :  { %9009 = vst [vmem:[#allocation66_spill] sm:$0xff] %v5680_v0  ;;  %v1434_v0 = vsel %vm215_vm1, %v1432_v5, %v1433_v58 }
 0x172   :  { %9010 = vst [vmem:[#allocation67_spill] sm:$0xff] %v5682_v52  ;;  %v1436_v50 = vrot.slane %v1427_v4, 2 }
 0x175   :  { %1384 = vrot.lane.b32.xlu1 %v1377_v1, %s5142_s22  ;;  %1382 = vrot.lane.b32.xlu0 %v1378_v60, %s5142_s22  ;;  %v1456_v1 = vmul.f32 %v1455_v36, %v5306_v6  ;;  %v1457_v60 = vmul.f32 %v1455_v36, %v5304_v3  ;;  %v1437_v6 = vsel %vm215_vm1, %v1435_v8, %v1436_v50  ;;  %v5734_v8 = vld [vmem:[#allocation2 + $0x8] sm:$0xff] }
 0x176   :  { %1386 = vrot.lane.b32.xlu2 %v1381_v57, %s5142_s22  ;;  %v1458_v3 = vmul.f32 %v1455_v36, %v5312_v11 }
 0x177   :  { %v5691_v16 = vpop.permute.xlu1 %968  ;;  %v5693_v61 = vpop.permute.xlu0 %966  ;;  %v1464_v5 = vrot.slane %v1456_v1, 2 }
 0x178   :  { %9011 = vst [vmem:[#allocation68_spill] sm:$0xff] %v5691_v16  ;;  %v5695_v52 = vpop.permute.xlu2 %1058  ;;  %v1465_v16 = vrot.slane %v1457_v60, 2  ;;  %v1467_v4 = vrot.slane %v1458_v3, 2 }
 0x179   :  { %9012 = vst [vmem:[#allocation69_spill] sm:$0xff] %v5693_v61 }
 0x17a   :  { %9013 = vst [vmem:[#allocation70_spill] sm:$0xff] %v5695_v52 }
 0x17d   :  { %1438 = vrot.lane.b32.xlu1 %v1434_v0, %s5141_s1  ;;  %1388 = vrot.lane.b32.xlu0 %v1380_v25, %s5142_s22  ;;  %v1466_v25 = vsel %vm215_vm1, %v1464_v5, %v1465_v16  ;;  %v1468_v0 = vrot.slane %v1459_v7, 2  ;;  %v1501_v5 = vmul.f32 %v5734_v8, %v1499_v17 }
 0x17e   :  { %1440 = vrot.lane.b32.xlu2 %v1433_v58, %s5141_s1 }
 0x17f   :  { %v5705_v57 = vpop.permute.xlu1 %998  ;;  %v5707_v52 = vpop.permute.xlu0 %996  ;;  %v1469_v11 = vsel %vm215_vm1, %v1467_v4, %v1468_v0 }
 0x180   :  { %9014 = vst [vmem:[#allocation71_spill] sm:$0xff] %v5705_v57  ;;  %v5709_v61 = vpop.permute.xlu2 %1112 }
 0x181   :  { %9015 = vst [vmem:[#allocation72_spill] sm:$0xff] %v5707_v52 }
 0x182   :  { %9016 = vst [vmem:[#allocation73_spill] sm:$0xff] %v5709_v61  ;;  %v5753_v61 = vld [vmem:[#allocation2 + $0x38] sm:$0xff] }
 0x185   :  { %1444 = vrot.lane.b32.xlu1 %v1436_v50, %s5141_s1  ;;  %1442 = vrot.lane.b32.xlu0 %v1437_v6, %s5141_s1  ;;  %v5737_v6 = vld [vmem:[#allocation2] sm:$0xff] }
 0x186   :  { %1470 = vrot.lane.b32.xlu2 %v1466_v25, %s5142_s22  ;;  %9023 = vst [vmem:[#allocation80_spill] sm:$0xff] %v5737_v6  ;;  %v1500_v3 = vmul.f32 %v5737_v6, %v1499_v17  ;;  %v1525_v25 = vstv %s4898_s29  ;;  %s6163_s29 = sld [smem:[#allocation5 + $0x21]] }
 0x187   :  { %v5718_v58 = vpop.permute.xlu1 %1032  ;;  %v5720_v34 = vpop.permute.xlu0 %1030 }
 0x188   :  { %9017 = vst [vmem:[#allocation74_spill] sm:$0xff] %v5718_v58  ;;  %v5722_v1 = vpop.permute.xlu2 %1118 }
 0x189   :  { %9018 = vst [vmem:[#allocation75_spill] sm:$0xff] %v5720_v34  ;;  %v1529_v34 = vmul.f32 %v5753_v61, %v1525_v25 }
 0x18a   :  { %9019 = vst [vmem:[#allocation76_spill] sm:$0xff] %v5722_v1  ;;  %v1526_v1 = vmul.f32 %v5737_v6, %v1525_v25 }
 0x18d   :  { %1474 = vrot.lane.b32.xlu1 %v1469_v11, %s5142_s22  ;;  %1472 = vrot.lane.b32.xlu0 %v1465_v16, %s5142_s22  ;;  %v5740_v16 = vld [vmem:[#allocation2 + $0x30] sm:$0xff] }
 0x18e   :  { %1476 = vrot.lane.b32.xlu2 %v1468_v0, %s5142_s22  ;;  %v1502_v7 = vmul.f32 %v5740_v16, %v1499_v17  ;;  %v1528_v58 = vmul.f32 %v5740_v16, %v1525_v25 }
 0x18f   :  { %v5728_v36 = vpop.permute.xlu1 %1056  ;;  %v5730_v60 = vpop.permute.xlu0 %1036 }
 0x190   :  { %9020 = vst [vmem:[#allocation77_spill] sm:$0xff] %v5728_v36  ;;  %v5732_v50 = vpop.permute.xlu2 %1148 }
 0x191   :  { %9021 = vst [vmem:[#allocation78_spill] sm:$0xff] %v5730_v60  ;;  %v1503_v60 = vmul.f32 %v5753_v61, %v1499_v17 }
 0x192   :  { %9022 = vst [vmem:[#allocation79_spill] sm:$0xff] %v5732_v50  ;;  %v1575_v50 = vstv %s4900_s30  ;;  %s4877_s30 = sld [smem:[#allocation5 + $0x24]] }
 0x193   :  { %v1578_v57 = vmul.f32 %v5740_v16, %v1575_v50 }
 0x195   :  { %1510 = vrot.lane.b32.xlu1 %v1501_v5, %s5141_s1  ;;  %1508 = vrot.lane.b32.xlu0 %v1500_v3, %s5141_s1  ;;  %v1527_v5 = vmul.f32 %v5734_v8, %v1525_v25  ;;  %v1576_v3 = vmul.f32 %v5737_v6, %v1575_v50 }
 0x196   :  { %1512 = vrot.lane.b32.xlu2 %v1502_v7, %s5141_s1  ;;  %v1577_v7 = vmul.f32 %v5734_v8, %v1575_v50 }
 0x197   :  { %v5746_v4 = vpop.permute.xlu1 %1062  ;;  %v5748_v0 = vpop.permute.xlu0 %1060 }
 0x198   :  { %9024 = vst [vmem:[#allocation81_spill] sm:$0xff] %v5746_v4  ;;  %v5750_v11 = vpop.permute.xlu2 %1202  ;;  %v1585_v36 = vrot.slane %v1577_v7, 1 }
 0x199   :  { %9025 = vst [vmem:[#allocation82_spill] sm:$0xff] %v5748_v0  ;;  %v1584_v0 = vrot.slane %v1576_v3, 1 }
 0x19a   :  { %9026 = vst [vmem:[#allocation83_spill] sm:$0xff] %v5750_v11 }
 0x19d   :  { %1534 = vrot.lane.b32.xlu1 %v1526_v1, %s5142_s22  ;;  %1514 = vrot.lane.b32.xlu0 %v1503_v60, %s5141_s1  ;;  %v1579_v1 = vmul.f32 %v5753_v61, %v1575_v50  ;;  %v1586_v60 = vsel %vm126_vm0, %v1584_v0, %v1585_v36 }
 0x19e   :  { %1536 = vrot.lane.b32.xlu2 %v1527_v5, %s5142_s22  ;;  %v1587_v5 = vrot.slane %v1578_v57, 1 }
 0x19f   :  { %v5762_v11 = vpop.permute.xlu1 %1116  ;;  %v5764_v4 = vpop.permute.xlu0 %1114  ;;  %v1588_v3 = vrot.slane %v1579_v1, 1 }
 0x1a0   :  { %9027 = vst [vmem:[#allocation84_spill] sm:$0xff] %v5762_v11  ;;  %v5766_v17 = vpop.permute.xlu2 %1232  ;;  %v1607_v11 = vstv %s4901_s3  ;;  %s4880_s3 = sld [smem:[#allocation5 + $0x27]] }
 0x1a1   :  { %9028 = vst [vmem:[#allocation85_spill] sm:$0xff] %v5764_v4  ;;  %v1589_v50 = vsel %vm126_vm0, %v1587_v5, %v1588_v3  ;;  %v1609_v0 = vmul.f32 %v5734_v8, %v1607_v11  ;;  %v1663_v4 = vstv %s4903_s4  ;;  %s6270_s4 = sld [smem:[#allocation5 + $0x4f]] }
 0x1a2   :  { %9029 = vst [vmem:[#allocation86_spill] sm:$0xff] %v5766_v17 }
 0x1a3   :  { %v1617_v57 = vrot.slane %v1609_v0, 1 }
 0x1a5   :  { %1540 = vrot.lane.b32.xlu1 %v1529_v34, %s5142_s22  ;;  %1538 = vrot.lane.b32.xlu0 %v1528_v58, %s5142_s22  ;;  %v1608_v34 = vmul.f32 %v5737_v6, %v1607_v11  ;;  %v1610_v58 = vmul.f32 %v5740_v16, %v1607_v11 }
 0x1a6   :  { %1590 = vrot.lane.b32.xlu2 %v1586_v60, %s5141_s1  ;;  %v1611_v60 = vmul.f32 %v5753_v61, %v1607_v11 }
 0x1a7   :  { %v5776_v7 = vpop.permute.xlu1 %1146  ;;  %v5778_v17 = vpop.permute.xlu0 %1144  ;;  %v1616_v1 = vrot.slane %v1608_v34, 1  ;;  %v1619_v5 = vrot.slane %v1610_v58, 1 }
 0x1a8   :  { %9030 = vst [vmem:[#allocation87_spill] sm:$0xff] %v5776_v7  ;;  %v5780_v25 = vpop.permute.xlu2 %1238  ;;  %v1620_v7 = vrot.slane %v1611_v60, 1 }
 0x1a9   :  { %9031 = vst [vmem:[#allocation88_spill] sm:$0xff] %v5778_v17  ;;  %v1618_v11 = vsel %vm126_vm0, %v1616_v1, %v1617_v57  ;;  %v1695_v1 = vstv %s4904_s5  ;;  %s4883_s5 = sld [smem:[#allocation5 + $0x2a]] }
 0x1aa   :  { %9032 = vst [vmem:[#allocation89_spill] sm:$0xff] %v5780_v25  ;;  %v1698_v29 = vmul.f32 %v5740_v16, %v1695_v1 }
 0x1ad   :  { %1594 = vrot.lane.b32.xlu1 %v1589_v50, %s5141_s1  ;;  %1592 = vrot.lane.b32.xlu0 %v1585_v36, %s5141_s1  ;;  %v1664_v50 = vmul.f32 %v5737_v6, %v1663_v4  ;;  %v1665_v36 = vmul.f32 %v5734_v8, %v1663_v4 }
 0x1ae   :  { %1596 = vrot.lane.b32.xlu2 %v1588_v3, %s5141_s1  ;;  %v1621_v3 = vsel %vm126_vm0, %v1619_v5, %v1620_v7  ;;  %v1666_v5 = vmul.f32 %v5740_v16, %v1663_v4 }
 0x1af   :  { %v5790_v17 = vpop.permute.xlu1 %1200  ;;  %v5792_v25 = vpop.permute.xlu0 %1150  ;;  %v1672_v0 = vrot.slane %v1664_v50, 2  ;;  %v1673_v34 = vrot.slane %v1665_v36, 2 }
 0x1b0   :  { %9033 = vst [vmem:[#allocation90_spill] sm:$0xff] %v5790_v17  ;;  %v5794_v52 = vpop.permute.xlu2 %1272  ;;  %v1667_v17 = vmul.f32 %v5753_v61, %v1663_v4  ;;  %v1675_v36 = vrot.slane %v1666_v5, 2 }
 0x1b1   :  { %9034 = vst [vmem:[#allocation91_spill] sm:$0xff] %v5792_v25  ;;  %v1674_v25 = vsel %vm215_vm1, %v1672_v0, %v1673_v34 }
 0x1b2   :  { %9035 = vst [vmem:[#allocation92_spill] sm:$0xff] %v5794_v52  ;;  %v1676_v50 = vrot.slane %v1667_v17, 2  ;;  %v1707_v17 = vrot.slane %v1698_v29, 2 }
 0x1b4   :  { %v1677_v4 = vsel %vm215_vm1, %v1675_v36, %v1676_v50 }
 0x1b5   :  { %1624 = vrot.lane.b32.xlu1 %v1617_v57, %s5142_s22  ;;  %1622 = vrot.lane.b32.xlu0 %v1618_v11, %s5142_s22  ;;  %v1696_v57 = vmul.f32 %v5737_v6, %v1695_v1  ;;  %v1697_v11 = vmul.f32 %v5734_v8, %v1695_v1 }
 0x1b6   :  { %1626 = vrot.lane.b32.xlu2 %v1621_v3, %s5142_s22 }
 0x1b7   :  { %v5803_v58 = vpop.permute.xlu1 %1206  ;;  %v5805_v60 = vpop.permute.xlu0 %1204  ;;  %v1704_v0 = vrot.slane %v1696_v57, 2 }
 0x1b8   :  { %9036 = vst [vmem:[#allocation93_spill] sm:$0xff] %v5803_v58  ;;  %v5807_v52 = vpop.permute.xlu2 %1296  ;;  %v1705_v58 = vrot.slane %v1697_v11, 2 }
 0x1b9   :  { %9037 = vst [vmem:[#allocation94_spill] sm:$0xff] %v5805_v60 }
 0x1ba   :  { %9038 = vst [vmem:[#allocation95_spill] sm:$0xff] %v5807_v52 }
 0x1bd   :  { %1678 = vrot.lane.b32.xlu1 %v1674_v25, %s5141_s1  ;;  %1628 = vrot.lane.b32.xlu0 %v1620_v7, %s5142_s22  ;;  %v1699_v25 = vmul.f32 %v5753_v61, %v1695_v1  ;;  %v1706_v7 = vsel %vm215_vm1, %v1704_v0, %v1705_v58  ;;  %v1737_v1 = vstv %s4906_s6  ;;  %s6317_s6 = sld [smem:[#allocation5 + $0x50]] }
 0x1be   :  { %1680 = vrot.lane.b32.xlu2 %v1673_v34, %s5141_s1 }
 0x1bf   :  { %v5817_v3 = vpop.permute.xlu1 %1236  ;;  %v5819_v52 = vpop.permute.xlu0 %1234  ;;  %v1708_v34 = vrot.slane %v1699_v25, 2 }
 0x1c0   :  { %9039 = vst [vmem:[#allocation96_spill] sm:$0xff] %v5817_v3  ;;  %v5821_v60 = vpop.permute.xlu2 %1350 }
 0x1c1   :  { %9040 = vst [vmem:[#allocation97_spill] sm:$0xff] %v5819_v52  ;;  %v1709_v36 = vsel %vm215_vm1, %v1707_v17, %v1708_v34 }
 0x1c2   :  { %9041 = vst [vmem:[#allocation98_spill] sm:$0xff] %v5821_v60 }
 0x1c5   :  { %1684 = vrot.lane.b32.xlu1 %v1676_v50, %s5141_s1  ;;  %1682 = vrot.lane.b32.xlu0 %v1677_v4, %s5141_s1  ;;  %v5846_v4 = vld [vmem:[#allocation2 + $0x18] sm:$0xff] }
 0x1c6   :  { %1710 = vrot.lane.b32.xlu2 %v1706_v7, %s5142_s22  ;;  %v1739_v25 = vmul.f32 %v5846_v4, %v1737_v1  ;;  %v5849_v7 = vld [vmem:[#allocation2 + $0x10] sm:$0xff] }
 0x1c7   :  { %v5830_v5 = vpop.permute.xlu1 %1270  ;;  %v5832_v57 = vpop.permute.xlu0 %1268  ;;  %v1738_v17 = vmul.f32 %v5849_v7, %v1737_v1 }
 0x1c8   :  { %9042 = vst [vmem:[#allocation99_spill] sm:$0xff] %v5830_v5  ;;  %v5834_v11 = vpop.permute.xlu2 %1356  ;;  %v55_v5 = vstv %s54_s9  ;;  %s4892_s9 = sld [smem:[#allocation5 + $0x33]] }
 0x1c9   :  { %9043 = vst [vmem:[#allocation100_spill] sm:$0xff] %v5832_v57  ;;  %v5865_v57 = vld [vmem:[#allocation2 + $0x48] sm:$0xff]  ;;  %v57_v26 = vmul.f32 %v5734_v8, %v55_v5  ;;  %v58_v48 = vmul.f32 %v5740_v16, %v55_v5 }
 0x1ca   :  { %9044 = vst [vmem:[#allocation101_spill] sm:$0xff] %v5834_v11 }
 0x1cd   :  { %1714 = vrot.lane.b32.xlu1 %v1709_v36, %s5142_s22  ;;  %1712 = vrot.lane.b32.xlu0 %v1705_v58, %s5142_s22  ;;  %v5852_v58 = vld [vmem:[#allocation2 + $0x40] sm:$0xff]  ;;  %v1763_v36 = vstv %s4907_s7  ;;  %s4886_s7 = sld [smem:[#allocation5 + $0x2d]] }
 0x1ce   :  { %1716 = vrot.lane.b32.xlu2 %v1708_v34, %s5142_s22  ;;  %v1740_v34 = vmul.f32 %v5852_v58, %v1737_v1 }
 0x1cf   :  { %v5840_v50 = vpop.permute.xlu1 %1294  ;;  %v5842_v29 = vpop.permute.xlu0 %1274 }
 0x1d0   :  { %9045 = vst [vmem:[#allocation102_spill] sm:$0xff] %v5840_v50  ;;  %v5844_v0 = vpop.permute.xlu2 %1386  ;;  %v1764_v50 = vmul.f32 %v5849_v7, %v1763_v36 }
 0x1d1   :  { %9046 = vst [vmem:[#allocation103_spill] sm:$0xff] %v5842_v29  ;;  %v1813_v29 = vstv %s4909_s8  ;;  %s4889_s8 = sld [smem:[#allocation5 + $0x30]] }
 0x1d2   :  { %9047 = vst [vmem:[#allocation104_spill] sm:$0xff] %v5844_v0  ;;  %v1815_v3 = vmul.f32 %v5846_v4, %v1813_v29 }
 0x1d4   :  { %v1823_v21 = vrot.slane %v1815_v3, 1 }
 0x1d5   :  { %1748 = vrot.lane.b32.xlu1 %v1739_v25, %s5141_s1  ;;  %1746 = vrot.lane.b32.xlu0 %v1738_v17, %s5141_s1  ;;  %v1741_v25 = vmul.f32 %v5865_v57, %v1737_v1  ;;  %v1765_v17 = vmul.f32 %v5846_v4, %v1763_v36 }
 0x1d6   :  { %1750 = vrot.lane.b32.xlu2 %v1740_v34, %s5141_s1  ;;  %v1814_v34 = vmul.f32 %v5849_v7, %v1813_v29 }
 0x1d7   :  { %v5858_v0 = vpop.permute.xlu1 %1300  ;;  %v5860_v11 = vpop.permute.xlu0 %1298 }
 0x1d8   :  { %9048 = vst [vmem:[#allocation105_spill] sm:$0xff] %v5858_v0  ;;  %v5862_v60 = vpop.permute.xlu2 %1440  ;;  %v56_v0 = vmul.f32 %v5737_v6, %v55_v5  ;;  %v1822_v35 = vrot.slane %v1814_v34, 1 }
 0x1d9   :  { %9049 = vst [vmem:[#allocation106_spill] sm:$0xff] %v5860_v11  ;;  %v117_v11 = vstv %s4843_s11  ;;  %s4895_s11 = sld [smem:[#allocation5 + $0x53]] }
 0x1da   :  { %9050 = vst [vmem:[#allocation107_spill] sm:$0xff] %v5862_v60  ;;  %v53_v60 = vstv %s4840_s10  ;;  %v119_v39 = vmul.f32 %v5734_v8, %v117_v11  ;;  %v1824_v3 = vsel %vm126_vm0, %v1822_v35, %v1823_v21  ;;  %s4896_s10 = sld [smem:[#allocation5 + $0x36]] }
 0x1db   :  { %v60_v43 = vadd.f32 %v56_v0, %v53_v60  ;;  %v61_v34 = vadd.f32 %v57_v26, %v53_v60  ;;  %v1845_v26 = vstv %s4910_s12  ;;  %s4899_s12 = sld [smem:[#allocation5 + $0x39]] }
 0x1dd   :  { %1772 = vrot.lane.b32.xlu1 %v1764_v50, %s5142_s22  ;;  %1752 = vrot.lane.b32.xlu0 %v1741_v25, %s5141_s1  ;;  %v1767_v50 = vmul.f32 %v5865_v57, %v1763_v36  ;;  %v1766_v25 = vmul.f32 %v5852_v58, %v1763_v36  ;;  %v86_v0 = vadd.f32 %v5296_v62, %v60_v43  ;;  %v128_v36 = vrot.slane %v119_v39, 1 }
 0x1de   :  { %1774 = vrot.lane.b32.xlu2 %v1765_v17, %s5142_s22  ;;  %v118_v17 = vmul.f32 %v5737_v6, %v117_v11  ;;  %v87_v62 = vadd.f32 %v5310_v10, %v61_v34  ;;  %v1848_v10 = vmul.f32 %v5852_v58, %v1845_v26 }
 0x1df   :  { %v5875_v52 = vpop.permute.xlu1 %1354  ;;  %v5877_v1 = vpop.permute.xlu0 %1352  ;;  %v112_v39 = vadd.f32 %v5266_v33, %v86_v0 }
 0x1e0   :  { %9051 = vst [vmem:[#allocation108_spill] sm:$0xff] %v5875_v52  ;;  %v5880_v13 = vpop.permute.xlu2 %1470  ;;  %v1816_v52 = vmul.f32 %v5852_v58, %v1813_v29  ;;  %v113_v33 = vadd.f32 %v5275_v40, %v87_v62 }
 0x1e1   :  { %9052 = vst [vmem:[#allocation109_spill] sm:$0xff] %v5877_v1  ;;  %v1817_v1 = vmul.f32 %v5865_v57, %v1813_v29  ;;  %v59_v29 = vmul.f32 %v5753_v61, %v55_v5 }
 0x1e2   :  { %9053 = vst [vmem:[#allocation110_spill] sm:$0xff] %v5880_v13  ;;  %v127_v13 = vrot.slane %v118_v17, 1  ;;  %v1825_v46 = vrot.slane %v1816_v52, 1  ;;  %v120_v52 = vmul.f32 %v5740_v16, %v117_v11  ;;  %v1847_v17 = vmul.f32 %v5846_v4, %v1845_v26 }
 0x1e3   :  { %v1826_v47 = vrot.slane %v1817_v1, 1 }
 0x1e4   :  { %v129_v5 = vsel %vm126_vm0, %v127_v13, %v128_v36 }
 0x1e5   :  { %1778 = vrot.lane.b32.xlu1 %v1767_v50, %s5142_s22  ;;  %1776 = vrot.lane.b32.xlu0 %v1766_v25, %s5142_s22  ;;  %v62_v50 = vadd.f32 %v58_v48, %v53_v60  ;;  %v121_v25 = vmul.f32 %v5753_v61, %v117_v11  ;;  %v1827_v1 = vsel %vm126_vm0, %v1825_v46, %v1826_v47  ;;  %v130_v46 = vrot.slane %v120_v52, 1 }
 0x1e6   :  { %1828 = vrot.lane.b32.xlu2 %v1824_v3, %s5141_s1  ;;  %v1846_v3 = vmul.f32 %v5849_v7, %v1845_v26  ;;  %v5913_v48 = vmul.f32 %v5865_v57, %v1845_v26  ;;  %v137_v0 = vadd.f32 %v129_v5, %v112_v39  ;;  %v1901_v39 = vstv %s5899_s14  ;;  %s4905_s14 = sld [smem:[#allocation5 + $0x3f]] }
 0x1e7   :  { %v5895_v49 = vpop.permute.xlu1 %1384  ;;  %v5897_v35 = vpop.permute.xlu0 %1382  ;;  %v131_v11 = vrot.slane %v121_v25, 1  ;;  %v138_v52 = vadd.f32 %v128_v36, %v113_v33  ;;  %v1902_v36 = vmul.f32 %v5849_v7, %v1901_v39 }
 0x1e8   :  { %9054 = vst [vmem:[#allocation111_spill] sm:$0xff] %v5895_v49  ;;  %v5902_v43 = vpop.permute.xlu2 %1476  ;;  %v206_v49 = vstv %s4846_s13  ;;  %v1854_v26 = vrot.slane %v1846_v3, 1  ;;  %v1858_v25 = vrot.slane %v5913_v48, 1  ;;  %v1903_v3 = vmul.f32 %v5846_v4, %v1901_v39  ;;  %s4902_s13 = sld [smem:[#allocation5 + $0x3c]] }
 0x1e9   :  { %9055 = vst [vmem:[#allocation112_spill] sm:$0xff] %v5897_v35  ;;  %v63_v35 = vadd.f32 %v59_v29, %v53_v60  ;;  %v208_v34 = vmul.f32 %v5734_v8, %v206_v49  ;;  %v207_v13 = vmul.f32 %v5737_v6, %v206_v49  ;;  %v88_v60 = vadd.f32 %v5294_v59, %v62_v50 }
 0x1ea   :  { %9056 = vst [vmem:[#allocation113_spill] sm:$0xff] %v5902_v43  ;;  %v1855_v29 = vrot.slane %v1847_v17, 1  ;;  %v1857_v6 = vrot.slane %v1848_v10, 1  ;;  %v170_v50 = vadd.f32 %v5340_v28, %v138_v52  ;;  %v210_v33 = vmul.f32 %v5753_v61, %v206_v49 }
 0x1eb   :  { %v89_v40 = vadd.f32 %v5308_v9, %v63_v35  ;;  %v217_v5 = vrot.slane %v208_v34, 2  ;;  %v132_v9 = vsel %vm126_vm0, %v130_v46, %v131_v11  ;;  %v169_v35 = vadd.f32 %v5285_v51, %v137_v0 }
 0x1ec   :  { %v1856_v17 = vsel %vm126_vm0, %v1854_v26, %v1855_v29  ;;  %v1859_v48 = vsel %vm126_vm0, %v1857_v6, %v1858_v25  ;;  %v209_v51 = vmul.f32 %v5740_v16, %v206_v49  ;;  %v1911_v6 = vrot.slane %v1903_v3, 2 }
 0x1ed   :  { %1832 = vrot.lane.b32.xlu1 %v1827_v1, %s5141_s1  ;;  %1830 = vrot.lane.b32.xlu0 %v1823_v21, %s5141_s1  ;;  %v216_v1 = vrot.slane %v207_v13, 2  ;;  %v115_v59 = vadd.f32 %v5324_v18, %v89_v40  ;;  %v201_v10 = vadd.f32 %v5354_v42, %v169_v35  ;;  %v202_v18 = vadd.f32 %v5352_v41, %v170_v50 }
 0x1ee   :  { %1834 = vrot.lane.b32.xlu2 %v1826_v47, %s5141_s1  ;;  %v114_v47 = vadd.f32 %v5326_v19, %v88_v60  ;;  %v1910_v42 = vrot.slane %v1902_v36, 2  ;;  %v220_v60 = vrot.slane %v210_v33, 2  ;;  %v219_v26 = vrot.slane %v209_v51, 2 }
 0x1ef   :  { %v5923_v62 = vpop.permute.xlu1 %1438  ;;  %v5925_v43 = vpop.permute.xlu0 %1388  ;;  %v218_v19 = vsel %vm215_vm1, %v216_v1, %v217_v5  ;;  %v140_v28 = vadd.f32 %v131_v11, %v115_v59  ;;  %v227_v49 = vadd.f32 %v217_v5, %v202_v18  ;;  %v1933_v40 = vstv %s5931_s15  ;;  %s4908_s15 = sld [smem:[#allocation5 + $0x42]] }
 0x1f0   :  { %v5929_v21 = vpop.permute.xlu2 %1512  ;;  %v139_v34 = vadd.f32 %v132_v9, %v114_v47  ;;  %v226_v13 = vadd.f32 %v218_v19, %v201_v10  ;;  %v295_v1 = vstv %s4849_s16  ;;  %v1912_v59 = vsel %vm215_vm1, %v1910_v42, %v1911_v6  ;;  %s4911_s16 = sld [smem:[#allocation5 + $0x45]] }
 0x1f1   :  { %v172_v52 = vadd.f32 %v5298_v63, %v140_v28  ;;  %v1904_v47 = vmul.f32 %v5852_v58, %v1901_v39  ;;  %v1934_v35 = vmul.f32 %v5849_v7, %v1933_v40  ;;  %v5967_v50 = vmul.f32 %v5846_v4, %v1933_v40 }
 0x1f2   :  { %v171_v41 = vadd.f32 %v5338_v27, %v139_v34  ;;  %v1905_v27 = vmul.f32 %v5865_v57, %v1901_v39  ;;  %v259_v63 = vadd.f32 %v5328_v20, %v227_v49  ;;  %v296_v3 = vmul.f32 %v5849_v7, %v295_v1 }
 0x1f3   :  { %v204_v5 = vadd.f32 %v5368_v54, %v172_v52  ;;  %v297_v54 = vmul.f32 %v5846_v4, %v295_v1  ;;  %v1942_v33 = vrot.slane %v1934_v35, 2  ;;  %v1943_v51 = vrot.slane %v5967_v50, 2 }
 0x1f4   :  { %v203_v9 = vadd.f32 %v5314_v12, %v171_v41  ;;  %v291_v12 = vadd.f32 %v5395_v38, %v259_v63  ;;  %v1914_v10 = vrot.slane %v1905_v27, 2  ;;  %v1936_v49 = vmul.f32 %v5852_v58, %v1933_v40 }
 0x1f5   :  { %1862 = vrot.lane.b32.xlu1 %v1855_v29, %s5142_s22  ;;  %1860 = vrot.lane.b32.xlu0 %v1856_v17, %s5142_s22  ;;  %v258_v29 = vadd.f32 %v5366_v53, %v226_v13  ;;  %v221_v53 = vsel %vm215_vm1, %v219_v26, %v220_v60  ;;  %v357_v17 = vstv %s4852_s17  ;;  %v229_v20 = vadd.f32 %v220_v60, %v204_v5  ;;  %s4914_s17 = sld [smem:[#allocation5 + $0x48]] }
 0x1f6   :  { %1864 = vrot.lane.b32.xlu2 %v1859_v48, %s5142_s22  ;;  %v358_v39 = vmul.f32 %v5849_v7, %v357_v17  ;;  %v1913_v48 = vrot.slane %v1904_v47, 2  ;;  %v228_v18 = vadd.f32 %v221_v53, %v203_v9  ;;  %v301_v41 = vadd.f32 %v297_v54, %v291_v12 }
 0x1f7   :  { %v5951_v46 = vpop.permute.xlu1 %1444  ;;  %v5953_v0 = vpop.permute.xlu0 %1442  ;;  %v290_v36 = vadd.f32 %v5342_v31, %v258_v29  ;;  %v261_v28 = vadd.f32 %v5379_v22, %v229_v20  ;;  %v1937_v60 = vmul.f32 %v5865_v57, %v1933_v40  ;;  %v1944_v29 = vsel %vm215_vm1, %v1942_v33, %v1943_v51 }
 0x1f8   :  { %v5955_v11 = vpop.permute.xlu2 %1536  ;;  %v260_v34 = vadd.f32 %v5381_v23, %v228_v18  ;;  %v1915_v13 = vsel %vm215_vm1, %v1913_v48, %v1914_v10  ;;  %v298_v52 = vmul.f32 %v5852_v58, %v295_v1  ;;  %v327_v23 = vadd.f32 %v5406_v55, %v301_v41 }
 0x1f9   :  { %v300_v42 = vadd.f32 %v296_v3, %v290_v36  ;;  %v293_v27 = vadd.f32 %v5356_v44, %v261_v28  ;;  %v299_v9 = vmul.f32 %v5865_v57, %v295_v1  ;;  %v1945_v40 = vrot.slane %v1936_v49, 2 }
 0x1fa   :  { %v292_v22 = vadd.f32 %v5393_v37, %v260_v34  ;;  %v1946_v5 = vrot.slane %v1937_v60, 2  ;;  %v361_v37 = vmul.f32 %v5865_v57, %v357_v17  ;;  %v360_v55 = vmul.f32 %v5852_v58, %v357_v17 }
 0x1fb   :  { %v326_v26 = vadd.f32 %v5408_v56, %v300_v42  ;;  %v445_v44 = vstv %s5979_s18  ;;  %v353_v50 = vadd.f32 %v5383_v24, %v327_v23  ;;  %v6047_v23 = vld [vmem:[#allocation2 + $0x20] sm:$0xff]  ;;  %s4917_s18 = sld [smem:[#allocation5 + $0x4b]] }
 0x1fc   :  { %v302_v1 = vadd.f32 %v298_v52, %v292_v22  ;;  %v447_v53 = vmul.f32 %v5846_v4, %v445_v44  ;;  %v446_v63 = vmul.f32 %v5849_v7, %v445_v44  ;;  %v1947_v12 = vsel %vm215_vm1, %v1945_v40, %v1946_v5  ;;  %v6044_v52 = vld [vmem:[#allocation2 + $0x28] sm:$0xff] }
 0x1fd   :  { %1916 = vrot.lane.b32.xlu1 %v1912_v59, %s5141_s1  ;;  %1866 = vrot.lane.b32.xlu0 %v1858_v25, %s5142_s22  ;;  %v359_v25 = vmul.f32 %v5846_v4, %v357_v17  ;;  %v352_v47 = vadd.f32 %v5416_v14, %v326_v26  ;;  %v370_v54 = vrot.slane %v361_v37, 1  ;;  %v448_v41 = vmul.f32 %v5852_v58, %v445_v44  ;;  %v9061_v37 = vld [vmem:[#allocation11_spill] sm:$0xff] }
 0x1fe   :  { %1918 = vrot.lane.b32.xlu2 %v1911_v6, %s5141_s1  ;;  %v366_v6 = vrot.slane %v358_v39, 1  ;;  %v303_v39 = vadd.f32 %v299_v9, %v293_v27  ;;  %v328_v48 = vadd.f32 %v5370_v2, %v302_v1  ;;  %v455_v18 = vrot.slane %v447_v53, 2  ;;  %v9062_v1 = vld [vmem:[#allocation17_spill] sm:$0xff]  ;;  %v9063_v53 = vld [vmem:[#allocation8_spill] sm:$0xff] }
 0x1ff   :  { %v5981_v31 = vpop.permute.xlu1 %1474  ;;  %v5983_v19 = vpop.permute.xlu0 %1472  ;;  %v367_v59 = vrot.slane %v359_v25, 1  ;;  %v454_v33 = vrot.slane %v446_v63, 2  ;;  %v1975_v2 = vstv %s4915_s19  ;;  %s6559_s19 = sld [smem:[#allocation5 + $0x4e]] }
 0x200   :  { %v5987_v38 = vpop.permute.xlu2 %1590  ;;  %v329_v17 = vadd.f32 %v5418_v15, %v303_v39  ;;  %v354_v28 = vadd.f32 %v5430_v32, %v328_v48  ;;  %v9057_v15 = vld [vmem:[#allocation12_spill] sm:$0xff]  ;;  %v1977_v22 = vmul.f32 %v6044_v52, %v1975_v2  ;;  %v2001_v39 = vstv %s6030_s20 }
 0x201   :  { %v368_v56 = vsel %vm126_vm0, %v366_v6, %v367_v59  ;;  %v377_v20 = vadd.f32 %v367_v59, %v353_v50  ;;  %v456_v32 = vsel %vm215_vm1, %v454_v33, %v455_v18  ;;  %v1976_v59 = vmul.f32 %v6047_v23, %v1975_v2 }
 0x202   :  { %v376_v3 = vadd.f32 %v368_v56, %v352_v47  ;;  %v355_v24 = vadd.f32 %v5428_v30, %v329_v17  ;;  %v9058_v30 = vld [vmem:[#allocation15_spill] sm:$0xff]  ;;  %v6050_v47 = vld [vmem:[#allocation2 + $0x50] sm:$0xff] }
 0x203   :  { %v409_v34 = vadd.f32 %v9057_v15, %v377_v20  ;;  %v1978_v9 = vmul.f32 %v6050_v47, %v1975_v2  ;;  %v9066_v20 = vld [vmem:[#allocation10_spill] sm:$0xff] }
 0x204   :  { %v408_v25 = vadd.f32 %v5397_v45, %v376_v3  ;;  %v449_v45 = vmul.f32 %v5865_v57, %v445_v44  ;;  %v533_v3 = vstv %s6023_s0 }
 0x205   :  { %1922 = vrot.lane.b32.xlu1 %v1914_v10, %s5141_s1  ;;  %1920 = vrot.lane.b32.xlu0 %v1915_v13, %s5141_s1  ;;  %v369_v10 = vrot.slane %v360_v55, 1  ;;  %v534_v33 = vmul.f32 %v6047_v23, %v533_v3 }
 0x206   :  { %1948 = vrot.lane.b32.xlu2 %v1944_v29, %s5142_s22  ;;  %v440_v6 = vadd.f32 %v9058_v30, %v408_v25  ;;  %v379_v29 = vadd.f32 %v370_v54, %v355_v24  ;;  %v458_v40 = vrot.slane %v449_v45, 2  ;;  %v6068_v25 = vstv %s4918_s21 }
 0x207   :  { %v6009_v35 = vpop.permute.xlu1 %1510  ;;  %v6011_v14 = vpop.permute.xlu0 %1508  ;;  %v371_v42 = vsel %vm126_vm0, %v369_v10, %v370_v54  ;;  %v9065_v10 = vld [vmem:[#allocation9_spill] sm:$0xff]  ;;  %v2002_v30 = vmul.f32 %v6047_v23, %v2001_v39 }
 0x208   :  { %v6016_v36 = vpop.permute.xlu2 %1596  ;;  %v378_v27 = vadd.f32 %v371_v42, %v354_v28  ;;  %v464_v56 = vadd.f32 %v456_v32, %v440_v6  ;;  %v411_v63 = vadd.f32 %v9063_v53, %v379_v29  ;;  %v9068_v28 = vld [vmem:[#allocation13_spill] sm:$0xff]  ;;  %v6074_v6 = vld [vmem:[#allocation2 + $0x58] sm:$0xff] }
 0x209   :  { %v1979_v45 = vmul.f32 %v6074_v6, %v1975_v2  ;;  %v9072_v53 = vld [vmem:[#allocation27_spill] sm:$0xff] }
 0x20a   :  { %v410_v55 = vadd.f32 %v9061_v37, %v378_v27  ;;  %v496_v50 = vadd.f32 %v9062_v1, %v464_v56  ;;  %v2052_v27 = vmul.f32 %v6047_v23, %v6068_v25 }
 0x20c   :  { %v442_v48 = vadd.f32 %v9065_v10, %v410_v55  ;;  %v528_v15 = vadd.f32 %v9068_v28, %v496_v50  ;;  %v536_v10 = vmul.f32 %v6050_v47, %v533_v3 }
 0x20d   :  { %1952 = vrot.lane.b32.xlu1 %v1947_v12, %s5142_s22  ;;  %1950 = vrot.lane.b32.xlu0 %v1943_v51, %s5142_s22  ;;  %v9059_v51 = vld [vmem:[#allocation14_spill] sm:$0xff] }
 0x20e   :  { %1954 = vrot.lane.b32.xlu2 %v1946_v5, %s5142_s22  ;;  %v441_v49 = vadd.f32 %v9059_v51, %v409_v34  ;;  %v457_v5 = vrot.slane %v448_v41, 2  ;;  %v9064_v12 = vld [vmem:[#allocation18_spill] sm:$0xff]  ;;  %v595_v34 = vstv %s4861_s23  ;;  %v9069_v41 = vld [vmem:[#allocation24_spill] sm:$0xff]  ;;  %v538_v55 = vadd.f32 %v534_v33, %v528_v15 }
 0x20f   :  { %v6036_v13 = vpop.permute.xlu1 %1534  ;;  %v6042_v26 = vpop.permute.xlu0 %1514  ;;  %v443_v17 = vadd.f32 %v9064_v12, %v411_v63  ;;  %v596_v32 = vmul.f32 %v6047_v23, %v595_v34  ;;  %v597_v56 = vmul.f32 %v6044_v52, %v595_v34  ;;  %v537_v12 = vmul.f32 %v6074_v6, %v533_v3 }
 0x210   :  { %v6040_v60 = vpop.permute.xlu2 %1626  ;;  %v465_v44 = vadd.f32 %v455_v18, %v441_v49  ;;  %v459_v54 = vsel %vm215_vm1, %v457_v5, %v458_v40  ;;  %v535_v49 = vmul.f32 %v6044_v52, %v533_v3  ;;  %v9070_v5 = vld [vmem:[#allocation20_spill] sm:$0xff]  ;;  %v564_v63 = vadd.f32 %v9072_v53, %v538_v55  ;;  %v9080_v53 = vld [vmem:[#allocation30_spill] sm:$0xff] }
 0x211   :  { %9060 = vst [vmem:[#allocation12_spill] sm:$0xff] %v6040_v60  ;;  %v466_v2 = vadd.f32 %v459_v54, %v442_v48  ;;  %v604_v50 = vrot.slane %v596_v32, 1  ;;  %v9073_v48 = vld [vmem:[#allocation23_spill] sm:$0xff]  ;;  %v605_v28 = vrot.slane %v597_v56, 1  ;;  %v2004_v32 = vmul.f32 %v6050_v47, %v2001_v39 }
 0x212   :  { %v497_v18 = vadd.f32 %v9066_v20, %v465_v44  ;;  %v9071_v44 = vld [vmem:[#allocation21_spill] sm:$0xff]  ;;  %v598_v3 = vmul.f32 %v6050_v47, %v595_v34 }
 0x214   :  { %v529_v51 = vadd.f32 %v9069_v41, %v497_v18  ;;  %v9074_v18 = vld [vmem:[#allocation26_spill] sm:$0xff]  ;;  %v9077_v41 = vld [vmem:[#allocation29_spill] sm:$0xff] }
 0x215   :  { %1986 = vrot.lane.b32.xlu1 %v1977_v22, %s5141_s1  ;;  %1984 = vrot.lane.b32.xlu0 %v1976_v59, %s5141_s1  ;;  %v2003_v22 = vmul.f32 %v6044_v52, %v2001_v39  ;;  %v467_v59 = vadd.f32 %v458_v40, %v443_v17  ;;  %v498_v40 = vadd.f32 %v9071_v44, %v466_v2  ;;  %v2060_v17 = vrot.slane %v2052_v27, 1 }
 0x216   :  { %1988 = vrot.lane.b32.xlu2 %v1978_v9, %s5141_s1  ;;  %v6087_v9 = vmul.f32 %v6044_v52, %v6068_v25  ;;  %v539_v1 = vadd.f32 %v535_v49, %v529_v51  ;;  %v590_v51 = vadd.f32 %v9077_v41, %v564_v63  ;;  %v2005_v49 = vmul.f32 %v6074_v6, %v2001_v39 }
 0x217   :  { %v6071_v42 = vpop.permute.xlu1 %1540  ;;  %v6080_v29 = vpop.permute.xlu0 %1538  ;;  %v499_v37 = vadd.f32 %v9070_v5, %v467_v59  ;;  %v530_v20 = vadd.f32 %v9073_v48, %v498_v40  ;;  %v599_v59 = vmul.f32 %v6074_v6, %v595_v34  ;;  %v683_v27 = vstv %s4864_s24  ;;  %v9079_v5 = vld [vmem:[#allocation22_spill] sm:$0xff] }
 0x218   :  { %v6066_v24 = vpop.permute.xlu2 %1680  ;;  %v2061_v54 = vrot.slane %v6087_v9, 1  ;;  %v565_v33 = vadd.f32 %v9074_v18, %v539_v1  ;;  %v685_v55 = vmul.f32 %v6044_v52, %v683_v27  ;;  %v684_v44 = vmul.f32 %v6047_v23, %v683_v27 }
 0x219   :  { %9067 = vst [vmem:[#allocation15_spill] sm:$0xff] %v6066_v24  ;;  %v540_v56 = vadd.f32 %v536_v10, %v530_v20  ;;  %v608_v34 = vrot.slane %v599_v59, 1 }
 0x21a   :  { %v2062_v2 = vsel %vm126_vm0, %v2060_v17, %v2061_v54  ;;  %v9081_v17 = vld [vmem:[#allocation19_spill] sm:$0xff]  ;;  %v693_v20 = vrot.slane %v685_v55, 2  ;;  %v692_v18 = vrot.slane %v684_v44, 2  ;;  %v9088_v55 = vld [vmem:[#allocation38_spill] sm:$0xff] }
 0x21b   :  { %v566_v10 = vadd.f32 %v9081_v17, %v540_v56 }
 0x21d   :  { %2010 = vrot.lane.b32.xlu1 %v2002_v30, %s5142_s22  ;;  %1990 = vrot.lane.b32.xlu0 %v1979_v45, %s5141_s1  ;;  %v9076_v30 = vld [vmem:[#allocation16_spill] sm:$0xff] }
 0x21e   :  { %2012 = vrot.lane.b32.xlu2 %v2003_v22, %s5142_s22  ;;  %v531_v45 = vadd.f32 %v9076_v30, %v499_v37  ;;  %v606_v22 = vsel %vm126_vm0, %v604_v50, %v605_v28  ;;  %v591_v37 = vadd.f32 %v9079_v5, %v565_v33  ;;  %v607_v50 = vrot.slane %v598_v3, 1 }
 0x21f   :  { %v6110_v9 = vpop.permute.xlu1 %1594  ;;  %v6116_v39 = vpop.permute.xlu0 %1592  ;;  %v614_v40 = vadd.f32 %v606_v22, %v590_v51  ;;  %v9085_v51 = vld [vmem:[#allocation33_spill] sm:$0xff]  ;;  %v9086_v22 = vld [vmem:[#allocation36_spill] sm:$0xff]  ;;  %v687_v3 = vmul.f32 %v6074_v6, %v683_v27  ;;  %v2054_v5 = vmul.f32 %v6050_v47, %v6068_v25 }
 0x220   :  { %v6101_v15 = vpop.permute.xlu2 %1710  ;;  %9078 = vst [vmem:[#allocation11_spill] sm:$0xff] %v6110_v9  ;;  %v541_v1 = vadd.f32 %v537_v12, %v531_v45  ;;  %v615_v48 = vadd.f32 %v605_v28, %v591_v37  ;;  %v9083_v12 = vld [vmem:[#allocation32_spill] sm:$0xff]  ;;  %v9084_v45 = vld [vmem:[#allocation25_spill] sm:$0xff]  ;;  %v773_v28 = vstv %s4868_s25  ;;  %v6136_v37 = vmul.f32 %v6074_v6, %v6068_v25 }
 0x221   :  { %9075 = vst [vmem:[#allocation14_spill] sm:$0xff] %v6101_v15  ;;  %v646_v41 = vadd.f32 %v9084_v45, %v614_v40  ;;  %v694_v40 = vsel %vm215_vm1, %v692_v18, %v693_v20  ;;  %v696_v17 = vrot.slane %v687_v3, 2  ;;  %v771_v25 = vstv %s4867_s26  ;;  %v9093_v3 = vld [vmem:[#allocation28_spill] sm:$0xff] }
 0x222   :  { %v567_v63 = vadd.f32 %v9080_v53, %v541_v1  ;;  %v647_v59 = vadd.f32 %v9086_v22, %v615_v48  ;;  %v2063_v45 = vrot.slane %v2054_v5, 1  ;;  %v835_v22 = vstv %s4871_s27  ;;  %s4923_s27 = sld [smem:[#allocation5 + $0x54]] }
 0x224   :  { %v593_v30 = vadd.f32 %v9083_v12, %v567_v63  ;;  %v679_v44 = vadd.f32 %v9088_v55, %v647_v59  ;;  %v9094_v55 = vld [vmem:[#allocation42_spill] sm:$0xff] }
 0x225   :  { %2016 = vrot.lane.b32.xlu1 %v2005_v49, %s5142_s22  ;;  %2014 = vrot.lane.b32.xlu0 %v2004_v32, %s5142_s22  ;;  %v592_v49 = vadd.f32 %v9085_v51, %v566_v10  ;;  %v609_v32 = vsel %vm126_vm0, %v607_v50, %v608_v34  ;;  %v686_v50 = vmul.f32 %v6050_v47, %v683_v27  ;;  %v9089_v51 = vld [vmem:[#allocation35_spill] sm:$0xff] }
 0x226   :  { %2066 = vrot.lane.b32.xlu2 %v2062_v2, %s5141_s1  ;;  %v9087_v2 = vld [vmem:[#allocation39_spill] sm:$0xff]  ;;  %v617_v1 = vadd.f32 %v608_v34, %v593_v30  ;;  %v775_v10 = vmul.f32 %v5734_v8, %v773_v28  ;;  %v703_v34 = vadd.f32 %v693_v20, %v679_v44  ;;  %v9090_v30 = vld [vmem:[#allocation80_spill] sm:$0xff] }
 0x227   :  { %v678_v56 = vadd.f32 %v9087_v2, %v646_v41  ;;  %v6141_v53 = vpop.permute.xlu1 %1624  ;;  %v616_v63 = vadd.f32 %v609_v32, %v592_v49  ;;  %v6144_v48 = vpop.permute.xlu0 %1622  ;;  %v2064_v41 = vrot.slane %v6136_v37, 1  ;;  %v774_v27 = vmul.f32 %v9090_v30, %v773_v28  ;;  %v9092_v49 = vld [vmem:[#allocation41_spill] sm:$0xff]  ;;  %v9095_v44 = vld [vmem:[#allocation31_spill] sm:$0xff] }
 0x228   :  { %v6123_v33 = vpop.permute.xlu2 %1716  ;;  %v649_v2 = vadd.f32 %v9093_v3, %v617_v1  ;;  %v779_v5 = vadd.f32 %v775_v10, %v771_v25  ;;  %v9097_v1 = vld [vmem:[#allocation37_spill] sm:$0xff]  ;;  %v9098_v3 = vld [vmem:[#allocation48_spill] sm:$0xff] }
 0x229   :  { %9082 = vst [vmem:[#allocation17_spill] sm:$0xff] %v6123_v33  ;;  %v702_v12 = vadd.f32 %v694_v40, %v678_v56  ;;  %v648_v18 = vadd.f32 %v9089_v51, %v616_v63  ;;  %v836_v56 = vmul.f32 %v9090_v30, %v835_v22  ;;  %v837_v40 = vmul.f32 %v5734_v8, %v835_v22 }
 0x22a   :  { %v681_v37 = vadd.f32 %v9094_v55, %v649_v2  ;;  %v2065_v20 = vsel %vm126_vm0, %v2063_v45, %v2064_v41  ;;  %v776_v51 = vmul.f32 %v5740_v16, %v773_v28  ;;  %v778_v24 = vadd.f32 %v774_v27, %v771_v25  ;;  %v9099_v45 = vld [vmem:[#allocation50_spill] sm:$0xff] }
 0x22b   :  { %v734_v32 = vadd.f32 %v9092_v49, %v702_v12  ;;  %v680_v63 = vadd.f32 %v9095_v44, %v648_v18  ;;  %v844_v10 = vrot.slane %v836_v56, 1  ;;  %v777_v49 = vmul.f32 %v5753_v61, %v773_v28  ;;  %v9101_v56 = vld [vmem:[#allocation51_spill] sm:$0xff] }
 0x22c   :  { %v805_v55 = vadd.f32 %v9099_v45, %v779_v5  ;;  %v705_v18 = vadd.f32 %v696_v17, %v681_v37  ;;  %v845_v44 = vrot.slane %v837_v40, 1  ;;  %v838_v27 = vmul.f32 %v5740_v16, %v835_v22  ;;  %v9104_v37 = vld [vmem:[#allocation44_spill] sm:$0xff] }
 0x22d   :  { %v6183_v5 = vstv %s6152_s28  ;;  %v781_v16 = vadd.f32 %v777_v49, %v771_v25  ;;  %v923_v49 = vstv %s6163_s29  ;;  %s4924_s28 = sld [smem:[#allocation5 + $0x57]] }
 0x22e   :  { %2068 = vrot.lane.b32.xlu2 %v2061_v54, %s5141_s1  ;;  %v695_v54 = vrot.slane %v686_v50, 2  ;;  %v766_v50 = vadd.f32 %v9097_v1, %v734_v32  ;;  %v780_v32 = vadd.f32 %v776_v51, %v771_v25  ;;  %v804_v1 = vadd.f32 %v9101_v56, %v778_v24  ;;  %v9109_v25 = vld [vmem:[#allocation47_spill] sm:$0xff] }
 0x22f   :  { %v6178_v28 = vpop.permute.xlu0 %1628  ;;  %v737_v40 = vadd.f32 %v9104_v37, %v705_v18  ;;  %v6199_v18 = vmul.f32 %v6044_v52, %v6183_v5 }
 0x230   :  { %v6150_v59 = vpop.permute.xlu2 %1750  ;;  %v697_v12 = vsel %vm215_vm1, %v695_v54, %v696_v17  ;;  %v6185_v17 = vmax.f32 %v766_v50, 0.0  ;;  %v2084_v50 = vmul.f32 %v6047_v23, %v6183_v5 }
 0x231   :  { %9091 = vst [vmem:[#allocation8_spill] sm:$0xff] %v6150_v59  ;;  %v9096_v59 = vld [vmem:[#allocation34_spill] sm:$0xff]  ;;  %v704_v54 = vadd.f32 %v697_v12, %v680_v63  ;;  %v9108_v12 = vld [vmem:[#allocation53_spill] sm:$0xff] }
 0x232   :  { %v735_v33 = vadd.f32 %v9096_v59, %v703_v34  ;;  %v6172_v34 = vmul.f32 %v5753_v61, %v835_v22  ;;  %v6175_v59 = vpop.permute.xlu1 %1678  ;;  %9103 = vst [vmem:[#allocation10_spill] sm:$0xff] %v6185_v17  ;;  %v9105_v22 = vld [vmem:[#allocation45_spill] sm:$0xff]  ;;  %v9107_v63 = vld [vmem:[#allocation46_spill] sm:$0xff]  ;;  %v830_v45 = vadd.f32 %v9108_v12, %v804_v1  ;;  %v9111_v1 = vld [vmem:[#allocation40_spill] sm:$0xff]  ;;  %v2092_v60 = vrot.slane %v2084_v50, 1 }
 0x233   :  { %9100 = vst [vmem:[#allocation18_spill] sm:$0xff] %v6175_v59  ;;  %v831_v24 = vadd.f32 %v9107_v63, %v805_v55  ;;  %v9110_v55 = vld [vmem:[#allocation43_spill] sm:$0xff]  ;;  %v769_v37 = vadd.f32 %v9111_v1, %v737_v40  ;;  %v9115_v59 = vld [vmem:[#allocation60_spill] sm:$0xff]  ;;  %v927_v1 = vmul.f32 %v5753_v61, %v923_v49  ;;  %v9120_v61 = vld [vmem:[#allocation49_spill] sm:$0xff] }
 0x234   :  { %v767_v2 = vadd.f32 %v9098_v3, %v735_v33  ;;  %v736_v3 = vadd.f32 %v9105_v22, %v704_v54  ;;  %v848_v56 = vrot.slane %v6172_v34, 1  ;;  %v806_v54 = vadd.f32 %v9110_v55, %v780_v32 }
 0x235   :  { %v925_v34 = vmul.f32 %v5734_v8, %v923_v49  ;;  %v855_v12 = vadd.f32 %v845_v44, %v831_v24  ;;  %v2093_v32 = vrot.slane %v6199_v18, 1  ;;  %v9114_v8 = vld [vmem:[#allocation57_spill] sm:$0xff] }
 0x236   :  { %2070 = vrot.lane.b32.xlu2 %v2065_v20, %s5141_s1  ;;  %v846_v20 = vsel %vm126_vm0, %v844_v10, %v845_v44  ;;  %v6190_v51 = vmax.f32 %v767_v2, 0.0  ;;  %v768_v10 = vadd.f32 %v9109_v25, %v736_v3  ;;  %v2232_v2 = vmul.f32 %v6185_v17, %v6185_v17  ;;  %v9112_v3 = vld [vmem:[#allocation54_spill] sm:$0xff]  ;;  %v9117_v44 = vld [vmem:[#allocation56_spill] sm:$0xff] }
 0x237   :  { %v854_v63 = vadd.f32 %v846_v20, %v830_v45  ;;  %v807_v25 = vadd.f32 %v9112_v3, %v781_v16  ;;  %v887_v40 = vadd.f32 %v9115_v59, %v855_v12  ;;  %v6223_v16 = vld [vmem:[#allocation2 + $0x30] sm:$0xff]  ;;  %v6233_v3 = vpop.permute.xlu0 %1682 }
 0x238   :  { %v6180_v33 = vpop.permute.xlu2 %1774  ;;  %9106 = vst [vmem:[#allocation13_spill] sm:$0xff] %v6190_v51  ;;  %v2233_v22 = vmul.f32 %v6190_v51, %v6190_v51  ;;  %v6215_v55 = vmax.f32 %v768_v10, 0.0  ;;  %v2217_v50 = vsel %vm2216_vm3, %v6190_v51, 0.0  ;;  %v9119_v59 = vld [vmem:[#allocation62_spill] sm:$0xff] }
 0x239   :  { %9102 = vst [vmem:[#allocation9_spill] sm:$0xff] %v6180_v33  ;;  %v847_v33 = vrot.slane %v838_v27, 1  ;;  %v924_v27 = vmul.f32 %v9090_v30, %v923_v49  ;;  %v832_v30 = vadd.f32 %v9114_v8, %v806_v54  ;;  %v833_v20 = vadd.f32 %v9117_v44, %v807_v25 }
 0x23a   :  { %9113 = vst [vmem:[#allocation24_spill] sm:$0xff] %v6215_v55  ;;  %v6226_v45 = vpop.permute.xlu1 %1684  ;;  %v2237_v10 = vsel %vm2216_vm3, %v2233_v22, 0.0  ;;  %v919_v54 = vadd.f32 %v9119_v59, %v887_v40  ;;  %v886_v12 = vadd.f32 %v9120_v61, %v854_v63  ;;  %v6241_v25 = vmax.f32 %v769_v37, 0.0  ;;  %v9123_v40 = vld [vmem:[#allocation63_spill] sm:$0xff] }
 0x23b   :  { %v849_v15 = vsel %vm126_vm0, %v847_v33, %v848_v56  ;;  %v932_v24 = vrot.slane %v924_v27, 2  ;;  %v926_v33 = vmul.f32 %v6223_v16, %v923_v49  ;;  %9118 = vst [vmem:[#allocation21_spill] sm:$0xff] %v6226_v45  ;;  %v2094_v49 = vsel %vm126_vm0, %v2092_v60, %v2093_v32 }
 0x23c   :  { %9121 = vst [vmem:[#allocation27_spill] sm:$0xff] %v6233_v3  ;;  %v2236_v27 = vsel %vm2214_vm2, %v2232_v2, 0.0  ;;  %v2234_v22 = vmul.f32 %v6215_v55, %v6215_v55  ;;  %v856_v8 = vadd.f32 %v849_v15, %v832_v30  ;;  %v918_v63 = vadd.f32 %v9123_v40, %v886_v12  ;;  %v9128_v12 = vld [vmem:[#allocation58_spill] sm:$0xff] }
 0x23d   :  { %9122 = vst [vmem:[#allocation23_spill] sm:$0xff] %v6241_v25  ;;  %v857_v59 = vadd.f32 %v848_v56, %v833_v20  ;;  %v2238_v51 = vadd.f32 %v2237_v10, %v2236_v27  ;;  %v936_v45 = vrot.slane %v927_v1, 2  ;;  %v935_v60 = vrot.slane %v926_v33, 2  ;;  %v9125_v20 = vld [vmem:[#allocation52_spill] sm:$0xff]  ;;  %v9126_v1 = vld [vmem:[#allocation55_spill] sm:$0xff] }
 0x23e   :  { %2072 = vrot.lane.b32.xlu2 %v2064_v41, %s5141_s1  ;;  %v933_v41 = vrot.slane %v925_v34, 2  ;;  %v2215_v34 = vsel %vm2214_vm2, %v6185_v17, 0.0  ;;  %v9124_v17 = vld [vmem:[#allocation59_spill] sm:$0xff]  ;;  %v2219_v2 = vsel %vm2214_vm2, %v6215_v55, 0.0  ;;  %v2235_v56 = vmul.f32 %v6241_v25, %v6241_v25 }
 0x23f   :  { %v2218_v44 = vadd.f32 %v2217_v50, %v2215_v34  ;;  %v2239_v30 = vsel %vm2214_vm2, %v2234_v22, 0.0  ;;  %v9127_v50 = vld [vmem:[#allocation65_spill] sm:$0xff]  ;;  %v2086_v22 = vmul.f32 %v6050_v47, %v6183_v5 }
 0x240   :  { %v6220_v9 = vpop.permute.xlu2 %1828  ;;  %v934_v61 = vsel %vm215_vm1, %v932_v24, %v933_v41  ;;  %v943_v3 = vadd.f32 %v933_v41, %v919_v54  ;;  %v889_v24 = vadd.f32 %v9125_v20, %v857_v59  ;;  %v937_v54 = vsel %vm215_vm1, %v935_v60, %v936_v45  ;;  %v6274_v59 = vpop.permute.xlu0 %1712 }
 0x241   :  { %9116 = vst [vmem:[#allocation20_spill] sm:$0xff] %v6220_v9  ;;  %v888_v9 = vadd.f32 %v9124_v17, %v856_v8  ;;  %v942_v37 = vadd.f32 %v934_v61, %v918_v63  ;;  %v2240_v17 = vadd.f32 %v2239_v30, %v2238_v51  ;;  %v2220_v41 = vadd.f32 %v2219_v2, %v2218_v44 }
 0x242   :  { %v975_v34 = vadd.f32 %v9128_v12, %v943_v3  ;;  %v1011_v8 = vstv %s4877_s30  ;;  %v6262_v40 = vpop.permute.xlu1 %1714  ;;  %v6268_v51 = vmul.f32 %v6074_v6, %v6183_v5  ;;  %v2241_v3 = vsel %vm2216_vm3, %v2235_v56, 0.0  ;;  %s6622_s30 = sld [smem:[#allocation5 + $0x5b]] }
 0x243   :  { %v920_v33 = vadd.f32 %v9126_v1, %v888_v9  ;;  %v974_v10 = vadd.f32 %v9127_v50, %v942_v37  ;;  %v9130_v9 = vld [vmem:[#allocation72_spill] sm:$0xff]  ;;  %v1013_v44 = vmul.f32 %v5846_v4, %v1011_v8  ;;  %v2221_v61 = vsel %vm2216_vm3, %v6241_v25, 0.0  ;;  %v9131_v37 = vld [vmem:[#allocation61_spill] sm:$0xff] }
 0x244   :  { %v1007_v63 = vadd.f32 %v9130_v9, %v975_v34  ;;  %v2242_v60 = vadd.f32 %v2241_v3, %v2240_v17  ;;  %v2222_v2 = vadd.f32 %v2221_v61, %v2220_v41  ;;  %v1012_v5 = vmul.f32 %v5849_v7, %v1011_v8  ;;  %v9132_v41 = vld [vmem:[#allocation69_spill] sm:$0xff]  ;;  %v6331_v25 = vld [vmem:[#allocation2 + $0x40] sm:$0xff] }
 0x245   :  { %v1006_v30 = vadd.f32 %v9131_v37, %v974_v10  ;;  %v944_v20 = vadd.f32 %v937_v54, %v920_v33  ;;  %v2095_v56 = vrot.slane %v2086_v22, 1  ;;  %v8801_v17 = vrot.slane %v6268_v51, 1  ;;  %v9134_v54 = vld [vmem:[#allocation68_spill] sm:$0xff] }
 0x246   :  { %2098 = vrot.lane.b32.xlu2 %v2094_v49, %s5142_s22  ;;  %v9129_v49 = vld [vmem:[#allocation66_spill] sm:$0xff]  ;;  %v1017_v10 = vadd.f32 %v1013_v44, %v1007_v63  ;;  %v2139_v63 = vstv %s6270_s4  ;;  %v9137_v44 = vld [vmem:[#allocation75_spill] sm:$0xff] }
 0x247   :  { %v921_v27 = vadd.f32 %v9129_v49, %v889_v24  ;;  %v1073_v24 = vstv %s4880_s3  ;;  %v976_v12 = vadd.f32 %v9132_v41, %v944_v20  ;;  %v1016_v3 = vadd.f32 %v1012_v5, %v1006_v30  ;;  %v9138_v20 = vld [vmem:[#allocation64_spill] sm:$0xff]  ;;  %v9139_v5 = vld [vmem:[#allocation70_spill] sm:$0xff] }
 0x248   :  { %v6251_v15 = vpop.permute.xlu2 %1834  ;;  %v1074_v50 = vmul.f32 %v5849_v7, %v1073_v24  ;;  %v1075_v18 = vmul.f32 %v5846_v4, %v1073_v24  ;;  %v2097_v61 = vsel %vm126_vm0, %v2095_v56, %v8801_v17  ;;  %v1076_v37 = vmul.f32 %v5852_v58, %v1073_v24  ;;  %v6307_v56 = vpop.permute.xlu0 %1746 }
 0x249   :  { %v945_v1 = vadd.f32 %v936_v45, %v921_v27  ;;  %v9135_v45 = vld [vmem:[#allocation71_spill] sm:$0xff]  ;;  %v9136_v27 = vld [vmem:[#allocation74_spill] sm:$0xff] }
 0x24a   :  { %v1008_v49 = vadd.f32 %v9135_v45, %v976_v12  ;;  %v1043_v9 = vadd.f32 %v9136_v27, %v1017_v10  ;;  %v1082_v22 = vrot.slane %v1074_v50, 1  ;;  %v1083_v41 = vrot.slane %v1075_v18, 1  ;;  %v9140_v10 = vld [vmem:[#allocation77_spill] sm:$0xff] }
 0x24b   :  { %v977_v34 = vadd.f32 %v9134_v54, %v945_v1  ;;  %v1015_v12 = vmul.f32 %v5865_v57, %v1011_v8  ;;  %v6303_v54 = vpop.permute.xlu1 %1748  ;;  %v2141_v27 = vmul.f32 %v6044_v52, %v2139_v63  ;;  %v1161_v18 = vstv %s4883_s5 }
 0x24c   :  { %v1069_v50 = vadd.f32 %v9139_v5, %v1043_v9 }
 0x24d   :  { %v1009_v1 = vadd.f32 %v9138_v20, %v977_v34  ;;  %v1085_v34 = vrot.slane %v1076_v37, 1  ;;  %v2149_v5 = vrot.slane %v2141_v27, 2  ;;  %v9144_v37 = vld [vmem:[#allocation82_spill] sm:$0xff] }
 0x24e   :  { %2100 = vrot.lane.b32.xlu2 %v2093_v32, %s5142_s22  ;;  %v1014_v32 = vmul.f32 %v5852_v58, %v1011_v8  ;;  %v1084_v58 = vsel %vm126_vm0, %v1082_v22, %v1083_v41  ;;  %v1093_v20 = vadd.f32 %v1083_v41, %v1069_v50  ;;  %v2142_v22 = vmul.f32 %v6050_v47, %v2139_v63  ;;  %v9147_v50 = vld [vmem:[#allocation87_spill] sm:$0xff] }
 0x24f   :  { %2243 = vadd.xlane.f32.xlu1 %v2242_v60  ;;  %2223 = vadd.xlane.f32.xlu0 %v2222_v2  ;;  %v1042_v60 = vadd.f32 %v9137_v44, %v1016_v3  ;;  %v1077_v2 = vmul.f32 %v5865_v57, %v1073_v24  ;;  %v1019_v8 = vadd.f32 %v1015_v12, %v1009_v1  ;;  %v9142_v44 = vld [vmem:[#allocation67_spill] sm:$0xff] }
 0x250   :  { %v6287_v33 = vpop.permute.xlu2 %1864  ;;  %v1018_v30 = vadd.f32 %v1014_v32, %v1008_v49  ;;  %v1163_v32 = vmul.f32 %v5846_v4, %v1161_v18  ;;  %v1162_v49 = vmul.f32 %v5849_v7, %v1161_v18  ;;  %v9145_v4 = vld [vmem:[#allocation85_spill] sm:$0xff]  ;;  %v2140_v41 = vmul.f32 %v6047_v23, %v2139_v63 }
 0x251   :  { %9133 = vst [vmem:[#allocation26_spill] sm:$0xff] %v6287_v33  ;;  %v1068_v45 = vadd.f32 %v9140_v10, %v1042_v60  ;;  %v1086_v24 = vrot.slane %v1077_v2, 1  ;;  %v2143_v2 = vmul.f32 %v6074_v6, %v2139_v63  ;;  %v1125_v12 = vadd.f32 %v9145_v4, %v1093_v20  ;;  %v9146_v7 = vld [vmem:[#allocation81_spill] sm:$0xff]  ;;  %v9149_v63 = vld [vmem:[#allocation88_spill] sm:$0xff] }
 0x252   :  { %v1044_v60 = vadd.f32 %v9142_v44, %v1018_v30  ;;  %v1170_v30 = vrot.slane %v1162_v49, 2  ;;  %v9148_v44 = vld [vmem:[#allocation73_spill] sm:$0xff] }
 0x253   :  { %v1092_v9 = vadd.f32 %v1084_v58, %v1068_v45  ;;  %v1087_v1 = vsel %vm126_vm0, %v1085_v34, %v1086_v24  ;;  %v1171_v58 = vrot.slane %v1163_v32, 2  ;;  %v1157_v27 = vadd.f32 %v9147_v50, %v1125_v12 }
 0x254   :  { %v1070_v17 = vadd.f32 %v9144_v37, %v1044_v60  ;;  %v1164_v34 = vmul.f32 %v6331_v25, %v1161_v18  ;;  %v6334_v60 = vpop.permute.xlu1 %1772  ;;  %v2151_v32 = vrot.slane %v2142_v22, 2  ;;  %v2152_v49 = vrot.slane %v2143_v2, 2  ;;  %v6337_v37 = vpop.permute.xlu0 %1752 }
 0x255   :  { %v2148_v12 = vrot.slane %v2140_v41, 2 }
 0x256   :  { %2102 = vrot.lane.b32.xlu2 %v2097_v61, %s5142_s22  ;;  %v9143_v61 = vld [vmem:[#allocation78_spill] sm:$0xff]  ;;  %v1094_v20 = vadd.f32 %v1087_v1, %v1070_v17  ;;  %v9152_v17 = vrot.slane %v6268_v51, 1  ;;  %v2153_v22 = vsel %vm215_vm1, %v2151_v32, %v2152_v49  ;;  %v9157_v51 = vld [vmem:[#allocation91_spill] sm:$0xff] }
 0x257   :  { %v1045_v10 = vadd.f32 %v9143_v61, %v1019_v8  ;;  %v1124_v8 = vadd.f32 %v9148_v44, %v1092_v9  ;;  %v1165_v61 = vmul.f32 %v5865_v57, %v1161_v18  ;;  %v1172_v57 = vsel %vm215_vm1, %v1170_v30, %v1171_v58 }
 0x258   :  { %v6312_v3 = vpop.permute.xlu2 %1918  ;;  %v1181_v44 = vadd.f32 %v1171_v58, %v1157_v27  ;;  %v2171_v18 = vstv %s6317_s6  ;;  %v2150_v30 = vsel %vm215_vm1, %v2148_v12, %v2149_v5  ;;  %v9154_v58 = vld [vmem:[#allocation79_spill] sm:$0xff] }
 0x259   :  { %9141 = vst [vmem:[#allocation16_spill] sm:$0xff] %v6312_v3  ;;  %v1071_v45 = vadd.f32 %v9146_v7, %v1045_v10  ;;  %v1156_v10 = vadd.f32 %v9149_v63, %v1124_v8  ;;  %v9151_v7 = vld [vmem:[#allocation84_spill] sm:$0xff]  ;;  %v1174_v55 = vrot.slane %v1165_v61, 2  ;;  %v1173_v3 = vrot.slane %v1164_v34, 2  ;;  %v9155_v8 = vld [vmem:[#allocation90_spill] sm:$0xff]  ;;  %v9156_v34 = vld [vmem:[#allocation83_spill] sm:$0xff] }
 0x25a   :  { %v1126_v50 = vadd.f32 %v9151_v7, %v1094_v20  ;;  %v2172_v2 = vmul.f32 %v6047_v23, %v2171_v18  ;;  %v2173_v41 = vmul.f32 %v6044_v52, %v2171_v18  ;;  %v1213_v20 = vadd.f32 %v9156_v34, %v1181_v44 }
 0x25b   :  { %v1095_v4 = vadd.f32 %v1086_v24, %v1071_v45  ;;  %v1180_v1 = vadd.f32 %v1172_v57, %v1156_v10  ;;  %v9153_v24 = vld [vmem:[#allocation76_spill] sm:$0xff]  ;;  %v1175_v32 = vsel %vm215_vm1, %v1173_v3, %v1174_v55  ;;  %v1249_v7 = vstv %s4886_s7  ;;  %v9158_v57 = vld [vmem:[#allocation97_spill] sm:$0xff] }
 0x25c   :  { %v1158_v27 = vadd.f32 %v9154_v58, %v1126_v50  ;;  %v2180_v10 = vrot.slane %v2172_v2, 2  ;;  %v2174_v50 = vmul.f32 %v6050_v47, %v2171_v18  ;;  %v2175_v44 = vmul.f32 %v6074_v6, %v2171_v18  ;;  %v6369_v58 = vpop.permute.xlu0 %1776 }
 0x25d   :  { %v1127_v45 = vadd.f32 %v9153_v24, %v1095_v4  ;;  %v1212_v61 = vadd.f32 %v9155_v8, %v1180_v1  ;;  %v1245_v4 = vadd.f32 %v9158_v57, %v1213_v20  ;;  %v9160_v1 = vld [vmem:[#allocation86_spill] sm:$0xff]  ;;  %v1250_v2 = vmul.f32 %v6047_v23, %v1249_v7 }
 0x25e   :  { %2156 = vrot.lane.b32.xlu2 %v2149_v5, %s5141_s1  ;;  %v1251_v5 = vmul.f32 %v6044_v52, %v1249_v7  ;;  %v1182_v3 = vadd.f32 %v1175_v32, %v1158_v27  ;;  %v9161_v20 = vld [vmem:[#allocation94_spill] sm:$0xff]  ;;  %v2184_v57 = vrot.slane %v2175_v44, 2  ;;  %v9166_v44 = vld [vmem:[#allocation89_spill] sm:$0xff] }
 0x25f   :  { %v1159_v63 = vadd.f32 %v9157_v51, %v1127_v45  ;;  %v1244_v24 = vadd.f32 %v9160_v1, %v1212_v61  ;;  %v1311_v45 = vstv %s4889_s8  ;;  %v9162_v61 = vld [vmem:[#allocation93_spill] sm:$0xff]  ;;  %v1252_v1 = vmul.f32 %v6050_v47, %v1249_v7  ;;  %s6627_s8 = sld [smem:[#allocation5 + $0x5c]] }
 0x260   :  { %v6339_v9 = vpop.permute.xlu2 %1948  ;;  %v1312_v34 = vmul.f32 %v6047_v23, %v1311_v45  ;;  %v1214_v18 = vadd.f32 %v9161_v20, %v1182_v3  ;;  %v1255_v51 = vadd.f32 %v1251_v5, %v1245_v4  ;;  %v1313_v32 = vmul.f32 %v6044_v52, %v1311_v45 }
 0x261   :  { %9150 = vst [vmem:[#allocation29_spill] sm:$0xff] %v6339_v9  ;;  %v1183_v8 = vadd.f32 %v1174_v55, %v1159_v63  ;;  %v9164_v63 = vld [vmem:[#allocation99_spill] sm:$0xff]  ;;  %v1254_v33 = vadd.f32 %v1250_v2, %v1244_v24  ;;  %v1315_v4 = vmul.f32 %v6074_v6, %v1311_v45  ;;  %v1314_v24 = vmul.f32 %v6050_v47, %v1311_v45 }
 0x262   :  { %v1281_v9 = vadd.f32 %v9164_v63, %v1255_v51  ;;  %v1321_v20 = vrot.slane %v1313_v32, 1 }
 0x263   :  { %2104 = vrot.lane.b32.xlu0 %v9152_v17, %s5142_s22  ;;  %v6365_v17 = vpop.permute.xlu1 %1778  ;;  %v1215_v27 = vadd.f32 %v9162_v61, %v1183_v8  ;;  %v1323_v32 = vrot.slane %v1314_v24, 1 }
 0x264   :  { %v6396_v63 = vpop.permute.xlu0 %1830 }
 0x265   :  { %v1247_v8 = vadd.f32 %v9166_v44, %v1215_v27  ;;  %v9171_v44 = vld [vmem:[#allocation106_spill] sm:$0xff] }
 0x266   :  { %2158 = vrot.lane.b32.xlu2 %v2153_v22, %s5141_s1  ;;  %v2181_v22 = vrot.slane %v2173_v41, 2  ;;  %v2183_v41 = vrot.slane %v2174_v50, 2 }
 0x268   :  { %v6360_v12 = vpop.permute.xlu2 %1954  ;;  %2154 = vrot.lane.b32.xlu1 %v2150_v30, %s5141_s1  ;;  %v2182_v30 = vsel %vm215_vm1, %v2180_v10, %v2181_v22  ;;  %v9165_v10 = vld [vmem:[#allocation100_spill] sm:$0xff]  ;;  %v2185_v50 = vsel %vm215_vm1, %v2183_v41, %v2184_v57  ;;  %v1399_v41 = vstv %s4892_s9 }
 0x269   :  { %9159 = vst [vmem:[#allocation22_spill] sm:$0xff] %v6360_v12  ;;  %v9163_v12 = vld [vmem:[#allocation96_spill] sm:$0xff]  ;;  %v1280_v3 = vadd.f32 %v9165_v10, %v1254_v33  ;;  %v1400_v45 = vmul.f32 %v6047_v23, %v1399_v41 }
 0x26a   :  { %v1246_v55 = vadd.f32 %v9163_v12, %v1214_v18  ;;  %v1253_v12 = vmul.f32 %v6074_v6, %v1249_v7  ;;  %v9168_v18 = vld [vmem:[#allocation102_spill] sm:$0xff]  ;;  %v1401_v7 = vmul.f32 %v6044_v52, %v1399_v41 }
 0x26b   :  { %2160 = vrot.lane.b32.xlu0 %v2152_v49, %s5141_s1  ;;  %v1320_v49 = vrot.slane %v1312_v34, 1  ;;  %v1306_v33 = vadd.f32 %v9168_v18, %v1280_v3  ;;  %v6393_v61 = vpop.permute.xlu1 %1832  ;;  %v1408_v23 = vrot.slane %v1400_v45, 2 }
 0x26c   :  { %v1256_v2 = vadd.f32 %v1252_v1, %v1246_v55  ;;  %v1257_v27 = vadd.f32 %v1253_v12, %v1247_v8  ;;  %v9173_v8 = vld [vmem:[#allocation105_spill] sm:$0xff]  ;;  %v1409_v24 = vrot.slane %v1401_v7, 2  ;;  %v6418_v45 = vpop.permute.xlu0 %1860 }
 0x26d   :  { %v1322_v51 = vsel %vm126_vm0, %v1320_v49, %v1321_v20  ;;  %v9170_v49 = vld [vmem:[#allocation103_spill] sm:$0xff] }
 0x26e   :  { %2186 = vrot.lane.b32.xlu2 %v2182_v30, %s5142_s22  ;;  %v9167_v30 = vld [vmem:[#allocation95_spill] sm:$0xff]  ;;  %v1330_v1 = vadd.f32 %v1322_v51, %v1306_v33  ;;  %v1283_v3 = vadd.f32 %v9170_v49, %v1257_v27  ;;  %v1410_v49 = vsel %vm215_vm1, %v1408_v23, %v1409_v24 }
 0x26f   :  { %v1307_v34 = vadd.f32 %v9167_v30, %v1281_v9  ;;  %v9169_v9 = vld [vmem:[#allocation92_spill] sm:$0xff]  ;;  %v9174_v33 = vld [vmem:[#allocation111_spill] sm:$0xff] }
 0x270   :  { %v6383_v5 = vpop.permute.xlu2 %1988  ;;  %2188 = vrot.lane.b32.xlu1 %v2181_v22, %s5142_s22  ;;  %v1324_v22 = vrot.slane %v1315_v4, 1  ;;  %v1282_v55 = vadd.f32 %v9169_v9, %v1256_v2  ;;  %v9172_v4 = vld [vmem:[#allocation109_spill] sm:$0xff]  ;;  %v1309_v12 = vadd.f32 %v9173_v8, %v1283_v3  ;;  %v9175_v2 = vld [vmem:[#allocation98_spill] sm:$0xff]  ;;  %v9176_v9 = vld [vmem:[#allocation112_spill] sm:$0xff] }
 0x271   :  { %v1331_v10 = vadd.f32 %v1321_v20, %v1307_v34  ;;  %v1362_v20 = vadd.f32 %v9175_v2, %v1330_v1  ;;  %v1402_v34 = vmul.f32 %v6050_v47, %v1399_v41  ;;  %v9177_v3 = vld [vmem:[#allocation108_spill] sm:$0xff]  ;;  %v9179_v47 = vld [vmem:[#allocation101_spill] sm:$0xff] }
 0x272   :  { %v1325_v52 = vsel %vm126_vm0, %v1323_v32, %v1324_v22 }
 0x273   :  { %2190 = vrot.lane.b32.xlu0 %v2185_v50, %s5142_s22  ;;  %v1308_v50 = vadd.f32 %v9171_v44, %v1282_v55  ;;  %v1363_v30 = vadd.f32 %v9172_v4, %v1331_v10  ;;  %v1394_v55 = vadd.f32 %v9176_v9, %v1362_v20  ;;  %v1333_v10 = vadd.f32 %v1324_v22, %v1309_v12  ;;  %v6415_v44 = vpop.permute.xlu1 %1862  ;;  %v9181_v12 = vld [vmem:[#allocation107_spill] sm:$0xff] }
 0x274   :  { %v1411_v1 = vrot.slane %v1402_v34, 2  ;;  %v1489_v20 = vstv %s4896_s10  ;;  %s6631_s10 = sld [smem:[#allocation5 + $0x5e]] }
 0x275   :  { %v1395_v51 = vadd.f32 %v9174_v33, %v1363_v30  ;;  %v1332_v27 = vadd.f32 %v1325_v52, %v1308_v50  ;;  %v1418_v30 = vadd.f32 %v1410_v49, %v1394_v55  ;;  %v9180_v50 = vld [vmem:[#allocation104_spill] sm:$0xff]  ;;  %v6435_v55 = vpop.permute.xlu0 %1866 }
 0x276   :  { %2192 = vrot.lane.b32.xlu2 %v2184_v57, %s5142_s22  ;;  %v1403_v57 = vmul.f32 %v6074_v6, %v1399_v41  ;;  %v1365_v41 = vadd.f32 %v9179_v47, %v1333_v10  ;;  %v5087_v49 = vld [vmem:[#allocation2] sm:$0xff] }
 0x277   :  { %v1364_v32 = vadd.f32 %v9177_v3, %v1332_v27  ;;  %v1419_v7 = vadd.f32 %v1409_v24, %v1395_v51  ;;  %v1450_v22 = vadd.f32 %v5923_v62, %v1418_v30  ;;  %v9182_v51 = vld [vmem:[#allocation110_spill] sm:$0xff]  ;;  %v1490_v3 = vmul.f32 %v5087_v49, %v1489_v20  ;;  %v6445_v30 = vld [vmem:[#allocation2 + $0x38] sm:$0xff] }
 0x278   :  { %v6405_v18 = vpop.permute.xlu2 %2012  ;;  %v1412_v4 = vrot.slane %v1403_v57, 2  ;;  %v1397_v23 = vadd.f32 %v5925_v43, %v1365_v41  ;;  %v1493_v47 = vmul.f32 %v6445_v30, %v1489_v20  ;;  %v9186_v41 = vld [vmem:[#allocation113_spill] sm:$0xff] }
 0x279   :  { %v1396_v8 = vadd.f32 %v9180_v50, %v1364_v32  ;;  %v1451_v52 = vadd.f32 %v9181_v12, %v1419_v7  ;;  %v1482_v2 = vadd.f32 %v9182_v51, %v1450_v22  ;;  %v1487_v32 = vstv %s4895_s11 }
 0x27a   :  { %v1413_v24 = vsel %vm215_vm1, %v1411_v1, %v1412_v4  ;;  %v1421_v34 = vadd.f32 %v1412_v4, %v1397_v23  ;;  %v1551_v4 = vstv %s4899_s12  ;;  %v1494_v12 = vadd.f32 %v1490_v3, %v1487_v32 }
 0x27b   :  { %v1483_v33 = vadd.f32 %v5983_v19, %v1451_v52  ;;  %v1420_v57 = vadd.f32 %v1413_v24, %v1396_v8  ;;  %v6430_v27 = vpop.permute.xlu1 %1916  ;;  %v6440_v19 = vmax.f32 %v1482_v2, 0.0  ;;  %v5089_v8 = vld [vmem:[#allocation2 + $0x8] sm:$0xff]  ;;  %v1492_v24 = vmul.f32 %v6223_v16, %v1489_v20 }
 0x27c   :  { %v1453_v43 = vadd.f32 %v5951_v46, %v1421_v34  ;;  %v1491_v22 = vmul.f32 %v5089_v8, %v1489_v20  ;;  %v1553_v23 = vmul.f32 %v5089_v8, %v1551_v4  ;;  %v1497_v34 = vadd.f32 %v1493_v47, %v1487_v32 }
 0x27d   :  { %v1452_v9 = vadd.f32 %v5953_v0, %v1420_v57  ;;  %v6433_v62 = vmax.f32 %v1483_v33, 0.0  ;;  %9185 = vst [vmem:[#allocation25_spill] sm:$0xff] %v6440_v19  ;;  %v1552_v0 = vmul.f32 %v5087_v49, %v1551_v4  ;;  %v2284_v33 = vsel %vm2214_vm2, %v6440_v19, 0.0 }
 0x27e   :  { %v1485_v50 = vadd.f32 %v9186_v41, %v1453_v43  ;;  %v1495_v43 = vadd.f32 %v1491_v22, %v1487_v32  ;;  %v1520_v3 = vadd.f32 %v6011_v14, %v1494_v12  ;;  %v1555_v41 = vmul.f32 %v6445_v30, %v1551_v4 }
 0x27f   :  { %9183 = vst [vmem:[#allocation19_spill] sm:$0xff] %v6433_v62  ;;  %v1484_v7 = vadd.f32 %v5981_v31, %v1452_v9  ;;  %v2301_v1 = vmul.f32 %v6433_v62, %v6433_v62  ;;  %v2285_v46 = vsel %vm2216_vm3, %v6433_v62, 0.0  ;;  %v2300_v31 = vmul.f32 %v6440_v19, %v6440_v19 }
 0x280   :  { %v6420_v6 = vpop.permute.xlu2 %2066  ;;  %v2286_v51 = vadd.f32 %v2285_v46, %v2284_v33  ;;  %v1560_v57 = vrot.slane %v1552_v0, 1  ;;  %v6459_v9 = vmax.f32 %v1485_v50, 0.0  ;;  %v1561_v62 = vrot.slane %v1553_v23, 1  ;;  %v6469_v46 = vpop.permute.xlu0 %1920 }
 0x281   :  { %9178 = vst [vmem:[#allocation30_spill] sm:$0xff] %v6420_v6  ;;  %v6453_v52 = vmax.f32 %v1484_v7, 0.0  ;;  %v2305_v2 = vsel %vm2216_vm3, %v2301_v1, 0.0  ;;  %v2304_v1 = vsel %vm2214_vm2, %v2300_v31, 0.0  ;;  %v1496_v0 = vadd.f32 %v1492_v24, %v1487_v32 }
 0x282   :  { %v1546_v14 = vadd.f32 %v6036_v13, %v1520_v3  ;;  %v2306_v50 = vadd.f32 %v2305_v2, %v2304_v1  ;;  %v1562_v22 = vsel %vm126_vm0, %v1560_v57, %v1561_v62  ;;  %v1523_v12 = vadd.f32 %v6042_v26, %v1497_v34 }
 0x283   :  { %9187 = vst [vmem:[#allocation33_spill] sm:$0xff] %v6453_v52  ;;  %v2302_v20 = vmul.f32 %v6453_v52, %v6453_v52  ;;  %v2287_v47 = vsel %vm2214_vm2, %v6453_v52, 0.0  ;;  %v1554_v33 = vmul.f32 %v6223_v16, %v1551_v4  ;;  %v1521_v19 = vadd.f32 %v6009_v35, %v1495_v43 }
 0x284   :  { %v2288_v23 = vadd.f32 %v2287_v47, %v2286_v51  ;;  %v1639_v6 = vstv %s4902_s13  ;;  %v2303_v32 = vmul.f32 %v6459_v9, %v6459_v9  ;;  %v1549_v31 = vadd.f32 %v6071_v42, %v1523_v12  ;;  %s6636_s13 = sld [smem:[#allocation5 + $0x5f]] }
 0x285   :  { %v1641_v24 = vmul.f32 %v5089_v8, %v1639_v6  ;;  %v1640_v52 = vmul.f32 %v5087_v49, %v1639_v6  ;;  %v2307_v13 = vsel %vm2214_vm2, %v2302_v20, 0.0  ;;  %v1570_v2 = vadd.f32 %v1562_v22, %v1546_v14 }
 0x286   :  { %v2289_v26 = vsel %vm2216_vm3, %v6459_v9, 0.0  ;;  %v2308_v57 = vadd.f32 %v2307_v13, %v2306_v50  ;;  %v1522_v51 = vadd.f32 %v5929_v21, %v1496_v0  ;;  %v1547_v35 = vadd.f32 %v5955_v11, %v1521_v19 }
 0x287   :  { %v2290_v4 = vadd.f32 %v2289_v26, %v2288_v23  ;;  %v1563_v34 = vrot.slane %v1554_v33, 1  ;;  %v1649_v3 = vrot.slane %v1641_v24, 2  ;;  %v2309_v42 = vsel %vm2216_vm3, %v2303_v32, 0.0  ;;  %v9189_v33 = vld [vmem:[#allocation11_spill] sm:$0xff]  ;;  %v9190_v32 = vld [vmem:[#allocation18_spill] sm:$0xff] }
 0x288   :  { %v6437_v10 = vpop.permute.xlu2 %2068  ;;  %v1602_v49 = vadd.f32 %v5987_v38, %v1570_v2  ;;  %v2310_v20 = vadd.f32 %v2309_v42, %v2308_v57  ;;  %v1548_v1 = vadd.f32 %v6080_v29, %v1522_v51  ;;  %v6494_v21 = vpop.permute.xlu0 %1950  ;;  %v1571_v19 = vadd.f32 %v1561_v62, %v1547_v35  ;;  %v5090_v35 = vld [vmem:[#allocation2 + $0x10] sm:$0xff]  ;;  %v9194_v42 = vld [vmem:[#allocation15_spill] sm:$0xff] }
 0x289   :  { %9184 = vst [vmem:[#allocation32_spill] sm:$0xff] %v6437_v10  ;;  %v6467_v10 = vpop.permute.xlu1 %1922  ;;  %v1643_v14 = vmul.f32 %v6445_v30, %v1639_v6  ;;  %v1642_v29 = vmul.f32 %v6223_v16, %v1639_v6  ;;  %v1727_v13 = vstv %s4905_s14  ;;  %v9192_v6 = vld [vmem:[#allocation21_spill] sm:$0xff] }
 0x28a   :  { %v1603_v50 = vadd.f32 %v6116_v39, %v1571_v19  ;;  %v9191_v39 = vld [vmem:[#allocation12_spill] sm:$0xff] }
 0x28b   :  { %v1652_v23 = vrot.slane %v1643_v14, 2  ;;  %v1651_v24 = vrot.slane %v1642_v29, 2  ;;  %v9196_v29 = vld [vmem:[#allocation27_spill] sm:$0xff] }
 0x28d   :  { %v1653_v51 = vsel %vm215_vm1, %v1651_v24, %v1652_v23 }
 0x290   :  { %v6463_v7 = vpop.permute.xlu2 %2070 }
 0x291   :  { %9188 = vst [vmem:[#allocation36_spill] sm:$0xff] %v6463_v7  ;;  %v1564_v7 = vrot.slane %v1555_v41, 1  ;;  %v1648_v41 = vrot.slane %v1640_v52, 2  ;;  %v6492_v47 = vpop.permute.xlu1 %1952  ;;  %v1634_v52 = vadd.f32 %v6144_v48, %v1602_v49  ;;  %v9195_v49 = vld [vmem:[#allocation17_spill] sm:$0xff] }
 0x293   :  { %v1573_v43 = vadd.f32 %v1564_v7, %v1549_v31  ;;  %v1565_v11 = vsel %vm126_vm0, %v1563_v34, %v1564_v7  ;;  %v1650_v0 = vsel %vm215_vm1, %v1648_v41, %v1649_v3  ;;  %v1635_v7 = vadd.f32 %v6141_v53, %v1603_v50  ;;  %v9193_v53 = vld [vmem:[#allocation14_spill] sm:$0xff] }
 0x294   :  { %v1572_v22 = vadd.f32 %v1565_v11, %v1548_v1  ;;  %v1658_v62 = vadd.f32 %v1650_v0, %v1634_v52  ;;  %v1728_v34 = vmul.f32 %v5090_v35, %v1727_v13  ;;  %v5091_v11 = vld [vmem:[#allocation2 + $0x18] sm:$0xff]  ;;  %v5092_v52 = vld [vmem:[#allocation2 + $0x48] sm:$0xff] }
 0x295   :  { %v1605_v38 = vadd.f32 %v6016_v36, %v1573_v43  ;;  %v1659_v30 = vadd.f32 %v1649_v3, %v1635_v7  ;;  %v1789_v43 = vstv %s4908_s15  ;;  %v1731_v0 = vmul.f32 %v5092_v52, %v1727_v13  ;;  %s6639_s15 = sld [smem:[#allocation5 + $0x61]] }
 0x296   :  { %v1604_v48 = vadd.f32 %v9189_v33, %v1572_v22  ;;  %v1690_v31 = vadd.f32 %v9190_v32, %v1658_v62  ;;  %v1790_v41 = vmul.f32 %v5090_v35, %v1789_v43  ;;  %v1791_v19 = vmul.f32 %v5091_v11, %v1789_v43 }
 0x297   :  { %v1637_v12 = vadd.f32 %v6178_v28, %v1605_v38  ;;  %v6513_v28 = vpop.permute.xlu0 %1984  ;;  %v1691_v3 = vadd.f32 %v9194_v42, %v1659_v30  ;;  %v1729_v14 = vmul.f32 %v5091_v11, %v1727_v13  ;;  %v1793_v62 = vmul.f32 %v5092_v52, %v1789_v43 }
 0x298   :  { %v6489_v8 = vpop.permute.xlu2 %2072  ;;  %v1636_v16 = vadd.f32 %v9191_v39, %v1604_v48  ;;  %v1730_v33 = vmul.f32 %v6331_v25, %v1727_v13 }
 0x299   :  { %v1661_v36 = vadd.f32 %v1652_v23, %v1637_v12  ;;  %v6511_v57 = vpop.permute.xlu1 %1986  ;;  %v1723_v38 = vadd.f32 %v6274_v59, %v1691_v3  ;;  %v1798_v12 = vrot.slane %v1790_v41, 1  ;;  %v1799_v23 = vrot.slane %v1791_v19, 1  ;;  %v9198_v3 = vld [vmem:[#allocation8_spill] sm:$0xff] }
 0x29a   :  { %2291 = vadd.xlane.f32.xlu1 %v2290_v4  ;;  %v1722_v4 = vadd.f32 %v9193_v53, %v1690_v31  ;;  %v1660_v1 = vadd.f32 %v1653_v51, %v1636_v16  ;;  %v1802_v13 = vrot.slane %v1793_v62, 1  ;;  %v9199_v19 = vld [vmem:[#allocation20_spill] sm:$0xff] }
 0x29b   :  { %v1693_v26 = vadd.f32 %v9192_v6, %v1661_v36  ;;  %v1733_v31 = vadd.f32 %v1729_v14, %v1723_v38  ;;  %v1800_v59 = vsel %vm126_vm0, %v1798_v12, %v1799_v23  ;;  %v1877_v6 = vstv %s4911_s16 }
 0x29c   :  { %v1732_v50 = vadd.f32 %v1728_v34, %v1722_v4  ;;  %v1692_v22 = vadd.f32 %v9196_v29, %v1660_v1  ;;  %v1878_v4 = vmul.f32 %v5090_v35, %v1877_v6  ;;  %v9197_v34 = vld [vmem:[#allocation9_spill] sm:$0xff]  ;;  %v1880_v29 = vmul.f32 %v6331_v25, %v1877_v6 }
 0x29d   :  { %2311 = vadd.xlane.f32.xlu0 %v2310_v20  ;;  %v1725_v20 = vadd.f32 %v9195_v49, %v1693_v26 }
 0x29e   :  { %v1758_v7 = vadd.f32 %v6307_v56, %v1732_v50  ;;  %v1724_v48 = vadd.f32 %v6262_v40, %v1692_v22  ;;  %v1759_v56 = vadd.f32 %v6303_v54, %v1733_v31  ;;  %v1792_v40 = vmul.f32 %v6331_v25, %v1789_v43 }
 0x29f   :  { %v1735_v32 = vadd.f32 %v1731_v0, %v1725_v20  ;;  %v6531_v16 = vpop.permute.xlu0 %1990  ;;  %v1886_v1 = vrot.slane %v1878_v4, 2  ;;  %v1881_v50 = vmul.f32 %v5092_v52, %v1877_v6  ;;  %v1965_v25 = vstv %s4914_s17  ;;  %v9202_v4 = vld [vmem:[#allocation16_spill] sm:$0xff]  ;;  %s4938_s17 = sld [smem:[#allocation5 + $0x62]] }
 0x2a0   :  { %v6507_v2 = vpop.permute.xlu2 %2098  ;;  %v1784_v24 = vadd.f32 %v6334_v60, %v1758_v7  ;;  %v1734_v26 = vadd.f32 %v1730_v33, %v1724_v48  ;;  %v1879_v60 = vmul.f32 %v5091_v11, %v1877_v6  ;;  %v1785_v41 = vadd.f32 %v9197_v34, %v1759_v56  ;;  %v5093_v56 = vld [vmem:[#allocation2 + $0x20] sm:$0xff]  ;;  %v5094_v34 = vld [vmem:[#allocation2 + $0x58] sm:$0xff] }
 0x2a1   :  { %v1761_v30 = vadd.f32 %v6337_v37, %v1735_v32  ;;  %v6529_v39 = vpop.permute.xlu1 %2010  ;;  %v1801_v42 = vrot.slane %v1792_v40, 1  ;;  %v2027_v6 = vstv %s4917_s18  ;;  %s4933_s18 = sld [smem:[#allocation5 + $0x5d]] }
 0x2a2   :  { %v1808_v51 = vadd.f32 %v1800_v59, %v1784_v24  ;;  %v1760_v49 = vadd.f32 %v9198_v3, %v1734_v26  ;;  %v1887_v20 = vrot.slane %v1879_v60, 2  ;;  %v1809_v38 = vadd.f32 %v1799_v23, %v1785_v41  ;;  %v9200_v24 = vld [vmem:[#allocation26_spill] sm:$0xff] }
 0x2a3   :  { %v1787_v53 = vadd.f32 %v6365_v17, %v1761_v30  ;;  %v1803_v0 = vsel %vm126_vm0, %v1801_v42, %v1802_v13  ;;  %v1890_v23 = vrot.slane %v1881_v50, 2  ;;  %v2028_v60 = vmul.f32 %v5093_v56, %v2027_v6 }
 0x2a4   :  { %v1840_v54 = vadd.f32 %v9199_v19, %v1808_v51  ;;  %v1786_v43 = vadd.f32 %v6369_v58, %v1760_v49  ;;  %v1888_v11 = vsel %vm215_vm1, %v1886_v1, %v1887_v20  ;;  %v1841_v58 = vadd.f32 %v6396_v63, %v1809_v38 }
 0x2a5   :  { %v1811_v37 = vadd.f32 %v1802_v13, %v1787_v53  ;;  %v2036_v50 = vrot.slane %v2028_v60, 1 }
 0x2a6   :  { %v1872_v17 = vadd.f32 %v6418_v45, %v1840_v54  ;;  %v1810_v7 = vadd.f32 %v1803_v0, %v1786_v43  ;;  %v1873_v45 = vadd.f32 %v6415_v44, %v1841_v58  ;;  %v2031_v58 = vmul.f32 %v5094_v34, %v2027_v6 }
 0x2a7   :  { %v1843_v14 = vadd.f32 %v6251_v15, %v1811_v37  ;;  %v6549_v12 = vpop.permute.xlu0 %2014  ;;  %v1889_v15 = vrot.slane %v1880_v29, 2  ;;  %v9203_v37 = vld [vmem:[#allocation22_spill] sm:$0xff] }
 0x2a8   :  { %v6525_v36 = vpop.permute.xlu2 %2100  ;;  %v1896_v33 = vadd.f32 %v1888_v11, %v1872_v17  ;;  %v1842_v48 = vadd.f32 %v6393_v61, %v1810_v7  ;;  %v1897_v31 = vadd.f32 %v1887_v20, %v1873_v45  ;;  %v9201_v61 = vld [vmem:[#allocation29_spill] sm:$0xff]  ;;  %v5096_v11 = vld [vmem:[#allocation2 + $0x50] sm:$0xff] }
 0x2a9   :  { %v6547_v22 = vpop.permute.xlu1 %2016  ;;  %v1875_v62 = vadd.f32 %v6435_v55, %v1843_v14  ;;  %v1891_v30 = vsel %vm215_vm1, %v1889_v15, %v1890_v23  ;;  %v1966_v55 = vmul.f32 %v5093_v56, %v1965_v25  ;;  %v5095_v20 = vld [vmem:[#allocation2 + $0x28] sm:$0xff]  ;;  %v1968_v14 = vmul.f32 %v5096_v11, %v1965_v25 }
 0x2aa   :  { %v1928_v52 = vadd.f32 %v6430_v27, %v1896_v33  ;;  %v1874_v59 = vadd.f32 %v9200_v24, %v1842_v48  ;;  %v1929_v51 = vadd.f32 %v9202_v4, %v1897_v31  ;;  %v1967_v1 = vmul.f32 %v5095_v20, %v1965_v25 }
 0x2ab   :  { %v1899_v32 = vadd.f32 %v1890_v23, %v1875_v62  ;;  %v2029_v19 = vmul.f32 %v5095_v20, %v2027_v6  ;;  %v2115_v23 = vstv %s6559_s19  ;;  %v2030_v31 = vmul.f32 %v5096_v11, %v2027_v6  ;;  %s4936_s19 = sld [smem:[#allocation5 + $0x60]] }
 0x2ac   :  { %v1960_v40 = vadd.f32 %v9201_v61, %v1928_v52  ;;  %v1898_v49 = vadd.f32 %v1891_v30, %v1874_v59  ;;  %v1961_v54 = vadd.f32 %v6494_v21, %v1929_v51  ;;  %v2040_v24 = vrot.slane %v2031_v58, 1 }
 0x2ad   :  { %v1931_v63 = vadd.f32 %v6467_v10, %v1899_v32  ;;  %v1969_v10 = vmul.f32 %v5094_v34, %v1965_v25  ;;  %v2037_v33 = vrot.slane %v2029_v19, 1 }
 0x2ae   :  { %v1970_v43 = vadd.f32 %v1966_v55, %v1960_v40  ;;  %v1930_v17 = vadd.f32 %v6469_v46, %v1898_v49  ;;  %v1971_v15 = vadd.f32 %v1967_v1, %v1961_v54  ;;  %v2039_v40 = vrot.slane %v2030_v31, 1 }
 0x2af   :  { %v1963_v3 = vadd.f32 %v9203_v37, %v1931_v63  ;;  %v2038_v46 = vsel %vm126_vm0, %v2036_v50, %v2037_v33 }
 0x2b0   :  { %v6542_v35 = vpop.permute.xlu2 %2102  ;;  %v1996_v29 = vadd.f32 %v6513_v28, %v1970_v43  ;;  %v1962_v45 = vadd.f32 %v6492_v47, %v1930_v17  ;;  %v1997_v28 = vadd.f32 %v6511_v57, %v1971_v15 }
 0x2b1   :  { %v1973_v48 = vadd.f32 %v1969_v10, %v1963_v3  ;;  %v2118_v3 = vmul.f32 %v5096_v11, %v2115_v23 }
 0x2b2   :  { %v2022_v21 = vadd.f32 %v6529_v39, %v1996_v29  ;;  %v1972_v47 = vadd.f32 %v1968_v14, %v1962_v45  ;;  %v2023_v39 = vadd.f32 %v6405_v18, %v1997_v28  ;;  %v2119_v18 = vmul.f32 %v5094_v34, %v2115_v23 }
 0x2b3   :  { %v1999_v25 = vadd.f32 %v6531_v16, %v1973_v48 }
 0x2b4   :  { %v2046_v61 = vadd.f32 %v2038_v46, %v2022_v21  ;;  %v1998_v16 = vadd.f32 %v6383_v5, %v1972_v47  ;;  %v2047_v51 = vadd.f32 %v2037_v33, %v2023_v39  ;;  %v2128_v54 = vrot.slane %v2119_v18, 2 }
 0x2b5   :  { %v2025_v55 = vadd.f32 %v6547_v22, %v1999_v25  ;;  %v2041_v22 = vsel %vm126_vm0, %v2039_v40, %v2040_v24 }
 0x2b6   :  { %v2024_v4 = vadd.f32 %v6549_v12, %v1998_v16 }
 0x2b8   :  { %v6562_v26 = vpop.permute.xlu2 %2156  ;;  %v2048_v5 = vadd.f32 %v2041_v22, %v2024_v4 }
 0x2c0   :  { %v2159_v59 = vpop.permute.xlu2 %2158 }
 0x2c2   :  { %v2244_v44 = vpop.xlane.xlu1 %2243  ;;  %v2224_v13 = vpop.xlane.xlu0 %2223 }
 0x2c3   :  { %v2245_v27 = vrot.slane %v2244_v44, 4  ;;  %v2225_v53 = vrot.slane %v2224_v13, 4 }
 0x2c5   :  { %v2246_v41 = vadd.f32 %v2245_v27, %v2244_v44  ;;  %v2226_v42 = vadd.f32 %v2225_v53, %v2224_v13  ;;  %v2117_v44 = vmul.f32 %v5095_v20, %v2115_v23  ;;  %v2116_v13 = vmul.f32 %v5093_v56, %v2115_v23  ;;  %v9204_v53 = vld [vmem:[#allocation30_spill] sm:$0xff]  ;;  %v9205_v20 = vld [vmem:[#allocation32_spill] sm:$0xff] }
 0x2c6   :  { %v2049_v27 = vadd.f32 %v2040_v24, %v2025_v55  ;;  %v2078_v60 = vadd.f32 %v9204_v53, %v2046_v61  ;;  %v2079_v1 = vadd.f32 %v9205_v20, %v2047_v51 }
 0x2c7   :  { %v2227_v0 = vrot.slane %v2226_v42, 2  ;;  %v2247_v38 = vrot.slane %v2246_v41, 2  ;;  %v2125_v6 = vrot.slane %v2117_v44, 2  ;;  %v2124_v57 = vrot.slane %v2116_v13, 2 }
 0x2c8   :  { %v2110_v56 = vadd.f32 %v6507_v2, %v2078_v60  ;;  %v2111_v43 = vadd.f32 %v6525_v36, %v2079_v1  ;;  %v9206_v2 = vld [vmem:[#allocation36_spill] sm:$0xff] }
 0x2c9   :  { %v2228_v7 = vadd.f32 %v2227_v0, %v2226_v42  ;;  %v2248_v62 = vadd.f32 %v2247_v38, %v2246_v41  ;;  %v2187_v41 = vpop.permute.xlu2 %2186  ;;  %v2081_v42 = vadd.f32 %v6489_v8, %v2049_v27  ;;  %v2126_v37 = vsel %vm215_vm1, %v2124_v57, %v2125_v6 }
 0x2ca   :  { %v2134_v19 = vadd.f32 %v2126_v37, %v2110_v56  ;;  %v2127_v0 = vrot.slane %v2118_v3, 2  ;;  %v2080_v17 = vadd.f32 %v9206_v2, %v2048_v5  ;;  %v2135_v11 = vadd.f32 %v2125_v6, %v2111_v43  ;;  %v9207_v2 = vld [vmem:[#allocation10_spill] sm:$0xff] }
 0x2cb   :  { %v2229_v52 = vrot.slane %v2228_v7, 1  ;;  %v2249_v32 = vrot.slane %v2248_v62, 1 }
 0x2cc   :  { %v2112_v34 = vadd.f32 %v6542_v35, %v2080_v17  ;;  %v2129_v58 = vsel %vm215_vm1, %v2127_v0, %v2128_v54 }
 0x2cd   :  { %v2230_v63 = vadd.f32 %v2229_v52, %v2228_v7  ;;  %v2250_v30 = vadd.f32 %v2249_v32, %v2248_v62  ;;  %v2167_v62 = vadd.f32 %v6562_v26, %v2135_v11  ;;  %v9210_v11 = vld [vmem:[#allocation23_spill] sm:$0xff] }
 0x2ce   :  { %v2136_v33 = vadd.f32 %v2129_v58, %v2112_v34 }
 0x2cf   :  { %5019 = vpush %v2230_v63 }
 0x2d0   :  { %5021 = vpush %v2250_v30  ;;  %v2168_v15 = vadd.f32 %v2159_v59, %v2136_v33 }
 0x2d1   :  { %v2193_v7 = vpop.permute.xlu2 %2192 }
 0x2d5   :  { %v2105_v10 = vpop.permute.xlu0 %2104 }
 0x2d6   :  { %v2113_v49 = vadd.f32 %v2105_v10, %v2081_v42 }
 0x2d8   :  { %v2137_v14 = vadd.f32 %v2128_v54, %v2113_v49 }
 0x2da   :  { %v2155_v12 = vpop.permute.xlu1 %2154 }
 0x2db   :  { %v2166_v38 = vadd.f32 %v2155_v12, %v2134_v19 }
 0x2dd   :  { %v2198_v50 = vadd.f32 %v2187_v41, %v2166_v38  ;;  %v2161_v8 = vpop.permute.xlu0 %2160 }
 0x2de   :  { %v2169_v29 = vadd.f32 %v2161_v8, %v2137_v14  ;;  %v9208_v14 = vld [vmem:[#allocation13_spill] sm:$0xff]  ;;  %v9209_v8 = vld [vmem:[#allocation24_spill] sm:$0xff] }
 0x2df   :  { %v6590_v45 = vmax.f32 %v2198_v50, 0.0 }
 0x2e0   :  { %v2201_v36 = vadd.f32 %v2193_v7, %v2169_v29 }
 0x2e1   :  { %v2368_v21 = vmul.f32 %v6590_v45, %v6590_v45  ;;  %v2352_v25 = vsel %vm2214_vm2, %v6590_v45, 0.0 }
 0x2e2   :  { %v2189_v48 = vpop.permute.xlu1 %2188  ;;  %v6596_v32 = vmax.f32 %v2201_v36, 0.0 }
 0x2e3   :  { %v2199_v23 = vadd.f32 %v2189_v48, %v2167_v62  ;;  %v2372_v63 = vsel %vm2214_vm2, %v2368_v21, 0.0 }
 0x2e4   :  { %v2371_v30 = vmul.f32 %v6596_v32, %v6596_v32  ;;  %v2357_v61 = vsel %vm2216_vm3, %v6596_v32, 0.0 }
 0x2e5   :  { %v6594_v52 = vmax.f32 %v2199_v23, 0.0  ;;  %v2191_v35 = vpop.permute.xlu0 %2190 }
 0x2e6   :  { %v2200_v46 = vadd.f32 %v2191_v35, %v2168_v15  ;;  %v2377_v16 = vsel %vm2216_vm3, %v2371_v30, 0.0  ;;  %v2457_v35 = vstv %s6622_s30  ;;  %s4989_s30 = sld [smem:[#allocation5 + $0x93]] }
 0x2e7   :  { %v2353_v26 = vsel %vm2216_vm3, %v6594_v52, 0.0  ;;  %v2369_v31 = vmul.f32 %v6594_v52, %v6594_v52 }
 0x2e8   :  { %v2354_v28 = vadd.f32 %v2353_v26, %v2352_v25  ;;  %v6604_v24 = vmax.f32 %v2200_v46, 0.0 }
 0x2e9   :  { %v2373_v59 = vsel %vm2216_vm3, %v2369_v31, 0.0 }
 0x2ea   :  { %v2355_v47 = vsel %vm2214_vm2, %v6604_v24, 0.0  ;;  %v2370_v55 = vmul.f32 %v6604_v24, %v6604_v24  ;;  %v2374_v44 = vadd.f32 %v2373_v59, %v2372_v63 }
 0x2eb   :  { %v2356_v13 = vadd.f32 %v2355_v47, %v2354_v28 }
 0x2ec   :  { %v2375_v39 = vsel %vm2214_vm2, %v2370_v55, 0.0  ;;  %v2483_v55 = vstv %s6627_s8 }
 0x2ed   :  { %v2358_v40 = vadd.f32 %v2357_v61, %v2356_v13  ;;  %v2376_v27 = vadd.f32 %v2375_v39, %v2374_v44  ;;  %v2533_v13 = vstv %s6631_s10  ;;  %v2565_v61 = vstv %s6636_s13 }
 0x2ef   :  { %2359 = vadd.xlane.f32.xlu2 %v2358_v40  ;;  %v2378_v6 = vadd.f32 %v2377_v16, %v2376_v27  ;;  %v6660_v40 = vstv %s6639_s15  ;;  %v6662_v27 = vstv %s4938_s17  ;;  %v2509_v16 = vstv %s4933_s18  ;;  %s4930_s17 = sld [smem:[#allocation5 + $0x5a]] }
 0x2f1   :  { %2379 = vadd.xlane.f32.xlu1 %v2378_v6  ;;  %v6664_v6 = vstv %s4936_s19  ;;  %s4941_s19 = sld [smem:[#allocation5 + $0x65]] }
 0x300   :  { %s5020_s0 = spop %5019 }
 0x301   :  { %s6618_s20 = smul.f32 0.0025510204, %s5020_s0  ;;  %s5022_s21 = spop %5021 }
 0x302   :  { %s2253_s23 = smul.f32 0.0025510204, %s5022_s21  ;;  %s4962_s0 = sld [smem:[#allocation5 + $0x79]] }
 0x303   :  { %s2254_s24 = smul.f32 %s6618_s20, %s6618_s20  ;;  %s4965_s21 = sld [smem:[#allocation5 + $0x7c]] }
 0x305   :  { %s2255_s25 = ssub.f32 %s2253_s23, %s2254_s24 }
 0x306   :  { %s4966_s23 = sld [smem:[#allocation5 + $0x7d]] }
 0x307   :  { %s2257_s26 = sadd.f32 1e-05, %s2255_s25 }
 0x308   :  { %s6804_s24 = sld [smem:[#allocation5 + $0x78]] }
 0x309   :  { %v2258_v57 = vstv %s2257_s26  ;;  %s6815_s25 = sld [smem:[#allocation5 + $0x7b]] }
 0x30a   :  { %5061 = vrsqrt.f32 %v2258_v57  ;;  %vm2265_vm5 = vweird.f32 %v2258_v57  ;;  %s6884_s26 = sld [smem:[#allocation5 + $0x94]] }
 0x30d   :  { %v2292_v53 = vpop.xlane.xlu1 %2291 }
 0x30e   :  { %v2293_v60 = vrot.slane %v2292_v53, 4 }
 0x310   :  { %v5062_v4 = vpop.eup %5061  ;;  %v2294_v51 = vadd.f32 %v2293_v60, %v2292_v53  ;;  %v2312_v22 = vpop.xlane.xlu0 %2311 }
 0x311   :  { %v2260_v56 = vmul.f32 %v5062_v4, %v2258_v57  ;;  %v2313_v10 = vrot.slane %v2312_v22, 4  ;;  %vm2266_vm4 = vweird.f32 %v5062_v4 }
 0x312   :  { %v2295_v41 = vrot.slane %v2294_v51, 2  ;;  %vm2267_vm6 = vmor %vm2265_vm5, %vm2266_vm4 }
 0x313   :  { %v2261_v42 = vmul.f32 %v5062_v4, %v2260_v56  ;;  %v2314_v18 = vadd.f32 %v2313_v10, %v2312_v22  ;;  %v6669_v56 = vstv %s4962_s0 }
 0x314   :  { %v2296_v37 = vadd.f32 %v2295_v41, %v2294_v51  ;;  %v6673_v41 = vstv %s4965_s21  ;;  %s7117_s21 = sld [smem:[#allocation5 + $0x68]] }
 0x315   :  { %v2262_v3 = vmul.f32 0.5, %v2261_v42  ;;  %v2315_v5 = vrot.slane %v2314_v18, 2 }
 0x316   :  { %v2297_v20 = vrot.slane %v2296_v37, 1 }
 0x317   :  { %v2263_v49 = vsub.f32 1.5, %v2262_v3  ;;  %v2316_v1 = vadd.f32 %v2315_v5, %v2314_v18  ;;  %v6677_v3 = vstv %s4966_s23  ;;  %s7119_s23 = sld [smem:[#allocation5 + $0x6a]] }
 0x318   :  { %v2298_v43 = vadd.f32 %v2297_v20, %v2296_v37 }
 0x319   :  { %v2264_v19 = vmul.f32 %v5062_v4, %v2263_v49  ;;  %v2317_v54 = vrot.slane %v2316_v1, 1 }
 0x31b   :  { %v2268_v12 = vsel %vm2267_vm6, %v5062_v4, %v2264_v19  ;;  %v2318_v0 = vadd.f32 %v2317_v54, %v2316_v1 }
 0x31c   :  { %5023 = vpush %v2268_v12 }
 0x31d   :  { %5025 = vpush %v2298_v43 }
 0x31e   :  { %5027 = vpush %v2318_v0 }
 0x34d   :  { %s5024_s29 = spop %5023 }
 0x34e   :  { %s2270_s3 = smul.f32 %s5024_s29, %s4923_s27  ;;  %s5026_s4 = spop %5025 }
 0x34f   :  { %s6624_s5 = smul.f32 0.0025510204, %s5026_s4  ;;  %s5028_s6 = spop %5027 }
 0x350   :  { %s2272_s7 = smul.f32 %s2270_s3, %s6618_s20  ;;  %v2274_v38 = vstv %s2270_s3  ;;  %s4963_s20 = sld [smem:[#allocation5 + $0x7a]] }
 0x351   :  { %s2322_s9 = smul.f32 %s6624_s5, %s6624_s5  ;;  %v2275_v17 = vmul.f32 %v2274_v38, %v9207_v2  ;;  %v2276_v50 = vmul.f32 %v2274_v38, %v9208_v14  ;;  %v2277_v34 = vmul.f32 %v2274_v38, %v9209_v8  ;;  %v2278_v58 = vmul.f32 %v2274_v38, %v9210_v11  ;;  %s6894_s27 = sld [smem:[#allocation5 + $0x95]] }
 0x352   :  { %s2273_s11 = ssub.f32 %s4924_s28, %s2272_s7  ;;  %s2321_s12 = smul.f32 0.0025510204, %s5028_s6 }
 0x353   :  { %s6910_s28 = sld [smem:[#allocation5 + $0x97]] }
 0x354   :  { %v2279_v29 = vstv %s2273_s11  ;;  %s2323_s14 = ssub.f32 %s2321_s12, %s2322_s9 }
 0x355   :  { %v2280_v7 = vadd.f32 %v2279_v29, %v2275_v17  ;;  %v2281_v62 = vadd.f32 %v2279_v29, %v2276_v50  ;;  %v2282_v33 = vadd.f32 %v2279_v29, %v2277_v34  ;;  %v2283_v36 = vadd.f32 %v2279_v29, %v2278_v58  ;;  %s6961_s29 = sld [smem:[#allocation5 + $0x98]] }
 0x356   :  { %s2325_s16 = sadd.f32 1e-05, %s2323_s14  ;;  %v6671_v10 = vstv %s4963_s20 }
 0x357   :  { %v2420_v48 = vmax.f32 %v2280_v7, 0.0  ;;  %v2421_v23 = vmax.f32 %v2281_v62, 0.0  ;;  %v2422_v15 = vmax.f32 %v2282_v33, 0.0  ;;  %v2423_v31 = vmax.f32 %v2283_v36, 0.0  ;;  %s4992_s3 = sld [smem:[#allocation5 + $0x96]] }
 0x358   :  { %v2326_v21 = vstv %s2325_s16  ;;  %s4925_s4 = sld [smem:[#allocation5 + $0x55]] }
 0x359   :  { %v6642_v46 = vmin.f32 %v2420_v48, 6.0  ;;  %v6644_v25 = vmin.f32 %v2421_v23, 6.0  ;;  %v6646_v26 = vmin.f32 %v2422_v15, 6.0  ;;  %5063 = vrsqrt.f32 %v2326_v21  ;;  %s4926_s6 = sld [smem:[#allocation5 + $0x58]] }
 0x35a   :  { %v6654_v30 = vmin.f32 %v2423_v31, 6.0  ;;  %vm2333_vm7 = vweird.f32 %v2326_v21  ;;  %s4940_s9 = sld [smem:[#allocation5 + $0x64]] }
 0x35b   :  { %v2458_v28 = vmul.f32 %v2457_v35, %v6642_v46  ;;  %v2460_v59 = vmul.f32 %v2457_v35, %v6646_v26  ;;  %v2459_v63 = vmul.f32 %v2457_v35, %v6644_v25  ;;  %v2486_v4 = vmul.f32 %v2483_v55, %v6646_v26  ;;  %s4929_s20 = sld [smem:[#allocation5 + $0xab]] }
 0x35c   :  { %v2461_v60 = vmul.f32 %v2457_v35, %v6654_v30  ;;  %v2484_v22 = vmul.f32 %v2483_v55, %v6642_v46  ;;  %v2535_v5 = vmul.f32 %v2533_v13, %v6644_v25  ;;  %v2534_v49 = vmul.f32 %v2533_v13, %v6642_v46 }
 0x35d   :  { %2466 = vrot.lane.b32.xlu0 %v2458_v28, %s5141_s1  ;;  %2470 = vrot.lane.b32.xlu1 %v2460_v59, %s5141_s1  ;;  %v2566_v20 = vmul.f32 %v2565_v61, %v6642_v46  ;;  %v2485_v12 = vmul.f32 %v2483_v55, %v6644_v25  ;;  %v2487_v43 = vmul.f32 %v2483_v55, %v6654_v30 }
 0x35e   :  { %2468 = vrot.lane.b32.xlu2 %v2459_v63, %s5141_s1  ;;  %v6686_v0 = vmul.f32 %v2565_v61, %v6644_v25  ;;  %v2536_v38 = vmul.f32 %v2533_v13, %v6646_v26  ;;  %v6690_v50 = vmul.f32 %v2533_v13, %v6654_v30  ;;  %v2543_v8 = vrot.slane %v2535_v5, 1 }
 0x35f   :  { %v5064_v47 = vpop.eup %5063  ;;  %v2542_v34 = vrot.slane %v2534_v49, 1  ;;  %v2574_v29 = vrot.slane %v2566_v20, 1  ;;  %v6694_v11 = vmul.f32 %v2565_v61, %v6654_v30  ;;  %v6697_v33 = vmul.f32 %v2565_v61, %v6646_v26 }
 0x360   :  { %v2328_v44 = vmul.f32 %v5064_v47, %v2326_v21  ;;  %vm2334_vm8 = vweird.f32 %v5064_v47  ;;  %v2575_v36 = vrot.slane %v6686_v0, 1  ;;  %v2545_v48 = vrot.slane %v2536_v38, 1 }
 0x361   :  { %vm2335_vm9 = vmor %vm2333_vm7, %vm2334_vm8  ;;  %v2512_v23 = vmul.f32 %v2509_v16, %v6646_v26  ;;  %v6702_v15 = vmul.f32 %v2509_v16, %v6654_v30  ;;  %v2546_v31 = vrot.slane %v6690_v50, 1  ;;  %v6709_v28 = vmul.f32 %v6660_v40, %v6646_v26 }
 0x362   :  { %v2360_v39 = vpop.xlane.xlu2 %2359  ;;  %v2329_v57 = vmul.f32 %v5064_v47, %v2328_v44  ;;  %v2510_v55 = vmul.f32 %v2509_v16, %v6642_v46  ;;  %v2544_v13 = vsel %vm126_vm0, %v2542_v34, %v2543_v8  ;;  %v2600_v61 = vmul.f32 %v6664_v6, %v6646_v26 }
 0x363   :  { %v2361_v53 = vrot.slane %v2360_v39, 4  ;;  %v2521_v59 = vrot.slane %v2512_v23, 1  ;;  %v8821_v63 = vrot.slane %v6702_v15, 1  ;;  %v2547_v20 = vsel %vm126_vm0, %v2545_v48, %v2546_v31 }
 0x364   :  { %v2380_v51 = vpop.xlane.xlu1 %2379  ;;  %v2330_v37 = vmul.f32 0.5, %v2329_v57  ;;  %v6769_v38 = vmul.f32 %v6669_v56, %v6644_v25  ;;  %v6882_v0 = vmul.f32 %v6662_v27, %v6644_v25 }
 0x365   :  { %v2362_v42 = vadd.f32 %v2361_v53, %v2360_v39  ;;  %v2381_v18 = vrot.slane %v2380_v51, 4  ;;  %2472 = vrot.lane.b32.xlu0 %v2461_v60, %s5141_s1  ;;  %2496 = vrot.lane.b32.xlu1 %v2486_v4, %s5142_s22  ;;  %v6722_v39 = vmul.f32 %v6664_v6, %v6654_v30  ;;  %v6727_v57 = vsel %vm126_vm0, %v2521_v59, %v8821_v63 }
 0x366   :  { %2492 = vrot.lane.b32.xlu2 %v2484_v22, %s5142_s22  ;;  %v2331_v19 = vsub.f32 1.5, %v2330_v37  ;;  %v2518_v60 = vrot.slane %v2510_v55, 1  ;;  %v6736_v4 = vmul.f32 %v6660_v40, %v6654_v30  ;;  %v2578_v37 = vrot.slane %v6694_v11, 1  ;;  %9211 = vst [vmem:[#allocation39_spill] sm:$0xff] %v6769_v38 }
 0x367   :  { %v2382_v1 = vadd.f32 %v2381_v18, %v2380_v51  ;;  %v2363_v54 = vrot.slane %v2362_v42, 2  ;;  %v2609_v51 = vrot.slane %v2600_v61, 2  ;;  %v8819_v22 = vrot.slane %v6722_v39, 2 }
 0x368   :  { %v2332_v2 = vmul.f32 %v5064_v47, %v2331_v19  ;;  %v2576_v18 = vsel %vm126_vm0, %v2574_v29, %v2575_v36  ;;  %v8813_v29 = vrot.slane %v6769_v38, 1  ;;  %v3252_v11 = vmul.f32 %v6669_v56, %v6646_v26 }
 0x369   :  { %v2364_v17 = vadd.f32 %v2363_v54, %v2362_v42  ;;  %v2383_v14 = vrot.slane %v2382_v1, 2  ;;  %v2598_v42 = vmul.f32 %v6664_v6, %v6642_v46  ;;  %v2633_v54 = vrot.slane %v6709_v28, 2 }
 0x36a   :  { %v2336_v58 = vsel %vm2335_vm9, %v5064_v47, %v2332_v2  ;;  %v6714_v47 = vmul.f32 %v2509_v16, %v6644_v25  ;;  %v6732_v16 = vmul.f32 %v6664_v6, %v6644_v25  ;;  %v6758_v6 = vsel %vm215_vm1, %v2609_v51, %v8819_v22 }
 0x36b   :  { %v2365_v7 = vrot.slane %v2364_v17, 1  ;;  %v2384_v62 = vadd.f32 %v2383_v14, %v2382_v1  ;;  %5029 = vpush %v2336_v58  ;;  %v2577_v1 = vrot.slane %v6697_v33, 1  ;;  %v2606_v19 = vrot.slane %v2598_v42, 2 }
 0x36c   :  { %v8822_v53 = vrot.slane %v6714_v47, 1  ;;  %v8820_v49 = vrot.slane %v6732_v16, 2  ;;  %v8823_v2 = vrot.slane %v6736_v4, 2  ;;  %v3282_v33 = vmul.f32 %v6671_v10, %v6642_v46 }
 0x36d   :  { %2494 = vrot.lane.b32.xlu0 %v2485_v12, %s5142_s22  ;;  %2550 = vrot.lane.b32.xlu1 %v2543_v8, %s5141_s1  ;;  %v2366_v21 = vadd.f32 %v2365_v7, %v2364_v17  ;;  %v2385_v35 = vrot.slane %v2384_v62, 1  ;;  %v6763_v12 = vmul.f32 %v6660_v40, %v6642_v46  ;;  %v6776_v17 = vmul.f32 %v6660_v40, %v6644_v25 }
 0x36e   :  { %2498 = vrot.lane.b32.xlu2 %v2487_v43, %s5142_s22  ;;  %v6748_v5 = vsel %vm126_vm0, %v2518_v60, %v8822_v53  ;;  %v3250_v43 = vmul.f32 %v6669_v56, %v6642_v46  ;;  %v6781_v14 = vsel %vm215_vm1, %v2606_v19, %v8820_v49  ;;  %v6785_v8 = vmul.f32 %v6669_v56, %v6654_v30 }
 0x36f   :  { %5031 = vpush %v2366_v21  ;;  %v2386_v44 = vadd.f32 %v2385_v35, %v2384_v62  ;;  %v3284_v40 = vmul.f32 %v6671_v10, %v6646_v26  ;;  %v6796_v7 = vmul.f32 %v6671_v10, %v6654_v30  ;;  %v6800_v62 = vmul.f32 %v6671_v10, %v6644_v25 }
 0x370   :  { %v3258_v34 = vrot.slane %v3250_v43, 1  ;;  %v8818_v58 = vrot.slane %v6785_v8, 1  ;;  %v3261_v48 = vrot.slane %v3252_v11, 1  ;;  %v6813_v21 = vmul.f32 %v6673_v41, %v6644_v25 }
 0x371   :  { %5033 = vpush %v2386_v44  ;;  %v3293_v23 = vrot.slane %v3284_v40, 1  ;;  %v8810_v35 = vrot.slane %v6796_v7, 1  ;;  %v8812_v28 = vrot.slane %v6800_v62, 1  ;;  %v3290_v10 = vrot.slane %v3282_v33, 1 }
 0x372   :  { %9212 = vst [vmem:[#allocation38_spill] sm:$0xff] %v6796_v7  ;;  %v6809_v56 = vsel %vm126_vm0, %v3258_v34, %v8813_v29  ;;  %v3338_v59 = vmul.f32 %v6673_v41, %v6642_v46  ;;  %v6824_v55 = vsel %vm126_vm0, %v3261_v48, %v8818_v58  ;;  %v8811_v44 = vrot.slane %v6813_v21, 2 }
 0x373   :  { %9213 = vst [vmem:[#allocation35_spill] sm:$0xff] %v6800_v62  ;;  %v6831_v61 = vmul.f32 %v6677_v3, %v6644_v25  ;;  %v6836_v60 = vsel %vm126_vm0, %v3293_v23, %v8810_v35  ;;  %v6841_v51 = vsel %vm126_vm0, %v3290_v10, %v8812_v28  ;;  %v3340_v43 = vmul.f32 %v6673_v41, %v6646_v26 }
 0x374   :  { %9214 = vst [vmem:[#allocation80_spill] sm:$0xff] %v6813_v21  ;;  %v3346_v42 = vrot.slane %v3338_v59, 2  ;;  %v6852_v34 = vmul.f32 %v6677_v3, %v6654_v30  ;;  %v2579_v50 = vsel %vm126_vm0, %v2577_v1, %v2578_v37  ;;  %v2635_v23 = vsel %vm215_vm1, %v2633_v54, %v8823_v2 }
 0x375   :  { %2548 = vrot.lane.b32.xlu0 %v2544_v13, %s5141_s1  ;;  %2580 = vrot.lane.b32.xlu1 %v2576_v18, %s5142_s22  ;;  %v3370_v13 = vmul.f32 %v6677_v3, %v6642_v46  ;;  %9215 = vst [vmem:[#allocation41_spill] sm:$0xff] %v6831_v61  ;;  %v6845_v18 = vmul.f32 %v6673_v41, %v6654_v30  ;;  %v8807_v19 = vrot.slane %v6831_v61, 2  ;;  %v3349_v33 = vrot.slane %v3340_v43, 2 }
 0x376   :  { %2552 = vrot.lane.b32.xlu2 %v2547_v20, %s5141_s1  ;;  %9216 = vst [vmem:[#allocation28_spill] sm:$0xff] %v6836_v60  ;;  %v6861_v11 = vsel %vm215_vm1, %v3346_v42, %v8811_v44  ;;  %v3372_v41 = vmul.f32 %v6677_v3, %v6646_v26  ;;  %v8808_v48 = vrot.slane %v6852_v34, 2  ;;  %v2630_v3 = vrot.slane %v6763_v12, 2 }
 0x377   :  { %9217 = vst [vmem:[#allocation42_spill] sm:$0xff] %v6841_v51  ;;  %v3378_v20 = vrot.slane %v3370_v13, 2  ;;  %v8809_v40 = vrot.slane %v6845_v18, 2  ;;  %v3225_v10 = vstv %s6804_s24  ;;  %v3313_v59 = vstv %s6815_s25  ;;  %s4942_s24 = sld [smem:[#allocation5 + $0x66]] }
 0x378   :  { %9218 = vst [vmem:[#allocation31_spill] sm:$0xff] %v6845_v18  ;;  %v6898_v54 = vmul.f32 %v6662_v27, %v6642_v46  ;;  %v6902_v12 = vmul.f32 %v6662_v27, %v6646_v26  ;;  %v3228_v13 = vmul.f32 %v3225_v10, %v6646_v26  ;;  %v6913_v42 = vmul.f32 %v3225_v10, %v6654_v30  ;;  %s4945_s25 = sld [smem:[#allocation5 + $0x69]] }
 0x379   :  { %9219 = vst [vmem:[#allocation34_spill] sm:$0xff] %v6852_v34  ;;  %v6890_v1 = vsel %vm215_vm1, %v3349_v33, %v8809_v40  ;;  %v6917_v43 = vmul.f32 %v3225_v10, %v6644_v25 }
 0x37a   :  { %9220 = vst [vmem:[#allocation37_spill] sm:$0xff] %v6861_v11  ;;  %v3237_v33 = vrot.slane %v3228_v13, 1  ;;  %v8815_v40 = vrot.slane %v6913_v42, 1 }
 0x37b   :  { %9222 = vst [vmem:[#allocation50_spill] sm:$0xff] %v6890_v1  ;;  %v8817_v44 = vrot.slane %v6917_v43, 1 }
 0x37c   :  { %9224 = vst [vmem:[#allocation44_spill] sm:$0xff] %v6913_v42 }
 0x37d   :  { %2554 = vrot.lane.b32.xlu0 %v2546_v31, %s5141_s1  ;;  %2586 = vrot.lane.b32.xlu1 %v2578_v37, %s5142_s22  ;;  %v6873_v31 = vsel %vm215_vm1, %v3378_v20, %v8807_v19  ;;  %v2631_v37 = vrot.slane %v6776_v17, 2  ;;  %v3226_v20 = vmul.f32 %v3225_v10, %v6642_v46  ;;  %9225 = vst [vmem:[#allocation45_spill] sm:$0xff] %v6917_v43 }
 0x37e   :  { %2582 = vrot.lane.b32.xlu2 %v2575_v36, %s5142_s22  ;;  %9221 = vst [vmem:[#allocation48_spill] sm:$0xff] %v6873_v31  ;;  %v3381_v36 = vrot.slane %v3372_v41, 2  ;;  %v3314_v41 = vmul.f32 %v3313_v59, %v6642_v46  ;;  %v6921_v19 = vmul.f32 %v3313_v59, %v6644_v25 }
 0x37f   :  { %v3234_v35 = vrot.slane %v3226_v20, 1  ;;  %v2632_v10 = vsel %vm215_vm1, %v2630_v3, %v2631_v37  ;;  %v6938_v20 = vsel %vm126_vm0, %v3237_v33, %v8815_v40  ;;  %v2663_v3 = vrot.slane %v6882_v0, 2 }
 0x380   :  { %v6907_v17 = vsel %vm215_vm1, %v3381_v36, %v8808_v48  ;;  %9226 = vst [vmem:[#allocation46_spill] sm:$0xff] %v6921_v19  ;;  %v6924_v36 = vmul.f32 %v3313_v59, %v6654_v30  ;;  %v3316_v48 = vmul.f32 %v3313_v59, %v6646_v26  ;;  %v3322_v28 = vrot.slane %v3314_v41, 2 }
 0x381   :  { %9223 = vst [vmem:[#allocation51_spill] sm:$0xff] %v6907_v17  ;;  %v8814_v13 = vrot.slane %v6921_v19, 2  ;;  %v2662_v41 = vrot.slane %v6898_v54, 2  ;;  %v6959_v33 = vmul.f32 %v6662_v27, %v6654_v30 }
 0x382   :  { %9227 = vst [vmem:[#allocation53_spill] sm:$0xff] %v6924_v36  ;;  %v8816_v29 = vrot.slane %v6924_v36, 2  ;;  %v3325_v59 = vrot.slane %v3316_v48, 2 }
 0x383   :  { %9228 = vst [vmem:[#allocation47_spill] sm:$0xff] %v6938_v20 }
 0x384   :  { %v6953_v48 = vsel %vm215_vm1, %v3325_v59, %v8816_v29 }
 0x385   :  { %2584 = vrot.lane.b32.xlu0 %v2579_v50, %s5142_s22  ;;  %2640 = vrot.lane.b32.xlu1 %v2635_v23, %s5141_s1  ;;  %v6943_v50 = vsel %vm126_vm0, %v3234_v35, %v8817_v44  ;;  %v6948_v23 = vsel %vm215_vm1, %v3322_v28, %v8814_v13  ;;  %9231 = vst [vmem:[#allocation54_spill] sm:$0xff] %v6953_v48  ;;  %v2665_v35 = vrot.slane %v6902_v12, 2  ;;  %v3997_v28 = vstv %s6894_s27  ;;  %s7160_s27 = sld [smem:[#allocation5 + $0x6b]] }
 0x386   :  { %2636 = vrot.lane.b32.xlu2 %v2632_v10, %s5141_s1  ;;  %9229 = vst [vmem:[#allocation43_spill] sm:$0xff] %v6943_v50  ;;  %v3965_v10 = vstv %s6884_s26  ;;  %v4053_v13 = vstv %s6910_s28  ;;  %v6972_v0 = vmul.f32 %v3997_v28, %v6644_v25  ;;  %v3998_v54 = vmul.f32 %v3997_v28, %v6642_v46  ;;  %s7126_s26 = sld [smem:[#allocation5 + $0x82]] }
 0x387   :  { %9230 = vst [vmem:[#allocation40_spill] sm:$0xff] %v6948_v23  ;;  %v6968_v40 = vmul.f32 %v3965_v10, %v6644_v25  ;;  %v3966_v59 = vmul.f32 %v3965_v10, %v6642_v46  ;;  %v3968_v27 = vmul.f32 %v3965_v10, %v6646_v26  ;;  %v6977_v29 = vmul.f32 %v3965_v10, %v6654_v30  ;;  %s7186_s28 = sld [smem:[#allocation5 + $0x83]] }
 0x388   :  { %9233 = vst [vmem:[#allocation60_spill] sm:$0xff] %v6972_v0  ;;  %v6980_v12 = vmul.f32 %v3997_v28, %v6654_v30  ;;  %v4000_v44 = vmul.f32 %v3997_v28, %v6646_v26  ;;  %v8825_v49 = vrot.slane %v6972_v0, 1  ;;  %v4006_v63 = vrot.slane %v3998_v54, 1 }
 0x389   :  { %9232 = vst [vmem:[#allocation57_spill] sm:$0xff] %v6968_v40  ;;  %v8826_v58 = vrot.slane %v6968_v40, 1  ;;  %v3974_v22 = vrot.slane %v3966_v59, 1  ;;  %v3977_v53 = vrot.slane %v3968_v27, 1  ;;  %v8827_v2 = vrot.slane %v6977_v29, 1 }
 0x38a   :  { %9234 = vst [vmem:[#allocation56_spill] sm:$0xff] %v6977_v29  ;;  %v8829_v10 = vrot.slane %v6980_v12, 1  ;;  %v4009_v36 = vrot.slane %v4000_v44, 1  ;;  %v9236_v28 = vrot.slane %v6736_v4, 2  ;;  %v4056_v54 = vmul.f32 %v4053_v13, %v6646_v26 }
 0x38b   :  { %9235 = vst [vmem:[#allocation62_spill] sm:$0xff] %v6980_v12  ;;  %v6995_v59 = vsel %vm126_vm0, %v3974_v22, %v8826_v58  ;;  %v7004_v27 = vmul.f32 %v4053_v13, %v6654_v30  ;;  %v7009_v4 = vsel %vm126_vm0, %v3977_v53, %v8827_v2  ;;  %v7017_v44 = vmul.f32 %v4053_v13, %v6644_v25 }
 0x38c   :  { %9237 = vst [vmem:[#allocation49_spill] sm:$0xff] %v6995_v59  ;;  %v7014_v22 = vsel %vm126_vm0, %v4009_v36, %v8829_v10  ;;  %v2664_v12 = vsel %vm215_vm1, %v2662_v41, %v2663_v3  ;;  %v2835_v23 = vstv %s4945_s25  ;;  %s7660_s25 = sld [smem:[#allocation5 + $0x72]] }
 0x38d   :  { %2638 = vrot.lane.b32.xlu0 %v2631_v37, %s5141_s1  ;;  %2670 = vrot.lane.b32.xlu1 %v2663_v3, %s5142_s22  ;;  %v7000_v37 = vsel %vm126_vm0, %v4006_v63, %v8825_v49  ;;  %9239 = vst [vmem:[#allocation59_spill] sm:$0xff] %v7004_v27  ;;  %v4054_v63 = vmul.f32 %v4053_v13, %v6642_v46  ;;  %v4065_v49 = vrot.slane %v4056_v54, 2  ;;  %v8831_v58 = vrot.slane %v7004_v27, 2 }
 0x38e   :  { %2642 = vrot.lane.b32.xlu2 %v9236_v28, %s5141_s1  ;;  %9238 = vst [vmem:[#allocation63_spill] sm:$0xff] %v7000_v37  ;;  %v2666_v28 = vrot.slane %v6959_v33, 2  ;;  %v4085_v37 = vstv %s6961_s29  ;;  %v8835_v53 = vrot.slane %v7017_v44, 2  ;;  %s7200_s29 = sld [smem:[#allocation5 + $0x85]] }
 0x38f   :  { %9240 = vst [vmem:[#allocation52_spill] sm:$0xff] %v7009_v4  ;;  %v4062_v2 = vrot.slane %v4054_v63, 2  ;;  %v7025_v29 = vmul.f32 %v4085_v37, %v6644_v25  ;;  %v4086_v36 = vmul.f32 %v4085_v37, %v6642_v46  ;;  %v7031_v10 = vsel %vm215_vm1, %v4065_v49, %v8831_v58 }
 0x390   :  { %9241 = vst [vmem:[#allocation55_spill] sm:$0xff] %v7014_v22  ;;  %v7034_v13 = vmul.f32 %v4085_v37, %v6654_v30  ;;  %v4088_v33 = vmul.f32 %v4085_v37, %v6646_v26  ;;  %v2667_v49 = vsel %vm215_vm1, %v2665_v35, %v2666_v28 }
 0x391   :  { %9242 = vst [vmem:[#allocation65_spill] sm:$0xff] %v7017_v44  ;;  %v7040_v54 = vsel %vm215_vm1, %v4062_v2, %v8835_v53  ;;  %v8833_v63 = vrot.slane %v7025_v29, 2  ;;  %v4094_v22 = vrot.slane %v4086_v36, 2  ;;  %v3941_v2 = vstv %s4989_s30  ;;  %s7235_s30 = sld [smem:[#allocation5 + $0x86]] }
 0x392   :  { %9243 = vst [vmem:[#allocation58_spill] sm:$0xff] %v7025_v29  ;;  %v8834_v37 = vrot.slane %v7034_v13, 2  ;;  %v4097_v27 = vrot.slane %v4088_v33, 2  ;;  %v3942_v41 = vmul.f32 %v3941_v2, %v6642_v46  ;;  %v7060_v35 = vmul.f32 %v3941_v2, %v6644_v25 }
 0x393   :  { %9244 = vst [vmem:[#allocation66_spill] sm:$0xff] %v7031_v10  ;;  %v7049_v58 = vsel %vm215_vm1, %v4094_v22, %v8833_v63  ;;  %v7068_v63 = vmul.f32 %v3941_v2, %v6654_v30 }
 0x394   :  { %9245 = vst [vmem:[#allocation72_spill] sm:$0xff] %v7034_v13  ;;  %v7056_v3 = vsel %vm215_vm1, %v4097_v27, %v8834_v37  ;;  %v3950_v22 = vrot.slane %v3942_v41, 1  ;;  %v8839_v36 = vrot.slane %v7060_v35, 1 }
 0x395   :  { %9246 = vst [vmem:[#allocation61_spill] sm:$0xff] %v7040_v54  ;;  %2668 = vrot.lane.b32.xlu0 %v2664_v12, %s5142_s22  ;;  %v4029_v12 = vstv %s4992_s3  ;;  %s7265_s3 = sld [smem:[#allocation5 + $0x81]] }
 0x396   :  { %9247 = vst [vmem:[#allocation69_spill] sm:$0xff] %v7049_v58  ;;  %2672 = vrot.lane.b32.xlu2 %v2667_v49, %s5142_s22  ;;  %v7064_v33 = vmul.f32 %v4029_v12, %v6644_v25  ;;  %v3944_v49 = vmul.f32 %v3941_v2, %v6646_v26  ;;  %v4032_v27 = vmul.f32 %v4029_v12, %v6646_v26  ;;  %v8838_v58 = vrot.slane %v7068_v63, 1 }
 0x397   :  { %9248 = vst [vmem:[#allocation68_spill] sm:$0xff] %v7056_v3  ;;  %v7072_v37 = vmul.f32 %v4029_v12, %v6654_v30  ;;  %v7077_v41 = vsel %vm126_vm0, %v3950_v22, %v8839_v36  ;;  %v4030_v3 = vmul.f32 %v4029_v12, %v6642_v46  ;;  %v9259_v36 = vld [vmem:[#allocation33_spill] sm:$0xff] }
 0x398   :  { %9249 = vst [vmem:[#allocation71_spill] sm:$0xff] %v7060_v35  ;;  %v8841_v53 = vrot.slane %v7064_v33, 2  ;;  %v3953_v13 = vrot.slane %v3944_v49, 1  ;;  %v4041_v2 = vrot.slane %v4032_v27, 2  ;;  %v9258_v27 = vld [vmem:[#allocation19_spill] sm:$0xff] }
 0x399   :  { %9250 = vst [vmem:[#allocation74_spill] sm:$0xff] %v7064_v33  ;;  %v8840_v29 = vrot.slane %v7072_v37, 2  ;;  %v4038_v54 = vrot.slane %v4030_v3, 2 }
 0x39a   :  { %9251 = vst [vmem:[#allocation75_spill] sm:$0xff] %v7068_v63  ;;  %v7087_v22 = vsel %vm126_vm0, %v3953_v13, %v8838_v58  ;;  %v9257_v13 = vld [vmem:[#allocation25_spill] sm:$0xff] }
 0x39b   :  { %9252 = vst [vmem:[#allocation64_spill] sm:$0xff] %v7072_v37  ;;  %v7092_v12 = vsel %vm215_vm1, %v4041_v2, %v8840_v29  ;;  %v7097_v49 = vsel %vm215_vm1, %v4038_v54, %v8841_v53 }
 0x39c   :  { %9253 = vst [vmem:[#allocation70_spill] sm:$0xff] %v7077_v41  ;;  %s5030_s7 = spop %5029 }
 0x39d   :  { %2674 = vrot.lane.b32.xlu0 %v2666_v28, %s5142_s22  ;;  %s2338_s8 = smul.f32 %s5030_s7, %s4925_s4  ;;  %9254 = vst [vmem:[#allocation77_spill] sm:$0xff] %v7087_v22  ;;  %s7276_s4 = sld [smem:[#allocation5 + $0x84]] }
 0x39e   :  { %9255 = vst [vmem:[#allocation67_spill] sm:$0xff] %v7092_v12  ;;  %s7373_s7 = sld [smem:[#allocation5 + $0x9e]] }
 0x39f   :  { %9256 = vst [vmem:[#allocation78_spill] sm:$0xff] %v7097_v49  ;;  %s2340_s10 = smul.f32 %s2338_s8, %s6624_s5  ;;  %v2342_v28 = vstv %s2338_s8  ;;  %s4943_s5 = sld [smem:[#allocation5 + $0x67]] }
 0x3a0   :  { %s5032_s11 = spop %5031  ;;  %v2343_v3 = vmul.f32 %v2342_v28, %v9257_v13  ;;  %v2344_v58 = vmul.f32 %v2342_v28, %v9258_v27  ;;  %v2345_v2 = vmul.f32 %v2342_v28, %v9259_v36  ;;  %v2346_v12 = vmul.f32 %v2342_v28, %v6459_v9  ;;  %s7411_s8 = sld [smem:[#allocation5 + $0xa0]] }
 0x3a1   :  { %s7100_s12 = smul.f32 0.0025510204, %s5032_s11  ;;  %s2341_s13 = ssub.f32 %s4926_s6, %s2340_s10  ;;  %v2695_v27 = vstv %s4940_s9 }
 0x3a2   :  { %s5034_s14 = spop %5033  ;;  %s7348_s6 = sld [smem:[#allocation5 + $0x9d]] }
 0x3a3   :  { %s2390_s15 = smul.f32 %s7100_s12, %s7100_s12  ;;  %v2347_v29 = vstv %s2341_s13  ;;  %s7433_s9 = sld [smem:[#allocation5 + $0xa1]] }
 0x3a4   :  { %s2389_s16 = smul.f32 0.0025510204, %s5034_s14  ;;  %v2348_v54 = vadd.f32 %v2347_v29, %v2343_v3  ;;  %v2349_v53 = vadd.f32 %v2347_v29, %v2344_v58  ;;  %v2350_v37 = vadd.f32 %v2347_v29, %v2345_v2  ;;  %v2351_v13 = vadd.f32 %v2347_v29, %v2346_v12  ;;  %s7450_s10 = sld [smem:[#allocation5 + $0x9c]] }
 0x3a5   :  { %s7481_s11 = sld [smem:[#allocation5 + $0x9f]] }
 0x3a6   :  { %s2391_s18 = ssub.f32 %s2389_s16, %s2390_s15  ;;  %v2428_v33 = vmax.f32 %v2348_v54, 0.0  ;;  %v2429_v63 = vmax.f32 %v2349_v53, 0.0  ;;  %v2430_v35 = vmax.f32 %v2350_v37, 0.0  ;;  %v2431_v29 = vmax.f32 %v2351_v13, 0.0 }
 0x3a7   :  { %v2771_v37 = vstv %s4943_s5  ;;  %v7134_v54 = vstv %s4929_s20  ;;  %s7549_s13 = sld [smem:[#allocation5 + $0x56]] }
 0x3a8   :  { %s2393_s0 = sadd.f32 1e-05, %s2391_s18  ;;  %v7108_v36 = vmin.f32 %v2428_v33, 6.0  ;;  %v7110_v49 = vmin.f32 %v2429_v63, 6.0  ;;  %v7112_v22 = vmin.f32 %v2430_v35, 6.0  ;;  %v7123_v63 = vstv %s4930_s17 }
 0x3a9   :  { %v7128_v35 = vmin.f32 %v2431_v29, 6.0  ;;  %v2721_v33 = vstv %s4941_s19  ;;  %v2450_v12 = vmul.f32 %v7123_v63, %v6646_v26  ;;  %v2448_v28 = vmul.f32 %v7123_v63, %v6642_v46  ;;  %s4928_s14 = sld [smem:[#allocation5 + $0x59]] }
 0x3aa   :  { %v2394_v58 = vstv %s2393_s0  ;;  %v2698_v3 = vmul.f32 %v2695_v27, %v7112_v22  ;;  %v2697_v9 = vmul.f32 %v2695_v27, %v7110_v49  ;;  %v2696_v53 = vmul.f32 %v2695_v27, %v7108_v36  ;;  %s4949_s5 = sld [smem:[#allocation5 + $0x6d]] }
 0x3ab   :  { %5065 = vrsqrt.f32 %v2394_v58  ;;  %v2772_v13 = vmul.f32 %v2771_v37, %v7108_v36  ;;  %v2722_v29 = vmul.f32 %v2721_v33, %v7108_v36  ;;  %v2699_v44 = vmul.f32 %v2695_v27, %v7128_v35  ;;  %s7603_s18 = sld [smem:[#allocation5 + $0x63]] }
 0x3ac   :  { %2708 = vrot.lane.b32.xlu0 %v2698_v3, %s5141_s1  ;;  %2706 = vrot.lane.b32.xlu2 %v2697_v9, %s5141_s1  ;;  %v7138_v3 = vmul.f32 %v2771_v37, %v7110_v49  ;;  %v7144_v10 = vadd.f32 %v2450_v12, %v7134_v54  ;;  %v7147_v4 = vadd.f32 %v2448_v28, %v7134_v54  ;;  %v7158_v12 = vstv %s7119_s23  ;;  %s4950_s0 = sld [smem:[#allocation5 + $0x6e]] }
 0x3ad   :  { %2704 = vrot.lane.b32.xlu1 %v2696_v53, %s5141_s1  ;;  %v2723_v53 = vmul.f32 %v2721_v33, %v7110_v49  ;;  %v2780_v0 = vrot.slane %v2772_v13, 1  ;;  %v7153_v40 = vmul.f32 %v2771_v37, %v7128_v35  ;;  %v2747_v28 = vstv %s4942_s24  ;;  %s4953_s20 = sld [smem:[#allocation5 + $0x71]] }
 0x3ae   :  { %vm2401_vm10 = vweird.f32 %v2394_v58  ;;  %v3487_v13 = vstv %s7126_s26  ;;  %v2774_v19 = vmul.f32 %v2771_v37, %v7112_v22  ;;  %v7183_v37 = vmul.f32 %v2747_v28, %v7128_v35  ;;  %s7639_s23 = sld [smem:[#allocation5 + $0x74]] }
 0x3af   :  { %v2784_v42 = vrot.slane %v7153_v40, 1  ;;  %v2748_v61 = vmul.f32 %v2747_v28, %v7108_v36  ;;  %v7190_v40 = vmul.f32 %v2747_v28, %v7110_v49  ;;  %s7641_s24 = sld [smem:[#allocation5 + $0x6f]] }
 0x3b0   :  { %v8857_v1 = vrot.slane %v7183_v37, 1  ;;  %s7711_s26 = sld [smem:[#allocation5 + $0x8b]] }
 0x3b1   :  { %v5066_v2 = vpop.eup %5065  ;;  %v2756_v18 = vrot.slane %v2748_v61, 1 }
 0x3b2   :  { %v2396_v9 = vmul.f32 %v5066_v2, %v2394_v58  ;;  %vm2402_vm11 = vweird.f32 %v5066_v2  ;;  %v2783_v58 = vrot.slane %v2774_v19, 1 }
 0x3b3   :  { %vm2403_vm12 = vmor %vm2401_vm10, %vm2402_vm11 }
 0x3b4   :  { %v2397_v41 = vmul.f32 %v5066_v2, %v2396_v9  ;;  %2732 = vrot.lane.b32.xlu0 %v2723_v53, %s5142_s22  ;;  %2730 = vrot.lane.b32.xlu2 %v2722_v29, %s5142_s22  ;;  %v2803_v9 = vstv %s7117_s21  ;;  %v2725_v53 = vmul.f32 %v2721_v33, %v7128_v35  ;;  %v2724_v29 = vmul.f32 %v2721_v33, %v7112_v22  ;;  %s7635_s21 = sld [smem:[#allocation5 + $0x73]] }
 0x3b5   :  { %2710 = vrot.lane.b32.xlu1 %v2699_v44, %s5141_s1  ;;  %v7169_v44 = vmul.f32 %v2803_v9, %v7112_v22  ;;  %v7176_v43 = vmul.f32 %v2803_v9, %v7128_v35  ;;  %v7179_v33 = vmul.f32 %v2803_v9, %v7110_v49 }
 0x3b6   :  { %v2398_v27 = vmul.f32 0.5, %v2397_v41  ;;  %v9260_v41 = vrot.slane %v7138_v3, 1 }
 0x3b7   :  { %v2815_v19 = vrot.slane %v7169_v44, 1 }
 0x3b8   :  { %v7165_v59 = vpop.permute.xlu2 %2468  ;;  %v2399_v48 = vsub.f32 1.5, %v2398_v27  ;;  %v2782_v20 = vsel %vm126_vm0, %v2780_v0, %v9260_v41  ;;  %v2750_v27 = vmul.f32 %v2747_v28, %v7112_v22  ;;  %v2836_v0 = vmul.f32 %v2835_v23, %v7108_v36 }
 0x3b9   :  { %v7194_v41 = vmul.f32 %v2835_v23, %v7110_v49  ;;  %v8858_v28 = vrot.slane %v7190_v40, 1 }
 0x3ba   :  { %v2400_v50 = vmul.f32 %v5066_v2, %v2399_v48  ;;  %v7197_v48 = vmul.f32 %v2835_v23, %v7128_v35  ;;  %v2759_v34 = vrot.slane %v2750_v27, 1  ;;  %v2844_v31 = vrot.slane %v2836_v0, 2 }
 0x3bb   :  { %v8856_v7 = vrot.slane %v7194_v41, 2  ;;  %v2785_v27 = vsel %vm126_vm0, %v2783_v58, %v2784_v42  ;;  %v7240_v0 = vmul.f32 %v3487_v13, %v7110_v49  ;;  %v3519_v58 = vstv %s7186_s28  ;;  %s7747_s28 = sld [smem:[#allocation5 + $0x8e]] }
 0x3bc   :  { %v2404_v17 = vsel %vm2403_vm12, %v5066_v2, %v2400_v50  ;;  %2786 = vrot.lane.b32.xlu0 %v2782_v20, %s5141_s1  ;;  %2736 = vrot.lane.b32.xlu2 %v2725_v53, %s5142_s22  ;;  %v7208_v50 = vstv %s7160_s27  ;;  %v7213_v61 = vsel %vm126_vm0, %v2759_v34, %v8857_v1  ;;  %v8861_v20 = vrot.slane %v7197_v48, 2  ;;  %s7722_s27 = sld [smem:[#allocation5 + $0x8c]] }
 0x3bd   :  { %5035 = vpush %v2404_v17  ;;  %2734 = vrot.lane.b32.xlu1 %v2724_v29, %s5142_s22  ;;  %v2838_v2 = vmul.f32 %v2835_v23, %v7112_v22  ;;  %v2804_v17 = vmul.f32 %v2803_v9, %v7108_v36  ;;  %v7222_v53 = vsel %vm126_vm0, %v2756_v18, %v8858_v28  ;;  %v2813_v18 = vrot.slane %v7179_v33, 1 }
 0x3be   :  { %v7227_v29 = vsel %vm215_vm1, %v2844_v31, %v8856_v7  ;;  %v7232_v23 = vmul.f32 %v7158_v12, %v7110_v49  ;;  %v3488_v9 = vmul.f32 %v3487_v13, %v7108_v36  ;;  %9261 = vst [vmem:[#allocation82_spill] sm:$0xff] %v7240_v0  ;;  %v3490_v31 = vmul.f32 %v3487_v13, %v7112_v22 }
 0x3bf   :  { %v2847_v44 = vrot.slane %v2838_v2, 2  ;;  %v7251_v28 = vmul.f32 %v3487_v13, %v7128_v35  ;;  %v8863_v34 = vrot.slane %v7240_v0, 1  ;;  %v7256_v11 = vmul.f32 %v3519_v58, %v7110_v49 }
 0x3c0   :  { %v7243_v7 = vpop.permute.xlu2 %2492  ;;  %v3496_v1 = vrot.slane %v3488_v9, 1  ;;  %v3499_v33 = vrot.slane %v3490_v31, 1  ;;  %v3520_v21 = vmul.f32 %v3519_v58, %v7108_v36  ;;  %v3522_v62 = vmul.f32 %v3519_v58, %v7112_v22 }
 0x3c1   :  { %v7248_v2 = vsel %vm215_vm1, %v2847_v44, %v8861_v20  ;;  %9262 = vst [vmem:[#allocation85_spill] sm:$0xff] %v7251_v28  ;;  %v7262_v44 = vmul.f32 %v3519_v58, %v7128_v35  ;;  %v3575_v9 = vstv %s7200_s29  ;;  %v8867_v31 = vrot.slane %v7256_v11, 1  ;;  %s7755_s29 = sld [smem:[#allocation5 + $0x8f]] }
 0x3c2   :  { %9263 = vst [vmem:[#allocation81_spill] sm:$0xff] %v7256_v11  ;;  %v7272_v13 = vsel %vm126_vm0, %v3496_v1, %v8863_v34  ;;  %v3528_v20 = vrot.slane %v3520_v21, 1  ;;  %v3576_v51 = vmul.f32 %v3575_v9, %v7108_v36  ;;  %v9266_v58 = vrot.slane %v7138_v3, 1 }
 0x3c3   :  { %9264 = vst [vmem:[#allocation87_spill] sm:$0xff] %v7262_v44  ;;  %v3531_v0 = vrot.slane %v3522_v62, 1  ;;  %v8866_v1 = vrot.slane %v7262_v44, 1  ;;  %v7288_v34 = vmul.f32 %v3575_v9, %v7110_v49  ;;  %v3578_v3 = vmul.f32 %v3575_v9, %v7112_v22 }
 0x3c4   :  { %2792 = vrot.lane.b32.xlu0 %v2784_v42, %s5141_s1  ;;  %2790 = vrot.lane.b32.xlu2 %v2785_v27, %s5141_s1  ;;  %9265 = vst [vmem:[#allocation73_spill] sm:$0xff] %v7272_v13  ;;  %v9267_v42 = vrot.slane %v7251_v28, 1  ;;  %v7293_v21 = vsel %vm126_vm0, %v3528_v20, %v8867_v31  ;;  %v3584_v13 = vrot.slane %v3576_v51, 2  ;;  %v2812_v28 = vrot.slane %v2804_v17, 1 }
 0x3c5   :  { %2788 = vrot.lane.b32.xlu1 %v9266_v58, %s5141_s1  ;;  %9269 = vst [vmem:[#allocation84_spill] sm:$0xff] %v7288_v34  ;;  %v7297_v58 = vmul.f32 %v3575_v9, %v7128_v35  ;;  %v7302_v62 = vsel %vm126_vm0, %v3531_v0, %v8866_v1  ;;  %v2869_v9 = vrot.slane %v7232_v23, 2  ;;  %v9276_v1 = vrot.slane %v7176_v43, 1 }
 0x3c6   :  { %v7284_v27 = vsel %vm126_vm0, %v3499_v33, %v9267_v42  ;;  %9270 = vst [vmem:[#allocation76_spill] sm:$0xff] %v7293_v21  ;;  %v8869_v33 = vrot.slane %v7288_v34, 2  ;;  %v3607_v42 = vstv %s7235_s30  ;;  %v2860_v44 = vmul.f32 %v7158_v12, %v7108_v36  ;;  %s7816_s30 = sld [smem:[#allocation5 + $0x8a]] }
 0x3c7   :  { %9268 = vst [vmem:[#allocation88_spill] sm:$0xff] %v7284_v27  ;;  %v3587_v27 = vrot.slane %v3578_v3, 2  ;;  %v8871_v11 = vrot.slane %v7297_v58, 2  ;;  %v7308_v20 = vmul.f32 %v3607_v42, %v7110_v49  ;;  %v3610_v51 = vmul.f32 %v3607_v42, %v7112_v22 }
 0x3c8   :  { %9271 = vst [vmem:[#allocation79_spill] sm:$0xff] %v7297_v58  ;;  %v7315_v17 = vsel %vm215_vm1, %v3584_v13, %v8869_v33  ;;  %v7318_v0 = vmul.f32 %v3607_v42, %v7128_v35  ;;  %v3608_v3 = vmul.f32 %v3607_v42, %v7108_v36  ;;  %v2817_v31 = vsel %vm126_vm0, %v2815_v19, %v9276_v1  ;;  %v7330_v33 = vpop.permute.xlu2 %2498 }
 0x3c9   :  { %9272 = vst [vmem:[#allocation90_spill] sm:$0xff] %v7302_v62  ;;  %v7327_v23 = vsel %vm215_vm1, %v3587_v27, %v8871_v11  ;;  %v8874_v34 = vrot.slane %v7308_v20, 2  ;;  %v3619_v13 = vrot.slane %v3610_v51, 2  ;;  %v7340_v19 = vmul.f32 %v7208_v50, %v7108_v36 }
 0x3ca   :  { %9273 = vst [vmem:[#allocation83_spill] sm:$0xff] %v7308_v20  ;;  %v8873_v42 = vrot.slane %v7318_v0, 2  ;;  %v3616_v62 = vrot.slane %v3608_v3, 2  ;;  %v7344_v27 = vmul.f32 %v7208_v50, %v7110_v49  ;;  %v3463_v1 = vstv %s7265_s3  ;;  %s7839_s3 = sld [smem:[#allocation5 + $0x8d]] }
 0x3cb   :  { %9274 = vst [vmem:[#allocation91_spill] sm:$0xff] %v7315_v17  ;;  %v2814_v17 = vsel %vm126_vm0, %v2812_v28, %v2813_v18  ;;  %v3551_v28 = vstv %s7276_s4  ;;  %v7362_v51 = vmul.f32 %v3463_v1, %v7128_v35  ;;  %v3466_v3 = vmul.f32 %v3463_v1, %v7112_v22  ;;  %s7894_s4 = sld [smem:[#allocation5 + $0xa6]] }
 0x3cc   :  { %9275 = vst [vmem:[#allocation97_spill] sm:$0xff] %v7318_v0  ;;  %2822 = vrot.lane.b32.xlu0 %v2817_v31, %s5142_s22  ;;  %2820 = vrot.lane.b32.xlu2 %v2813_v18, %s5142_s22  ;;  %v7354_v31 = vsel %vm215_vm1, %v3619_v13, %v8873_v42  ;;  %v7359_v18 = vsel %vm215_vm1, %v3616_v62, %v8874_v34  ;;  %v2868_v34 = vrot.slane %v2860_v44, 2 }
 0x3cd   :  { %9277 = vst [vmem:[#allocation86_spill] sm:$0xff] %v7327_v23  ;;  %2818 = vrot.lane.b32.xlu1 %v2814_v17, %s5142_s22  ;;  %v3464_v23 = vmul.f32 %v3463_v1, %v7108_v36  ;;  %v7367_v17 = vmul.f32 %v3463_v1, %v7110_v49  ;;  %v3552_v13 = vmul.f32 %v3551_v28, %v7108_v36  ;;  %v3475_v0 = vrot.slane %v3466_v3, 1 }
 0x3ce   :  { %9278 = vst [vmem:[#allocation94_spill] sm:$0xff] %v7354_v31  ;;  %v7371_v42 = vmul.f32 %v3551_v28, %v7110_v49  ;;  %v7387_v44 = vmul.f32 %v3551_v28, %v7128_v35  ;;  %v2870_v3 = vsel %vm215_vm1, %v2868_v34, %v2869_v9  ;;  %v9287_v34 = vrot.slane %v7176_v43, 1 }
 0x3cf   :  { %9279 = vst [vmem:[#allocation93_spill] sm:$0xff] %v7359_v18  ;;  %v2471_v11 = vpop.permute.xlu1 %2470  ;;  %v2467_v58 = vpop.permute.xlu0 %2466  ;;  %v8879_v18 = vrot.slane %v7362_v51, 1  ;;  %v3472_v31 = vrot.slane %v3464_v23, 1  ;;  %v8880_v20 = vrot.slane %v7367_v17, 1  ;;  %v3560_v21 = vrot.slane %v3552_v13, 2 }
 0x3d0   :  { %9280 = vst [vmem:[#allocation96_spill] sm:$0xff] %v7362_v51  ;;  %v2478_v62 = vadd.f32 %v2467_v58, %v7147_v4  ;;  %v8878_v1 = vrot.slane %v7371_v42, 2  ;;  %v3554_v4 = vmul.f32 %v3551_v28, %v7112_v22  ;;  %v2863_v58 = vmul.f32 %v7158_v12, %v7128_v35 }
 0x3d1   :  { %9281 = vst [vmem:[#allocation99_spill] sm:$0xff] %v7367_v17  ;;  %v7383_v38 = vsel %vm126_vm0, %v3475_v0, %v8879_v18  ;;  %v2862_v23 = vmul.f32 %v7158_v12, %v7112_v22  ;;  %v4203_v12 = vstv %s7348_s6  ;;  %v4235_v43 = vstv %s7373_s7  ;;  %s7921_s6 = sld [smem:[#allocation5 + $0xa7]] }
 0x3d2   :  { %9282 = vst [vmem:[#allocation100_spill] sm:$0xff] %v7371_v42  ;;  %v2504_v60 = vadd.f32 %v7243_v7, %v2478_v62  ;;  %v7396_v7 = vsel %vm126_vm0, %v3472_v31, %v8880_v20  ;;  %v7401_v0 = vsel %vm215_vm1, %v3560_v21, %v8878_v1  ;;  %v3563_v13 = vrot.slane %v3554_v4, 2  ;;  %v7414_v21 = vpop.permute.xlu2 %2552  ;;  %s7951_s7 = sld [smem:[#allocation5 + $0xa9]] }
 0x3d3   :  { %9283 = vst [vmem:[#allocation89_spill] sm:$0xff] %v7383_v38  ;;  %v8881_v62 = vrot.slane %v7387_v44, 2  ;;  %v2480_v31 = vadd.f32 %v2471_v11, %v7144_v10  ;;  %v2872_v1 = vrot.slane %v2863_v58, 2  ;;  %v7429_v11 = vmul.f32 %v4203_v12, %v7110_v49 }
 0x3d4   :  { %9284 = vst [vmem:[#allocation95_spill] sm:$0xff] %v7387_v44  ;;  %v7405_v28 = vadd.f32 %v6748_v5, %v2504_v60  ;;  %2876 = vrot.lane.b32.xlu0 %v2869_v9, %s5141_s1  ;;  %2874 = vrot.lane.b32.xlu2 %v2870_v3, %s5141_s1  ;;  %v2900_v5 = vrot.slane %v7340_v19, 2  ;;  %v4204_v10 = vmul.f32 %v4203_v12, %v7108_v36 }
 0x3d5   :  { %9285 = vst [vmem:[#allocation102_spill] sm:$0xff] %v7396_v7  ;;  %2824 = vrot.lane.b32.xlu1 %v9287_v34, %s5142_s22  ;;  %v7424_v9 = vsel %vm215_vm1, %v3563_v13, %v8881_v62  ;;  %v2871_v34 = vrot.slane %v2862_v23, 2  ;;  %v4236_v18 = vmul.f32 %v4235_v43, %v7108_v36  ;;  %v7437_v20 = vmul.f32 %v4235_v43, %v7110_v49 }
 0x3d6   :  { %9286 = vst [vmem:[#allocation92_spill] sm:$0xff] %v7401_v0  ;;  %v8886_v13 = vrot.slane %v7429_v11, 1  ;;  %v4212_v62 = vrot.slane %v4204_v10, 1  ;;  %v4206_v58 = vmul.f32 %v4203_v12, %v7112_v22  ;;  %v7442_v60 = vmul.f32 %v4203_v12, %v7128_v35 }
 0x3d7   :  { %9288 = vst [vmem:[#allocation103_spill] sm:$0xff] %v7424_v9  ;;  %v2497_v4 = vpop.permute.xlu1 %2496  ;;  %v7426_v3 = vpop.permute.xlu0 %2472  ;;  %v4244_v23 = vrot.slane %v4236_v18, 1  ;;  %v2894_v18 = vmul.f32 %v7208_v50, %v7112_v22 }
 0x3d8   :  { %9289 = vst [vmem:[#allocation106_spill] sm:$0xff] %v7429_v11  ;;  %v2506_v19 = vadd.f32 %v2497_v4, %v2480_v31  ;;  %v2895_v31 = vmul.f32 %v7208_v50, %v7128_v35  ;;  %v8884_v4 = vrot.slane %v7437_v20, 1  ;;  %v7455_v10 = vsel %vm126_vm0, %v4212_v62, %v8886_v13 }
 0x3d9   :  { %9290 = vst [vmem:[#allocation109_spill] sm:$0xff] %v7437_v20  ;;  %v4215_v0 = vrot.slane %v4206_v58, 1  ;;  %v8885_v12 = vrot.slane %v7442_v60, 1  ;;  %v7470_v62 = vmul.f32 %v4235_v43, %v7128_v35  ;;  %v2873_v58 = vsel %vm215_vm1, %v2871_v34, %v2872_v1 }
 0x3da   :  { %9291 = vst [vmem:[#allocation105_spill] sm:$0xff] %v7442_v60  ;;  %v7445_v42 = vadd.f32 %v6727_v57, %v2506_v19  ;;  %v4238_v57 = vmul.f32 %v4235_v43, %v7112_v22  ;;  %v9293_v19 = vrot.slane %v7344_v27, 2  ;;  %v7467_v9 = vsel %vm126_vm0, %v4244_v23, %v8884_v4  ;;  %v7496_v13 = vpop.permute.xlu2 %2582 }
 0x3db   :  { %9292 = vst [vmem:[#allocation111_spill] sm:$0xff] %v7455_v10  ;;  %v8889_v43 = vrot.slane %v7470_v62, 1 }
 0x3dc   :  { %v2902_v44 = vsel %vm215_vm1, %v2900_v5, %v9293_v19  ;;  %9294 = vst [vmem:[#allocation98_spill] sm:$0xff] %v7467_v9  ;;  %2880 = vrot.lane.b32.xlu2 %v2872_v1, %s5141_s1  ;;  %v7478_v5 = vsel %vm126_vm0, %v4215_v0, %v8885_v12  ;;  %v4247_v50 = vrot.slane %v4238_v57, 1  ;;  %v4291_v19 = vstv %s7411_s8  ;;  %s7994_s8 = sld [smem:[#allocation5 + $0xaa]] }
 0x3dd   :  { %9295 = vst [vmem:[#allocation112_spill] sm:$0xff] %v7470_v62  ;;  %2906 = vrot.lane.b32.xlu0 %v2902_v44, %s5142_s22  ;;  %2878 = vrot.lane.b32.xlu1 %v2873_v58, %s5141_s1  ;;  %v4292_v44 = vmul.f32 %v4291_v19, %v7108_v36  ;;  %v7487_v23 = vmul.f32 %v4291_v19, %v7110_v49  ;;  %v2904_v0 = vrot.slane %v2895_v31, 2  ;;  %v4323_v12 = vstv %s7433_s9  ;;  %s7999_s9 = sld [smem:[#allocation5 + $0x76]] }
 0x3de   :  { %9296 = vst [vmem:[#allocation108_spill] sm:$0xff] %v7478_v5  ;;  %v4294_v1 = vmul.f32 %v4291_v19, %v7112_v22  ;;  %v7493_v57 = vmul.f32 %v4291_v19, %v7128_v35  ;;  %v2903_v58 = vrot.slane %v2894_v18, 2  ;;  %v7501_v60 = vsel %vm126_vm0, %v4247_v50, %v8889_v43 }
 0x3df   :  { %9297 = vst [vmem:[#allocation101_spill] sm:$0xff] %v7487_v23  ;;  %v7490_v34 = vpop.permute.xlu1 %2550  ;;  %v2495_v4 = vpop.permute.xlu0 %2494  ;;  %v4300_v20 = vrot.slane %v4292_v44, 2  ;;  %v8892_v5 = vrot.slane %v7487_v23, 2  ;;  %v7506_v31 = vmul.f32 %v4323_v12, %v7110_v49  ;;  %v4324_v19 = vmul.f32 %v4323_v12, %v7108_v36 }
 0x3e0   :  { %9298 = vst [vmem:[#allocation104_spill] sm:$0xff] %v7493_v57  ;;  %v4303_v9 = vrot.slane %v4294_v1, 2  ;;  %v8893_v10 = vrot.slane %v7493_v57, 2  ;;  %v7515_v50 = vmul.f32 %v4323_v12, %v7128_v35  ;;  %v4326_v44 = vmul.f32 %v4323_v12, %v7112_v22 }
 0x3e1   :  { %9299 = vst [vmem:[#allocation107_spill] sm:$0xff] %v7501_v60  ;;  %v7512_v18 = vsel %vm215_vm1, %v4300_v20, %v8892_v5  ;;  %v4179_v43 = vstv %s7450_s10  ;;  %v8894_v62 = vrot.slane %v7506_v31, 2  ;;  %v4332_v60 = vrot.slane %v4324_v19, 2  ;;  %s8027_s10 = sld [smem:[#allocation5 + $0xa5]] }
 0x3e2   :  { %9300 = vst [vmem:[#allocation110_spill] sm:$0xff] %v7506_v31  ;;  %v7522_v1 = vsel %vm215_vm1, %v4303_v9, %v8893_v10  ;;  %v2449_v23 = vmul.f32 %v7123_v63, %v6644_v25  ;;  %v2905_v20 = vsel %vm215_vm1, %v2903_v58, %v2904_v0  ;;  %v8896_v5 = vrot.slane %v7515_v50, 2  ;;  %v7563_v31 = vpop.permute.xlu2 %2636 }
 0x3e3   :  { %9301 = vst [vmem:[#allocation113_spill] sm:$0xff] %v7512_v18  ;;  %v4335_v18 = vrot.slane %v4326_v44, 2  ;;  %v7534_v9 = vsel %vm215_vm1, %v4332_v60, %v8894_v62  ;;  %v4180_v12 = vmul.f32 %v4179_v43, %v7108_v36  ;;  %v4267_v19 = vstv %s7481_s11  ;;  %s8038_s11 = sld [smem:[#allocation5 + $0xa8]] }
 0x3e4   :  { %9302 = vst [vmem:[#allocation11_spill] sm:$0xff] %v7515_v50  ;;  %2910 = vrot.lane.b32.xlu2 %v2905_v20, %s5142_s22  ;;  %v9305_v10 = vrot.slane %v7344_v27, 2  ;;  %v4182_v62 = vmul.f32 %v4179_v43, %v7112_v22  ;;  %v7553_v57 = vmul.f32 %v4179_v43, %v7128_v35  ;;  %v4268_v27 = vmul.f32 %v4267_v19, %v7108_v36 }
 0x3e5   :  { %9303 = vst [vmem:[#allocation18_spill] sm:$0xff] %v7522_v1  ;;  %2912 = vrot.lane.b32.xlu0 %v2904_v0, %s5142_s22  ;;  %v7544_v58 = vsel %vm215_vm1, %v4335_v18, %v8896_v5  ;;  %v7547_v0 = vmul.f32 %v4179_v43, %v7110_v49  ;;  %v4188_v60 = vrot.slane %v4180_v12, 1 }
 0x3e6   :  { %9304 = vst [vmem:[#allocation12_spill] sm:$0xff] %v7534_v9  ;;  %2908 = vrot.lane.b32.xlu1 %v9305_v10, %s5142_s22  ;;  %v2453_v10 = vadd.f32 %v2449_v23, %v7134_v54  ;;  %v8902_v50 = vrot.slane %v7553_v57, 1  ;;  %v7561_v9 = vmul.f32 %v4267_v19, %v7110_v49  ;;  %v4276_v12 = vrot.slane %v4268_v27, 2 }
 0x3e7   :  { %9306 = vst [vmem:[#allocation21_spill] sm:$0xff] %v7544_v58  ;;  %v2581_v44 = vpop.permute.xlu1 %2580  ;;  %v2549_v20 = vpop.permute.xlu0 %2548  ;;  %v8899_v5 = vrot.slane %v7547_v0, 1  ;;  %v4191_v58 = vrot.slane %v4182_v62, 1  ;;  %v7572_v23 = vmul.f32 %v4267_v19, %v7128_v35 }
 0x3e8   :  { %9307 = vst [vmem:[#allocation14_spill] sm:$0xff] %v7547_v0  ;;  %v2560_v18 = vadd.f32 %v2549_v20, %v7405_v28  ;;  %v4270_v28 = vmul.f32 %v4267_v19, %v7112_v22  ;;  %v2479_v62 = vadd.f32 %v7165_v59, %v2453_v10  ;;  %v2451_v20 = vmul.f32 %v7123_v63, %v6654_v30 }
 0x3e9   :  { %9308 = vst [vmem:[#allocation15_spill] sm:$0xff] %v7553_v57  ;;  %v7568_v43 = vsel %vm126_vm0, %v4188_v60, %v8899_v5  ;;  %v8900_v60 = vrot.slane %v7561_v9, 2  ;;  %v8901_v19 = vrot.slane %v7572_v23, 2 }
 0x3ea   :  { %9309 = vst [vmem:[#allocation17_spill] sm:$0xff] %v7561_v9  ;;  %v2592_v1 = vadd.f32 %v2581_v44, %v2560_v18  ;;  %v7580_v44 = vsel %vm126_vm0, %v4191_v58, %v8902_v50  ;;  %v4279_v18 = vrot.slane %v4270_v28, 2  ;;  %v2505_v5 = vadd.f32 %v2495_v4, %v2479_v62 }
 0x3eb   :  { %9310 = vst [vmem:[#allocation27_spill] sm:$0xff] %v7568_v43  ;;  %v7590_v59 = vsel %vm215_vm1, %v4276_v12, %v8900_v60  ;;  %v2455_v58 = vadd.f32 %v2451_v20, %v7134_v54  ;;  %v9315_v4 = vrot.slane %v6714_v47, 1  ;;  %v7605_v12 = vpop.permute.xlu2 %2642 }
 0x3ec   :  { %9311 = vst [vmem:[#allocation9_spill] sm:$0xff] %v7572_v23  ;;  %v7584_v27 = vadd.f32 %v6781_v14, %v2592_v1  ;;  %v7595_v63 = vsel %vm215_vm1, %v4279_v18, %v8901_v19 }
 0x3ed   :  { %9312 = vst [vmem:[#allocation8_spill] sm:$0xff] %v7580_v44  ;;  %v2481_v10 = vadd.f32 %v7426_v3, %v2455_v58  ;;  %v2529_v28 = vadd.f32 %v9315_v4, %v2505_v5 }
 0x3ee   :  { %9313 = vst [vmem:[#allocation20_spill] sm:$0xff] %v7590_v59  ;;  %s5036_s15 = spop %5035 }
 0x3ef   :  { %9314 = vst [vmem:[#allocation26_spill] sm:$0xff] %v7595_v63  ;;  %s2406_s16 = smul.f32 %s5036_s15, %s7549_s13  ;;  %v2587_v14 = vpop.permute.xlu1 %2586  ;;  %v2555_v1 = vpop.permute.xlu0 %2554  ;;  %v2507_v3 = vadd.f32 %v7330_v33, %v2481_v10  ;;  %v2561_v47 = vadd.f32 %v7490_v34, %v2529_v28  ;;  %v2933_v34 = vstv %s4949_s5  ;;  %s8109_s13 = sld [smem:[#allocation5 + $0x77]] }
 0x3f0   :  { %s4968_s15 = sld [smem:[#allocation5 + $0x7f]] }
 0x3f1   :  { %s2408_s17 = smul.f32 %s2406_s16, %s7100_s12  ;;  %v2410_v62 = vstv %s2406_s16  ;;  %s4952_s12 = sld [smem:[#allocation5 + $0x70]]  ;;  %v2593_v28 = vadd.f32 %v7496_v13, %v2561_v47 }
 0x3f2   :  { %v2411_v18 = vmul.f32 %v2410_v62, %v6590_v45  ;;  %v2412_v54 = vmul.f32 %v2410_v62, %v6594_v52  ;;  %v2413_v20 = vmul.f32 %v2410_v62, %v6604_v24  ;;  %v2414_v60 = vmul.f32 %v2410_v62, %v6596_v32  ;;  %s4969_s16 = sld [smem:[#allocation5 + $0x80]] }
 0x3f3   :  { %s2409_s19 = ssub.f32 %s4928_s14, %s2408_s17  ;;  %v2562_v45 = vadd.f32 %v7414_v21, %v7445_v42  ;;  %v9316_v32 = vrot.slane %v6702_v15, 1  ;;  %v2685_v21 = vstv %s7603_s18 }
 0x3f4   :  { %s4948_s14 = sld [smem:[#allocation5 + $0x6c]] }
 0x3f5   :  { %v2415_v5 = vstv %s2409_s19  ;;  %v2531_v33 = vadd.f32 %v9316_v32, %v2507_v3  ;;  %s4958_s17 = sld [smem:[#allocation5 + $0x75]] }
 0x3f6   :  { %v2416_v58 = vadd.f32 %v2415_v5, %v2411_v18  ;;  %v2417_v4 = vadd.f32 %v2415_v5, %v2412_v54  ;;  %v2418_v19 = vadd.f32 %v2415_v5, %v2413_v20  ;;  %v2419_v50 = vadd.f32 %v2415_v5, %v2414_v60  ;;  %s4957_s5 = sld [smem:[#allocation5 + $0xac]] }
 0x3f7   :  { %v2641_v9 = vpop.permute.xlu1 %2640  ;;  %v2585_v52 = vpop.permute.xlu0 %2584  ;;  %s4977_s18 = sld [smem:[#allocation5 + $0x88]] }
 0x3f8   :  { %v2436_v23 = vmax.f32 %v2416_v58, 0.0  ;;  %v2437_v24 = vmax.f32 %v2417_v4, 0.0  ;;  %v2438_v63 = vmax.f32 %v2418_v19, 0.0  ;;  %v2594_v10 = vadd.f32 %v2585_v52, %v2562_v45  ;;  %s4967_s19 = sld [smem:[#allocation5 + $0x7e]] }
 0x3f9   :  { %v2439_v62 = vmax.f32 %v2419_v50, 0.0  ;;  %v2563_v19 = vadd.f32 %v2555_v1, %v2531_v33  ;;  %v2673_v50 = vpop.permute.xlu2 %2672  ;;  %v2688_v58 = vmul.f32 %v2685_v21, %v7112_v22  ;;  %v2959_v52 = vstv %s4950_s0  ;;  %s4987_s0 = sld [smem:[#allocation5 + $0x91]] }
 0x3fa   :  { %v7618_v60 = vmin.f32 %v2436_v23, 6.0  ;;  %v7620_v18 = vmin.f32 %v2437_v24, 6.0  ;;  %v7622_v54 = vmin.f32 %v2438_v63, 6.0  ;;  %v2618_v42 = vadd.f32 %v6758_v6, %v2594_v10 }
 0x3fb   :  { %v7629_v47 = vmin.f32 %v2439_v62, 6.0  ;;  %v9317_v23 = vrot.slane %v6732_v16, 2  ;;  %v3009_v63 = vstv %s4952_s12  ;;  %v2687_v10 = vmul.f32 %v2685_v21, %v7110_v49  ;;  %s4978_s12 = sld [smem:[#allocation5 + $0x89]] }
 0x3fc   :  { %v2936_v15 = vmul.f32 %v2933_v34, %v7622_v54  ;;  %v2935_v20 = vmul.f32 %v2933_v34, %v7620_v18  ;;  %v2934_v3 = vmul.f32 %v2933_v34, %v7618_v60  ;;  %v2650_v13 = vadd.f32 %v2641_v9, %v2618_v42 }
 0x3fd   :  { %v2617_v6 = vadd.f32 %v9317_v23, %v2593_v28  ;;  %v2595_v9 = vadd.f32 %v2587_v14, %v2563_v19  ;;  %v3010_v16 = vmul.f32 %v3009_v63, %v7618_v60  ;;  %v7645_v24 = vmul.f32 %v3009_v63, %v7620_v18 }
 0x3fe   :  { %2946 = vrot.lane.b32.xlu0 %v2936_v15, %s5141_s1  ;;  %2944 = vrot.lane.b32.xlu2 %v2935_v20, %s5141_s1  ;;  %v2682_v5 = vadd.f32 %v2673_v50, %v2650_v13  ;;  %v7651_v28 = vmul.f32 %v3009_v63, %v7629_v47  ;;  %v3012_v14 = vmul.f32 %v3009_v63, %v7622_v54  ;;  %v3041_v62 = vstv %s4953_s20  ;;  %s4988_s20 = sld [smem:[#allocation5 + $0x92]] }
 0x3ff   :  { %2942 = vrot.lane.b32.xlu1 %v2934_v3, %s5141_s1  ;;  %v2639_v1 = vpop.permute.xlu0 %2638  ;;  %v2671_v45 = vpop.permute.xlu1 %2670  ;;  %v2961_v19 = vmul.f32 %v2959_v52, %v7620_v18  ;;  %v2960_v15 = vmul.f32 %v2959_v52, %v7618_v60  ;;  %v9318_v20 = vrot.slane %v6722_v39, 2  ;;  %v2937_v13 = vmul.f32 %v2933_v34, %v7629_v47 }
 0x400   :  { %v2649_v4 = vadd.f32 %v2639_v1, %v2617_v6  ;;  %v7647_v32 = vadd.f32 %v2688_v58, %v2682_v5  ;;  %v2648_v50 = vadd.f32 %v7563_v31, %v7584_v27  ;;  %v3018_v23 = vrot.slane %v3010_v16, 1 }
 0x401   :  { %v2619_v3 = vadd.f32 %v9318_v20, %v2595_v9  ;;  %v8905_v6 = vrot.slane %v7645_v24, 1  ;;  %v8906_v39 = vrot.slane %v7651_v28, 1  ;;  %v3021_v63 = vrot.slane %v3012_v14, 1 }
 0x402   :  { %v2681_v33 = vadd.f32 %v2671_v45, %v2649_v4  ;;  %v3044_v1 = vmul.f32 %v3041_v62, %v7622_v54  ;;  %v7671_v5 = vmul.f32 %v3041_v62, %v7629_v47  ;;  %v2686_v27 = vmul.f32 %v2685_v21, %v7108_v36 }
 0x403   :  { %v2689_v34 = vmul.f32 %v2685_v21, %v7128_v35  ;;  %v7677_v58 = vstv %s7635_s21  ;;  %v2651_v4 = vadd.f32 %v7605_v12, %v2619_v3  ;;  %v7681_v45 = vstv %s7639_s23  ;;  %s4976_s21 = sld [smem:[#allocation5 + $0x87]] }
 0x404   :  { %v7654_v42 = vadd.f32 %v2687_v10, %v2681_v33  ;;  %v2985_v16 = vstv %s7641_s24  ;;  %v3020_v33 = vsel %vm126_vm0, %v3018_v23, %v8905_v6  ;;  %v2963_v10 = vmul.f32 %v2959_v52, %v7629_v47  ;;  %s4996_s23 = sld [smem:[#allocation5 + $0x9a]] }
 0x405   :  { %v2962_v14 = vmul.f32 %v2959_v52, %v7622_v54  ;;  %v3023_v12 = vsel %vm126_vm0, %v3021_v63, %v8906_v39  ;;  %v3053_v20 = vrot.slane %v3044_v1, 1  ;;  %v7705_v52 = vmul.f32 %v7677_v58, %v7620_v18  ;;  %s4997_s24 = sld [smem:[#allocation5 + $0x9b]] }
 0x406   :  { %2970 = vrot.lane.b32.xlu0 %v2961_v19, %s5142_s22  ;;  %2968 = vrot.lane.b32.xlu2 %v2960_v15, %s5142_s22  ;;  %v7690_v19 = vmul.f32 %v3041_v62, %v7620_v18  ;;  %v7692_v21 = vpop.permute.xlu2 %2706  ;;  %v7709_v23 = vmul.f32 %v2985_v16, %v7629_v47  ;;  %v7715_v63 = vmul.f32 %v7677_v58, %v7618_v60  ;;  %v9329_v38 = vrot.slane %v7651_v28, 1 }
 0x407   :  { %2948 = vrot.lane.b32.xlu1 %v2937_v13, %s5141_s1  ;;  %v2669_v31 = vpop.permute.xlu0 %2668  ;;  %v7701_v13 = vmul.f32 %v3041_v62, %v7618_v60  ;;  %v2986_v1 = vmul.f32 %v2985_v16, %v7618_v60  ;;  %v7719_v62 = vmul.f32 %v2985_v16, %v7620_v18 }
 0x408   :  { %v2680_v9 = vadd.f32 %v2669_v31, %v2648_v50  ;;  %v2988_v50 = vmul.f32 %v2985_v16, %v7622_v54  ;;  %v3073_v31 = vstv %s7660_s25  ;;  %v9321_v0 = vrot.slane %v7709_v23, 1  ;;  %s4986_s25 = sld [smem:[#allocation5 + $0x90]] }
 0x409   :  { %v3074_v6 = vmul.f32 %v3073_v31, %v7618_v60  ;;  %v7727_v39 = vmul.f32 %v3073_v31, %v7620_v18  ;;  %v2994_v3 = vrot.slane %v2986_v1, 1  ;;  %v7733_v16 = vmul.f32 %v3073_v31, %v7629_v47 }
 0x40a   :  { %v7697_v15 = vadd.f32 %v2686_v27, %v2680_v9  ;;  %v2997_v27 = vrot.slane %v2988_v50, 1  ;;  %v3076_v57 = vmul.f32 %v3073_v31, %v7622_v54  ;;  %v7739_v9 = vmul.f32 %v7681_v45, %v7618_v60 }
 0x40b   :  { %9319 = vst [vmem:[#allocation29_spill] sm:$0xff] %v7727_v39  ;;  %v8909_v1 = vrot.slane %v7727_v39, 2  ;;  %v9322_v31 = vrot.slane %v7719_v62, 1  ;;  %v8910_v44 = vrot.slane %v7733_v16, 2 }
 0x40c   :  { %9320 = vst [vmem:[#allocation16_spill] sm:$0xff] %v7733_v16  ;;  %v3085_v43 = vrot.slane %v3076_v57, 2  ;;  %v3757_v57 = vstv %s7722_s27  ;;  %s4985_s27 = sld [smem:[#allocation5 + $0xad]] }
 0x40d   :  { %v7802_v11 = vmul.f32 %v3757_v57, %v7629_v47  ;;  %v3760_v16 = vmul.f32 %v3757_v57, %v7622_v54 }
 0x40e   :  { %3024 = vrot.lane.b32.xlu0 %v3020_v33, %s5141_s1  ;;  %2974 = vrot.lane.b32.xlu2 %v2963_v10, %s5142_s22  ;;  %v7744_v33 = vsel %vm126_vm0, %v2997_v27, %v9321_v0  ;;  %v3082_v10 = vrot.slane %v3074_v6, 2  ;;  %v9323_v0 = vrot.slane %v7671_v5, 1  ;;  %v3051_v27 = vrot.slane %v7690_v19, 1 }
 0x40f   :  { %2972 = vrot.lane.b32.xlu1 %v2962_v14, %s5142_s22  ;;  %v2675_v50 = vpop.permute.xlu0 %2674  ;;  %v7752_v14 = vsel %vm126_vm0, %v2994_v3, %v9322_v31  ;;  %v7772_v31 = vmul.f32 %v7681_v45, %v7620_v18  ;;  %9328 = vst [vmem:[#allocation10_spill] sm:$0xff] %v7802_v11  ;;  %v8921_v28 = vrot.slane %v7802_v11, 1 }
 0x410   :  { %v2683_v59 = vadd.f32 %v2675_v50, %v2651_v4  ;;  %v3055_v6 = vsel %vm126_vm0, %v3053_v20, %v9323_v0  ;;  %v3050_v4 = vrot.slane %v7701_v13, 1  ;;  %v7765_v50 = vsel %vm215_vm1, %v3082_v10, %v8909_v1 }
 0x411   :  { %9324 = vst [vmem:[#allocation22_spill] sm:$0xff] %v7765_v50  ;;  %v7777_v20 = vsel %vm215_vm1, %v3085_v43, %v8910_v44  ;;  %v7783_v10 = vmul.f32 %v7677_v58, %v7629_v47  ;;  %v7795_v44 = vmul.f32 %v3757_v57, %v7620_v18  ;;  %v3758_v13 = vmul.f32 %v3757_v57, %v7618_v60 }
 0x412   :  { %v7767_v3 = vadd.f32 %v2689_v34, %v2683_v59  ;;  %9325 = vst [vmem:[#allocation30_spill] sm:$0xff] %v7777_v20  ;;  %v3725_v59 = vstv %s7711_s26  ;;  %v7786_v34 = vpop.permute.xlu2 %2730  ;;  %v3845_v57 = vstv %s7755_s29 }
 0x413   :  { %v7789_v0 = vmul.f32 %v3725_v59, %v7620_v18  ;;  %v3726_v1 = vmul.f32 %v3725_v59, %v7618_v60  ;;  %v3728_v43 = vmul.f32 %v3725_v59, %v7622_v54  ;;  %9326 = vst [vmem:[#allocation32_spill] sm:$0xff] %v7795_v44  ;;  %v7799_v19 = vmul.f32 %v3725_v59, %v7629_v47 }
 0x414   :  { %v9330_v59 = vrot.slane %v7645_v24, 1  ;;  %v8917_v50 = vrot.slane %v7795_v44, 1  ;;  %v3766_v20 = vrot.slane %v3758_v13, 1 }
 0x415   :  { %9327 = vst [vmem:[#allocation36_spill] sm:$0xff] %v7799_v19  ;;  %v8918_v51 = vrot.slane %v7789_v0, 1  ;;  %v3734_v17 = vrot.slane %v3726_v1, 1  ;;  %v3737_v7 = vrot.slane %v3728_v43, 1  ;;  %v8916_v39 = vrot.slane %v7799_v19, 1 }
 0x416   :  { %3030 = vrot.lane.b32.xlu0 %v9329_v38, %s5141_s1  ;;  %3028 = vrot.lane.b32.xlu2 %v3023_v12, %s5141_s1  ;;  %v3769_v12 = vrot.slane %v3760_v16, 1  ;;  %v3813_v1 = vstv %s7747_s28  ;;  %v7828_v24 = vsel %vm126_vm0, %v3766_v20, %v8917_v50  ;;  %v7856_v19 = vmul.f32 %v3845_v57, %v7629_v47 }
 0x417   :  { %3026 = vrot.lane.b32.xlu1 %v9330_v59, %s5141_s1  ;;  %v7821_v38 = vsel %vm126_vm0, %v3734_v17, %v8918_v51  ;;  %9331 = vst [vmem:[#allocation13_spill] sm:$0xff] %v7828_v24  ;;  %v7833_v13 = vsel %vm126_vm0, %v3737_v7, %v8916_v39  ;;  %v3816_v43 = vmul.f32 %v3813_v1, %v7622_v54 }
 0x418   :  { %9332 = vst [vmem:[#allocation24_spill] sm:$0xff] %v7833_v13  ;;  %v7837_v59 = vmul.f32 %v3813_v1, %v7629_v47  ;;  %v7844_v17 = vsel %vm126_vm0, %v3769_v12, %v8921_v28  ;;  %v7847_v16 = vmul.f32 %v3813_v1, %v7620_v18  ;;  %v3814_v20 = vmul.f32 %v3813_v1, %v7618_v60 }
 0x419   :  { %9334 = vst [vmem:[#allocation25_spill] sm:$0xff] %v7844_v17  ;;  %v7851_v7 = vmul.f32 %v3845_v57, %v7620_v18  ;;  %v3825_v39 = vrot.slane %v3816_v43, 2  ;;  %v3846_v51 = vmul.f32 %v3845_v57, %v7618_v60  ;;  %v3848_v17 = vmul.f32 %v3845_v57, %v7622_v54 }
 0x41a   :  { %9333 = vst [vmem:[#allocation23_spill] sm:$0xff] %v7837_v59  ;;  %v8923_v50 = vrot.slane %v7837_v59, 2  ;;  %v8924_v11 = vrot.slane %v7847_v16, 2  ;;  %v3822_v12 = vrot.slane %v3814_v20, 2  ;;  %v7863_v1 = vmul.f32 %v7677_v58, %v7622_v54  ;;  %v7871_v44 = vpop.permute.xlu2 %2736 }
 0x41b   :  { %9335 = vst [vmem:[#allocation19_spill] sm:$0xff] %v7847_v16  ;;  %v8925_v28 = vrot.slane %v7851_v7, 2  ;;  %v3854_v13 = vrot.slane %v3846_v51, 2  ;;  %v3052_v57 = vsel %vm126_vm0, %v3050_v4, %v3051_v27  ;;  %v7878_v58 = vmul.f32 %v7681_v45, %v7629_v47 }
 0x41c   :  { %9336 = vst [vmem:[#allocation33_spill] sm:$0xff] %v7851_v7  ;;  %v7868_v43 = vsel %vm215_vm1, %v3825_v39, %v8923_v50  ;;  %v7883_v39 = vsel %vm215_vm1, %v3822_v12, %v8924_v11  ;;  %v3857_v51 = vrot.slane %v3848_v17, 2  ;;  %v3701_v4 = vstv %s7816_s30 }
 0x41d   :  { %9337 = vst [vmem:[#allocation114_spill] sm:$0xff] %v7856_v19  ;;  %v9340_v12 = vrot.slane %v7705_v52, 2  ;;  %v9341_v17 = vrot.slane %v7715_v63, 2  ;;  %v3702_v50 = vmul.f32 %v3701_v4, %v7618_v60  ;;  %v3704_v7 = vmul.f32 %v3701_v4, %v7622_v54 }
 0x41e   :  { %3060 = vrot.lane.b32.xlu0 %v3055_v6, %s5142_s22  ;;  %3058 = vrot.lane.b32.xlu2 %v3051_v27, %s5142_s22  ;;  %9338 = vst [vmem:[#allocation115_spill] sm:$0xff] %v7883_v39  ;;  %v2709_v20 = vpop.permute.xlu0 %2708  ;;  %v7891_v27 = vsel %vm215_vm1, %v3854_v13, %v8925_v28  ;;  %v7908_v13 = vmul.f32 %v3701_v4, %v7620_v18 }
 0x41f   :  { %3056 = vrot.lane.b32.xlu1 %v3052_v57, %s5142_s22  ;;  %9339 = vst [vmem:[#allocation116_spill] sm:$0xff] %v7891_v27  ;;  %v2705_v24 = vpop.permute.xlu1 %2704  ;;  %v3108_v11 = vsel %vm215_vm1, %v9341_v17, %v9340_v12  ;;  %v9342_v57 = vrot.slane %v7856_v19, 2  ;;  %v3789_v27 = vstv %s7839_s3  ;;  %v7914_v59 = vmul.f32 %v3701_v4, %v7629_v47 }
 0x420   :  { %v2716_v28 = vadd.f32 %v2705_v24, %v7697_v15  ;;  %v3710_v63 = vrot.slane %v3702_v50, 1  ;;  %v8934_v12 = vrot.slane %v7908_v13, 1  ;;  %v7918_v17 = vmul.f32 %v3789_v27, %v7620_v18 }
 0x421   :  { %v7904_v6 = vsel %vm215_vm1, %v3857_v51, %v9342_v57  ;;  %v3792_v51 = vmul.f32 %v3789_v27, %v7622_v54  ;;  %v8931_v15 = vrot.slane %v7914_v59, 1  ;;  %v7926_v24 = vmul.f32 %v3789_v27, %v7629_v47 }
 0x422   :  { %9343 = vst [vmem:[#allocation117_spill] sm:$0xff] %v7904_v6  ;;  %v2742_v57 = vadd.f32 %v7786_v34, %v2716_v28  ;;  %v3713_v6 = vrot.slane %v3704_v7, 1  ;;  %v7931_v50 = vsel %vm126_vm0, %v3710_v63, %v8934_v12  ;;  %v8932_v4 = vrot.slane %v7918_v17, 2 }
 0x423   :  { %9344 = vst [vmem:[#allocation118_spill] sm:$0xff] %v7926_v24  ;;  %v3801_v19 = vrot.slane %v3792_v51, 2  ;;  %v3790_v39 = vmul.f32 %v3789_v27, %v7618_v60  ;;  %v3109_v34 = vrot.slane %v7863_v1, 2  ;;  %v8930_v7 = vrot.slane %v7926_v24, 2 }
 0x424   :  { %v7936_v16 = vadd.f32 %v7222_v53, %v2742_v57  ;;  %v7942_v28 = vsel %vm126_vm0, %v3713_v6, %v8931_v15  ;;  %v2717_v63 = vadd.f32 %v7692_v21, %v7654_v42  ;;  %v9345_v51 = vrot.slane %v7705_v52, 2 }
 0x425   :  { %v3798_v53 = vrot.slane %v3790_v39, 2  ;;  %v9346_v27 = vrot.slane %v7671_v5, 1  ;;  %v7958_v6 = vmul.f32 %v7681_v45, %v7622_v54  ;;  %v7963_v42 = vsel %vm215_vm1, %v3801_v19, %v8930_v7 }
 0x426   :  { %3114 = vrot.lane.b32.xlu0 %v9345_v51, %s5141_s1  ;;  %3112 = vrot.lane.b32.xlu2 %v3108_v11, %s5141_s1  ;;  %v2733_v1 = vpop.permute.xlu0 %2732  ;;  %v4441_v21 = vstv %s7894_s4  ;;  %v7966_v11 = vpop.permute.xlu2 %2790  ;;  %v9347_v57 = vrot.slane %v7772_v31, 2  ;;  %v9348_v5 = vrot.slane %v7739_v9, 2  ;;  %v9349_v7 = vrot.slane %v7783_v10, 2 }
 0x427   :  { %3062 = vrot.lane.b32.xlu1 %v9346_v27, %s5142_s22  ;;  %v2711_v52 = vpop.permute.xlu1 %2710  ;;  %v2743_v39 = vadd.f32 %v2733_v1, %v2717_v63  ;;  %v3142_v27 = vrot.slane %v7878_v58, 2  ;;  %v7977_v45 = vsel %vm215_vm1, %v3798_v53, %v8932_v4  ;;  %v4442_v63 = vmul.f32 %v4441_v21, %v7618_v60 }
 0x428   :  { %v3140_v51 = vsel %vm215_vm1, %v9348_v5, %v9347_v57  ;;  %v2719_v19 = vadd.f32 %v2711_v52, %v7767_v3  ;;  %v3111_v15 = vsel %vm215_vm1, %v3109_v34, %v9349_v7  ;;  %v7985_v1 = vmul.f32 %v4441_v21, %v7620_v18 }
 0x429   :  { %v2718_v9 = vadd.f32 %v2709_v20, %v7647_v32  ;;  %v9351_v58 = vrot.slane %v7190_v40, 1  ;;  %v4473_v5 = vstv %s7921_s6  ;;  %v4444_v53 = vmul.f32 %v4441_v21, %v7622_v54 }
 0x42a   :  { %9350 = vst [vmem:[#allocation119_spill] sm:$0xff] %v7985_v1  ;;  %v2745_v3 = vadd.f32 %v7871_v44, %v2719_v19  ;;  %v4450_v52 = vrot.slane %v4442_v63, 1  ;;  %v8933_v34 = vrot.slane %v7985_v1, 1  ;;  %v4474_v7 = vmul.f32 %v4473_v5, %v7618_v60 }
 0x42b   :  { %v7990_v57 = vadd.f32 %v9351_v58, %v2743_v39  ;;  %v8002_v32 = vmul.f32 %v4473_v5, %v7620_v18  ;;  %v8005_v40 = vmul.f32 %v4441_v21, %v7629_v47  ;;  %v4453_v20 = vrot.slane %v4444_v53, 1 }
 0x42c   :  { %v4476_v39 = vmul.f32 %v4473_v5, %v7622_v54  ;;  %v9354_v58 = vrot.slane %v7183_v37, 1  ;;  %v8015_v19 = vsel %vm126_vm0, %v4450_v52, %v8933_v34  ;;  %v4482_v63 = vrot.slane %v4474_v7, 1 }
 0x42d   :  { %9352 = vst [vmem:[#allocation120_spill] sm:$0xff] %v8002_v32  ;;  %v8018_v4 = vmul.f32 %v4473_v5, %v7629_v47  ;;  %v9357_v21 = vrot.slane %v7783_v10, 2  ;;  %v8938_v53 = vrot.slane %v8002_v32, 1  ;;  %v8941_v37 = vrot.slane %v8005_v40, 1 }
 0x42e   :  { %9353 = vst [vmem:[#allocation121_spill] sm:$0xff] %v8005_v40  ;;  %v8010_v44 = vadd.f32 %v9354_v58, %v2745_v3  ;;  %3144 = vrot.lane.b32.xlu0 %v3140_v51, %s5142_s22  ;;  %v4485_v3 = vrot.slane %v4476_v39, 1  ;;  %v4529_v58 = vstv %s7951_s7  ;;  %v8029_v52 = vpop.permute.xlu0 %2786  ;;  %v2821_v24 = vpop.permute.xlu2 %2820  ;;  %v4561_v40 = vstv %s7994_s8  ;;  %s4995_s7 = sld [smem:[#allocation5 + $0x99]] }
 0x42f   :  { %9355 = vst [vmem:[#allocation122_spill] sm:$0xff] %v8015_v19  ;;  %3118 = vrot.lane.b32.xlu2 %v9357_v21, %s5141_s1  ;;  %3116 = vrot.lane.b32.xlu1 %v3111_v15, %s5141_s1  ;;  %v8034_v51 = vmul.f32 %v4529_v58, %v7620_v18  ;;  %v4530_v10 = vmul.f32 %v4529_v58, %v7618_v60  ;;  %v2735_v39 = vpop.permute.xlu1 %2734  ;;  %v3141_v21 = vrot.slane %v7958_v6, 2  ;;  %v9361_v1 = vrot.slane %v8018_v4, 1  ;;  %s5005_s8 = sld [smem:[#allocation5 + $0xa3]] }
 0x430   :  { %9356 = vst [vmem:[#allocation123_spill] sm:$0xff] %v8018_v4  ;;  %v4532_v7 = vmul.f32 %v4529_v58, %v7622_v54  ;;  %v8044_v15 = vsel %vm126_vm0, %v4482_v63, %v8938_v53  ;;  %v8049_v34 = vsel %vm126_vm0, %v4453_v20, %v8941_v37  ;;  %v8052_v12 = vmul.f32 %v4529_v58, %v7629_v47 }
 0x431   :  { %9358 = vst [vmem:[#allocation124_spill] sm:$0xff] %v8034_v51  ;;  %v2744_v5 = vadd.f32 %v2735_v39, %v2718_v9  ;;  %v8057_v19 = vsel %vm126_vm0, %v4485_v3, %v9361_v1  ;;  %v8940_v6 = vrot.slane %v8034_v51, 2  ;;  %v4538_v32 = vrot.slane %v4530_v10, 2 }
 0x432   :  { %9359 = vst [vmem:[#allocation125_spill] sm:$0xff] %v8049_v34  ;;  %v4541_v63 = vrot.slane %v4532_v7, 2  ;;  %v8943_v53 = vrot.slane %v8052_v12, 2  ;;  %v8069_v9 = vmul.f32 %v4561_v40, %v7620_v18  ;;  %v4562_v1 = vmul.f32 %v4561_v40, %v7618_v60 }
 0x433   :  { %9360 = vst [vmem:[#allocation126_spill] sm:$0xff] %v8052_v12  ;;  %v2768_v20 = vadd.f32 %v7213_v61, %v2744_v5  ;;  %v8066_v58 = vsel %vm215_vm1, %v4538_v32, %v8940_v6  ;;  %v3173_v3 = vstv %s7999_s9  ;;  %v8079_v61 = vmul.f32 %v4561_v40, %v7629_v47  ;;  %s5013_s9 = sld [smem:[#allocation5 + $0xae]] }
 0x434   :  { %9362 = vst [vmem:[#allocation127_spill] sm:$0xff] %v8057_v19  ;;  %v8076_v10 = vsel %vm215_vm1, %v4541_v63, %v8943_v53  ;;  %v4564_v5 = vmul.f32 %v4561_v40, %v7622_v54  ;;  %v3143_v32 = vsel %vm215_vm1, %v3141_v21, %v3142_v27  ;;  %v8945_v7 = vrot.slane %v8069_v9, 2 }
 0x435   :  { %9363 = vst [vmem:[#allocation128_spill] sm:$0xff] %v8066_v58  ;;  %v4570_v39 = vrot.slane %v4562_v1, 2  ;;  %v8947_v6 = vrot.slane %v8079_v61, 2  ;;  %v9367_v63 = vrot.slane %v7772_v31, 2  ;;  %v3176_v53 = vmul.f32 %v3173_v3, %v6646_v26 }
 0x436   :  { %9364 = vst [vmem:[#allocation129_spill] sm:$0xff] %v8069_v9  ;;  %3150 = vrot.lane.b32.xlu0 %v3142_v27, %s5142_s22  ;;  %v4573_v37 = vrot.slane %v4564_v5, 2  ;;  %v2793_v12 = vpop.permute.xlu0 %2792  ;;  %v4417_v21 = vstv %s8027_s10  ;;  %v4505_v1 = vstv %s8038_s11  ;;  %v2875_v51 = vpop.permute.xlu2 %2874  ;;  %v3174_v34 = vmul.f32 %v3173_v3, %v6642_v46  ;;  %s5006_s10 = sld [smem:[#allocation5 + $0xa4]] }
 0x437   :  { %9365 = vst [vmem:[#allocation130_spill] sm:$0xff] %v8076_v10  ;;  %3148 = vrot.lane.b32.xlu2 %v3143_v32, %s5142_s22  ;;  %3146 = vrot.lane.b32.xlu1 %v9367_v63, %s5142_s22  ;;  %v8094_v40 = vsel %vm215_vm1, %v4570_v39, %v8945_v7  ;;  %v2789_v27 = vpop.permute.xlu1 %2788  ;;  %v3175_v32 = vmul.f32 %v3173_v3, %v6644_v25  ;;  %s5014_s11 = sld [smem:[#allocation5 + $0xb1]] }
 0x438   :  { %9366 = vst [vmem:[#allocation131_spill] sm:$0xff] %v8079_v61  ;;  %v8102_v5 = vsel %vm215_vm1, %v4573_v37, %v8947_v6  ;;  %v8105_v31 = vmul.f32 %v4417_v21, %v7620_v18  ;;  %v4418_v63 = vmul.f32 %v4417_v21, %v7618_v60  ;;  %v2799_v9 = vadd.f32 %v2789_v27, %v7990_v57 }
 0x439   :  { %9368 = vst [vmem:[#allocation132_spill] sm:$0xff] %v8094_v40  ;;  %v4420_v39 = vmul.f32 %v4417_v21, %v7622_v54  ;;  %v8113_v7 = vmul.f32 %v4417_v21, %v7629_v47  ;;  %v4508_v40 = vmul.f32 %v4505_v1, %v7622_v54  ;;  %v8118_v6 = vmul.f32 %v4505_v1, %v7629_v47 }
 0x43a   :  { %9369 = vst [vmem:[#allocation133_spill] sm:$0xff] %v8102_v5  ;;  %v4427_v61 = vrot.slane %v8105_v31, 1  ;;  %v4426_v37 = vrot.slane %v4418_v63, 1  ;;  %v8121_v5 = vmul.f32 %v4505_v1, %v7620_v18  ;;  %v2831_v10 = vadd.f32 %v2821_v24, %v2799_v9 }
 0x43b   :  { %v4429_v57 = vrot.slane %v4420_v39, 1  ;;  %v4430_v27 = vrot.slane %v8113_v7, 1  ;;  %v4517_v58 = vrot.slane %v4508_v40, 2  ;;  %v8950_v4 = vrot.slane %v8118_v6, 2 }
 0x43c   :  { %v8127_v21 = vsel %vm126_vm0, %v4426_v37, %v4427_v61  ;;  %v4515_v63 = vrot.slane %v8121_v5, 2  ;;  %v4506_v19 = vmul.f32 %v4505_v1, %v7618_v60  ;;  %v9370_v24 = vrot.slane %v7194_v41, 2 }
 0x43d   :  { %v8138_v40 = vsel %vm126_vm0, %v4429_v57, %v4430_v27  ;;  %v2800_v39 = vadd.f32 %v7966_v11, %v2768_v20  ;;  %v8146_v1 = vsel %vm215_vm1, %v4517_v58, %v8950_v4  ;;  %v2798_v41 = vadd.f32 %v8029_v52, %v7936_v16 }
 0x43e   :  { %v2855_v9 = vadd.f32 %v9370_v24, %v2831_v10  ;;  %3186 = vrot.lane.b32.xlu0 %v3176_v53, %s5141_s1  ;;  %v4514_v37 = vrot.slane %v4506_v19, 2  ;;  %v2823_v10 = vpop.permute.xlu0 %2822  ;;  %v3199_v20 = vstv %s8109_s13  ;;  %v3177_v52 = vmul.f32 %v3173_v3, %v6654_v30 }
 0x43f   :  { %3184 = vrot.lane.b32.xlu2 %v3175_v32, %s5141_s1  ;;  %3182 = vrot.lane.b32.xlu1 %v3174_v34, %s5141_s1  ;;  %v2819_v57 = vpop.permute.xlu1 %2818  ;;  %v2832_v24 = vadd.f32 %v2823_v10, %v2800_v39  ;;  %v3201_v19 = vmul.f32 %v3199_v20, %v6644_v25  ;;  %v3200_v16 = vmul.f32 %v3199_v20, %v6642_v46  ;;  %v2881_v34 = vpop.permute.xlu2 %2880 }
 0x440   :  { %v8154_v11 = vsel %vm215_vm1, %v4514_v37, %v4515_v63  ;;  %v2830_v53 = vadd.f32 %v2819_v57, %v2798_v41  ;;  %v2801_v39 = vadd.f32 %v2793_v12, %v8010_v44  ;;  %v3203_v57 = vmul.f32 %v3199_v20, %v6654_v30 }
 0x441   :  { %v2856_v32 = vadd.f32 %v7248_v2, %v2832_v24  ;;  %v3202_v3 = vmul.f32 %v3199_v20, %v6646_v26  ;;  %v2923_v24 = vstv %s4948_s14 }
 0x442   :  { %v2854_v58 = vadd.f32 %v7227_v29, %v2830_v53  ;;  %v9371_v29 = vrot.slane %v7197_v48, 2  ;;  %v2924_v48 = vmul.f32 %v2923_v24, %v7618_v60  ;;  %v2926_v20 = vmul.f32 %v2923_v24, %v7622_v54 }
 0x444   :  { %v2886_v53 = vadd.f32 %v2875_v51, %v2854_v58 }
 0x446   :  { %3210 = vrot.lane.b32.xlu0 %v3201_v19, %s5142_s22  ;;  %v2877_v37 = vpop.permute.xlu0 %2876 }
 0x447   :  { %3208 = vrot.lane.b32.xlu2 %v3200_v16, %s5142_s22  ;;  %3188 = vrot.lane.b32.xlu1 %v3177_v52, %s5141_s1  ;;  %v2825_v2 = vpop.permute.xlu1 %2824  ;;  %v2911_v44 = vpop.permute.xlu2 %2910  ;;  %v2887_v58 = vadd.f32 %v2877_v37, %v2855_v9  ;;  %v9378_v37 = vld [vmem:[#allocation42_spill] sm:$0xff] }
 0x448   :  { %v2833_v41 = vadd.f32 %v2825_v2, %v2801_v39 }
 0x44a   :  { %v2857_v10 = vadd.f32 %v9371_v29, %v2833_v41 }
 0x44c   :  { %v2889_v51 = vadd.f32 %v2881_v34, %v2857_v10  ;;  %v2925_v34 = vmul.f32 %v2923_v24, %v7620_v18 }
 0x44e   :  { %3264 = vrot.lane.b32.xlu0 %v6809_v56, %s5141_s1  ;;  %v9372_v56 = vrot.slane %v6785_v8, 1 }
 0x44f   :  { %3214 = vrot.lane.b32.xlu2 %v3203_v57, %s5142_s22  ;;  %v2907_v12 = vpop.permute.xlu0 %2906  ;;  %3212 = vrot.lane.b32.xlu1 %v3202_v3, %s5142_s22  ;;  %v2879_v19 = vpop.permute.xlu1 %2878  ;;  %v9373_v57 = vld [vmem:[#allocation39_spill] sm:$0xff] }
 0x450   :  { %v2918_v16 = vadd.f32 %v2907_v12, %v2886_v53  ;;  %v2888_v52 = vadd.f32 %v2879_v19, %v2856_v32  ;;  %v9374_v3 = vrot.slane %v9373_v57, 1 }
 0x452   :  { %v2928_v39 = vadd.f32 %v2924_v48, %v2918_v16  ;;  %v2920_v2 = vadd.f32 %v2911_v44, %v2888_v52  ;;  %v2927_v44 = vmul.f32 %v2923_v24, %v7629_v47  ;;  %v9375_v16 = vld [vmem:[#allocation28_spill] sm:$0xff]  ;;  %v9382_v24 = vld [vmem:[#allocation38_spill] sm:$0xff] }
 0x453   :  { %v9379_v52 = vld [vmem:[#allocation80_spill] sm:$0xff] }
 0x454   :  { %v2930_v41 = vadd.f32 %v2926_v20, %v2920_v2  ;;  %v9380_v2 = vrot.slane %v9379_v52, 2  ;;  %v9381_v20 = vld [vmem:[#allocation37_spill] sm:$0xff] }
 0x456   :  { %3270 = vrot.lane.b32.xlu0 %v9372_v56, %s5141_s1 }
 0x457   :  { %3268 = vrot.lane.b32.xlu2 %v6824_v55, %s5141_s1  ;;  %v2913_v29 = vpop.permute.xlu0 %2912  ;;  %3266 = vrot.lane.b32.xlu1 %v9374_v3, %s5141_s1  ;;  %v9376_v55 = vld [vmem:[#allocation35_spill] sm:$0xff]  ;;  %v9387_v3 = vld [vmem:[#allocation50_spill] sm:$0xff] }
 0x458   :  { %v2909_v32 = vpop.permute.xlu1 %2908  ;;  %v2921_v53 = vadd.f32 %v2913_v29, %v2889_v51  ;;  %v2945_v12 = vpop.permute.xlu2 %2944  ;;  %v9377_v9 = vrot.slane %v9376_v55, 1  ;;  %v9383_v51 = vrot.slane %v9382_v24, 1  ;;  %v9385_v29 = vld [vmem:[#allocation31_spill] sm:$0xff] }
 0x459   :  { %v2919_v19 = vadd.f32 %v2909_v32, %v2887_v58  ;;  %v9384_v58 = vld [vmem:[#allocation48_spill] sm:$0xff]  ;;  %v9386_v57 = vrot.slane %v9385_v29, 2 }
 0x45a   :  { %v2931_v10 = vadd.f32 %v2927_v44, %v2921_v53 }
 0x45b   :  { %v2929_v8 = vadd.f32 %v2925_v34, %v2919_v19 }
 0x45d   :  { %v2955_v52 = vadd.f32 %v2945_v12, %v2929_v8  ;;  %v9394_v8 = vrot.slane %v7709_v23, 1 }
 0x45e   :  { %3300 = vrot.lane.b32.xlu0 %v9375_v16, %s5142_s22  ;;  %v9388_v16 = vld [vmem:[#allocation34_spill] sm:$0xff] }
 0x45f   :  { %3298 = vrot.lane.b32.xlu2 %v9377_v9, %s5142_s22  ;;  %3296 = vrot.lane.b32.xlu1 %v9378_v37, %s5142_s22  ;;  %v9389_v55 = vrot.slane %v9388_v16, 2  ;;  %v9390_v9 = vld [vmem:[#allocation51_spill] sm:$0xff] }
 0x460   :  { %v2969_v48 = vpop.permute.xlu2 %2968 }
 0x466   :  { %3354 = vrot.lane.b32.xlu0 %v9380_v2, %s5141_s1  ;;  %v9391_v2 = vld [vmem:[#allocation41_spill] sm:$0xff] }
 0x467   :  { %3352 = vrot.lane.b32.xlu2 %v9381_v20, %s5141_s1  ;;  %3302 = vrot.lane.b32.xlu1 %v9383_v51, %s5142_s22  ;;  %v9392_v20 = vrot.slane %v9391_v2, 2 }
 0x468   :  { %v2975_v56 = vpop.permute.xlu2 %2974 }
 0x46e   :  { %3384 = vrot.lane.b32.xlu0 %v9384_v58, %s5142_s22 }
 0x46f   :  { %3358 = vrot.lane.b32.xlu2 %v9386_v57, %s5141_s1  ;;  %3356 = vrot.lane.b32.xlu1 %v9387_v3, %s5141_s1  ;;  %v9393_v57 = vrot.slane %v7719_v62, 1 }
 0x470   :  { %v3029_v32 = vpop.permute.xlu2 %3028  ;;  %v2947_v53 = vpop.permute.xlu0 %2946 }
 0x471   :  { %v2943_v44 = vpop.permute.xlu1 %2942 }
 0x472   :  { %v2954_v19 = vadd.f32 %v2943_v44, %v2928_v39  ;;  %v3411_v39 = vstv %s4968_s15 }
 0x473   :  { %v3412_v12 = vmul.f32 %v3411_v39, %v7108_v36 }
 0x474   :  { %v2980_v34 = vadd.f32 %v2969_v48, %v2954_v19  ;;  %v3414_v19 = vmul.f32 %v3411_v39, %v7112_v22 }
 0x476   :  { %3390 = vrot.lane.b32.xlu0 %v9389_v55, %s5142_s22  ;;  %v3004_v37 = vadd.f32 %v7752_v14, %v2980_v34  ;;  %v3413_v14 = vmul.f32 %v3411_v39, %v7110_v49 }
 0x477   :  { %3388 = vrot.lane.b32.xlu2 %v9390_v9, %s5142_s22  ;;  %3386 = vrot.lane.b32.xlu1 %v9392_v20, %s5142_s22 }
 0x478   :  { %v3059_v24 = vpop.permute.xlu2 %3058  ;;  %v2971_v51 = vpop.permute.xlu0 %2970 }
 0x479   :  { %v2949_v58 = vpop.permute.xlu1 %2948  ;;  %v2981_v29 = vadd.f32 %v2971_v51, %v2955_v52  ;;  %v3415_v51 = vmul.f32 %v3411_v39, %v7128_v35  ;;  %v9396_v39 = vld [vmem:[#allocation29_spill] sm:$0xff] }
 0x47a   :  { %v2957_v48 = vadd.f32 %v2949_v58, %v2931_v10  ;;  %v2956_v10 = vadd.f32 %v2947_v53, %v2930_v41 }
 0x47b   :  { %v3005_v3 = vadd.f32 %v9393_v57, %v2981_v29  ;;  %v9395_v57 = vld [vmem:[#allocation73_spill] sm:$0xff] }
 0x47c   :  { %v2983_v44 = vadd.f32 %v2975_v56, %v2957_v48  ;;  %v3437_v56 = vstv %s4969_s16 }
 0x47d   :  { %v3439_v2 = vmul.f32 %v3437_v56, %v7110_v49  ;;  %v3438_v20 = vmul.f32 %v3437_v56, %v7108_v36  ;;  %v3441_v48 = vmul.f32 %v3437_v56, %v7128_v35 }
 0x47e   :  { %3424 = vrot.lane.b32.xlu0 %v3414_v19, %s5141_s1  ;;  %v3007_v34 = vadd.f32 %v9394_v8, %v2983_v44  ;;  %v9397_v44 = vrot.slane %v9396_v39, 2  ;;  %v9405_v39 = vld [vmem:[#allocation81_spill] sm:$0xff] }
 0x47f   :  { %3422 = vrot.lane.b32.xlu2 %v3413_v14, %s5141_s1  ;;  %3420 = vrot.lane.b32.xlu1 %v3412_v12, %s5141_s1 }
 0x480   :  { %v3113_v16 = vpop.permute.xlu2 %3112  ;;  %v3025_v62 = vpop.permute.xlu0 %3024 }
 0x481   :  { %v2973_v55 = vpop.permute.xlu1 %2972  ;;  %v3036_v12 = vadd.f32 %v3025_v62, %v3004_v37 }
 0x482   :  { %v2982_v9 = vadd.f32 %v2973_v55, %v2956_v10 }
 0x484   :  { %v3006_v52 = vadd.f32 %v7744_v33, %v2982_v9  ;;  %v3440_v33 = vmul.f32 %v3437_v56, %v7112_v22  ;;  %v9398_v9 = vld [vmem:[#allocation30_spill] sm:$0xff] }
 0x485   :  { %v9399_v56 = vld [vmem:[#allocation22_spill] sm:$0xff] }
 0x486   :  { %3448 = vrot.lane.b32.xlu0 %v3439_v2, %s5142_s22  ;;  %v3038_v14 = vadd.f32 %v3029_v32, %v3006_v52  ;;  %v9403_v52 = vld [vmem:[#allocation16_spill] sm:$0xff] }
 0x487   :  { %3446 = vrot.lane.b32.xlu2 %v3438_v20, %s5142_s22  ;;  %3426 = vrot.lane.b32.xlu1 %v3415_v51, %s5141_s1  ;;  %v9400_v51 = vld [vmem:[#allocation88_spill] sm:$0xff] }
 0x488   :  { %v3031_v41 = vpop.permute.xlu0 %3030 }
 0x489   :  { %v3119_v23 = vpop.permute.xlu2 %3118  ;;  %v3027_v53 = vpop.permute.xlu1 %3026 }
 0x48a   :  { %v3037_v58 = vadd.f32 %v3027_v53, %v3005_v3  ;;  %v9401_v53 = vld [vmem:[#allocation82_spill] sm:$0xff] }
 0x48c   :  { %v3069_v29 = vadd.f32 %v3059_v24, %v3037_v58  ;;  %v9402_v58 = vrot.slane %v9401_v53, 1  ;;  %v3163_v53 = vstv %s4958_s17 }
 0x48e   :  { %3502 = vrot.lane.b32.xlu0 %v9395_v57, %s5141_s1  ;;  %v3093_v19 = vadd.f32 %v9397_v44, %v3069_v29  ;;  %v3039_v29 = vadd.f32 %v3031_v41, %v3007_v34  ;;  %v9406_v44 = vrot.slane %v9405_v39, 1 }
 0x48f   :  { %3452 = vrot.lane.b32.xlu2 %v3441_v48, %s5142_s22  ;;  %3450 = vrot.lane.b32.xlu1 %v3440_v33, %s5142_s22  ;;  %v9404_v33 = vrot.slane %v9403_v52, 2 }
 0x490   :  { %v3061_v10 = vpop.permute.xlu0 %3060 }
 0x491   :  { %v3149_v8 = vpop.permute.xlu2 %3148  ;;  %v3057_v3 = vpop.permute.xlu1 %3056  ;;  %v3070_v24 = vadd.f32 %v3061_v10, %v3038_v14  ;;  %v9407_v14 = vld [vmem:[#allocation76_spill] sm:$0xff] }
 0x492   :  { %v3068_v55 = vadd.f32 %v3057_v3, %v3036_v12 }
 0x493   :  { %v3094_v2 = vadd.f32 %v9398_v9, %v3070_v24  ;;  %v9408_v9 = vld [vmem:[#allocation85_spill] sm:$0xff] }
 0x494   :  { %v3092_v20 = vadd.f32 %v9399_v56, %v3068_v55  ;;  %v9409_v56 = vrot.slane %v9408_v9, 1  ;;  %v3165_v9 = vmul.f32 %v3163_v53, %v6644_v25 }
 0x496   :  { %v3124_v34 = vadd.f32 %v3113_v16, %v3092_v20  ;;  %v3161_v16 = vstv %s4957_s5 }
 0x497   :  { %3506 = vrot.lane.b32.xlu2 %v9400_v51, %s5141_s1  ;;  %3504 = vrot.lane.b32.xlu1 %v9402_v58, %s5141_s1 }
 0x498   :  { %v3115_v32 = vpop.permute.xlu0 %3114 }
 0x499   :  { %v3185_v48 = vpop.permute.xlu2 %3184  ;;  %v3063_v37 = vpop.permute.xlu1 %3062  ;;  %v3125_v58 = vadd.f32 %v3115_v32, %v3093_v19  ;;  %v9410_v32 = vld [vmem:[#allocation90_spill] sm:$0xff] }
 0x49a   :  { %v3071_v62 = vadd.f32 %v3063_v37, %v3039_v29 }
 0x49c   :  { %v3095_v57 = vadd.f32 %v9404_v33, %v3071_v62 }
 0x49e   :  { %v3127_v51 = vadd.f32 %v3119_v23, %v3095_v57 }
 0x49f   :  { %3536 = vrot.lane.b32.xlu2 %v9406_v44, %s5142_s22  ;;  %3534 = vrot.lane.b32.xlu1 %v9407_v14, %s5142_s22  ;;  %v3164_v14 = vmul.f32 %v3163_v53, %v6642_v46 }
 0x4a0   :  { %v3145_v10 = vpop.permute.xlu0 %3144 }
 0x4a1   :  { %v3209_v12 = vpop.permute.xlu2 %3208  ;;  %v3117_v3 = vpop.permute.xlu1 %3116  ;;  %v3156_v41 = vadd.f32 %v3145_v10, %v3124_v34 }
 0x4a2   :  { %v3126_v24 = vadd.f32 %v3117_v3, %v3094_v2  ;;  %v3166_v2 = vmul.f32 %v3163_v53, %v6646_v26 }
 0x4a3   :  { %v4592_v29 = vmax.f32 %v3156_v41, 0.0  ;;  %v3168_v41 = vadd.f32 %v3164_v14, %v3161_v16  ;;  %v9411_v14 = vld [vmem:[#allocation87_spill] sm:$0xff] }
 0x4a4   :  { %v3158_v55 = vadd.f32 %v3149_v8, %v3126_v24  ;;  %v3170_v10 = vadd.f32 %v3166_v2, %v3161_v16  ;;  %v3169_v2 = vadd.f32 %v3165_v9, %v3161_v16 }
 0x4a5   :  { %v8260_v20 = vmin.f32 %v4592_v29, 6.0 }
 0x4a6   :  { %v4594_v39 = vmax.f32 %v3158_v55, 0.0 }
 0x4a7   :  { %3508 = vrot.lane.b32.xlu2 %v9409_v56, %s5141_s1  ;;  %v4617_v3 = vsel %vm4616_vm13, %v8260_v20, 0.0 }
 0x4a8   :  { %v3151_v62 = vpop.permute.xlu0 %3150  ;;  %v8263_v57 = vmin.f32 %v4594_v39, 6.0 }
 0x4a9   :  { %v3215_v37 = vpop.permute.xlu2 %3214  ;;  %v3147_v52 = vpop.permute.xlu1 %3146  ;;  %v3159_v33 = vadd.f32 %v3151_v62, %v3127_v51 }
 0x4aa   :  { %v3157_v44 = vadd.f32 %v3147_v52, %v3125_v58  ;;  %v4621_v52 = vsel %vm4616_vm13, %v8263_v57, 0.0 }
 0x4ab   :  { %v4595_v23 = vmax.f32 %v3159_v33, 0.0 }
 0x4ac   :  { %v4593_v8 = vmax.f32 %v3157_v44, 0.0  ;;  %v3167_v44 = vmul.f32 %v3163_v53, %v6654_v30 }
 0x4ad   :  { %v8274_v51 = vmin.f32 %v4595_v23, 6.0 }
 0x4ae   :  { %v8265_v19 = vmin.f32 %v4593_v8, 6.0 }
 0x4af   :  { %3538 = vrot.lane.b32.xlu2 %v9410_v32, %s5142_s22  ;;  %v4623_v8 = vsel %vm4618_vm14, %v8274_v51, 0.0  ;;  %v9412_v32 = vrot.slane %v9411_v14, 1 }
 0x4b0   :  { %v4619_v24 = vsel %vm4618_vm14, %v8265_v19, 0.0  ;;  %v3187_v55 = vpop.permute.xlu0 %3186 }
 0x4b1   :  { %v3269_v34 = vpop.permute.xlu2 %3268  ;;  %v4620_v56 = vadd.f32 %v4619_v24, %v4617_v3  ;;  %v3183_v58 = vpop.permute.xlu1 %3182  ;;  %v3196_v29 = vadd.f32 %v3187_v55, %v3170_v10  ;;  %v9413_v3 = vld [vmem:[#allocation43_spill] sm:$0xff]  ;;  %v3195_v10 = vadd.f32 %v3185_v48, %v3169_v2  ;;  %v4636_v48 = vmul.f32 %v8263_v57, %v8263_v57 }
 0x4b2   :  { %v3194_v62 = vadd.f32 %v3183_v58, %v3168_v41  ;;  %v4635_v41 = vmul.f32 %v8265_v19, %v8265_v19  ;;  %v4634_v58 = vmul.f32 %v8260_v20, %v8260_v20 }
 0x4b3   :  { %v4622_v33 = vadd.f32 %v4621_v52, %v4620_v56  ;;  %v3171_v56 = vadd.f32 %v3167_v44, %v3161_v16  ;;  %v9414_v52 = vld [vmem:[#allocation45_spill] sm:$0xff]  ;;  %v9416_v16 = vld [vmem:[#allocation91_spill] sm:$0xff]  ;;  %v9417_v44 = vld [vmem:[#allocation44_spill] sm:$0xff] }
 0x4b4   :  { %v3220_v39 = vadd.f32 %v3209_v12, %v3194_v62  ;;  %v9415_v14 = vrot.slane %v9414_v52, 1  ;;  %v4638_v2 = vsel %vm4616_vm13, %v4634_v58, 0.0  ;;  %v9419_v52 = vld [vmem:[#allocation47_spill] sm:$0xff] }
 0x4b5   :  { %v4624_v23 = vadd.f32 %v4623_v8, %v4622_v33  ;;  %v4639_v33 = vsel %vm4618_vm14, %v4635_v41, 0.0  ;;  %v9418_v8 = vrot.slane %v9417_v44, 1  ;;  %v4637_v41 = vmul.f32 %v8274_v51, %v8274_v51 }
 0x4b6   :  { %v3244_v24 = vadd.f32 %v9413_v3, %v3220_v39  ;;  %v4640_v3 = vadd.f32 %v4639_v33, %v4638_v2 }
 0x4b7   :  { %3540 = vrot.lane.b32.xlu2 %v9412_v32, %s5142_s22 }
 0x4b8   :  { %4625 = vadd.xlane.f32.xlu0 %v4624_v23  ;;  %v3211_v12 = vpop.permute.xlu0 %3210 }
 0x4b9   :  { %v3299_v55 = vpop.permute.xlu2 %3298  ;;  %v3189_v53 = vpop.permute.xlu1 %3188  ;;  %v3221_v9 = vadd.f32 %v3211_v12, %v3195_v10 }
 0x4ba   :  { %v3197_v62 = vadd.f32 %v3189_v53, %v3171_v56 }
 0x4bb   :  { %v3245_v32 = vadd.f32 %v9415_v14, %v3221_v9  ;;  %v4641_v9 = vsel %vm4616_vm13, %v4636_v48, 0.0  ;;  %v9420_v14 = vld [vmem:[#allocation86_spill] sm:$0xff]  ;;  %v9423_v48 = vld [vmem:[#allocation83_spill] sm:$0xff] }
 0x4bc   :  { %v3223_v39 = vadd.f32 %v3215_v37, %v3197_v62  ;;  %v4642_v62 = vadd.f32 %v4641_v9, %v4640_v3  ;;  %v9424_v3 = vrot.slane %v9423_v48, 2 }
 0x4be   :  { %v3247_v23 = vadd.f32 %v9418_v8, %v3223_v39 }
 0x4bf   :  { %3590 = vrot.lane.b32.xlu2 %v9416_v16, %s5141_s1  ;;  %v4643_v16 = vsel %vm4618_vm14, %v4637_v41, 0.0 }
 0x4c0   :  { %v3265_v56 = vpop.permute.xlu0 %3264  ;;  %v4644_v39 = vadd.f32 %v4643_v16, %v4642_v62 }
 0x4c1   :  { %v3353_v10 = vpop.permute.xlu2 %3352  ;;  %v3213_v12 = vpop.permute.xlu1 %3212  ;;  %v3276_v53 = vadd.f32 %v3265_v56, %v3244_v24 }
 0x4c2   :  { %v3222_v37 = vadd.f32 %v3213_v12, %v3196_v29  ;;  %v9421_v29 = vld [vmem:[#allocation84_spill] sm:$0xff] }
 0x4c3   :  { %v9422_v12 = vrot.slane %v9421_v29, 2  ;;  %v9430_v29 = vld [vmem:[#allocation79_spill] sm:$0xff] }
 0x4c4   :  { %v3246_v58 = vadd.f32 %v9419_v52, %v3222_v37  ;;  %v9425_v37 = vld [vmem:[#allocation46_spill] sm:$0xff] }
 0x4c5   :  { %v9426_v9 = vrot.slane %v9425_v37, 2 }
 0x4c6   :  { %v3278_v41 = vadd.f32 %v3269_v34, %v3246_v58 }
 0x4c7   :  { %3594 = vrot.lane.b32.xlu2 %v9420_v14, %s5141_s1 }
 0x4c8   :  { %v3271_v2 = vpop.permute.xlu0 %3270 }
 0x4c9   :  { %v3359_v33 = vpop.permute.xlu2 %3358  ;;  %v3267_v44 = vpop.permute.xlu1 %3266  ;;  %4645 = vadd.xlane.f32.xlu1 %v4644_v39  ;;  %v3279_v24 = vadd.f32 %v3271_v2, %v3247_v23  ;;  %v9428_v2 = vld [vmem:[#allocation40_spill] sm:$0xff] }
 0x4ca   :  { %v3277_v8 = vadd.f32 %v3267_v44, %v3245_v32  ;;  %v9427_v32 = vld [vmem:[#allocation54_spill] sm:$0xff] }
 0x4cc   :  { %v3309_v56 = vadd.f32 %v3299_v55, %v3277_v8  ;;  %3592 = vrot.lane.b32.xlu0 %v9422_v12, %s5141_s1  ;;  %v9429_v8 = vld [vmem:[#allocation94_spill] sm:$0xff]  ;;  %v9431_v12 = vrot.slane %v9430_v29, 2 }
 0x4ce   :  { %v3333_v52 = vadd.f32 %v9426_v9, %v3309_v56  ;;  %v3649_v56 = vstv %s4977_s18  ;;  %v9432_v9 = vld [vmem:[#allocation53_spill] sm:$0xff] }
 0x4cf   :  { %3624 = vrot.lane.b32.xlu2 %v9424_v3, %s5142_s22 }
 0x4d0   :  { %v3301_v14 = vpop.permute.xlu0 %3300 }
 0x4d1   :  { %v3389_v62 = vpop.permute.xlu2 %3388  ;;  %v3297_v16 = vpop.permute.xlu1 %3296  ;;  %v3310_v39 = vadd.f32 %v3301_v14, %v3278_v41  ;;  %v9433_v41 = vrot.slane %v9432_v9, 2  ;;  %v3652_v9 = vmul.f32 %v3649_v56, %v7622_v54 }
 0x4d2   :  { %v3308_v23 = vadd.f32 %v3297_v16, %v3276_v53  ;;  %v3650_v53 = vmul.f32 %v3649_v56, %v7618_v60  ;;  %v9434_v16 = vld [vmem:[#allocation97_spill] sm:$0xff] }
 0x4d3   :  { %v3334_v55 = vadd.f32 %v9427_v32, %v3310_v39  ;;  %v9435_v39 = vrot.slane %v9434_v16, 2 }
 0x4d4   :  { %v3332_v44 = vadd.f32 %v9428_v2, %v3308_v23  ;;  %3626 = vrot.lane.b32.xlu0 %v9429_v8, %s5142_s22  ;;  %v3401_v23 = vstv %s4967_s19  ;;  %v3675_v2 = vstv %s4978_s12 }
 0x4d6   :  { %v3364_v32 = vadd.f32 %v3353_v10, %v3332_v44  ;;  %v3404_v10 = vmul.f32 %v3401_v23, %v7112_v22 }
 0x4d7   :  { %3596 = vrot.lane.b32.xlu2 %v9431_v12, %s5141_s1 }
 0x4d8   :  { %v3355_v58 = vpop.permute.xlu0 %3354 }
 0x4d9   :  { %v3423_v34 = vpop.permute.xlu2 %3422  ;;  %v3303_v48 = vpop.permute.xlu1 %3302  ;;  %v3365_v3 = vadd.f32 %v3355_v58, %v3333_v52  ;;  %v9436_v58 = vld [vmem:[#allocation93_spill] sm:$0xff] }
 0x4da   :  { %v3311_v37 = vadd.f32 %v3303_v48, %v3279_v24  ;;  %v3402_v24 = vmul.f32 %v3401_v23, %v7108_v36  ;;  %v3676_v48 = vmul.f32 %v3675_v2, %v7618_v60 }
 0x4dc   :  { %v3335_v14 = vadd.f32 %v9433_v41, %v3311_v37  ;;  %3658 = vrot.lane.b32.xlu0 %v3650_v53, %s5141_s1 }
 0x4de   :  { %v3367_v41 = vadd.f32 %v3359_v33, %v3335_v14  ;;  %v3653_v33 = vmul.f32 %v3649_v56, %v7629_v47 }
 0x4df   :  { %3628 = vrot.lane.b32.xlu2 %v9435_v39, %s5142_s22 }
 0x4e0   :  { %v3385_v29 = vpop.permute.xlu0 %3384 }
 0x4e1   :  { %v3447_v8 = vpop.permute.xlu2 %3446  ;;  %v3357_v12 = vpop.permute.xlu1 %3356  ;;  %v3396_v4 = vadd.f32 %v3385_v29, %v3364_v32 }
 0x4e2   :  { %v3366_v52 = vadd.f32 %v3357_v12, %v3334_v55  ;;  %3622 = vrot.lane.b32.xlu1 %v9436_v58, %s5142_s22  ;;  %v3651_v55 = vmul.f32 %v3649_v56, %v7620_v18  ;;  %v3405_v12 = vmul.f32 %v3401_v23, %v7128_v35  ;;  %v9438_v56 = vld [vmem:[#allocation102_spill] sm:$0xff] }
 0x4e3   :  { %v3406_v37 = vadd.f32 %v3402_v24, %v3396_v4  ;;  %v3403_v4 = vmul.f32 %v3401_v23, %v7110_v49  ;;  %v3678_v24 = vmul.f32 %v3675_v2, %v7622_v54 }
 0x4e4   :  { %v3398_v53 = vadd.f32 %v3389_v62, %v3366_v52  ;;  %3684 = vrot.lane.b32.xlu0 %v3676_v48, %s5142_s22 }
 0x4e6   :  { %v3408_v44 = vadd.f32 %v3404_v10, %v3398_v53  ;;  %v3677_v53 = vmul.f32 %v3675_v2, %v7620_v18 }
 0x4e7   :  { %3662 = vrot.lane.b32.xlu2 %v3652_v9, %s5141_s1 }
 0x4e8   :  { %v3391_v39 = vpop.permute.xlu0 %3390 }
 0x4e9   :  { %v3453_v16 = vpop.permute.xlu2 %3452  ;;  %v3387_v32 = vpop.permute.xlu1 %3386  ;;  %v3399_v29 = vadd.f32 %v3391_v39, %v3367_v41  ;;  %v9437_v41 = vrot.slane %v7789_v0, 1 }
 0x4ea   :  { %v3397_v62 = vadd.f32 %v3387_v32, %v3365_v3  ;;  %3660 = vrot.lane.b32.xlu1 %v3651_v55, %s5141_s1 }
 0x4eb   :  { %v3409_v52 = vadd.f32 %v3405_v12, %v3399_v29  ;;  %v3679_v12 = vmul.f32 %v3675_v2, %v7629_v47 }
 0x4ec   :  { %v3407_v58 = vadd.f32 %v3403_v4, %v3397_v62  ;;  %3688 = vrot.lane.b32.xlu0 %v3678_v24, %s5142_s22 }
 0x4ee   :  { %v3433_v55 = vadd.f32 %v3423_v34, %v3407_v58  ;;  %v9444_v34 = vld [vmem:[#allocation96_spill] sm:$0xff] }
 0x4ef   :  { %3664 = vrot.lane.b32.xlu2 %v3653_v33, %s5141_s1  ;;  %v9441_v33 = vld [vmem:[#allocation32_spill] sm:$0xff]  ;;  %v9445_v58 = vrot.slane %v9444_v34, 1  ;;  %v9454_v34 = vld [vmem:[#allocation19_spill] sm:$0xff] }
 0x4f0   :  { %v3425_v48 = vpop.permute.xlu0 %3424 }
 0x4f1   :  { %v3507_v14 = vpop.permute.xlu2 %3506  ;;  %v3421_v9 = vpop.permute.xlu1 %3420  ;;  %v3434_v10 = vadd.f32 %v3425_v48, %v3408_v44  ;;  %v9442_v48 = vrot.slane %v9441_v33, 1  ;;  %v9453_v33 = vld [vmem:[#allocation103_spill] sm:$0xff] }
 0x4f2   :  { %v3432_v23 = vadd.f32 %v3421_v9, %v3406_v37  ;;  %3686 = vrot.lane.b32.xlu1 %v3677_v53, %s5142_s22 }
 0x4f4   :  { %v3458_v3 = vadd.f32 %v3447_v8, %v3432_v23  ;;  %3742 = vrot.lane.b32.xlu0 %v9437_v41, %s5141_s1  ;;  %v9439_v8 = vld [vmem:[#allocation99_spill] sm:$0xff] }
 0x4f5   :  { %v9440_v62 = vrot.slane %v9439_v8, 1 }
 0x4f6   :  { %v3482_v39 = vadd.f32 %v9438_v56, %v3458_v3  ;;  %v9446_v56 = vld [vmem:[#allocation24_spill] sm:$0xff] }
 0x4f7   :  { %3740 = vrot.lane.b32.xlu2 %v7821_v38, %s5141_s1  ;;  %v9443_v38 = vld [vmem:[#allocation13_spill] sm:$0xff] }
 0x4f8   :  { %v3449_v29 = vpop.permute.xlu0 %3448 }
 0x4f9   :  { %v3537_v32 = vpop.permute.xlu2 %3536  ;;  %v3427_v4 = vpop.permute.xlu1 %3426  ;;  %v3459_v44 = vadd.f32 %v3449_v29, %v3433_v55  ;;  %v9448_v29 = vld [vmem:[#allocation10_spill] sm:$0xff] }
 0x4fa   :  { %v3435_v37 = vadd.f32 %v3427_v4, %v3409_v52  ;;  %3690 = vrot.lane.b32.xlu1 %v3679_v12, %s5142_s22  ;;  %v9449_v12 = vrot.slane %v9448_v29, 1  ;;  %v9450_v4 = vld [vmem:[#allocation25_spill] sm:$0xff] }
 0x4fb   :  { %v3483_v24 = vadd.f32 %v9440_v62, %v3459_v44  ;;  %v9462_v29 = vld [vmem:[#allocation33_spill] sm:$0xff] }
 0x4fc   :  { %v3461_v0 = vadd.f32 %v3453_v16, %v3435_v37  ;;  %3774 = vrot.lane.b32.xlu0 %v9442_v48, %s5142_s22  ;;  %v9447_v16 = vld [vmem:[#allocation89_spill] sm:$0xff] }
 0x4fe   :  { %v3485_v53 = vadd.f32 %v9445_v58, %v3461_v0  ;;  %v9455_v58 = vrot.slane %v9454_v34, 2 }
 0x4ff   :  { %3772 = vrot.lane.b32.xlu2 %v9443_v38, %s5142_s22 }
 0x500   :  { %v3503_v9 = vpop.permute.xlu0 %3502 }
 0x501   :  { %v3509_v2 = vpop.permute.xlu2 %3508  ;;  %v3451_v52 = vpop.permute.xlu1 %3450  ;;  %v3514_v3 = vadd.f32 %v3503_v9, %v3482_v39  ;;  %v9451_v39 = vld [vmem:[#allocation36_spill] sm:$0xff] }
 0x502   :  { %v3517_v23 = vadd.f32 %v3509_v2, %v3485_v53  ;;  %v3460_v41 = vadd.f32 %v3451_v52, %v3434_v10  ;;  %3744 = vrot.lane.b32.xlu1 %v9446_v56, %s5141_s1  ;;  %v9452_v10 = vrot.slane %v9451_v39, 1  ;;  %v9457_v52 = vld [vmem:[#allocation95_spill] sm:$0xff]  ;;  %v9467_v39 = vld [vmem:[#allocation114_spill] sm:$0xff] }
 0x504   :  { %v3484_v55 = vadd.f32 %v9447_v16, %v3460_v41  ;;  %3778 = vrot.lane.b32.xlu0 %v9449_v12, %s5142_s22  ;;  %v9458_v41 = vrot.slane %v9457_v52, 2  ;;  %v9463_v12 = vrot.slane %v9462_v29, 2 }
 0x506   :  { %v3516_v44 = vadd.f32 %v3507_v14, %v3484_v55 }
 0x507   :  { %3776 = vrot.lane.b32.xlu2 %v9450_v4, %s5142_s22  ;;  %v3889_v4 = vstv %s4987_s0 }
 0x509   :  { %v3539_v37 = vpop.permute.xlu2 %3538  ;;  %v3505_v62 = vpop.permute.xlu1 %3504 }
 0x50a   :  { %v3548_v8 = vadd.f32 %v3539_v37, %v3516_v44  ;;  %v3515_v0 = vadd.f32 %v3505_v62, %v3483_v24  ;;  %3746 = vrot.lane.b32.xlu1 %v9452_v10, %s5141_s1  ;;  %v9456_v24 = vld [vmem:[#allocation115_spill] sm:$0xff]  ;;  %v9464_v44 = vld [vmem:[#allocation116_spill] sm:$0xff]  ;;  %v3890_v37 = vmul.f32 %v3889_v4, %v6642_v46  ;;  %v9468_v10 = vrot.slane %v9467_v39, 2 }
 0x50c   :  { %v3572_v48 = vadd.f32 %v9453_v33, %v3548_v8  ;;  %v3547_v38 = vadd.f32 %v3537_v32, %v3515_v0  ;;  %3832 = vrot.lane.b32.xlu0 %v7868_v43, %s5141_s1  ;;  %v9459_v32 = vld [vmem:[#allocation23_spill] sm:$0xff]  ;;  %v9461_v43 = vld [vmem:[#allocation92_spill] sm:$0xff]  ;;  %v3915_v33 = vstv %s4988_s20 }
 0x50d   :  { %v9460_v16 = vrot.slane %v9459_v32, 2  ;;  %v9465_v8 = vld [vmem:[#allocation100_spill] sm:$0xff] }
 0x50e   :  { %v9466_v62 = vrot.slane %v9465_v8, 2  ;;  %v3639_v8 = vstv %s4976_s21  ;;  %s5017_s21 = sld [smem:[#allocation5 + $0xb0]] }
 0x50f   :  { %3830 = vrot.lane.b32.xlu2 %v9455_v58, %s5141_s1 }
 0x510   :  { %v3571_v0 = vadd.f32 %v9466_v62, %v3547_v38 }
 0x511   :  { %v3541_v14 = vpop.permute.xlu2 %3540  ;;  %v3535_v2 = vpop.permute.xlu1 %3534 }
 0x512   :  { %v3549_v53 = vadd.f32 %v3541_v14, %v3517_v23  ;;  %v3546_v9 = vadd.f32 %v3535_v2, %v3514_v3  ;;  %3828 = vrot.lane.b32.xlu1 %v9456_v24, %s5141_s1  ;;  %v9469_v14 = vld [vmem:[#allocation117_spill] sm:$0xff]  ;;  %v3892_v2 = vmul.f32 %v3889_v4, %v6646_v26  ;;  %v3918_v24 = vmul.f32 %v3915_v33, %v6646_v26 }
 0x514   :  { %v3573_v56 = vadd.f32 %v9458_v41, %v3549_v53  ;;  %3834 = vrot.lane.b32.xlu0 %v9460_v16, %s5141_s1  ;;  %v3570_v55 = vadd.f32 %v9461_v43, %v3546_v9  ;;  %v3916_v53 = vmul.f32 %v3915_v33, %v6642_v46  ;;  %v3891_v9 = vmul.f32 %v3889_v4, %v6644_v25 }
 0x515   :  { %v3893_v41 = vmul.f32 %v3889_v4, %v6654_v30 }
 0x517   :  { %3862 = vrot.lane.b32.xlu2 %v9463_v12, %s5142_s22  ;;  %v9470_v12 = vld [vmem:[#allocation57_spill] sm:$0xff] }
 0x519   :  { %v3591_v23 = vpop.permute.xlu2 %3590 }
 0x51a   :  { %v8391_v3 = vadd.f32 %v3591_v23, %v3570_v55  ;;  %3860 = vrot.lane.b32.xlu1 %v9464_v44, %s5142_s22  ;;  %v3917_v55 = vmul.f32 %v3915_v33, %v6644_v25  ;;  %v9471_v23 = vrot.slane %v9470_v12, 1 }
 0x51c   :  { %3898 = vrot.lane.b32.xlu0 %v3890_v37, %s5141_s1  ;;  %v9472_v37 = vld [vmem:[#allocation49_spill] sm:$0xff] }
 0x51f   :  { %3866 = vrot.lane.b32.xlu2 %v9468_v10, %s5142_s22  ;;  %v3919_v10 = vmul.f32 %v3915_v33, %v6654_v30 }
 0x521   :  { %v3595_v34 = vpop.permute.xlu2 %3594 }
 0x522   :  { %v3604_v58 = vadd.f32 %v3595_v34, %v3572_v48  ;;  %3864 = vrot.lane.b32.xlu1 %v9469_v14, %s5142_s22  ;;  %v3643_v14 = vmul.f32 %v3639_v8, %v7629_v47 }
 0x524   :  { %3924 = vrot.lane.b32.xlu0 %v3916_v53, %s5142_s22 }
 0x527   :  { %3902 = vrot.lane.b32.xlu2 %v3892_v2, %s5141_s1 }
 0x529   :  { %v3625_v38 = vpop.permute.xlu2 %3624 }
 0x52a   :  { %3900 = vrot.lane.b32.xlu1 %v3891_v9, %s5141_s1  ;;  %v9473_v9 = vld [vmem:[#allocation60_spill] sm:$0xff] }
 0x52b   :  { %v4626_v52 = vpop.xlane.xlu0 %4625 }
 0x52c   :  { %v4627_v48 = vrot.slane %v4626_v52, 4  ;;  %3928 = vrot.lane.b32.xlu0 %v3918_v24, %s5142_s22  ;;  %v9474_v24 = vrot.slane %v9473_v9, 1 }
 0x52e   :  { %v4628_v32 = vadd.f32 %v4627_v48, %v4626_v52  ;;  %v9475_v48 = vld [vmem:[#allocation63_spill] sm:$0xff] }
 0x52f   :  { %3904 = vrot.lane.b32.xlu2 %v3893_v41, %s5141_s1 }
 0x530   :  { %v4629_v16 = vrot.slane %v4628_v32, 2 }
 0x531   :  { %v3597_v43 = vpop.permute.xlu2 %3596 }
 0x532   :  { %3926 = vrot.lane.b32.xlu1 %v3917_v55, %s5142_s22  ;;  %v4630_v29 = vadd.f32 %v4629_v16, %v4628_v32  ;;  %v3605_v62 = vadd.f32 %v3597_v43, %v3573_v56  ;;  %v3641_v55 = vmul.f32 %v3639_v8, %v7620_v18 }
 0x534   :  { %3982 = vrot.lane.b32.xlu0 %v9471_v23, %s5141_s1  ;;  %v4631_v44 = vrot.slane %v4630_v29, 1 }
 0x536   :  { %v4632_v4 = vadd.f32 %v4631_v44, %v4630_v29  ;;  %v9476_v29 = vld [vmem:[#allocation52_spill] sm:$0xff]  ;;  %v9477_v44 = vld [vmem:[#allocation62_spill] sm:$0xff] }
 0x537   :  { %3980 = vrot.lane.b32.xlu2 %v9472_v37, %s5141_s1  ;;  %v9478_v37 = vrot.slane %v9477_v44, 1 }
 0x538   :  { %5037 = vpush %v4632_v4 }
 0x539   :  { %v3629_v39 = vpop.permute.xlu2 %3628 }
 0x53a   :  { %v3637_v34 = vadd.f32 %v3629_v39, %v3605_v62  ;;  %3930 = vrot.lane.b32.xlu1 %v3919_v10, %s5142_s22  ;;  %v9479_v62 = vld [vmem:[#allocation55_spill] sm:$0xff] }
 0x53c   :  { %v8424_v53 = vadd.f32 %v3643_v14, %v3637_v34  ;;  %v4646_v2 = vpop.xlane.xlu1 %4645  ;;  %4014 = vrot.lane.b32.xlu0 %v9474_v24, %s5142_s22  ;;  %v9482_v24 = vld [vmem:[#allocation66_spill] sm:$0xff] }
 0x53d   :  { %v4647_v52 = vrot.slane %v4646_v2, 4 }
 0x53e   :  { %v3593_v56 = vpop.permute.xlu0 %3592 }
 0x53f   :  { %4012 = vrot.lane.b32.xlu2 %v9475_v48, %s5142_s22  ;;  %v4648_v41 = vadd.f32 %v4647_v52, %v4646_v2  ;;  %v3603_v32 = vadd.f32 %v3593_v56, %v3571_v0  ;;  %v3642_v0 = vmul.f32 %v3639_v8, %v7622_v54  ;;  %v9480_v2 = vld [vmem:[#allocation56_spill] sm:$0xff]  ;;  %v9483_v52 = vld [vmem:[#allocation65_spill] sm:$0xff] }
 0x540   :  { %v9481_v9 = vrot.slane %v9480_v2, 1  ;;  %v9484_v48 = vrot.slane %v9483_v52, 2 }
 0x541   :  { %v3663_v33 = vpop.permute.xlu2 %3662  ;;  %v4649_v16 = vrot.slane %v4648_v41, 2  ;;  %v3635_v43 = vadd.f32 %v3625_v38, %v3603_v32 }
 0x542   :  { %3984 = vrot.lane.b32.xlu1 %v9476_v29, %s5141_s1 }
 0x543   :  { %v4650_v12 = vadd.f32 %v4649_v16, %v4648_v41  ;;  %v3645_v23 = vadd.f32 %v3641_v55, %v3635_v43  ;;  %v9486_v16 = vld [vmem:[#allocation59_spill] sm:$0xff]  ;;  %v3640_v55 = vmul.f32 %v3639_v8, %v7618_v60 }
 0x544   :  { %4018 = vrot.lane.b32.xlu0 %v9478_v37, %s5142_s22  ;;  %v9487_v43 = vrot.slane %v9486_v16, 2 }
 0x545   :  { %v4651_v4 = vrot.slane %v4650_v12, 1 }
 0x546   :  { %v3627_v39 = vpop.permute.xlu0 %3626 }
 0x547   :  { %4016 = vrot.lane.b32.xlu2 %v9479_v62, %s5142_s22  ;;  %v3636_v10 = vadd.f32 %v3627_v39, %v3604_v58  ;;  %v4652_v38 = vadd.f32 %v4651_v4, %v4650_v12  ;;  %v9485_v58 = vld [vmem:[#allocation61_spill] sm:$0xff]  ;;  %v9488_v12 = vld [vmem:[#allocation58_spill] sm:$0xff]  ;;  %v4127_v62 = vstv %s4996_s23 }
 0x548   :  { %v9489_v44 = vrot.slane %v9488_v12, 2 }
 0x549   :  { %v3665_v34 = vpop.permute.xlu2 %3664  ;;  %v3646_v14 = vadd.f32 %v3642_v0, %v3636_v10  ;;  %5039 = vpush %v4652_v38  ;;  %v9490_v10 = vld [vmem:[#allocation69_spill] sm:$0xff]  ;;  %v4128_v38 = vmul.f32 %v4127_v62, %v7108_v36 }
 0x54a   :  { %3986 = vrot.lane.b32.xlu1 %v9481_v9, %s5141_s1 }
 0x54b   :  { %v3672_v8 = vadd.f32 %v3663_v33, %v3646_v14 }
 0x54c   :  { %4072 = vrot.lane.b32.xlu0 %v9482_v24, %s5141_s1  ;;  %v9491_v24 = vld [vmem:[#allocation72_spill] sm:$0xff] }
 0x54d   :  { %v9492_v52 = vrot.slane %v9491_v24, 2  ;;  %v9495_v24 = vrot.slane %v7914_v59, 1  ;;  %v9499_v59 = vld [vmem:[#allocation111_spill] sm:$0xff] }
 0x54e   :  { %v3659_v56 = vpop.permute.xlu0 %3658 }
 0x54f   :  { %4070 = vrot.lane.b32.xlu2 %v9484_v48, %s5141_s1 }
 0x551   :  { %v3741_v41 = vpop.permute.xlu2 %3740 }
 0x552   :  { %4068 = vrot.lane.b32.xlu1 %v9485_v58, %s5141_s1 }
 0x554   :  { %v3623_v32 = vpop.permute.xlu1 %3622  ;;  %4074 = vrot.lane.b32.xlu0 %v9487_v43, %s5141_s1  ;;  %v9493_v43 = vld [vmem:[#allocation68_spill] sm:$0xff] }
 0x555   :  { %v3634_v29 = vadd.f32 %v3623_v32, %v8391_v3  ;;  %v4153_v32 = vstv %s4997_s24 }
 0x556   :  { %v3685_v37 = vpop.permute.xlu0 %3684 }
 0x557   :  { %4102 = vrot.lane.b32.xlu2 %v9489_v44, %s5142_s22  ;;  %v3644_v4 = vadd.f32 %v3640_v55, %v3634_v29  ;;  %v4154_v55 = vmul.f32 %v4153_v32, %v7108_v36 }
 0x559   :  { %v3773_v39 = vpop.permute.xlu2 %3772  ;;  %v3670_v0 = vadd.f32 %v3659_v56, %v3644_v4  ;;  %v9494_v4 = vrot.slane %v7908_v13, 1 }
 0x55a   :  { %4100 = vrot.lane.b32.xlu1 %v9490_v10, %s5142_s22  ;;  %v4129_v10 = vmul.f32 %v4127_v62, %v7110_v49 }
 0x55b   :  { %v3696_v2 = vadd.f32 %v3685_v37, %v3670_v0 }
 0x55c   :  { %v3661_v9 = vpop.permute.xlu1 %3660  ;;  %4136 = vrot.lane.b32.xlu0 %v4128_v38, %s5141_s1 }
 0x55d   :  { %v3720_v3 = vadd.f32 %v7931_v50, %v3696_v2  ;;  %v3671_v12 = vadd.f32 %v3661_v9, %v3645_v23  ;;  %v4130_v50 = vmul.f32 %v4127_v62, %v7112_v22  ;;  %v4156_v23 = vmul.f32 %v4153_v32, %v7112_v22 }
 0x55e   :  { %v3689_v48 = vpop.permute.xlu0 %3688  ;;  %v4131_v9 = vmul.f32 %v4127_v62, %v7128_v35  ;;  %v9497_v62 = vld [vmem:[#allocation106_spill] sm:$0xff] }
 0x55f   :  { %4106 = vrot.lane.b32.xlu2 %v9492_v52, %s5142_s22  ;;  %v3698_v58 = vadd.f32 %v3689_v48, %v3672_v8  ;;  %v3752_v29 = vadd.f32 %v3741_v41, %v3720_v3  ;;  %v3673_v41 = vadd.f32 %v3665_v34, %v8424_v53 }
 0x561   :  { %v3777_v56 = vpop.permute.xlu2 %3776  ;;  %v3722_v16 = vadd.f32 %v7942_v28, %v3698_v58  ;;  %v3784_v37 = vadd.f32 %v3773_v39, %v3752_v29  ;;  %v4155_v58 = vmul.f32 %v4153_v32, %v7110_v49 }
 0x562   :  { %4104 = vrot.lane.b32.xlu1 %v9493_v43, %s5142_s22  ;;  %v9498_v43 = vrot.slane %v9497_v62, 1 }
 0x563   :  { %v3808_v38 = vadd.f32 %v7977_v45, %v3784_v37  ;;  %v9496_v45 = vrot.slane %v7918_v17, 2  ;;  %v9500_v37 = vld [vmem:[#allocation98_spill] sm:$0xff] }
 0x564   :  { %v3687_v44 = vpop.permute.xlu1 %3686  ;;  %4162 = vrot.lane.b32.xlu0 %v4154_v55, %s5142_s22 }
 0x565   :  { %v3697_v33 = vadd.f32 %v3687_v44, %v3671_v12  ;;  %v4157_v44 = vmul.f32 %v4153_v32, %v7128_v35 }
 0x566   :  { %v3743_v14 = vpop.permute.xlu0 %3742 }
 0x567   :  { %4140 = vrot.lane.b32.xlu2 %v4130_v50, %s5141_s1  ;;  %v3721_v28 = vadd.f32 %v9494_v4, %v3697_v33  ;;  %v8497_v50 = vstv %s4986_s25  ;;  %v9501_v4 = vld [vmem:[#allocation108_spill] sm:$0xff] }
 0x569   :  { %v3831_v0 = vpop.permute.xlu2 %3830  ;;  %v3753_v39 = vadd.f32 %v3743_v14, %v3721_v28  ;;  %s5038_s26 = spop %5037 }
 0x56a   :  { %4138 = vrot.lane.b32.xlu1 %v4129_v10, %s5141_s1  ;;  %s8492_s28 = smul.f32 0.0034722222, %s5038_s26 }
 0x56c   :  { %v3691_v2 = vpop.permute.xlu1 %3690  ;;  %4166 = vrot.lane.b32.xlu0 %v4156_v23, %s5142_s22  ;;  %s4656_s29 = smul.f32 %s8492_s28, %s8492_s28 }
 0x56d   :  { %v3699_v3 = vadd.f32 %v3691_v2, %v3673_v41 }
 0x56e   :  { %v3775_v13 = vpop.permute.xlu0 %3774 }
 0x56f   :  { %4142 = vrot.lane.b32.xlu2 %v4131_v9, %s5141_s1  ;;  %v3785_v8 = vadd.f32 %v3775_v13, %v3753_v39  ;;  %v3723_v52 = vadd.f32 %v9495_v24, %v3699_v3  ;;  %v3883_v3 = vmul.f32 %v8497_v50, %v6654_v30 }
 0x571   :  { %v3863_v48 = vpop.permute.xlu2 %3862  ;;  %v3809_v53 = vadd.f32 %v9496_v45, %v3785_v8  ;;  %v9504_v8 = vld [vmem:[#allocation109_spill] sm:$0xff] }
 0x572   :  { %4164 = vrot.lane.b32.xlu1 %v4155_v58, %s5142_s22  ;;  %v9505_v24 = vrot.slane %v9504_v8, 1 }
 0x573   :  { %v3841_v62 = vadd.f32 %v3831_v0, %v3809_v53 }
 0x574   :  { %v3745_v34 = vpop.permute.xlu1 %3744  ;;  %4220 = vrot.lane.b32.xlu0 %v9498_v43, %s5141_s1 }
 0x575   :  { %v3754_v55 = vadd.f32 %v3745_v34, %v3722_v16  ;;  %v3882_v16 = vmul.f32 %v8497_v50, %v6646_v26  ;;  %v9502_v26 = vld [vmem:[#allocation118_spill] sm:$0xff] }
 0x576   :  { %v3779_v29 = vpop.permute.xlu0 %3778  ;;  %v9503_v9 = vrot.slane %v9502_v26, 2 }
 0x577   :  { %4218 = vrot.lane.b32.xlu2 %v9499_v59, %s5141_s1  ;;  %v3786_v12 = vadd.f32 %v3777_v56, %v3754_v55  ;;  %v8507_v56 = vstv %s4985_s27  ;;  %v3880_v59 = vmul.f32 %v8497_v50, %v6642_v46 }
 0x578   :  { %v3886_v10 = vadd.f32 %v3882_v16, %v8507_v56  ;;  %v3887_v58 = vadd.f32 %v3883_v3, %v8507_v56 }
 0x579   :  { %v3867_v17 = vpop.permute.xlu2 %3866  ;;  %v3810_v33 = vadd.f32 %v7963_v42, %v3786_v12 }
 0x57a   :  { %4168 = vrot.lane.b32.xlu1 %v4157_v44, %s5142_s22  ;;  %s5040_s30 = spop %5039  ;;  %v3873_v44 = vadd.f32 %v3863_v48, %v3841_v62  ;;  %v3881_v62 = vmul.f32 %v8497_v50, %v6644_v25 }
 0x57b   :  { %s4655_s3 = smul.f32 0.0034722222, %s5040_s30  ;;  %s5016_s30 = sld [smem:[#allocation5 + $0xb2]] }
 0x57c   :  { %v3747_v14 = vpop.permute.xlu1 %3746  ;;  %4250 = vrot.lane.b32.xlu0 %v9500_v37, %s5142_s22  ;;  %v4601_v46 = vmax.f32 %v3873_v44, 0.0  ;;  %v3885_v50 = vadd.f32 %v3881_v62, %v8507_v56 }
 0x57d   :  { %s4657_s4 = ssub.f32 %s4655_s3, %s4656_s29  ;;  %v3755_v32 = vadd.f32 %v3747_v14, %v3723_v52  ;;  %v3884_v14 = vadd.f32 %v3880_v59, %v8507_v56 }
 0x57e   :  { %v3833_v42 = vpop.permute.xlu0 %3832  ;;  %v8532_v8 = vmin.f32 %v4601_v46, 6.0  ;;  %s5015_s29 = sld [smem:[#allocation5 + $0xaf]] }
 0x57f   :  { %4222 = vrot.lane.b32.xlu2 %v9501_v4, %s5141_s1  ;;  %s4659_s6 = sadd.f32 1e-05, %s4657_s4  ;;  %v3787_v28 = vadd.f32 %v3779_v29, %v3755_v32  ;;  %v9506_v4 = vld [vmem:[#allocation105_spill] sm:$0xff]  ;;  %v3842_v48 = vadd.f32 %v3833_v42, %v3810_v33 }
 0x581   :  { %v3903_v23 = vpop.permute.xlu2 %3902  ;;  %v4660_v41 = vstv %s4659_s6  ;;  %v3811_v39 = vadd.f32 %v9503_v9, %v3787_v28  ;;  %v9507_v28 = vrot.slane %v9506_v4, 1 }
 0x582   :  { %v8512_v2 = vadd.f32 %v3903_v23, %v3886_v10  ;;  %5067 = vrsqrt.f32 %v4660_v41  ;;  %vm4667_vm0 = vweird.f32 %v4660_v41 }
 0x584   :  { %v3829_v13 = vpop.permute.xlu1 %3828 }
 0x585   :  { %v3840_v12 = vadd.f32 %v3829_v13, %v3808_v38 }
 0x586   :  { %v3835_v52 = vpop.permute.xlu0 %3834 }
 0x587   :  { %4252 = vrot.lane.b32.xlu2 %v9505_v24, %s5142_s22  ;;  %v3843_v32 = vadd.f32 %v3835_v52, %v3811_v39 }
 0x588   :  { %v5068_v45 = vpop.eup %5067 }
 0x589   :  { %v3905_v34 = vpop.permute.xlu2 %3904  ;;  %v4662_v43 = vmul.f32 %v5068_v45, %v4660_v41  ;;  %vm4668_vm15 = vweird.f32 %v5068_v45  ;;  %v3875_v38 = vadd.f32 %v3867_v17, %v3843_v32 }
 0x58a   :  { %v8522_v55 = vadd.f32 %v3905_v34, %v3887_v58  ;;  %vm4669_vm1 = vmor %vm4667_vm0, %vm4668_vm15  ;;  %v9508_v58 = vld [vmem:[#allocation107_spill] sm:$0xff] }
 0x58b   :  { %v4663_v29 = vmul.f32 %v5068_v45, %v4662_v43  ;;  %v4603_v52 = vmax.f32 %v3875_v38, 0.0 }
 0x58c   :  { %v3861_v30 = vpop.permute.xlu1 %3860 }
 0x58d   :  { %v3872_v16 = vadd.f32 %v3861_v30, %v3840_v12  ;;  %v4664_v37 = vmul.f32 0.5, %v4663_v29  ;;  %v9509_v29 = vld [vmem:[#allocation70_spill] sm:$0xff]  ;;  %v4687_v30 = vsel %vm4618_vm14, %v8532_v8, 0.0  ;;  %v8549_v25 = vmin.f32 %v4603_v52, 6.0  ;;  %v9512_v52 = vld [vmem:[#allocation77_spill] sm:$0xff] }
 0x58e   :  { %v3899_v0 = vpop.permute.xlu0 %3898 }
 0x58f   :  { %4224 = vrot.lane.b32.xlu2 %v9507_v28, %s5141_s1  ;;  %v4600_v53 = vmax.f32 %v3872_v16, 0.0  ;;  %v3910_v10 = vadd.f32 %v3899_v0, %v3884_v14  ;;  %v4665_v23 = vsub.f32 1.5, %v4664_v37 }
 0x591   :  { %v3981_v26 = vpop.permute.xlu2 %3980  ;;  %v4666_v9 = vmul.f32 %v5068_v45, %v4665_v23  ;;  %v8530_v3 = vmin.f32 %v4600_v53, 6.0  ;;  %v9510_v23 = vld [vmem:[#allocation112_spill] sm:$0xff] }
 0x592   :  { %v9511_v56 = vrot.slane %v9510_v23, 1  ;;  %v9520_v23 = vld [vmem:[#allocation74_spill] sm:$0xff] }
 0x593   :  { %v4670_v13 = vsel %vm4669_vm1, %v5068_v45, %v4666_v9  ;;  %v4702_v17 = vmul.f32 %v8530_v3, %v8530_v3  ;;  %v4703_v45 = vmul.f32 %v8532_v8, %v8532_v8  ;;  %v4686_v43 = vsel %vm4616_vm13, %v8530_v3, 0.0 }
 0x594   :  { %v3865_v39 = vpop.permute.xlu1 %3864  ;;  %5041 = vpush %v4670_v13  ;;  %v4688_v32 = vadd.f32 %v4687_v30, %v4686_v43 }
 0x595   :  { %v3874_v24 = vadd.f32 %v3865_v39, %v3842_v48  ;;  %v4706_v44 = vsel %vm4616_vm13, %v4702_v17, 0.0  ;;  %v4707_v28 = vsel %vm4618_vm14, %v4703_v45, 0.0 }
 0x596   :  { %v3925_v34 = vpop.permute.xlu0 %3924  ;;  %v4708_v38 = vadd.f32 %v4707_v28, %v4706_v44  ;;  %v9518_v28 = vld [vmem:[#allocation75_spill] sm:$0xff] }
 0x597   :  { %4254 = vrot.lane.b32.xlu2 %v9508_v58, %s5142_s22  ;;  %v4602_v33 = vmax.f32 %v3874_v24, 0.0  ;;  %v3936_v42 = vadd.f32 %v3925_v34, %v3910_v10  ;;  %v4691_v24 = vsel %vm4618_vm14, %v8549_v25, 0.0 }
 0x599   :  { %v4013_v41 = vpop.permute.xlu2 %4012  ;;  %v8544_v59 = vmin.f32 %v4602_v33, 6.0  ;;  %v3960_v12 = vadd.f32 %v9509_v29, %v3936_v42  ;;  %v9513_v42 = vld [vmem:[#allocation78_spill] sm:$0xff]  ;;  %v9515_v29 = vld [vmem:[#allocation71_spill] sm:$0xff] }
 0x59b   :  { %v4689_v16 = vsel %vm4616_vm13, %v8544_v59, 0.0  ;;  %v4704_v14 = vmul.f32 %v8544_v59, %v8544_v59  ;;  %v3992_v37 = vadd.f32 %v3981_v26, %v3960_v12  ;;  %v4705_v26 = vmul.f32 %v8549_v25, %v8549_v25 }
 0x59c   :  { %v3901_v4 = vpop.permute.xlu1 %3900  ;;  %v4690_v9 = vadd.f32 %v4689_v16, %v4688_v32  ;;  %v9516_v12 = vrot.slane %v9515_v29, 1  ;;  %v9526_v29 = vld [vmem:[#allocation101_spill] sm:$0xff] }
 0x59d   :  { %v4024_v0 = vadd.f32 %v4013_v41, %v3992_v37  ;;  %v3911_v53 = vadd.f32 %v3901_v4, %v3885_v50  ;;  %v4709_v10 = vsel %vm4616_vm13, %v4704_v14, 0.0  ;;  %v4711_v62 = vsel %vm4618_vm14, %v4705_v26, 0.0  ;;  %v9517_v37 = vld [vmem:[#allocation18_spill] sm:$0xff] }
 0x59e   :  { %v3929_v46 = vpop.permute.xlu0 %3928  ;;  %v4710_v39 = vadd.f32 %v4709_v10, %v4708_v38  ;;  %v4692_v34 = vadd.f32 %v4691_v24, %v4690_v9 }
 0x59f   :  { %4256 = vrot.lane.b32.xlu2 %v9511_v56, %s5142_s22  ;;  %v3938_v48 = vadd.f32 %v3929_v46, %v8512_v2  ;;  %v4048_v41 = vadd.f32 %v9513_v42, %v4024_v0  ;;  %v9514_v2 = vld [vmem:[#allocation113_spill] sm:$0xff]  ;;  %v9519_v0 = vrot.slane %v9518_v28, 1  ;;  %v9521_v56 = vrot.slane %v9520_v23, 2  ;;  %v9525_v42 = vld [vmem:[#allocation12_spill] sm:$0xff]  ;;  %v9532_v28 = vld [vmem:[#allocation11_spill] sm:$0xff] }
 0x5a0   :  { %v4712_v33 = vadd.f32 %v4711_v62, %v4710_v39  ;;  %v9522_v39 = vld [vmem:[#allocation110_spill] sm:$0xff] }
 0x5a1   :  { %v4017_v13 = vpop.permute.xlu2 %4016  ;;  %v3962_v58 = vadd.f32 %v9512_v52, %v3938_v48 }
 0x5a4   :  { %v3927_v17 = vpop.permute.xlu1 %3926  ;;  %4693 = vadd.xlane.f32.xlu1 %v4692_v34  ;;  %v8584_v34 = vstv %s4995_s7 }
 0x5a5   :  { %v3937_v45 = vadd.f32 %v3927_v17, %v3911_v53  ;;  %v9524_v17 = vld [vmem:[#allocation67_spill] sm:$0xff] }
 0x5a6   :  { %4713 = vadd.xlane.f32.xlu0 %v4712_v33  ;;  %v3983_v43 = vpop.permute.xlu0 %3982 }
 0x5a7   :  { %4306 = vrot.lane.b32.xlu2 %v9514_v2, %s5141_s1  ;;  %v3961_v30 = vadd.f32 %v9516_v12, %v3937_v45  ;;  %v4119_v45 = vmul.f32 %v8584_v34, %v7110_v49  ;;  %v9527_v12 = vrot.slane %v9526_v29, 2  ;;  %v4365_v49 = vstv %s5005_s8 }
 0x5a9   :  { %v4071_v50 = vpop.permute.xlu2 %4070  ;;  %v3993_v44 = vadd.f32 %v3983_v43, %v3961_v30 }
 0x5ac   :  { %v3931_v16 = vpop.permute.xlu1 %3930 }
 0x5ad   :  { %v3939_v14 = vadd.f32 %v3931_v16, %v8522_v55  ;;  %v9523_v55 = vrot.slane %v9522_v39, 2  ;;  %v4391_v39 = vstv %s5006_s10 }
 0x5ae   :  { %v4015_v32 = vpop.permute.xlu0 %4014 }
 0x5af   :  { %4310 = vrot.lane.b32.xlu2 %v9517_v37, %s5141_s1  ;;  %v4025_v4 = vadd.f32 %v4015_v32, %v3993_v44  ;;  %v3963_v53 = vadd.f32 %v9519_v0, %v3939_v14  ;;  %v9530_v37 = vld [vmem:[#allocation64_spill] sm:$0xff]  ;;  %v9533_v0 = vrot.slane %v9532_v28, 2 }
 0x5b0   :  { %v9531_v32 = vrot.slane %v9530_v37, 2  ;;  %v4393_v37 = vmul.f32 %v4391_v39, %v7620_v18 }
 0x5b1   :  { %v4103_v10 = vpop.permute.xlu2 %4102  ;;  %v4049_v46 = vadd.f32 %v9521_v56, %v4025_v4  ;;  %v9534_v56 = vld [vmem:[#allocation21_spill] sm:$0xff] }
 0x5b3   :  { %v4081_v9 = vadd.f32 %v4071_v50, %v4049_v46 }
 0x5b4   :  { %v3985_v38 = vpop.permute.xlu1 %3984 }
 0x5b5   :  { %v4113_v48 = vadd.f32 %v4103_v10, %v4081_v9  ;;  %v3994_v26 = vadd.f32 %v3985_v38, %v3962_v58  ;;  %v4366_v10 = vmul.f32 %v4365_v49, %v7618_v60 }
 0x5b6   :  { %v4019_v24 = vpop.permute.xlu0 %4018 }
 0x5b7   :  { %4340 = vrot.lane.b32.xlu2 %v9523_v55, %s5142_s22  ;;  %v4026_v52 = vadd.f32 %v4017_v13, %v3994_v26  ;;  %v8591_v58 = vadd.f32 %v4119_v45, %v4113_v48  ;;  %v9528_v13 = vld [vmem:[#allocation104_spill] sm:$0xff]  ;;  %v4368_v26 = vmul.f32 %v4365_v49, %v7622_v54 }
 0x5b8   :  { %v9529_v30 = vrot.slane %v9528_v13, 2 }
 0x5b9   :  { %v4107_v62 = vpop.permute.xlu2 %4106  ;;  %v4050_v33 = vadd.f32 %v9524_v17, %v4026_v52 }
 0x5ba   :  { %4338 = vrot.lane.b32.xlu0 %v9525_v42, %s5142_s22 }
 0x5bc   :  { %v3987_v2 = vpop.permute.xlu1 %3986 }
 0x5bd   :  { %v3995_v43 = vadd.f32 %v3987_v2, %v3963_v53  ;;  %4308 = vrot.lane.b32.xlu1 %v9527_v12, %s5141_s1 }
 0x5be   :  { %v4073_v50 = vpop.permute.xlu0 %4072 }
 0x5bf   :  { %4312 = vrot.lane.b32.xlu2 %v9529_v30, %s5141_s1  ;;  %v4027_v44 = vadd.f32 %v4019_v24, %v3995_v43  ;;  %v4082_v16 = vadd.f32 %v4073_v50, %v4050_v33  ;;  %v4367_v33 = vmul.f32 %v4365_v49, %v7620_v18 }
 0x5c1   :  { %v8599_v14 = vpop.permute.xlu2 %4140  ;;  %v4051_v4 = vadd.f32 %v9531_v32, %v4027_v44  ;;  %v4369_v44 = vmul.f32 %v4365_v49, %v7629_v47  ;;  %v4120_v49 = vmul.f32 %v8584_v34, %v7112_v22 }
 0x5c2   :  { %4344 = vrot.lane.b32.xlu0 %v9533_v0, %s5142_s22 }
 0x5c4   :  { %v4069_v53 = vpop.permute.xlu1 %4068 }
 0x5c5   :  { %v4080_v23 = vadd.f32 %v4069_v53, %v4048_v41  ;;  %s5042_s13 = spop %5041  ;;  %4342 = vrot.lane.b32.xlu1 %v9534_v56, %s5142_s22  ;;  %v4121_v41 = vmul.f32 %v8584_v34, %v7128_v35  ;;  %v9535_v56 = vld [vmem:[#allocation27_spill] sm:$0xff] }
 0x5c6   :  { %s4672_s14 = smul.f32 %s5042_s13, %s5013_s9  ;;  %v4075_v46 = vpop.permute.xlu0 %4074 }
 0x5c7   :  { %4374 = vrot.lane.b32.xlu2 %v4366_v10, %s5141_s1  ;;  %v4083_v9 = vadd.f32 %v4075_v46, %v4051_v4  ;;  %v4394_v4 = vmul.f32 %v4391_v39, %v7622_v54 }
 0x5c8   :  { %s4674_s15 = smul.f32 %s4672_s14, %s8492_s28  ;;  %v4676_v38 = vstv %s4672_s14 }
 0x5c9   :  { %v4143_v48 = vpop.permute.xlu2 %4142  ;;  %v4115_v55 = vadd.f32 %v4107_v62, %v4083_v9  ;;  %v4677_v24 = vmul.f32 %v4676_v38, %v8260_v20  ;;  %v4678_v52 = vmul.f32 %v4676_v38, %v8265_v19  ;;  %v4679_v17 = vmul.f32 %v4676_v38, %v8263_v57 }
 0x5ca   :  { %s4675_s16 = ssub.f32 %s5014_s11, %s4674_s15  ;;  %4378 = vrot.lane.b32.xlu0 %v4368_v26, %s5141_s1  ;;  %v4680_v42 = vmul.f32 %v4676_v38, %v8274_v51  ;;  %v4392_v62 = vmul.f32 %v4391_v39, %v7618_v60  ;;  %v4118_v57 = vmul.f32 %v8584_v34, %v7108_v36  ;;  %v9536_v38 = vld [vmem:[#allocation122_spill] sm:$0xff] }
 0x5cb   :  { %v4125_v2 = vadd.f32 %v4121_v41, %v4115_v55 }
 0x5cc   :  { %v4681_v45 = vstv %s4675_s16  ;;  %v4101_v43 = vpop.permute.xlu1 %4100 }
 0x5cd   :  { %v4682_v29 = vadd.f32 %v4681_v45, %v4677_v24  ;;  %v4683_v12 = vadd.f32 %v4681_v45, %v4678_v52  ;;  %v4684_v35 = vadd.f32 %v4681_v45, %v4679_v17  ;;  %4376 = vrot.lane.b32.xlu1 %v4367_v33, %s5141_s1  ;;  %v4685_v13 = vadd.f32 %v4681_v45, %v4680_v42  ;;  %v9539_v17 = vld [vmem:[#allocation8_spill] sm:$0xff]  ;;  %v9540_v45 = vld [vmem:[#allocation125_spill] sm:$0xff] }
 0x5ce   :  { %v4151_v20 = vadd.f32 %v4143_v48, %v4125_v2  ;;  %v4112_v30 = vadd.f32 %v4101_v43, %v4080_v23  ;;  %v4137_v19 = vpop.permute.xlu0 %4136  ;;  %v4395_v48 = vmul.f32 %v4391_v39, %v7629_v47 }
 0x5cf   :  { %4400 = vrot.lane.b32.xlu2 %v4392_v62, %s5142_s22  ;;  %4822 = vst.msk [vmem:[%s8796_s2] sm:$0xff] %vm4616_vm13, %v4682_v29  ;;  %v9543_v62 = vld [vmem:[#allocation14_spill] sm:$0xff] }
 0x5d0   :  { %4823 = vst.msk [vmem:[%s8796_s2 + $0x8] sm:$0xf] %vm4618_vm14, %v4683_v12  ;;  %v4122_v51 = vadd.f32 %v4118_v57, %v4112_v30  ;;  %v9544_v29 = vrot.slane %v9543_v62, 1  ;;  %v9545_v30 = vld [vmem:[#allocation127_spill] sm:$0xff]  ;;  %v9568_v62 = vld [vmem:[#allocation17_spill] sm:$0xff] }
 0x5d1   :  { %v4219_v50 = vpop.permute.xlu2 %4218  ;;  %4828 = vst.msk [vmem:[%s8796_s2 + $0x30] sm:$0xff] %vm4616_vm13, %v4684_v35 }
 0x5d2   :  { %4829 = vst.msk [vmem:[%s8796_s2 + $0x38] sm:$0xf] %vm4618_vm14, %v4685_v13  ;;  %v4148_v36 = vadd.f32 %v4137_v19, %v4122_v51  ;;  %4380 = vrot.lane.b32.xlu0 %v4369_v44, %s5141_s1  ;;  %v9546_v51 = vld [vmem:[#allocation121_spill] sm:$0xff]  ;;  %v9548_v44 = vld [vmem:[#allocation123_spill] sm:$0xff] }
 0x5d4   :  { %v4105_v32 = vpop.permute.xlu1 %4104 }
 0x5d5   :  { %v4114_v28 = vadd.f32 %v4105_v32, %v4082_v16  ;;  %4402 = vrot.lane.b32.xlu1 %v4393_v37, %s5142_s22  ;;  %v9537_v16 = vld [vmem:[#allocation119_spill] sm:$0xff] }
 0x5d6   :  { %v4163_v0 = vpop.permute.xlu0 %4162  ;;  %v9538_v55 = vrot.slane %v9537_v16, 1  ;;  %v9550_v32 = vld [vmem:[#allocation15_spill] sm:$0xff] }
 0x5d7   :  { %4404 = vrot.lane.b32.xlu2 %v4394_v4, %s5142_s22  ;;  %v4124_v53 = vadd.f32 %v4120_v49, %v4114_v28  ;;  %v4174_v10 = vadd.f32 %v4163_v0, %v4148_v36  ;;  %v9549_v36 = vrot.slane %v9548_v44, 1  ;;  %v9551_v4 = vrot.slane %v9550_v32, 1 }
 0x5d9   :  { %v4223_v23 = vpop.permute.xlu2 %4222  ;;  %v4198_v46 = vadd.f32 %v9535_v56, %v4174_v10  ;;  %v4150_v9 = vadd.f32 %v8599_v14, %v4124_v53 }
 0x5da   :  { %4456 = vrot.lane.b32.xlu0 %v9536_v38, %s5141_s1 }
 0x5db   :  { %v4230_v26 = vadd.f32 %v4219_v50, %v4198_v46  ;;  %v9547_v50 = vrot.slane %v9546_v51, 1 }
 0x5dc   :  { %v4139_v22 = vpop.permute.xlu1 %4138 }
 0x5dd   :  { %v4149_v34 = vadd.f32 %v4139_v22, %v8591_v58  ;;  %4406 = vrot.lane.b32.xlu1 %v4395_v48, %s5142_s22  ;;  %v9541_v58 = vld [vmem:[#allocation120_spill] sm:$0xff]  ;;  %v9557_v22 = vld [vmem:[#allocation130_spill] sm:$0xff] }
 0x5de   :  { %v4167_v41 = vpop.permute.xlu0 %4166  ;;  %v9542_v2 = vrot.slane %v9541_v58, 1  ;;  %v9556_v48 = vld [vmem:[#allocation128_spill] sm:$0xff] }
 0x5df   :  { %4458 = vrot.lane.b32.xlu2 %v9538_v55, %s5141_s1  ;;  %v4176_v24 = vadd.f32 %v4167_v41, %v4150_v9  ;;  %v9555_v9 = vld [vmem:[#allocation26_spill] sm:$0xff]  ;;  %v9560_v41 = vld [vmem:[#allocation9_spill] sm:$0xff] }
 0x5e1   :  { %v4253_v52 = vpop.permute.xlu2 %4252  ;;  %v4200_v14 = vadd.f32 %v9539_v17, %v4176_v24  ;;  %v9561_v24 = vrot.slane %v9560_v41, 2  ;;  %v9562_v17 = vld [vmem:[#allocation132_spill] sm:$0xff] }
 0x5e2   :  { %4488 = vrot.lane.b32.xlu0 %v8044_v15, %s5142_s22 }
 0x5e3   :  { %v4232_v33 = vadd.f32 %v4223_v23, %v4200_v14  ;;  %v9552_v23 = vld [vmem:[#allocation20_spill] sm:$0xff]  ;;  %v9563_v14 = vld [vmem:[#allocation126_spill] sm:$0xff] }
 0x5e4   :  { %v4165_v39 = vpop.permute.xlu1 %4164 }
 0x5e5   :  { %v4175_v42 = vadd.f32 %v4165_v39, %v4149_v34  ;;  %4460 = vrot.lane.b32.xlu1 %v9540_v45, %s5141_s1  ;;  %v9565_v45 = vld [vmem:[#allocation131_spill] sm:$0xff] }
 0x5e6   :  { %v4221_v43 = vpop.permute.xlu0 %4220  ;;  %v9566_v58 = vrot.slane %v9565_v45, 2 }
 0x5e7   :  { %4490 = vrot.lane.b32.xlu2 %v9542_v2, %s5142_s22  ;;  %v4199_v12 = vadd.f32 %v9544_v29, %v4175_v42  ;;  %v9567_v2 = vld [vmem:[#allocation133_spill] sm:$0xff]  ;;  %v9569_v29 = vrot.slane %v9568_v62, 2 }
 0x5e9   :  { %v4225_v35 = vpop.permute.xlu2 %4224  ;;  %v4231_v13 = vadd.f32 %v4221_v43, %v4199_v12 }
 0x5ea   :  { %4492 = vrot.lane.b32.xlu0 %v9545_v30, %s5142_s22 }
 0x5eb   :  { %v4263_v15 = vadd.f32 %v4253_v52, %v4231_v13 }
 0x5ec   :  { %v4169_v57 = vpop.permute.xlu1 %4168 }
 0x5ed   :  { %v4177_v19 = vadd.f32 %v4169_v57, %v4151_v20  ;;  %4462 = vrot.lane.b32.xlu1 %v9547_v50, %s5141_s1  ;;  %v9553_v20 = vld [vmem:[#allocation124_spill] sm:$0xff]  ;;  %v4287_v12 = vadd.f32 %v9569_v29, %v4263_v15 }
 0x5ee   :  { %v4251_v37 = vpop.permute.xlu0 %4250  ;;  %v9554_v46 = vrot.slane %v9553_v20, 2 }
 0x5ef   :  { %4494 = vrot.lane.b32.xlu2 %v9549_v36, %s5142_s22  ;;  %v4201_v49 = vadd.f32 %v9551_v4, %v4177_v19  ;;  %v4262_v28 = vadd.f32 %v4251_v37, %v4230_v26  ;;  %v9558_v26 = vld [vmem:[#allocation129_spill] sm:$0xff] }
 0x5f0   :  { %v9559_v55 = vrot.slane %v9558_v26, 2 }
 0x5f1   :  { %v4255_v0 = vpop.permute.xlu2 %4254  ;;  %v4233_v10 = vadd.f32 %v4225_v35, %v4201_v49  ;;  %v4286_v56 = vadd.f32 %v9552_v23, %v4262_v28 }
 0x5f2   :  { %v4264_v53 = vadd.f32 %v4255_v0, %v4232_v33  ;;  %4546 = vrot.lane.b32.xlu0 %v9554_v46, %s5141_s1  ;;  %v9564_v33 = vrot.slane %v9563_v14, 2 }
 0x5f4   :  { %v4288_v38 = vadd.f32 %v9555_v9, %v4264_v53 }
 0x5f5   :  { %4544 = vrot.lane.b32.xlu1 %v9556_v48, %s5141_s1 }
 0x5f7   :  { %4548 = vrot.lane.b32.xlu2 %v9557_v22, %s5141_s1 }
 0x5f9   :  { %v4257_v34 = vpop.permute.xlu2 %4256 }
 0x5fa   :  { %v4265_v16 = vadd.f32 %v4257_v34, %v4233_v10  ;;  %4578 = vrot.lane.b32.xlu0 %v9559_v55, %s5142_s22 }
 0x5fc   :  { %v4289_v52 = vadd.f32 %v9561_v24, %v4265_v16 }
 0x5fd   :  { %4576 = vrot.lane.b32.xlu1 %v9562_v17, %s5142_s22 }
 0x5ff   :  { %4550 = vrot.lane.b32.xlu2 %v9564_v33, %s5141_s1  ;;  %s5004_s1 = sld [smem:[#allocation5 + $0xa2]] }
 0x601   :  { %v4307_v39 = vpop.permute.xlu2 %4306 }
 0x602   :  { %v4318_v42 = vadd.f32 %v4307_v39, %v4286_v56  ;;  %4582 = vrot.lane.b32.xlu0 %v9566_v58, %s5142_s22 }
 0x605   :  { %4580 = vrot.lane.b32.xlu1 %v9567_v2, %s5142_s22  ;;  %v4355_v15 = vstv %s5004_s1  ;;  %s5018_s1 = sld [smem:[#allocation5 + $0xb3]] }
 0x606   :  { %v4356_v56 = vmul.f32 %v4355_v15, %v7618_v60  ;;  %v4357_v26 = vmul.f32 %v4355_v15, %v7620_v18  ;;  %v4359_v33 = vmul.f32 %v4355_v15, %v7629_v47  ;;  %v4358_v2 = vmul.f32 %v4355_v15, %v7622_v54 }
 0x609   :  { %v4311_v43 = vpop.permute.xlu2 %4310 }
 0x60a   :  { %v4320_v45 = vadd.f32 %v4311_v43, %v4288_v38 }
 0x611   :  { %v4341_v35 = vpop.permute.xlu2 %4340 }
 0x617   :  { %v4694_v13 = vpop.xlane.xlu1 %4693 }
 0x618   :  { %v4695_v30 = vrot.slane %v4694_v13, 4 }
 0x619   :  { %v4714_v57 = vpop.xlane.xlu0 %4713  ;;  %v4313_v50 = vpop.permute.xlu2 %4312 }
 0x61a   :  { %v4696_v19 = vadd.f32 %v4695_v30, %v4694_v13  ;;  %v4715_v51 = vrot.slane %v4714_v57, 4  ;;  %v4321_v55 = vadd.f32 %v4313_v50, %v4289_v52 }
 0x61c   :  { %v4697_v44 = vrot.slane %v4696_v19, 2  ;;  %v4716_v36 = vadd.f32 %v4715_v51, %v4714_v57 }
 0x61e   :  { %v4717_v37 = vrot.slane %v4716_v36, 2  ;;  %v4698_v32 = vadd.f32 %v4697_v44, %v4696_v19 }
 0x620   :  { %v4699_v4 = vrot.slane %v4698_v32, 1  ;;  %v4718_v49 = vadd.f32 %v4717_v37, %v4716_v36 }
 0x621   :  { %v4375_v10 = vpop.permute.xlu2 %4374 }
 0x622   :  { %v4700_v28 = vadd.f32 %v4699_v4, %v4698_v32  ;;  %v4719_v0 = vrot.slane %v4718_v49, 1 }
 0x624   :  { %5043 = vpush %v4700_v28  ;;  %v4720_v53 = vadd.f32 %v4719_v0, %v4718_v49 }
 0x626   :  { %5045 = vpush %v4720_v53 }
 0x629   :  { %v4401_v46 = vpop.permute.xlu2 %4400 }
 0x62c   :  { %v4339_v23 = vpop.permute.xlu0 %4338 }
 0x62d   :  { %v4350_v20 = vadd.f32 %v4339_v23, %v4318_v42 }
 0x62f   :  { %v4360_v9 = vadd.f32 %v4356_v56, %v4350_v20  ;;  %v4309_v48 = vpop.permute.xlu1 %4308  ;;  %v9570_v20 = vrot.slane %v8118_v6, 2 }
 0x630   :  { %v4319_v22 = vadd.f32 %v4309_v48, %v4287_v12 }
 0x631   :  { %v4386_v34 = vadd.f32 %v4375_v10, %v4360_v9  ;;  %v4405_v62 = vpop.permute.xlu2 %4404 }
 0x632   :  { %v4351_v16 = vadd.f32 %v4341_v35, %v4319_v22 }
 0x633   :  { %v4412_v41 = vadd.f32 %v4401_v46, %v4386_v34 }
 0x634   :  { %v4345_v24 = vpop.permute.xlu0 %4344  ;;  %v4361_v17 = vadd.f32 %v4357_v26, %v4351_v16 }
 0x635   :  { %v4353_v14 = vadd.f32 %v4345_v24, %v4321_v55  ;;  %v4436_v39 = vadd.f32 %v8127_v21, %v4412_v41 }
 0x637   :  { %v4343_v60 = vpop.permute.xlu1 %4342  ;;  %v4363_v42 = vadd.f32 %v4359_v33, %v4353_v14 }
 0x638   :  { %v4352_v58 = vadd.f32 %v4343_v60, %v4320_v45 }
 0x639   :  { %v4459_v30 = vpop.permute.xlu2 %4458 }
 0x63a   :  { %v4362_v29 = vadd.f32 %v4358_v2, %v4352_v58 }
 0x63c   :  { %v4379_v12 = vpop.permute.xlu0 %4378 }
 0x63d   :  { %v4388_v35 = vadd.f32 %v4379_v12, %v4362_v29 }
 0x63f   :  { %v4414_v18 = vadd.f32 %v4405_v62, %v4388_v35  ;;  %v4377_v52 = vpop.permute.xlu1 %4376 }
 0x640   :  { %v4387_v19 = vadd.f32 %v4377_v52, %v4361_v17 }
 0x641   :  { %v4438_v13 = vadd.f32 %v8138_v40, %v4414_v18  ;;  %v4491_v50 = vpop.permute.xlu2 %4490 }
 0x644   :  { %v4381_v57 = vpop.permute.xlu0 %4380 }
 0x645   :  { %v4389_v54 = vadd.f32 %v4381_v57, %v4363_v42 }
 0x647   :  { %v4403_v47 = vpop.permute.xlu1 %4402 }
 0x648   :  { %v4413_v51 = vadd.f32 %v4403_v47, %v4387_v19 }
 0x64a   :  { %v4437_v21 = vadd.f32 %v4427_v61, %v4413_v51 }
 0x64c   :  { %v4469_v38 = vadd.f32 %v4459_v30, %v4437_v21  ;;  %v4457_v43 = vpop.permute.xlu0 %4456 }
 0x64d   :  { %v4468_v4 = vadd.f32 %v4457_v43, %v4436_v39 }
 0x64e   :  { %v4501_v44 = vadd.f32 %v4491_v50, %v4469_v38 }
 0x64f   :  { %v4407_v36 = vpop.permute.xlu1 %4406 }
 0x650   :  { %v4415_v37 = vadd.f32 %v4407_v36, %v4389_v54  ;;  %v4525_v32 = vadd.f32 %v4515_v63, %v4501_v44 }
 0x652   :  { %v4439_v40 = vadd.f32 %v4430_v27, %v4415_v37  ;;  %v4495_v27 = vpop.permute.xlu2 %4494 }
 0x654   :  { %v4489_v49 = vpop.permute.xlu0 %4488 }
 0x655   :  { %s5044_s22 = spop %5043  ;;  %v4500_v28 = vadd.f32 %v4489_v49, %v4468_v4 }
 0x656   :  { %s8717_s23 = smul.f32 0.0034722222, %s5044_s22 }
 0x657   :  { %v4461_v61 = vpop.permute.xlu1 %4460  ;;  %s5046_s24 = spop %5045  ;;  %v4524_v31 = vadd.f32 %v8154_v11, %v4500_v28 }
 0x658   :  { %s4724_s25 = smul.f32 %s8717_s23, %s8717_s23  ;;  %v4470_v0 = vadd.f32 %v4461_v61, %v4438_v13 }
 0x659   :  { %s4723_s26 = smul.f32 0.0034722222, %s5046_s24 }
 0x65a   :  { %v4549_v22 = vpop.permute.xlu2 %4548 }
 0x65b   :  { %s4725_s27 = ssub.f32 %s4723_s26, %s4724_s25 }
 0x65c   :  { %v4493_v5 = vpop.permute.xlu0 %4492 }
 0x65d   :  { %s4727_s28 = sadd.f32 1e-05, %s4725_s27  ;;  %v4502_v7 = vadd.f32 %v4493_v5, %v4470_v0 }
 0x65f   :  { %v4728_v63 = vstv %s4727_s28  ;;  %v4526_v53 = vadd.f32 %v8146_v1, %v4502_v7  ;;  %v4463_v10 = vpop.permute.xlu1 %4462 }
 0x660   :  { %5069 = vrsqrt.f32 %v4728_v63  ;;  %v4471_v15 = vadd.f32 %v4463_v10, %v4439_v40  ;;  %vm4735_vm3 = vweird.f32 %v4728_v63 }
 0x661   :  { %v4558_v12 = vadd.f32 %v4549_v22, %v4526_v53 }
 0x662   :  { %v4503_v23 = vadd.f32 %v4495_v27, %v4471_v15  ;;  %v4551_v6 = vpop.permute.xlu2 %4550 }
 0x664   :  { %v4547_v56 = vpop.permute.xlu0 %4546  ;;  %v4527_v11 = vadd.f32 %v9570_v20, %v4503_v23 }
 0x665   :  { %v4557_v26 = vadd.f32 %v4547_v56, %v4525_v32 }
 0x666   :  { %v5070_v46 = vpop.eup %5069  ;;  %v4559_v42 = vadd.f32 %v4551_v6, %v4527_v11 }
 0x667   :  { %v4730_v9 = vmul.f32 %v5070_v46, %v4728_v63  ;;  %v4545_v48 = vpop.permute.xlu1 %4544  ;;  %vm4736_vm2 = vweird.f32 %v5070_v46 }
 0x668   :  { %v4556_v24 = vadd.f32 %v4545_v48, %v4524_v31  ;;  %vm4737_vm4 = vmor %vm4735_vm3, %vm4736_vm2 }
 0x669   :  { %v4731_v34 = vmul.f32 %v5070_v46, %v4730_v9 }
 0x66b   :  { %v4732_v16 = vmul.f32 0.5, %v4731_v34 }
 0x66c   :  { %v4579_v55 = vpop.permute.xlu0 %4578 }
 0x66d   :  { %v4733_v41 = vsub.f32 1.5, %v4732_v16  ;;  %v4589_v1 = vadd.f32 %v4579_v55, %v4557_v26 }
 0x66f   :  { %v4577_v17 = vpop.permute.xlu1 %4576  ;;  %v4734_v14 = vmul.f32 %v5070_v46, %v4733_v41  ;;  %v4609_v45 = vmax.f32 %v4589_v1, 0.0 }
 0x670   :  { %v4588_v33 = vadd.f32 %v4577_v17, %v4556_v24 }
 0x671   :  { %v4738_v39 = vsel %vm4737_vm4, %v5070_v46, %v4734_v14  ;;  %v8727_v29 = vmin.f32 %v4609_v45, 6.0 }
 0x672   :  { %v4608_v60 = vmax.f32 %v4588_v33, 0.0  ;;  %5047 = vpush %v4738_v39 }
 0x673   :  { %v4771_v30 = vmul.f32 %v8727_v29, %v8727_v29  ;;  %v4755_v51 = vsel %vm4618_vm14, %v8727_v29, 0.0 }
 0x674   :  { %v8725_v58 = vmin.f32 %v4608_v60, 6.0  ;;  %v4583_v2 = vpop.permute.xlu0 %4582 }
 0x675   :  { %v4591_v62 = vadd.f32 %v4583_v2, %v4559_v42  ;;  %v4775_v50 = vsel %vm4618_vm14, %v4771_v30, 0.0 }
 0x676   :  { %v4770_v52 = vmul.f32 %v8725_v58, %v8725_v58  ;;  %v4754_v57 = vsel %vm4616_vm13, %v8725_v58, 0.0 }
 0x677   :  { %v4611_v35 = vmax.f32 %v4591_v62, 0.0  ;;  %v4581_v18 = vpop.permute.xlu1 %4580  ;;  %v4756_v43 = vadd.f32 %v4755_v51, %v4754_v57 }
 0x678   :  { %v4590_v13 = vadd.f32 %v4581_v18, %v4558_v12  ;;  %v4774_v21 = vsel %vm4616_vm13, %v4770_v52, 0.0 }
 0x679   :  { %v8735_v19 = vmin.f32 %v4611_v35, 6.0  ;;  %v4776_v32 = vadd.f32 %v4775_v50, %v4774_v21 }
 0x67a   :  { %v4610_v47 = vmax.f32 %v4590_v13, 0.0 }
 0x67b   :  { %v4773_v54 = vmul.f32 %v8735_v19, %v8735_v19  ;;  %v4759_v40 = vsel %vm4618_vm14, %v8735_v19, 0.0 }
 0x67c   :  { %v8740_v38 = vmin.f32 %v4610_v47, 6.0 }
 0x67d   :  { %v4779_v61 = vsel %vm4618_vm14, %v4773_v54, 0.0 }
 0x67e   :  { %v4757_v44 = vsel %vm4616_vm13, %v8740_v38, 0.0  ;;  %v4772_v36 = vmul.f32 %v8740_v38, %v8740_v38 }
 0x67f   :  { %v4758_v37 = vadd.f32 %v4757_v44, %v4756_v43 }
 0x680   :  { %v4777_v4 = vsel %vm4616_vm13, %v4772_v36, 0.0 }
 0x681   :  { %v4760_v49 = vadd.f32 %v4759_v40, %v4758_v37  ;;  %v4778_v28 = vadd.f32 %v4777_v4, %v4776_v32 }
 0x683   :  { %4761 = vadd.xlane.f32.xlu2 %v4760_v49  ;;  %v4780_v31 = vadd.f32 %v4779_v61, %v4778_v28 }
 0x685   :  { %4781 = vadd.xlane.f32.xlu1 %v4780_v31 }
 0x6a3   :  { %s5048_s3 = spop %5047 }
 0x6a4   :  { %s4740_s4 = smul.f32 %s5048_s3, %s5015_s29 }
 0x6a6   :  { %s4742_s6 = smul.f32 %s4740_s4, %s8717_s23  ;;  %v4744_v0 = vstv %s4740_s4 }
 0x6a7   :  { %v4745_v5 = vmul.f32 %v4744_v0, %v8530_v3  ;;  %v4746_v7 = vmul.f32 %v4744_v0, %v8532_v8  ;;  %v4747_v27 = vmul.f32 %v4744_v0, %v8544_v59  ;;  %v4748_v63 = vmul.f32 %v4744_v0, %v8549_v25 }
 0x6a8   :  { %s4743_s7 = ssub.f32 %s5016_s30, %s4742_s6 }
 0x6aa   :  { %v4749_v53 = vstv %s4743_s7 }
 0x6ab   :  { %v4750_v10 = vadd.f32 %v4749_v53, %v4745_v5  ;;  %v4751_v15 = vadd.f32 %v4749_v53, %v4746_v7  ;;  %v4752_v23 = vadd.f32 %v4749_v53, %v4747_v27  ;;  %v4753_v56 = vadd.f32 %v4749_v53, %v4748_v63 }
 0x6ad   :  { %4824 = vst.msk [vmem:[%s8796_s2 + $0x10] sm:$0xff] %vm4616_vm13, %v4750_v10 }
 0x6ae   :  { %4825 = vst.msk [vmem:[%s8796_s2 + $0x18] sm:$0xf] %vm4618_vm14, %v4751_v15 }
 0x6af   :  { %4830 = vst.msk [vmem:[%s8796_s2 + $0x40] sm:$0xff] %vm4616_vm13, %v4752_v23 }
 0x6b0   :  { %4831 = vst.msk [vmem:[%s8796_s2 + $0x48] sm:$0xf] %vm4618_vm14, %v4753_v56 }
 0x6f6   :  { %v4762_v3 = vpop.xlane.xlu2 %4761 }
 0x6f7   :  { %v4763_v8 = vrot.slane %v4762_v3, 4 }
 0x6f8   :  { %v4782_v59 = vpop.xlane.xlu1 %4781 }
 0x6f9   :  { %v4764_v25 = vadd.f32 %v4763_v8, %v4762_v3  ;;  %v4783_v20 = vrot.slane %v4782_v59, 4 }
 0x6fb   :  { %v4765_v11 = vrot.slane %v4764_v25, 2  ;;  %v4784_v46 = vadd.f32 %v4783_v20, %v4782_v59 }
 0x6fd   :  { %v4766_v9 = vadd.f32 %v4765_v11, %v4764_v25  ;;  %v4785_v48 = vrot.slane %v4784_v46, 2 }
 0x6ff   :  { %v4786_v22 = vadd.f32 %v4785_v48, %v4784_v46  ;;  %v4767_v34 = vrot.slane %v4766_v9, 1 }
 0x701   :  { %v4768_v16 = vadd.f32 %v4767_v34, %v4766_v9  ;;  %v4787_v26 = vrot.slane %v4786_v22, 1 }
 0x703   :  { %5049 = vpush %v4768_v16  ;;  %v4788_v55 = vadd.f32 %v4787_v26, %v4786_v22 }
 0x705   :  { %5051 = vpush %v4788_v55 }
 0x734   :  { %s5050_s17 = spop %5049 }
 0x735   :  { %s4790_s5 = smul.f32 0.0034722222, %s5050_s17 }
 0x736   :  { %s5052_s18 = spop %5051 }
 0x737   :  { %s4792_s19 = smul.f32 %s4790_s5, %s4790_s5 }
 0x738   :  { %s4791_s12 = smul.f32 0.0034722222, %s5052_s18 }
 0x73a   :  { %s4793_s0 = ssub.f32 %s4791_s12, %s4792_s19 }
 0x73c   :  { %s4795_s20 = sadd.f32 1e-05, %s4793_s0 }
 0x73e   :  { %v4796_v41 = vstv %s4795_s20 }
 0x73f   :  { %5071 = vrsqrt.f32 %v4796_v41  ;;  %vm4803_vm6 = vweird.f32 %v4796_v41 }
 0x745   :  { %v5072_v24 = vpop.eup %5071 }
 0x746   :  { %v4798_v1 = vmul.f32 %v5072_v24, %v4796_v41  ;;  %vm4804_vm5 = vweird.f32 %v5072_v24 }
 0x747   :  { %vm4805_vm7 = vmor %vm4803_vm6, %vm4804_vm5 }
 0x748   :  { %v4799_v17 = vmul.f32 %v5072_v24, %v4798_v1 }
 0x74a   :  { %v4800_v14 = vmul.f32 0.5, %v4799_v17 }
 0x74c   :  { %v4801_v33 = vsub.f32 1.5, %v4800_v14 }
 0x74e   :  { %v4802_v39 = vmul.f32 %v5072_v24, %v4801_v33 }
 0x750   :  { %v4806_v6 = vsel %vm4805_vm7, %v5072_v24, %v4802_v39 }
 0x751   :  { %5053 = vpush %v4806_v6 }
 0x782   :  { %s5054_s22 = spop %5053 }
 0x783   :  { %s4808_s23 = smul.f32 %s5054_s22, %s5017_s21 }
 0x785   :  { %s4810_s24 = smul.f32 %s4808_s23, %s4790_s5  ;;  %v4812_v45 = vstv %s4808_s23 }
 0x786   :  { %v4813_v60 = vmul.f32 %v4812_v45, %v8725_v58  ;;  %v4814_v42 = vmul.f32 %v4812_v45, %v8727_v29  ;;  %v4815_v2 = vmul.f32 %v4812_v45, %v8740_v38  ;;  %v4816_v62 = vmul.f32 %v4812_v45, %v8735_v19 }
 0x787   :  { %s4811_s25 = ssub.f32 %s5018_s1, %s4810_s24 }
 0x789   :  { %v4817_v12 = vstv %s4811_s25 }
 0x78a   :  { %v4818_v35 = vadd.f32 %v4817_v12, %v4813_v60  ;;  %v4819_v18 = vadd.f32 %v4817_v12, %v4814_v42  ;;  %v4820_v52 = vadd.f32 %v4817_v12, %v4815_v2  ;;  %v4821_v13 = vadd.f32 %v4817_v12, %v4816_v62 }
 0x78c   :  { %4826 = vst.msk [vmem:[%s8796_s2 + $0x20] sm:$0xff] %vm4616_vm13, %v4818_v35 }
 0x78d   :  { %4827 = vst.msk [vmem:[%s8796_s2 + $0x28] sm:$0xf] %vm4618_vm14, %v4819_v18 }
 0x78e   :  { %4832 = vst.msk [vmem:[%s8796_s2 + $0x50] sm:$0xff] %vm4616_vm13, %v4820_v52 }
 0x78f   :  { %4833 = vst.msk [vmem:[%s8796_s2 + $0x58] sm:$0xf] %vm4618_vm14, %v4821_v13 }
 0x790   :  { %4838 = vsyncpa [#allocation3], 1 }
 0x791   :  { %4839 = vsyncpa [#allocation4], 1 }

</bundles_post_ra>
